<compile_context>
chip_gen: v7x
topology: tpu7x:2x2x1
jax: 0.10.0
libtpu: 0.0.40
codegen_flags: <defaults>
</compile_context>

<pallas_src>
import functools
import numpy as np
import jax
import jax.numpy as jnp
from jax.experimental import pallas as pl
from jax.experimental.pallas import tpu as pltpu

COUT = 64
CIN = 3
KH = KW = 3
TB = 8          # rows per sub-band matmul (keeps the banded K small)


def _pick_th(h):
    """Rows of output per grid step (must divide H, multiple of 8 preferred)."""
    for cand in (64, 32, 16, 8):
        if h % cand == 0:
            return cand
    # TODO(synk): heights that are not a multiple of 8 fall back to a single
    # whole-image band; the in-kernel reshape may then cost a relayout.
    return h


def _conv_bn_relu_kernel(x_ref, wb_ref, bias_ref, o_ref, *, th, tb, kb, w_out):
    # x_ref   : (3, Hp, Wp)       bf16  whole padded image (resident per batch)
    # wb_ref  : (9, 64*tb, kb)    bf16  banded, BN-scale-folded conv weights
    # bias_ref: (64*tb, 1)        f32   BN bias per (out-channel, row-in-band)
    # o_ref   : (64, th, W)       NCHW row-block of the output
    i = pl.program_id(1)
    for sb in range(th // tb):
        row0 = pl.multiple_of(i * th + sb * tb, tb)
        acc = None
        for t in range(9):                       # t = cin * 3 + kx
            c, kx = t // 3, t % 3
            s = x_ref[c, pl.ds(row0, kb), pl.ds(kx, w_out)]        # (kb, W)
            p = jnp.dot(wb_ref[t], s, preferred_element_type=jnp.float32)
            acc = p if acc is None else acc + p                    # (64*tb, W)
        r = jnp.maximum(acc + bias_ref[...], 0.0)                  # f32 epilogue
        o_ref[:, sb * tb:(sb + 1) * tb, :] = (
            r.reshape(COUT, tb, w_out).astype(o_ref.dtype))


def first_conv_forward(x_nchw, w_conv, gamma, beta, running_mean, running_var,
                       eps=1e-5, out_dtype=jnp.float32):
    n, cin, h, w = x_nchw.shape
    assert cin == CIN and w_conv.shape == (COUT, CIN, KH, KW)

    th = _pick_th(h)
    tb = TB if th % TB == 0 else th
    kb = ((tb + 2 + 15) // 16) * 16            # banded K, padded for alignment

    # ---- fold BN (inference form) into the conv weights, in f32 ------------
    inv_std = 1.0 / jnp.sqrt(running_var + eps)
    scale = gamma * inv_std                                     # (64,)
    bias = beta - running_mean * scale                          # (64,)
    w_scaled = w_conv * scale[:, None, None, None]              # (64,3,3,3) f32

    # ---- banded weights: fold the ky taps into the contraction dim ---------
    # wb[c*3+kx][o*tb + j, d] = w_scaled[o, c, d - j, kx]  if 0 <= d - j <= 2
    j = jnp.arange(tb)[:, None]                                 # (tb, 1)
    d = jnp.arange(kb)[None, :]                                 # (1, kb)
    ky = d - j
    valid = (ky >= 0) & (ky <= 2)                               # (tb, kb)
    wt = jnp.transpose(w_scaled, (1, 3, 0, 2))                  # (c, kx, o, ky)
    wb = jnp.where(valid, wt[..., jnp.clip(ky, 0, 2)], 0.0)     # (c,kx,o,tb,kb)
    wb = wb.reshape(9, COUT * tb, kb).astype(jnp.bfloat16)

    bias_flat = jnp.repeat(bias, tb).reshape(COUT * tb, 1).astype(jnp.float32)

    # ---- 1-px zero halo (plus alignment rows at the bottom), bf16, NCHW ----
    pad_bottom = kb - tb - 1
    xp = jnp.pad(x_nchw.astype(jnp.bfloat16),
                 ((0, 0), (0, 0), (1, pad_bottom), (1, 1)))     # (N,3,Hp,Wp)
    hp, wp = xp.shape[2], xp.shape[3]

    kernel = functools.partial(_conv_bn_relu_kernel,
                               th=th, tb=tb, kb=kb, w_out=w)

    return pl.pallas_call(
        kernel,
        out_shape=jax.ShapeDtypeStruct((n, COUT, h, w), out_dtype),
        grid=(n, h // th),
        in_specs=[
            # whole padded image, resident across the row-block axis
            pl.BlockSpec((None, CIN, hp, wp), lambda b, i: (b, 0, 0, 0)),
            # banded weights / bias: DMA'd once, VMEM-resident for all steps
            pl.BlockSpec((9, COUT * tb, kb), lambda b, i: (0, 0, 0)),
            pl.BlockSpec((COUT * tb, 1), lambda b, i: (0, 0)),
        ],
        out_specs=pl.BlockSpec((None, COUT, th, w), lambda b, i: (b, 0, i, 0)),
        compiler_params=pltpu.CompilerParams(
            dimension_semantics=("parallel", "arbitrary"),
            vmem_limit_bytes=48 * 1024 * 1024,   # headroom on v7x's 64 MiB/TC
        ),
    )(xp, wb, bias_flat)


# ---------------------------------------------------------------------------
# Pure-JAX reference (f32) for a tolerance check
# ---------------------------------------------------------------------------
def reference_forward(x_nchw, w_conv, gamma, beta, running_mean, running_var,
                      eps=1e-5):
    y = jax.lax.conv_general_dilated(
        x_nchw, w_conv, (1, 1), ((1, 1), (1, 1)),
        dimension_numbers=("NCHW", "OIHW", "NCHW"),
        precision=jax.lax.Precision.HIGHEST)
    inv_std = 1.0 / jnp.sqrt(running_var + eps)
    s = (gamma * inv_std).reshape(1, -1, 1, 1)
    b = (beta - running_mean * gamma * inv_std).reshape(1, -1, 1, 1)
    return jnp.maximum(y * s + b, 0.0)


# ---------------------------------------------------------------------------
if __name__ == "__main__":
    key = jax.random.PRNGKey(0)
    kx_, kw_, kg_, kb_, km_, kv_ = jax.random.split(key, 6)

    N, H, W = 2, 32, 32

    x = jax.random.normal(kx_, (N, CIN, H, W), jnp.float32)
    w_conv = (jax.random.normal(kw_, (COUT, CIN, KH, KW), jnp.float32)
              * (1.0 / np.sqrt(CIN * KH * KW)))
    gamma = 1.0 + 0.1 * jax.random.normal(kg_, (COUT,), jnp.float32)
    beta = 0.1 * jax.random.normal(kb_, (COUT,), jnp.float32)
    running_mean = 0.1 * jax.random.normal(km_, (COUT,), jnp.float32)
    running_var = jax.random.uniform(kv_, (COUT,), jnp.float32, 0.5, 1.5)

    fwd = jax.jit(first_conv_forward)
    out = jax.block_until_ready(fwd(x, w_conv, gamma, beta,
                                    running_mean, running_var))

    assert out.shape == (N, COUT, H, W)
    assert bool(jnp.all(jnp.isfinite(out)))

    ref = reference_forward(x, w_conv, gamma, beta, running_mean, running_var)
    max_abs_diff = float(jnp.max(jnp.abs(out - ref)))
    assert max_abs_diff < 0.15, f"max abs diff too large: {max_abs_diff}"

    print("KERNEL_OK")
</pallas_src>

<mosaic_0001>
module attributes {stable_mosaic.version = 11 : i64} {
  func.func @_conv_bn_relu_kernel(%arg0: i32, %arg1: i32, %arg2: memref<1x3x40x34xbf16, #tpu.memory_space<vmem>>, %arg3: memref<9x512x16xbf16, #tpu.memory_space<vmem>>, %arg4: memref<512x1xf32, #tpu.memory_space<vmem>>, %arg5: memref<1x64x32x32xf32, #tpu.memory_space<vmem>>) attributes {dimension_semantics = [#tpu.dimension_semantics<parallel>, #tpu.dimension_semantics<arbitrary>], iteration_bounds = array<i64: 2, 1>, scalar_prefetch = 0 : i64, scratch_operands = 0 : i64, tpu.core_type = #tpu.core_type<tc>, window_params = [{transform_indices = @transform_0, window_bounds = array<i64: 1, 3, 40, 34>}, {pipeline_mode = #tpu.pipeline_mode<synchronous>, transform_indices = @transform_1, window_bounds = array<i64: 9, 512, 16>}, {pipeline_mode = #tpu.pipeline_mode<synchronous>, transform_indices = @transform_2, window_bounds = array<i64: 512, 1>}, {transform_indices = @transform_3, window_bounds = array<i64: 1, 64, 32, 32>}]} {
    %c32_i32 = arith.constant 32 : i32
    %0 = arith.muli %arg1, %c32_i32 : i32
    %c0_i32 = arith.constant 0 : i32
    %1 = arith.addi %0, %c0_i32 : i32
    %2 = tpu.assume_multiple %1, 8 : i32
    %c0 = arith.constant 0 : index
    %c0_0 = arith.constant 0 : index
    %3 = arith.index_cast %2 : i32 to index
    %c0_1 = arith.constant 0 : index
    %4 = vector.load %arg2[%c0, %c0_0, %3, %c0_1] : memref<1x3x40x34xbf16, #tpu.memory_space<vmem>>, vector<1x1x16x32xbf16>
    %5 = vector.shape_cast %4 : vector<1x1x16x32xbf16> to vector<16x32xbf16>
    %c0_2 = arith.constant 0 : index
    %c0_3 = arith.constant 0 : index
    %c0_4 = arith.constant 0 : index
    %6 = vector.load %arg3[%c0_2, %c0_3, %c0_4] : memref<9x512x16xbf16, #tpu.memory_space<vmem>>, vector<1x512x16xbf16>
    %7 = vector.shape_cast %6 : vector<1x512x16xbf16> to vector<512x16xbf16>
    %cst = arith.constant dense<0.000000e+00> : vector<512x32xf32>
    %8 = tpu.matmul %7, %5, %cst {dimension_numbers = #tpu.dot_dimension_numbers<[1], [0], [0], [1], [0, 0, 1, 1], [], []>} : vector<512x16xbf16>, vector<16x32xbf16>, vector<512x32xf32> -> vector<512x32xf32>
    %c0_5 = arith.constant 0 : index
    %c0_6 = arith.constant 0 : index
    %9 = arith.index_cast %2 : i32 to index
    %c1 = arith.constant 1 : index
    %10 = vector.load %arg2[%c0_5, %c0_6, %9, %c1] : memref<1x3x40x34xbf16, #tpu.memory_space<vmem>>, vector<1x1x16x32xbf16>
    %11 = vector.shape_cast %10 : vector<1x1x16x32xbf16> to vector<16x32xbf16>
    %c1_7 = arith.constant 1 : index
    %c0_8 = arith.constant 0 : index
    %c0_9 = arith.constant 0 : index
    %12 = vector.load %arg3[%c1_7, %c0_8, %c0_9] : memref<9x512x16xbf16, #tpu.memory_space<vmem>>, vector<1x512x16xbf16>
    %13 = vector.shape_cast %12 : vector<1x512x16xbf16> to vector<512x16xbf16>
    %cst_10 = arith.constant dense<0.000000e+00> : vector<512x32xf32>
    %14 = tpu.matmul %13, %11, %cst_10 {dimension_numbers = #tpu.dot_dimension_numbers<[1], [0], [0], [1], [0, 0, 1, 1], [], []>} : vector<512x16xbf16>, vector<16x32xbf16>, vector<512x32xf32> -> vector<512x32xf32>
    %15 = arith.addf %8, %14 : vector<512x32xf32>
    %c0_11 = arith.constant 0 : index
    %c0_12 = arith.constant 0 : index
    %16 = arith.index_cast %2 : i32 to index
    %c2 = arith.constant 2 : index
    %17 = vector.load %arg2[%c0_11, %c0_12, %16, %c2] : memref<1x3x40x34xbf16, #tpu.memory_space<vmem>>, vector<1x1x16x32xbf16>
    %18 = vector.shape_cast %17 : vector<1x1x16x32xbf16> to vector<16x32xbf16>
    %c2_13 = arith.constant 2 : index
    %c0_14 = arith.constant 0 : index
    %c0_15 = arith.constant 0 : index
    %19 = vector.load %arg3[%c2_13, %c0_14, %c0_15] : memref<9x512x16xbf16, #tpu.memory_space<vmem>>, vector<1x512x16xbf16>
    %20 = vector.shape_cast %19 : vector<1x512x16xbf16> to vector<512x16xbf16>
    %cst_16 = arith.constant dense<0.000000e+00> : vector<512x32xf32>
    %21 = tpu.matmul %20, %18, %cst_16 {dimension_numbers = #tpu.dot_dimension_numbers<[1], [0], [0], [1], [0, 0, 1, 1], [], []>} : vector<512x16xbf16>, vector<16x32xbf16>, vector<512x32xf32> -> vector<512x32xf32>
    %22 = arith.addf %15, %21 : vector<512x32xf32>
    %c0_17 = arith.constant 0 : index
    %c1_18 = arith.constant 1 : index
    %23 = arith.index_cast %2 : i32 to index
    %c0_19 = arith.constant 0 : index
    %24 = vector.load %arg2[%c0_17, %c1_18, %23, %c0_19] : memref<1x3x40x34xbf16, #tpu.memory_space<vmem>>, vector<1x1x16x32xbf16>
    %25 = vector.shape_cast %24 : vector<1x1x16x32xbf16> to vector<16x32xbf16>
    %c3 = arith.constant 3 : index
    %c0_20 = arith.constant 0 : index
    %c0_21 = arith.constant 0 : index
    %26 = vector.load %arg3[%c3, %c0_20, %c0_21] : memref<9x512x16xbf16, #tpu.memory_space<vmem>>, vector<1x512x16xbf16>
    %27 = vector.shape_cast %26 : vector<1x512x16xbf16> to vector<512x16xbf16>
    %cst_22 = arith.constant dense<0.000000e+00> : vector<512x32xf32>
    %28 = tpu.matmul %27, %25, %cst_22 {dimension_numbers = #tpu.dot_dimension_numbers<[1], [0], [0], [1], [0, 0, 1, 1], [], []>} : vector<512x16xbf16>, vector<16x32xbf16>, vector<512x32xf32> -> vector<512x32xf32>
    %29 = arith.addf %22, %28 : vector<512x32xf32>
    %c0_23 = arith.constant 0 : index
    %c1_24 = arith.constant 1 : index
    %30 = arith.index_cast %2 : i32 to index
    %c1_25 = arith.constant 1 : index
    %31 = vector.load %arg2[%c0_23, %c1_24, %30, %c1_25] : memref<1x3x40x34xbf16, #tpu.memory_space<vmem>>, vector<1x1x16x32xbf16>
    %32 = vector.shape_cast %31 : vector<1x1x16x32xbf16> to vector<16x32xbf16>
    %c4 = arith.constant 4 : index
    %c0_26 = arith.constant 0 : index
    %c0_27 = arith.constant 0 : index
    %33 = vector.load %arg3[%c4, %c0_26, %c0_27] : memref<9x512x16xbf16, #tpu.memory_space<vmem>>, vector<1x512x16xbf16>
    %34 = vector.shape_cast %33 : vector<1x512x16xbf16> to vector<512x16xbf16>
    %cst_28 = arith.constant dense<0.000000e+00> : vector<512x32xf32>
    %35 = tpu.matmul %34, %32, %cst_28 {dimension_numbers = #tpu.dot_dimension_numbers<[1], [0], [0], [1], [0, 0, 1, 1], [], []>} : vector<512x16xbf16>, vector<16x32xbf16>, vector<512x32xf32> -> vector<512x32xf32>
    %36 = arith.addf %29, %35 : vector<512x32xf32>
    %c0_29 = arith.constant 0 : index
    %c1_30 = arith.constant 1 : index
    %37 = arith.index_cast %2 : i32 to index
    %c2_31 = arith.constant 2 : index
    %38 = vector.load %arg2[%c0_29, %c1_30, %37, %c2_31] : memref<1x3x40x34xbf16, #tpu.memory_space<vmem>>, vector<1x1x16x32xbf16>
    %39 = vector.shape_cast %38 : vector<1x1x16x32xbf16> to vector<16x32xbf16>
    %c5 = arith.constant 5 : index
    %c0_32 = arith.constant 0 : index
    %c0_33 = arith.constant 0 : index
    %40 = vector.load %arg3[%c5, %c0_32, %c0_33] : memref<9x512x16xbf16, #tpu.memory_space<vmem>>, vector<1x512x16xbf16>
    %41 = vector.shape_cast %40 : vector<1x512x16xbf16> to vector<512x16xbf16>
    %cst_34 = arith.constant dense<0.000000e+00> : vector<512x32xf32>
    %42 = tpu.matmul %41, %39, %cst_34 {dimension_numbers = #tpu.dot_dimension_numbers<[1], [0], [0], [1], [0, 0, 1, 1], [], []>} : vector<512x16xbf16>, vector<16x32xbf16>, vector<512x32xf32> -> vector<512x32xf32>
    %43 = arith.addf %36, %42 : vector<512x32xf32>
    %c0_35 = arith.constant 0 : index
    %c2_36 = arith.constant 2 : index
    %44 = arith.index_cast %2 : i32 to index
    %c0_37 = arith.constant 0 : index
    %45 = vector.load %arg2[%c0_35, %c2_36, %44, %c0_37] : memref<1x3x40x34xbf16, #tpu.memory_space<vmem>>, vector<1x1x16x32xbf16>
    %46 = vector.shape_cast %45 : vector<1x1x16x32xbf16> to vector<16x32xbf16>
    %c6 = arith.constant 6 : index
    %c0_38 = arith.constant 0 : index
    %c0_39 = arith.constant 0 : index
    %47 = vector.load %arg3[%c6, %c0_38, %c0_39] : memref<9x512x16xbf16, #tpu.memory_space<vmem>>, vector<1x512x16xbf16>
    %48 = vector.shape_cast %47 : vector<1x512x16xbf16> to vector<512x16xbf16>
    %cst_40 = arith.constant dense<0.000000e+00> : vector<512x32xf32>
    %49 = tpu.matmul %48, %46, %cst_40 {dimension_numbers = #tpu.dot_dimension_numbers<[1], [0], [0], [1], [0, 0, 1, 1], [], []>} : vector<512x16xbf16>, vector<16x32xbf16>, vector<512x32xf32> -> vector<512x32xf32>
    %50 = arith.addf %43, %49 : vector<512x32xf32>
    %c0_41 = arith.constant 0 : index
    %c2_42 = arith.constant 2 : index
    %51 = arith.index_cast %2 : i32 to index
    %c1_43 = arith.constant 1 : index
    %52 = vector.load %arg2[%c0_41, %c2_42, %51, %c1_43] : memref<1x3x40x34xbf16, #tpu.memory_space<vmem>>, vector<1x1x16x32xbf16>
    %53 = vector.shape_cast %52 : vector<1x1x16x32xbf16> to vector<16x32xbf16>
    %c7 = arith.constant 7 : index
    %c0_44 = arith.constant 0 : index
    %c0_45 = arith.constant 0 : index
    %54 = vector.load %arg3[%c7, %c0_44, %c0_45] : memref<9x512x16xbf16, #tpu.memory_space<vmem>>, vector<1x512x16xbf16>
    %55 = vector.shape_cast %54 : vector<1x512x16xbf16> to vector<512x16xbf16>
    %cst_46 = arith.constant dense<0.000000e+00> : vector<512x32xf32>
    %56 = tpu.matmul %55, %53, %cst_46 {dimension_numbers = #tpu.dot_dimension_numbers<[1], [0], [0], [1], [0, 0, 1, 1], [], []>} : vector<512x16xbf16>, vector<16x32xbf16>, vector<512x32xf32> -> vector<512x32xf32>
    %57 = arith.addf %50, %56 : vector<512x32xf32>
    %c0_47 = arith.constant 0 : index
    %c2_48 = arith.constant 2 : index
    %58 = arith.index_cast %2 : i32 to index
    %c2_49 = arith.constant 2 : index
    %59 = vector.load %arg2[%c0_47, %c2_48, %58, %c2_49] : memref<1x3x40x34xbf16, #tpu.memory_space<vmem>>, vector<1x1x16x32xbf16>
    %60 = vector.shape_cast %59 : vector<1x1x16x32xbf16> to vector<16x32xbf16>
    %c8 = arith.constant 8 : index
    %c0_50 = arith.constant 0 : index
    %c0_51 = arith.constant 0 : index
    %61 = vector.load %arg3[%c8, %c0_50, %c0_51] : memref<9x512x16xbf16, #tpu.memory_space<vmem>>, vector<1x512x16xbf16>
    %62 = vector.shape_cast %61 : vector<1x512x16xbf16> to vector<512x16xbf16>
    %cst_52 = arith.constant dense<0.000000e+00> : vector<512x32xf32>
    %63 = tpu.matmul %62, %60, %cst_52 {dimension_numbers = #tpu.dot_dimension_numbers<[1], [0], [0], [1], [0, 0, 1, 1], [], []>} : vector<512x16xbf16>, vector<16x32xbf16>, vector<512x32xf32> -> vector<512x32xf32>
    %64 = arith.addf %57, %63 : vector<512x32xf32>
    %c0_53 = arith.constant 0 : index
    %c0_54 = arith.constant 0 : index
    %65 = vector.load %arg4[%c0_53, %c0_54] : memref<512x1xf32, #tpu.memory_space<vmem>>, vector<512x1xf32>
    %66 = vector.broadcast %65 : vector<512x1xf32> to vector<512x32xf32>
    %67 = arith.addf %64, %66 : vector<512x32xf32>
    %cst_55 = arith.constant 0.000000e+00 : f32
    %68 = vector.broadcast %cst_55 : f32 to vector<512x32xf32>
    %69 = arith.maximumf %67, %68 : vector<512x32xf32>
    %70 = vector.shape_cast %69 : vector<512x32xf32> to vector<64x8x32xf32>
    %c0_56 = arith.constant 0 : index
    %c0_57 = arith.constant 0 : index
    %c0_58 = arith.constant 0 : index
    %c0_59 = arith.constant 0 : index
    %71 = vector.load %arg5[%c0_56, %c0_57, %c0_58, %c0_59] : memref<1x64x32x32xf32, #tpu.memory_space<vmem>>, vector<1x64x8x32xf32>
    %72 = vector.shape_cast %71 : vector<1x64x8x32xf32> to vector<64x8x32xf32>
    %73 = vector.shape_cast %70 : vector<64x8x32xf32> to vector<1x64x8x32xf32>
    tpu.vector_store %arg5[%c0_56, %c0_57, %c0_58, %c0_59], %73 {strides = array<i32>} : memref<1x64x32x32xf32, #tpu.memory_space<vmem>>, vector<1x64x8x32xf32>,
    %c32_i32_60 = arith.constant 32 : i32
    %74 = arith.muli %arg1, %c32_i32_60 : i32
    %c8_i32 = arith.constant 8 : i32
    %75 = arith.addi %74, %c8_i32 : i32
    %76 = tpu.assume_multiple %75, 8 : i32
    %c0_61 = arith.constant 0 : index
    %c0_62 = arith.constant 0 : index
    %77 = arith.index_cast %76 : i32 to index
    %c0_63 = arith.constant 0 : index
    %78 = vector.load %arg2[%c0_61, %c0_62, %77, %c0_63] : memref<1x3x40x34xbf16, #tpu.memory_space<vmem>>, vector<1x1x16x32xbf16>
    %79 = vector.shape_cast %78 : vector<1x1x16x32xbf16> to vector<16x32xbf16>
    %c0_64 = arith.constant 0 : index
    %c0_65 = arith.constant 0 : index
    %c0_66 = arith.constant 0 : index
    %80 = vector.load %arg3[%c0_64, %c0_65, %c0_66] : memref<9x512x16xbf16, #tpu.memory_space<vmem>>, vector<1x512x16xbf16>
    %81 = vector.shape_cast %80 : vector<1x512x16xbf16> to vector<512x16xbf16>
    %cst_67 = arith.constant dense<0.000000e+00> : vector<512x32xf32>
    %82 = tpu.matmul %81, %79, %cst_67 {dimension_numbers = #tpu.dot_dimension_numbers<[1], [0], [0], [1], [0, 0, 1, 1], [], []>} : vector<512x16xbf16>, vector<16x32xbf16>, vector<512x32xf32> -> vector<512x32xf32>
    %c0_68 = arith.constant 0 : index
    %c0_69 = arith.constant 0 : index
    %83 = arith.index_cast %76 : i32 to index
    %c1_70 = arith.constant 1 : index
    %84 = vector.load %arg2[%c0_68, %c0_69, %83, %c1_70] : memref<1x3x40x34xbf16, #tpu.memory_space<vmem>>, vector<1x1x16x32xbf16>
    %85 = vector.shape_cast %84 : vector<1x1x16x32xbf16> to vector<16x32xbf16>
    %c1_71 = arith.constant 1 : index
    %c0_72 = arith.constant 0 : index
    %c0_73 = arith.constant 0 : index
    %86 = vector.load %arg3[%c1_71, %c0_72, %c0_73] : memref<9x512x16xbf16, #tpu.memory_space<vmem>>, vector<1x512x16xbf16>
    %87 = vector.shape_cast %86 : vector<1x512x16xbf16> to vector<512x16xbf16>
    %cst_74 = arith.constant dense<0.000000e+00> : vector<512x32xf32>
    %88 = tpu.matmul %87, %85, %cst_74 {dimension_numbers = #tpu.dot_dimension_numbers<[1], [0], [0], [1], [0, 0, 1, 1], [], []>} : vector<512x16xbf16>, vector<16x32xbf16>, vector<512x32xf32> -> vector<512x32xf32>
    %89 = arith.addf %82, %88 : vector<512x32xf32>
    %c0_75 = arith.constant 0 : index
    %c0_76 = arith.constant 0 : index
    %90 = arith.index_cast %76 : i32 to index
    %c2_77 = arith.constant 2 : index
    %91 = vector.load %arg2[%c0_75, %c0_76, %90, %c2_77] : memref<1x3x40x34xbf16, #tpu.memory_space<vmem>>, vector<1x1x16x32xbf16>
    %92 = vector.shape_cast %91 : vector<1x1x16x32xbf16> to vector<16x32xbf16>
    %c2_78 = arith.constant 2 : index
    %c0_79 = arith.constant 0 : index
    %c0_80 = arith.constant 0 : index
    %93 = vector.load %arg3[%c2_78, %c0_79, %c0_80] : memref<9x512x16xbf16, #tpu.memory_space<vmem>>, vector<1x512x16xbf16>
    %94 = vector.shape_cast %93 : vector<1x512x16xbf16> to vector<512x16xbf16>
    %cst_81 = arith.constant dense<0.000000e+00> : vector<512x32xf32>
    %95 = tpu.matmul %94, %92, %cst_81 {dimension_numbers = #tpu.dot_dimension_numbers<[1], [0], [0], [1], [0, 0, 1, 1], [], []>} : vector<512x16xbf16>, vector<16x32xbf16>, vector<512x32xf32> -> vector<512x32xf32>
    %96 = arith.addf %89, %95 : vector<512x32xf32>
    %c0_82 = arith.constant 0 : index
    %c1_83 = arith.constant 1 : index
    %97 = arith.index_cast %76 : i32 to index
    %c0_84 = arith.constant 0 : index
    %98 = vector.load %arg2[%c0_82, %c1_83, %97, %c0_84] : memref<1x3x40x34xbf16, #tpu.memory_space<vmem>>, vector<1x1x16x32xbf16>
    %99 = vector.shape_cast %98 : vector<1x1x16x32xbf16> to vector<16x32xbf16>
    %c3_85 = arith.constant 3 : index
    %c0_86 = arith.constant 0 : index
    %c0_87 = arith.constant 0 : index
    %100 = vector.load %arg3[%c3_85, %c0_86, %c0_87] : memref<9x512x16xbf16, #tpu.memory_space<vmem>>, vector<1x512x16xbf16>
    %101 = vector.shape_cast %100 : vector<1x512x16xbf16> to vector<512x16xbf16>
    %cst_88 = arith.constant dense<0.000000e+00> : vector<512x32xf32>
    %102 = tpu.matmul %101, %99, %cst_88 {dimension_numbers = #tpu.dot_dimension_numbers<[1], [0], [0], [1], [0, 0, 1, 1], [], []>} : vector<512x16xbf16>, vector<16x32xbf16>, vector<512x32xf32> -> vector<512x32xf32>
    %103 = arith.addf %96, %102 : vector<512x32xf32>
    %c0_89 = arith.constant 0 : index
    %c1_90 = arith.constant 1 : index
    %104 = arith.index_cast %76 : i32 to index
    %c1_91 = arith.constant 1 : index
    %105 = vector.load %arg2[%c0_89, %c1_90, %104, %c1_91] : memref<1x3x40x34xbf16, #tpu.memory_space<vmem>>, vector<1x1x16x32xbf16>
    %106 = vector.shape_cast %105 : vector<1x1x16x32xbf16> to vector<16x32xbf16>
    %c4_92 = arith.constant 4 : index
    %c0_93 = arith.constant 0 : index
    %c0_94 = arith.constant 0 : index
    %107 = vector.load %arg3[%c4_92, %c0_93, %c0_94] : memref<9x512x16xbf16, #tpu.memory_space<vmem>>, vector<1x512x16xbf16>
    %108 = vector.shape_cast %107 : vector<1x512x16xbf16> to vector<512x16xbf16>
    %cst_95 = arith.constant dense<0.000000e+00> : vector<512x32xf32>
    %109 = tpu.matmul %108, %106, %cst_95 {dimension_numbers = #tpu.dot_dimension_numbers<[1], [0], [0], [1], [0, 0, 1, 1], [], []>} : vector<512x16xbf16>, vector<16x32xbf16>, vector<512x32xf32> -> vector<512x32xf32>
    %110 = arith.addf %103, %109 : vector<512x32xf32>
    %c0_96 = arith.constant 0 : index
    %c1_97 = arith.constant 1 : index
    %111 = arith.index_cast %76 : i32 to index
    %c2_98 = arith.constant 2 : index
    %112 = vector.load %arg2[%c0_96, %c1_97, %111, %c2_98] : memref<1x3x40x34xbf16, #tpu.memory_space<vmem>>, vector<1x1x16x32xbf16>
    %113 = vector.shape_cast %112 : vector<1x1x16x32xbf16> to vector<16x32xbf16>
    %c5_99 = arith.constant 5 : index
    %c0_100 = arith.constant 0 : index
    %c0_101 = arith.constant 0 : index
    %114 = vector.load %arg3[%c5_99, %c0_100, %c0_101] : memref<9x512x16xbf16, #tpu.memory_space<vmem>>, vector<1x512x16xbf16>
    %115 = vector.shape_cast %114 : vector<1x512x16xbf16> to vector<512x16xbf16>
    %cst_102 = arith.constant dense<0.000000e+00> : vector<512x32xf32>
    %116 = tpu.matmul %115, %113, %cst_102 {dimension_numbers = #tpu.dot_dimension_numbers<[1], [0], [0], [1], [0, 0, 1, 1], [], []>} : vector<512x16xbf16>, vector<16x32xbf16>, vector<512x32xf32> -> vector<512x32xf32>
    %117 = arith.addf %110, %116 : vector<512x32xf32>
    %c0_103 = arith.constant 0 : index
    %c2_104 = arith.constant 2 : index
    %118 = arith.index_cast %76 : i32 to index
    %c0_105 = arith.constant 0 : index
    %119 = vector.load %arg2[%c0_103, %c2_104, %118, %c0_105] : memref<1x3x40x34xbf16, #tpu.memory_space<vmem>>, vector<1x1x16x32xbf16>
    %120 = vector.shape_cast %119 : vector<1x1x16x32xbf16> to vector<16x32xbf16>
    %c6_106 = arith.constant 6 : index
    %c0_107 = arith.constant 0 : index
    %c0_108 = arith.constant 0 : index
    %121 = vector.load %arg3[%c6_106, %c0_107, %c0_108] : memref<9x512x16xbf16, #tpu.memory_space<vmem>>, vector<1x512x16xbf16>
    %122 = vector.shape_cast %121 : vector<1x512x16xbf16> to vector<512x16xbf16>
    %cst_109 = arith.constant dense<0.000000e+00> : vector<512x32xf32>
    %123 = tpu.matmul %122, %120, %cst_109 {dimension_numbers = #tpu.dot_dimension_numbers<[1], [0], [0], [1], [0, 0, 1, 1], [], []>} : vector<512x16xbf16>, vector<16x32xbf16>, vector<512x32xf32> -> vector<512x32xf32>
    %124 = arith.addf %117, %123 : vector<512x32xf32>
    %c0_110 = arith.constant 0 : index
    %c2_111 = arith.constant 2 : index
    %125 = arith.index_cast %76 : i32 to index
    %c1_112 = arith.constant 1 : index
    %126 = vector.load %arg2[%c0_110, %c2_111, %125, %c1_112] : memref<1x3x40x34xbf16, #tpu.memory_space<vmem>>, vector<1x1x16x32xbf16>
    %127 = vector.shape_cast %126 : vector<1x1x16x32xbf16> to vector<16x32xbf16>
    %c7_113 = arith.constant 7 : index
    %c0_114 = arith.constant 0 : index
    %c0_115 = arith.constant 0 : index
    %128 = vector.load %arg3[%c7_113, %c0_114, %c0_115] : memref<9x512x16xbf16, #tpu.memory_space<vmem>>, vector<1x512x16xbf16>
    %129 = vector.shape_cast %128 : vector<1x512x16xbf16> to vector<512x16xbf16>
    %cst_116 = arith.constant dense<0.000000e+00> : vector<512x32xf32>
    %130 = tpu.matmul %129, %127, %cst_116 {dimension_numbers = #tpu.dot_dimension_numbers<[1], [0], [0], [1], [0, 0, 1, 1], [], []>} : vector<512x16xbf16>, vector<16x32xbf16>, vector<512x32xf32> -> vector<512x32xf32>
    %131 = arith.addf %124, %130 : vector<512x32xf32>
    %c0_117 = arith.constant 0 : index
    %c2_118 = arith.constant 2 : index
    %132 = arith.index_cast %76 : i32 to index
    %c2_119 = arith.constant 2 : index
    %133 = vector.load %arg2[%c0_117, %c2_118, %132, %c2_119] : memref<1x3x40x34xbf16, #tpu.memory_space<vmem>>, vector<1x1x16x32xbf16>
    %134 = vector.shape_cast %133 : vector<1x1x16x32xbf16> to vector<16x32xbf16>
    %c8_120 = arith.constant 8 : index
    %c0_121 = arith.constant 0 : index
    %c0_122 = arith.constant 0 : index
    %135 = vector.load %arg3[%c8_120, %c0_121, %c0_122] : memref<9x512x16xbf16, #tpu.memory_space<vmem>>, vector<1x512x16xbf16>
    %136 = vector.shape_cast %135 : vector<1x512x16xbf16> to vector<512x16xbf16>
    %cst_123 = arith.constant dense<0.000000e+00> : vector<512x32xf32>
    %137 = tpu.matmul %136, %134, %cst_123 {dimension_numbers = #tpu.dot_dimension_numbers<[1], [0], [0], [1], [0, 0, 1, 1], [], []>} : vector<512x16xbf16>, vector<16x32xbf16>, vector<512x32xf32> -> vector<512x32xf32>
    %138 = arith.addf %131, %137 : vector<512x32xf32>
    %c0_124 = arith.constant 0 : index
    %c0_125 = arith.constant 0 : index
    %139 = vector.load %arg4[%c0_124, %c0_125] : memref<512x1xf32, #tpu.memory_space<vmem>>, vector<512x1xf32>
    %140 = vector.broadcast %139 : vector<512x1xf32> to vector<512x32xf32>
    %141 = arith.addf %138, %140 : vector<512x32xf32>
    %cst_126 = arith.constant 0.000000e+00 : f32
    %142 = vector.broadcast %cst_126 : f32 to vector<512x32xf32>
    %143 = arith.maximumf %141, %142 : vector<512x32xf32>
    %144 = vector.shape_cast %143 : vector<512x32xf32> to vector<64x8x32xf32>
    %c0_127 = arith.constant 0 : index
    %c0_128 = arith.constant 0 : index
    %c8_129 = arith.constant 8 : index
    %c0_130 = arith.constant 0 : index
    %145 = vector.load %arg5[%c0_127, %c0_128, %c8_129, %c0_130] : memref<1x64x32x32xf32, #tpu.memory_space<vmem>>, vector<1x64x8x32xf32>
    %146 = vector.shape_cast %145 : vector<1x64x8x32xf32> to vector<64x8x32xf32>
    %147 = vector.shape_cast %144 : vector<64x8x32xf32> to vector<1x64x8x32xf32>
    tpu.vector_store %arg5[%c0_127, %c0_128, %c8_129, %c0_130], %147 {strides = array<i32>} : memref<1x64x32x32xf32, #tpu.memory_space<vmem>>, vector<1x64x8x32xf32>,
    %c32_i32_131 = arith.constant 32 : i32
    %148 = arith.muli %arg1, %c32_i32_131 : i32
    %c16_i32 = arith.constant 16 : i32
    %149 = arith.addi %148, %c16_i32 : i32
    %150 = tpu.assume_multiple %149, 8 : i32
    %c0_132 = arith.constant 0 : index
    %c0_133 = arith.constant 0 : index
    %151 = arith.index_cast %150 : i32 to index
    %c0_134 = arith.constant 0 : index
    %152 = vector.load %arg2[%c0_132, %c0_133, %151, %c0_134] : memref<1x3x40x34xbf16, #tpu.memory_space<vmem>>, vector<1x1x16x32xbf16>
    %153 = vector.shape_cast %152 : vector<1x1x16x32xbf16> to vector<16x32xbf16>
    %c0_135 = arith.constant 0 : index
    %c0_136 = arith.constant 0 : index
    %c0_137 = arith.constant 0 : index
    %154 = vector.load %arg3[%c0_135, %c0_136, %c0_137] : memref<9x512x16xbf16, #tpu.memory_space<vmem>>, vector<1x512x16xbf16>
    %155 = vector.shape_cast %154 : vector<1x512x16xbf16> to vector<512x16xbf16>
    %cst_138 = arith.constant dense<0.000000e+00> : vector<512x32xf32>
    %156 = tpu.matmul %155, %153, %cst_138 {dimension_numbers = #tpu.dot_dimension_numbers<[1], [0], [0], [1], [0, 0, 1, 1], [], []>} : vector<512x16xbf16>, vector<16x32xbf16>, vector<512x32xf32> -> vector<512x32xf32>
    %c0_139 = arith.constant 0 : index
    %c0_140 = arith.constant 0 : index
    %157 = arith.index_cast %150 : i32 to index
    %c1_141 = arith.constant 1 : index
    %158 = vector.load %arg2[%c0_139, %c0_140, %157, %c1_141] : memref<1x3x40x34xbf16, #tpu.memory_space<vmem>>, vector<1x1x16x32xbf16>
    %159 = vector.shape_cast %158 : vector<1x1x16x32xbf16> to vector<16x32xbf16>
    %c1_142 = arith.constant 1 : index
    %c0_143 = arith.constant 0 : index
    %c0_144 = arith.constant 0 : index
    %160 = vector.load %arg3[%c1_142, %c0_143, %c0_144] : memref<9x512x16xbf16, #tpu.memory_space<vmem>>, vector<1x512x16xbf16>
    %161 = vector.shape_cast %160 : vector<1x512x16xbf16> to vector<512x16xbf16>
    %cst_145 = arith.constant dense<0.000000e+00> : vector<512x32xf32>
    %162 = tpu.matmul %161, %159, %cst_145 {dimension_numbers = #tpu.dot_dimension_numbers<[1], [0], [0], [1], [0, 0, 1, 1], [], []>} : vector<512x16xbf16>, vector<16x32xbf16>, vector<512x32xf32> -> vector<512x32xf32>
    %163 = arith.addf %156, %162 : vector<512x32xf32>
    %c0_146 = arith.constant 0 : index
    %c0_147 = arith.constant 0 : index
    %164 = arith.index_cast %150 : i32 to index
    %c2_148 = arith.constant 2 : index
    %165 = vector.load %arg2[%c0_146, %c0_147, %164, %c2_148] : memref<1x3x40x34xbf16, #tpu.memory_space<vmem>>, vector<1x1x16x32xbf16>
    %166 = vector.shape_cast %165 : vector<1x1x16x32xbf16> to vector<16x32xbf16>
    %c2_149 = arith.constant 2 : index
    %c0_150 = arith.constant 0 : index
    %c0_151 = arith.constant 0 : index
    %167 = vector.load %arg3[%c2_149, %c0_150, %c0_151] : memref<9x512x16xbf16, #tpu.memory_space<vmem>>, vector<1x512x16xbf16>
    %168 = vector.shape_cast %167 : vector<1x512x16xbf16> to vector<512x16xbf16>
    %cst_152 = arith.constant dense<0.000000e+00> : vector<512x32xf32>
    %169 = tpu.matmul %168, %166, %cst_152 {dimension_numbers = #tpu.dot_dimension_numbers<[1], [0], [0], [1], [0, 0, 1, 1], [], []>} : vector<512x16xbf16>, vector<16x32xbf16>, vector<512x32xf32> -> vector<512x32xf32>
    %170 = arith.addf %163, %169 : vector<512x32xf32>
    %c0_153 = arith.constant 0 : index
    %c1_154 = arith.constant 1 : index
    %171 = arith.index_cast %150 : i32 to index
    %c0_155 = arith.constant 0 : index
    %172 = vector.load %arg2[%c0_153, %c1_154, %171, %c0_155] : memref<1x3x40x34xbf16, #tpu.memory_space<vmem>>, vector<1x1x16x32xbf16>
    %173 = vector.shape_cast %172 : vector<1x1x16x32xbf16> to vector<16x32xbf16>
    %c3_156 = arith.constant 3 : index
    %c0_157 = arith.constant 0 : index
    %c0_158 = arith.constant 0 : index
    %174 = vector.load %arg3[%c3_156, %c0_157, %c0_158] : memref<9x512x16xbf16, #tpu.memory_space<vmem>>, vector<1x512x16xbf16>
    %175 = vector.shape_cast %174 : vector<1x512x16xbf16> to vector<512x16xbf16>
    %cst_159 = arith.constant dense<0.000000e+00> : vector<512x32xf32>
    %176 = tpu.matmul %175, %173, %cst_159 {dimension_numbers = #tpu.dot_dimension_numbers<[1], [0], [0], [1], [0, 0, 1, 1], [], []>} : vector<512x16xbf16>, vector<16x32xbf16>, vector<512x32xf32> -> vector<512x32xf32>
    %177 = arith.addf %170, %176 : vector<512x32xf32>
    %c0_160 = arith.constant 0 : index
    %c1_161 = arith.constant 1 : index
    %178 = arith.index_cast %150 : i32 to index
    %c1_162 = arith.constant 1 : index
    %179 = vector.load %arg2[%c0_160, %c1_161, %178, %c1_162] : memref<1x3x40x34xbf16, #tpu.memory_space<vmem>>, vector<1x1x16x32xbf16>
    %180 = vector.shape_cast %179 : vector<1x1x16x32xbf16> to vector<16x32xbf16>
    %c4_163 = arith.constant 4 : index
    %c0_164 = arith.constant 0 : index
    %c0_165 = arith.constant 0 : index
    %181 = vector.load %arg3[%c4_163, %c0_164, %c0_165] : memref<9x512x16xbf16, #tpu.memory_space<vmem>>, vector<1x512x16xbf16>
    %182 = vector.shape_cast %181 : vector<1x512x16xbf16> to vector<512x16xbf16>
    %cst_166 = arith.constant dense<0.000000e+00> : vector<512x32xf32>
    %183 = tpu.matmul %182, %180, %cst_166 {dimension_numbers = #tpu.dot_dimension_numbers<[1], [0], [0], [1], [0, 0, 1, 1], [], []>} : vector<512x16xbf16>, vector<16x32xbf16>, vector<512x32xf32> -> vector<512x32xf32>
    %184 = arith.addf %177, %183 : vector<512x32xf32>
    %c0_167 = arith.constant 0 : index
    %c1_168 = arith.constant 1 : index
    %185 = arith.index_cast %150 : i32 to index
    %c2_169 = arith.constant 2 : index
    %186 = vector.load %arg2[%c0_167, %c1_168, %185, %c2_169] : memref<1x3x40x34xbf16, #tpu.memory_space<vmem>>, vector<1x1x16x32xbf16>
    %187 = vector.shape_cast %186 : vector<1x1x16x32xbf16> to vector<16x32xbf16>
    %c5_170 = arith.constant 5 : index
    %c0_171 = arith.constant 0 : index
    %c0_172 = arith.constant 0 : index
    %188 = vector.load %arg3[%c5_170, %c0_171, %c0_172] : memref<9x512x16xbf16, #tpu.memory_space<vmem>>, vector<1x512x16xbf16>
    %189 = vector.shape_cast %188 : vector<1x512x16xbf16> to vector<512x16xbf16>
    %cst_173 = arith.constant dense<0.000000e+00> : vector<512x32xf32>
    %190 = tpu.matmul %189, %187, %cst_173 {dimension_numbers = #tpu.dot_dimension_numbers<[1], [0], [0], [1], [0, 0, 1, 1], [], []>} : vector<512x16xbf16>, vector<16x32xbf16>, vector<512x32xf32> -> vector<512x32xf32>
    %191 = arith.addf %184, %190 : vector<512x32xf32>
    %c0_174 = arith.constant 0 : index
    %c2_175 = arith.constant 2 : index
    %192 = arith.index_cast %150 : i32 to index
    %c0_176 = arith.constant 0 : index
    %193 = vector.load %arg2[%c0_174, %c2_175, %192, %c0_176] : memref<1x3x40x34xbf16, #tpu.memory_space<vmem>>, vector<1x1x16x32xbf16>
    %194 = vector.shape_cast %193 : vector<1x1x16x32xbf16> to vector<16x32xbf16>
    %c6_177 = arith.constant 6 : index
    %c0_178 = arith.constant 0 : index
    %c0_179 = arith.constant 0 : index
    %195 = vector.load %arg3[%c6_177, %c0_178, %c0_179] : memref<9x512x16xbf16, #tpu.memory_space<vmem>>, vector<1x512x16xbf16>
    %196 = vector.shape_cast %195 : vector<1x512x16xbf16> to vector<512x16xbf16>
    %cst_180 = arith.constant dense<0.000000e+00> : vector<512x32xf32>
    %197 = tpu.matmul %196, %194, %cst_180 {dimension_numbers = #tpu.dot_dimension_numbers<[1], [0], [0], [1], [0, 0, 1, 1], [], []>} : vector<512x16xbf16>, vector<16x32xbf16>, vector<512x32xf32> -> vector<512x32xf32>
    %198 = arith.addf %191, %197 : vector<512x32xf32>
    %c0_181 = arith.constant 0 : index
    %c2_182 = arith.constant 2 : index
    %199 = arith.index_cast %150 : i32 to index
    %c1_183 = arith.constant 1 : index
    %200 = vector.load %arg2[%c0_181, %c2_182, %199, %c1_183] : memref<1x3x40x34xbf16, #tpu.memory_space<vmem>>, vector<1x1x16x32xbf16>
    %201 = vector.shape_cast %200 : vector<1x1x16x32xbf16> to vector<16x32xbf16>
    %c7_184 = arith.constant 7 : index
    %c0_185 = arith.constant 0 : index
    %c0_186 = arith.constant 0 : index
    %202 = vector.load %arg3[%c7_184, %c0_185, %c0_186] : memref<9x512x16xbf16, #tpu.memory_space<vmem>>, vector<1x512x16xbf16>
    %203 = vector.shape_cast %202 : vector<1x512x16xbf16> to vector<512x16xbf16>
    %cst_187 = arith.constant dense<0.000000e+00> : vector<512x32xf32>
    %204 = tpu.matmul %203, %201, %cst_187 {dimension_numbers = #tpu.dot_dimension_numbers<[1], [0], [0], [1], [0, 0, 1, 1], [], []>} : vector<512x16xbf16>, vector<16x32xbf16>, vector<512x32xf32> -> vector<512x32xf32>
    %205 = arith.addf %198, %204 : vector<512x32xf32>
    %c0_188 = arith.constant 0 : index
    %c2_189 = arith.constant 2 : index
    %206 = arith.index_cast %150 : i32 to index
    %c2_190 = arith.constant 2 : index
    %207 = vector.load %arg2[%c0_188, %c2_189, %206, %c2_190] : memref<1x3x40x34xbf16, #tpu.memory_space<vmem>>, vector<1x1x16x32xbf16>
    %208 = vector.shape_cast %207 : vector<1x1x16x32xbf16> to vector<16x32xbf16>
    %c8_191 = arith.constant 8 : index
    %c0_192 = arith.constant 0 : index
    %c0_193 = arith.constant 0 : index
    %209 = vector.load %arg3[%c8_191, %c0_192, %c0_193] : memref<9x512x16xbf16, #tpu.memory_space<vmem>>, vector<1x512x16xbf16>
    %210 = vector.shape_cast %209 : vector<1x512x16xbf16> to vector<512x16xbf16>
    %cst_194 = arith.constant dense<0.000000e+00> : vector<512x32xf32>
    %211 = tpu.matmul %210, %208, %cst_194 {dimension_numbers = #tpu.dot_dimension_numbers<[1], [0], [0], [1], [0, 0, 1, 1], [], []>} : vector<512x16xbf16>, vector<16x32xbf16>, vector<512x32xf32> -> vector<512x32xf32>
    %212 = arith.addf %205, %211 : vector<512x32xf32>
    %c0_195 = arith.constant 0 : index
    %c0_196 = arith.constant 0 : index
    %213 = vector.load %arg4[%c0_195, %c0_196] : memref<512x1xf32, #tpu.memory_space<vmem>>, vector<512x1xf32>
    %214 = vector.broadcast %213 : vector<512x1xf32> to vector<512x32xf32>
    %215 = arith.addf %212, %214 : vector<512x32xf32>
    %cst_197 = arith.constant 0.000000e+00 : f32
    %216 = vector.broadcast %cst_197 : f32 to vector<512x32xf32>
    %217 = arith.maximumf %215, %216 : vector<512x32xf32>
    %218 = vector.shape_cast %217 : vector<512x32xf32> to vector<64x8x32xf32>
    %c0_198 = arith.constant 0 : index
    %c0_199 = arith.constant 0 : index
    %c16 = arith.constant 16 : index
    %c0_200 = arith.constant 0 : index
    %219 = vector.load %arg5[%c0_198, %c0_199, %c16, %c0_200] : memref<1x64x32x32xf32, #tpu.memory_space<vmem>>, vector<1x64x8x32xf32>
    %220 = vector.shape_cast %219 : vector<1x64x8x32xf32> to vector<64x8x32xf32>
    %221 = vector.shape_cast %218 : vector<64x8x32xf32> to vector<1x64x8x32xf32>
    tpu.vector_store %arg5[%c0_198, %c0_199, %c16, %c0_200], %221 {strides = array<i32>} : memref<1x64x32x32xf32, #tpu.memory_space<vmem>>, vector<1x64x8x32xf32>,
    %c32_i32_201 = arith.constant 32 : i32
    %222 = arith.muli %arg1, %c32_i32_201 : i32
    %c24_i32 = arith.constant 24 : i32
    %223 = arith.addi %222, %c24_i32 : i32
    %224 = tpu.assume_multiple %223, 8 : i32
    %c0_202 = arith.constant 0 : index
    %c0_203 = arith.constant 0 : index
    %225 = arith.index_cast %224 : i32 to index
    %c0_204 = arith.constant 0 : index
    %226 = vector.load %arg2[%c0_202, %c0_203, %225, %c0_204] : memref<1x3x40x34xbf16, #tpu.memory_space<vmem>>, vector<1x1x16x32xbf16>
    %227 = vector.shape_cast %226 : vector<1x1x16x32xbf16> to vector<16x32xbf16>
    %c0_205 = arith.constant 0 : index
    %c0_206 = arith.constant 0 : index
    %c0_207 = arith.constant 0 : index
    %228 = vector.load %arg3[%c0_205, %c0_206, %c0_207] : memref<9x512x16xbf16, #tpu.memory_space<vmem>>, vector<1x512x16xbf16>
    %229 = vector.shape_cast %228 : vector<1x512x16xbf16> to vector<512x16xbf16>
    %cst_208 = arith.constant dense<0.000000e+00> : vector<512x32xf32>
    %230 = tpu.matmul %229, %227, %cst_208 {dimension_numbers = #tpu.dot_dimension_numbers<[1], [0], [0], [1], [0, 0, 1, 1], [], []>} : vector<512x16xbf16>, vector<16x32xbf16>, vector<512x32xf32> -> vector<512x32xf32>
    %c0_209 = arith.constant 0 : index
    %c0_210 = arith.constant 0 : index
    %231 = arith.index_cast %224 : i32 to index
    %c1_211 = arith.constant 1 : index
    %232 = vector.load %arg2[%c0_209, %c0_210, %231, %c1_211] : memref<1x3x40x34xbf16, #tpu.memory_space<vmem>>, vector<1x1x16x32xbf16>
    %233 = vector.shape_cast %232 : vector<1x1x16x32xbf16> to vector<16x32xbf16>
    %c1_212 = arith.constant 1 : index
    %c0_213 = arith.constant 0 : index
    %c0_214 = arith.constant 0 : index
    %234 = vector.load %arg3[%c1_212, %c0_213, %c0_214] : memref<9x512x16xbf16, #tpu.memory_space<vmem>>, vector<1x512x16xbf16>
    %235 = vector.shape_cast %234 : vector<1x512x16xbf16> to vector<512x16xbf16>
    %cst_215 = arith.constant dense<0.000000e+00> : vector<512x32xf32>
    %236 = tpu.matmul %235, %233, %cst_215 {dimension_numbers = #tpu.dot_dimension_numbers<[1], [0], [0], [1], [0, 0, 1, 1], [], []>} : vector<512x16xbf16>, vector<16x32xbf16>, vector<512x32xf32> -> vector<512x32xf32>
    %237 = arith.addf %230, %236 : vector<512x32xf32>
    %c0_216 = arith.constant 0 : index
    %c0_217 = arith.constant 0 : index
    %238 = arith.index_cast %224 : i32 to index
    %c2_218 = arith.constant 2 : index
    %239 = vector.load %arg2[%c0_216, %c0_217, %238, %c2_218] : memref<1x3x40x34xbf16, #tpu.memory_space<vmem>>, vector<1x1x16x32xbf16>
    %240 = vector.shape_cast %239 : vector<1x1x16x32xbf16> to vector<16x32xbf16>
    %c2_219 = arith.constant 2 : index
    %c0_220 = arith.constant 0 : index
    %c0_221 = arith.constant 0 : index
    %241 = vector.load %arg3[%c2_219, %c0_220, %c0_221] : memref<9x512x16xbf16, #tpu.memory_space<vmem>>, vector<1x512x16xbf16>
    %242 = vector.shape_cast %241 : vector<1x512x16xbf16> to vector<512x16xbf16>
    %cst_222 = arith.constant dense<0.000000e+00> : vector<512x32xf32>
    %243 = tpu.matmul %242, %240, %cst_222 {dimension_numbers = #tpu.dot_dimension_numbers<[1], [0], [0], [1], [0, 0, 1, 1], [], []>} : vector<512x16xbf16>, vector<16x32xbf16>, vector<512x32xf32> -> vector<512x32xf32>
    %244 = arith.addf %237, %243 : vector<512x32xf32>
    %c0_223 = arith.constant 0 : index
    %c1_224 = arith.constant 1 : index
    %245 = arith.index_cast %224 : i32 to index
    %c0_225 = arith.constant 0 : index
    %246 = vector.load %arg2[%c0_223, %c1_224, %245, %c0_225] : memref<1x3x40x34xbf16, #tpu.memory_space<vmem>>, vector<1x1x16x32xbf16>
    %247 = vector.shape_cast %246 : vector<1x1x16x32xbf16> to vector<16x32xbf16>
    %c3_226 = arith.constant 3 : index
    %c0_227 = arith.constant 0 : index
    %c0_228 = arith.constant 0 : index
    %248 = vector.load %arg3[%c3_226, %c0_227, %c0_228] : memref<9x512x16xbf16, #tpu.memory_space<vmem>>, vector<1x512x16xbf16>
    %249 = vector.shape_cast %248 : vector<1x512x16xbf16> to vector<512x16xbf16>
    %cst_229 = arith.constant dense<0.000000e+00> : vector<512x32xf32>
    %250 = tpu.matmul %249, %247, %cst_229 {dimension_numbers = #tpu.dot_dimension_numbers<[1], [0], [0], [1], [0, 0, 1, 1], [], []>} : vector<512x16xbf16>, vector<16x32xbf16>, vector<512x32xf32> -> vector<512x32xf32>
    %251 = arith.addf %244, %250 : vector<512x32xf32>
    %c0_230 = arith.constant 0 : index
    %c1_231 = arith.constant 1 : index
    %252 = arith.index_cast %224 : i32 to index
    %c1_232 = arith.constant 1 : index
    %253 = vector.load %arg2[%c0_230, %c1_231, %252, %c1_232] : memref<1x3x40x34xbf16, #tpu.memory_space<vmem>>, vector<1x1x16x32xbf16>
    %254 = vector.shape_cast %253 : vector<1x1x16x32xbf16> to vector<16x32xbf16>
    %c4_233 = arith.constant 4 : index
    %c0_234 = arith.constant 0 : index
    %c0_235 = arith.constant 0 : index
    %255 = vector.load %arg3[%c4_233, %c0_234, %c0_235] : memref<9x512x16xbf16, #tpu.memory_space<vmem>>, vector<1x512x16xbf16>
    %256 = vector.shape_cast %255 : vector<1x512x16xbf16> to vector<512x16xbf16>
    %cst_236 = arith.constant dense<0.000000e+00> : vector<512x32xf32>
    %257 = tpu.matmul %256, %254, %cst_236 {dimension_numbers = #tpu.dot_dimension_numbers<[1], [0], [0], [1], [0, 0, 1, 1], [], []>} : vector<512x16xbf16>, vector<16x32xbf16>, vector<512x32xf32> -> vector<512x32xf32>
    %258 = arith.addf %251, %257 : vector<512x32xf32>
    %c0_237 = arith.constant 0 : index
    %c1_238 = arith.constant 1 : index
    %259 = arith.index_cast %224 : i32 to index
    %c2_239 = arith.constant 2 : index
    %260 = vector.load %arg2[%c0_237, %c1_238, %259, %c2_239] : memref<1x3x40x34xbf16, #tpu.memory_space<vmem>>, vector<1x1x16x32xbf16>
    %261 = vector.shape_cast %260 : vector<1x1x16x32xbf16> to vector<16x32xbf16>
    %c5_240 = arith.constant 5 : index
    %c0_241 = arith.constant 0 : index
    %c0_242 = arith.constant 0 : index
    %262 = vector.load %arg3[%c5_240, %c0_241, %c0_242] : memref<9x512x16xbf16, #tpu.memory_space<vmem>>, vector<1x512x16xbf16>
    %263 = vector.shape_cast %262 : vector<1x512x16xbf16> to vector<512x16xbf16>
    %cst_243 = arith.constant dense<0.000000e+00> : vector<512x32xf32>
    %264 = tpu.matmul %263, %261, %cst_243 {dimension_numbers = #tpu.dot_dimension_numbers<[1], [0], [0], [1], [0, 0, 1, 1], [], []>} : vector<512x16xbf16>, vector<16x32xbf16>, vector<512x32xf32> -> vector<512x32xf32>
    %265 = arith.addf %258, %264 : vector<512x32xf32>
    %c0_244 = arith.constant 0 : index
    %c2_245 = arith.constant 2 : index
    %266 = arith.index_cast %224 : i32 to index
    %c0_246 = arith.constant 0 : index
    %267 = vector.load %arg2[%c0_244, %c2_245, %266, %c0_246] : memref<1x3x40x34xbf16, #tpu.memory_space<vmem>>, vector<1x1x16x32xbf16>
    %268 = vector.shape_cast %267 : vector<1x1x16x32xbf16> to vector<16x32xbf16>
    %c6_247 = arith.constant 6 : index
    %c0_248 = arith.constant 0 : index
    %c0_249 = arith.constant 0 : index
    %269 = vector.load %arg3[%c6_247, %c0_248, %c0_249] : memref<9x512x16xbf16, #tpu.memory_space<vmem>>, vector<1x512x16xbf16>
    %270 = vector.shape_cast %269 : vector<1x512x16xbf16> to vector<512x16xbf16>
    %cst_250 = arith.constant dense<0.000000e+00> : vector<512x32xf32>
    %271 = tpu.matmul %270, %268, %cst_250 {dimension_numbers = #tpu.dot_dimension_numbers<[1], [0], [0], [1], [0, 0, 1, 1], [], []>} : vector<512x16xbf16>, vector<16x32xbf16>, vector<512x32xf32> -> vector<512x32xf32>
    %272 = arith.addf %265, %271 : vector<512x32xf32>
    %c0_251 = arith.constant 0 : index
    %c2_252 = arith.constant 2 : index
    %273 = arith.index_cast %224 : i32 to index
    %c1_253 = arith.constant 1 : index
    %274 = vector.load %arg2[%c0_251, %c2_252, %273, %c1_253] : memref<1x3x40x34xbf16, #tpu.memory_space<vmem>>, vector<1x1x16x32xbf16>
    %275 = vector.shape_cast %274 : vector<1x1x16x32xbf16> to vector<16x32xbf16>
    %c7_254 = arith.constant 7 : index
    %c0_255 = arith.constant 0 : index
    %c0_256 = arith.constant 0 : index
    %276 = vector.load %arg3[%c7_254, %c0_255, %c0_256] : memref<9x512x16xbf16, #tpu.memory_space<vmem>>, vector<1x512x16xbf16>
    %277 = vector.shape_cast %276 : vector<1x512x16xbf16> to vector<512x16xbf16>
    %cst_257 = arith.constant dense<0.000000e+00> : vector<512x32xf32>
    %278 = tpu.matmul %277, %275, %cst_257 {dimension_numbers = #tpu.dot_dimension_numbers<[1], [0], [0], [1], [0, 0, 1, 1], [], []>} : vector<512x16xbf16>, vector<16x32xbf16>, vector<512x32xf32> -> vector<512x32xf32>
    %279 = arith.addf %272, %278 : vector<512x32xf32>
    %c0_258 = arith.constant 0 : index
    %c2_259 = arith.constant 2 : index
    %280 = arith.index_cast %224 : i32 to index
    %c2_260 = arith.constant 2 : index
    %281 = vector.load %arg2[%c0_258, %c2_259, %280, %c2_260] : memref<1x3x40x34xbf16, #tpu.memory_space<vmem>>, vector<1x1x16x32xbf16>
    %282 = vector.shape_cast %281 : vector<1x1x16x32xbf16> to vector<16x32xbf16>
    %c8_261 = arith.constant 8 : index
    %c0_262 = arith.constant 0 : index
    %c0_263 = arith.constant 0 : index
    %283 = vector.load %arg3[%c8_261, %c0_262, %c0_263] : memref<9x512x16xbf16, #tpu.memory_space<vmem>>, vector<1x512x16xbf16>
    %284 = vector.shape_cast %283 : vector<1x512x16xbf16> to vector<512x16xbf16>
    %cst_264 = arith.constant dense<0.000000e+00> : vector<512x32xf32>
    %285 = tpu.matmul %284, %282, %cst_264 {dimension_numbers = #tpu.dot_dimension_numbers<[1], [0], [0], [1], [0, 0, 1, 1], [], []>} : vector<512x16xbf16>, vector<16x32xbf16>, vector<512x32xf32> -> vector<512x32xf32>
    %286 = arith.addf %279, %285 : vector<512x32xf32>
    %c0_265 = arith.constant 0 : index
    %c0_266 = arith.constant 0 : index
    %287 = vector.load %arg4[%c0_265, %c0_266] : memref<512x1xf32, #tpu.memory_space<vmem>>, vector<512x1xf32>
    %288 = vector.broadcast %287 : vector<512x1xf32> to vector<512x32xf32>
    %289 = arith.addf %286, %288 : vector<512x32xf32>
    %cst_267 = arith.constant 0.000000e+00 : f32
    %290 = vector.broadcast %cst_267 : f32 to vector<512x32xf32>
    %291 = arith.maximumf %289, %290 : vector<512x32xf32>
    %292 = vector.shape_cast %291 : vector<512x32xf32> to vector<64x8x32xf32>
    %c0_268 = arith.constant 0 : index
    %c0_269 = arith.constant 0 : index
    %c24 = arith.constant 24 : index
    %c0_270 = arith.constant 0 : index
    %293 = vector.load %arg5[%c0_268, %c0_269, %c24, %c0_270] : memref<1x64x32x32xf32, #tpu.memory_space<vmem>>, vector<1x64x8x32xf32>
    %294 = vector.shape_cast %293 : vector<1x64x8x32xf32> to vector<64x8x32xf32>
    %295 = vector.shape_cast %292 : vector<64x8x32xf32> to vector<1x64x8x32xf32>
    tpu.vector_store %arg5[%c0_268, %c0_269, %c24, %c0_270], %295 {strides = array<i32>} : memref<1x64x32x32xf32, #tpu.memory_space<vmem>>, vector<1x64x8x32xf32>,
    return
  }
  func.func @transform_0(%arg0: i32, %arg1: i32) -> (i32, i32, i32, i32) {
    %c0_i32 = arith.constant 0 : i32
    %c0_i32_0 = arith.constant 0 : i32
    %c0_i32_1 = arith.constant 0 : i32
    %c0_i32_2 = arith.constant 0 : i32
    return %arg0, %c0_i32, %c0_i32_0, %c0_i32_1 : i32, i32, i32, i32
  }
  func.func @transform_1(%arg0: i32, %arg1: i32) -> (i32, i32, i32) {
    %c0_i32 = arith.constant 0 : i32
    %c0_i32_0 = arith.constant 0 : i32
    %c0_i32_1 = arith.constant 0 : i32
    %c0_i32_2 = arith.constant 0 : i32
    return %c0_i32, %c0_i32_0, %c0_i32_1 : i32, i32, i32
  }
  func.func @transform_2(%arg0: i32, %arg1: i32) -> (i32, i32) {
    %c0_i32 = arith.constant 0 : i32
    %c0_i32_0 = arith.constant 0 : i32
    %c0_i32_1 = arith.constant 0 : i32
    return %c0_i32, %c0_i32_0 : i32, i32
  }
  func.func @transform_3(%arg0: i32, %arg1: i32) -> (i32, i32, i32, i32) {
    %c0_i32 = arith.constant 0 : i32
    %c0_i32_0 = arith.constant 0 : i32
    %c0_i32_1 = arith.constant 0 : i32
    return %arg0, %c0_i32, %arg1, %c0_i32_0 : i32, i32, i32, i32
  }
}

</mosaic_0001>

<bundles_post_ra>
// kernel: first_conv_forward.1
= control target key start
LH: loop header
LB: loop body
LE: loop exit
PB: predicated region body
PF: predicated region fallthrough
CT: control target
= control target key end

     0   :  { %s37830_s12 = smov 0   ;;  %s37832_s13 = smov 0   ;;  %s44728_s0 = inlined_call_operand.vmem [shape: bf16[2,3,40,34], index: 0, kind: input, shape index: {}]   ;;  %s44729_s1 = inlined_call_operand.vmem [shape: bf16[9,512,16], index: 1, kind: input, shape index: {}]   ;;  %s44730_s2 = inlined_call_operand.vmem [shape: f32[512,1], index: 2, kind: input, shape index: {}]   ;;  %s44731_s3 = inlined_call_operand.vmem [shape: f32[2,64,32,32], index: 3, kind: output, shape index: {}]  }
   0x1   :  { %s37834_s14 = smov 0  }
   0x2 LB: > { %s25_s15 = sadd.s32 1, %s37801_s13  ;;  %p26554_p0 = scmp.ge.s32.totalorder %s37805_s14, 1  ;;  %s37805_s14 = sphi %s37834_s14, %s13_s14   ;;  %s37801_s13 = sphi %s37832_s13, %s44991_s13   ;;  %s37797_s12 = sphi %s37830_s12, %s44990_s12  }
   0x3   : > { %p27_p1 = scmp.ge.s32.totalorder %s25_s15, 2  ;;  %p151_p2 = scmp.lt.s32.totalorder %s37805_s14, 3 }
   0x5   : > { %s44993_s15 = smov (%p27_p1, %s25_s15), 0  ;;  %p152_p3 = pnand %p26554_p0, %p151_p2 }
   0x7   : > { %155 = sbr.rel (%p152_p3) target bundleno = 2660 (0xa64), region = 32 }
   0xe   : > { %p179_p4 = scmp.lt.s32.totalorder %s37797_s12, 1  ;;  %v36597_v0 = vld [vmem:[%s44729_s1 + $0x100] sm:$0xff]   ;;  %vm499_vm0 = vcmask 130048   ;;  %s37807_s24 = smov 127   ;;  %v36598_v5 = vld [vmem:[%s44729_s1 + $0x108] sm:$0xff]   ;;  %v36601_v6 = vld [vmem:[%s44729_s1 + $0x110] sm:$0xff]  }
   0xf   : > { %32143 = vmatprep.mubr.msk.bf16.mxu0 %vm499_vm0, %v36597_v0  ;;  %v36599_v1 = vld [vmem:[%s44729_s1 + $0x100] sm:$0xff]   ;;  %s37808_s25 = smov 126   ;;  %v36600_v8 = vld [vmem:[%s44729_s1 + $0x108] sm:$0xff]   ;;  %v36603_v10 = vld [vmem:[%s44729_s1 + $0x110] sm:$0xff]   ;;  %vm6698_vm1 = vcmask 261120  }
  0x10   : > { %s44995_s12 = smov (!%p179_p4, %s37797_s12), 1  ;;  %32737 = vmatprep.mubr.msk.bf16.mxu1 %vm499_vm0, %v36599_v1  ;;  %v36602_v11 = vld [vmem:[%s44729_s1 + $0x118] sm:$0xff]   ;;  %v36605_v13 = vld [vmem:[%s44729_s1 + $0x120] sm:$0xff]   ;;  %v36606_v16 = vld [vmem:[%s44729_s1 + $0x128] sm:$0xff]  }
  0x11   : > { %s36565_s20 = smul.u32 60, %s44995_s12  ;;  %v36604_v14 = vld [vmem:[%s44729_s1 + $0x118] sm:$0xff]   ;;  %v36607_v15 = vld [vmem:[%s44729_s1 + $0x120] sm:$0xff]   ;;  %v36609_v17 = vld [vmem:[%s44729_s1 + $0x130] sm:$0xff]   ;;  %s30952_s11 = sshll.u32 %s44995_s12, 11 }
  0x12   : > { %v36608_v18 = vld [vmem:[%s44729_s1 + $0x128] sm:$0xff]   ;;  %v36611_v19 = vld [vmem:[%s44729_s1 + $0x130] sm:$0xff]   ;;  %v36610_v20 = vld [vmem:[%s44729_s1 + $0x138] sm:$0xff]  }
  0x13   : > { %s37862_s23 = scalar_lea.vmem %s44728_s0, %s36565_s20  ;;  %v36613_v21 = vld [vmem:[%s44729_s1 + $0x140] sm:$0xff]   ;;  %v36612_v22 = vld [vmem:[%s44729_s1 + $0x138] sm:$0xff]   ;;  %v36614_v24 = vld [vmem:[%s44729_s1 + $0x148] sm:$0xff]   ;;  %s41646_s20 = scalar_lea.vmem %s44731_s3, %s30952_s11 }
  0x14   : > { %v36595_v2 = vld [vmem:[%s37862_s23] sm:$0xff]   ;;  %v36617_v25 = vld [vmem:[%s44729_s1 + $0x150] sm:$0xff]   ;;  %v36616_v26 = vld [vmem:[%s44729_s1 + $0x148] sm:$0xff]  }
  0x15   : > { %496 = vrot.lane.b32.xlu0 %v36595_v2, %s37807_s24  ;;  %v36596_v3 = vld [vmem:[%s37862_s23 + $0x4] sm:$0xff]   ;;  %1656 = vrot.lane.b32.xlu1 %v36595_v2, %s37808_s25  ;;  %v36619_v27 = vld [vmem:[%s44729_s1 + $0x150] sm:$0xff]  }
  0x16   : > { %v36615_v23 = vld [vmem:[%s44729_s1 + $0x140] sm:$0xff]   ;;  %v36618_v28 = vld [vmem:[%s44729_s1 + $0x158] sm:$0xff]   ;;  %v36622_v32 = vld [vmem:[%s44729_s1 + $0x168] sm:$0xff]  }
  0x17   : > { %v36621_v29 = vld [vmem:[%s44729_s1 + $0x160] sm:$0xff]   ;;  %v36620_v30 = vld [vmem:[%s44729_s1 + $0x158] sm:$0xff]   ;;  %v36625_v33 = vld [vmem:[%s44729_s1 + $0x170] sm:$0xff]  }
  0x18   : > { %v36623_v31 = vld [vmem:[%s44729_s1 + $0x160] sm:$0xff]   ;;  %v36624_v34 = vld [vmem:[%s44729_s1 + $0x168] sm:$0xff]   ;;  %v36627_v35 = vld [vmem:[%s44729_s1 + $0x170] sm:$0xff]  }
  0x19   : > { %7063 = vrot.lane.b32.xlu0 %v36596_v3, %s37807_s24  ;;  %8221 = vrot.lane.b32.xlu1 %v36596_v3, %s37808_s25  ;;  %v36626_v36 = vld [vmem:[%s44729_s1 + $0x178] sm:$0xff]   ;;  %v36629_v37 = vld [vmem:[%s44729_s1 + $0x180] sm:$0xff]  }
  0x1a   : > { %v36628_v38 = vld [vmem:[%s44729_s1 + $0x178] sm:$0xff]   ;;  %v36631_v39 = vld [vmem:[%s44729_s1 + $0x180] sm:$0xff]   ;;  %v36630_v40 = vld [vmem:[%s44729_s1 + $0x188] sm:$0xff]  }
  0x1b   : > { %v36633_v41 = vld [vmem:[%s44729_s1 + $0x190] sm:$0xff]   ;;  %v36632_v42 = vld [vmem:[%s44729_s1 + $0x188] sm:$0xff]   ;;  %v36634_v44 = vld [vmem:[%s44729_s1 + $0x198] sm:$0xff]  }
  0x1c   : > { %v36635_v43 = vld [vmem:[%s44729_s1 + $0x190] sm:$0xff]   ;;  %v36637_v45 = vld [vmem:[%s44729_s1 + $0x1a0] sm:$0xff]   ;;  %v36636_v46 = vld [vmem:[%s44729_s1 + $0x198] sm:$0xff]  }
  0x1d   : > { %v36639_v47 = vld [vmem:[%s44729_s1 + $0x1a0] sm:$0xff]   ;;  %v36638_v48 = vld [vmem:[%s44729_s1 + $0x1a8] sm:$0xff]   ;;  %v36641_v49 = vld [vmem:[%s44729_s1 + $0x1b0] sm:$0xff]  }
  0x1e   : > { %v36640_v50 = vld [vmem:[%s44729_s1 + $0x1a8] sm:$0xff]   ;;  %v36643_v51 = vld [vmem:[%s44729_s1 + $0x1b0] sm:$0xff]   ;;  %v36642_v52 = vld [vmem:[%s44729_s1 + $0x1b8] sm:$0xff]  }
  0x1f   : > { %v36645_v53 = vld [vmem:[%s44729_s1 + $0x1c0] sm:$0xff]   ;;  %v36644_v54 = vld [vmem:[%s44729_s1 + $0x1b8] sm:$0xff]   ;;  %v36646_v56 = vld [vmem:[%s44729_s1 + $0x1c8] sm:$0xff]  }
  0x20   : > { %v36647_v55 = vld [vmem:[%s44729_s1 + $0x1c0] sm:$0xff]   ;;  %v36649_v57 = vld [vmem:[%s44729_s1 + $0x1d0] sm:$0xff]   ;;  %v36648_v58 = vld [vmem:[%s44729_s1 + $0x1c8] sm:$0xff]  }
  0x21   : > { %v36651_v59 = vld [vmem:[%s44729_s1 + $0x1d0] sm:$0xff]   ;;  %v36650_v60 = vld [vmem:[%s44729_s1 + $0x1d8] sm:$0xff]   ;;  %v36653_v61 = vld [vmem:[%s44729_s1 + $0x1e0] sm:$0xff]  }
  0x22   : > { %v36652_v62 = vld [vmem:[%s44729_s1 + $0x1d8] sm:$0xff]   ;;  %v36655_v63 = vld [vmem:[%s44729_s1 + $0x1e0] sm:$0xff]   ;;  %v36654_v0 = vld [vmem:[%s44729_s1 + $0x1e8] sm:$0xff]  }
  0x23   : > { %v36657_v1 = vld [vmem:[%s44729_s1 + $0x1f0] sm:$0xff]  }
  0x87   : > { %v497_v4 = vpop.permute.xlu0 %496  ;;  %v37876_v7 = vpop.permute.xlu1 %1656 }
  0x88   : > { %32141 = vmatprep.subr.bf16.mxu0 %v497_v4 }
  0x89   : > { %32142 = vmatpush3.bf16.msra.mxu0 %v497_v4  ;;  %v36658_v4 = vld [vmem:[%s44729_s1 + $0x1f8] sm:$0xff]  }
  0x8a   : > { %32207 = vmatprep.subr.bf16.mxu0 %v36595_v2 }
  0x8b   : > { %v7064_v9 = vpop.permute.xlu0 %7063  ;;  %v37890_v12 = vpop.permute.xlu1 %8221 }
  0x8c   : > { %32144 = vmatmul.mubr.msk.bf16.vlgmr.msra.gmra.mrb[0].mxu0 %vm499_vm0, %v36598_v5  ;;  %32735 = vmatprep.subr.bf16.mxu1 %v7064_v9  ;;  %v36661_v5 = vld [vmem:[%s44729_s1] sm:$0xff]  }
  0x8d   : > { %32736 = vmatpush3.bf16.msra.mxu1 %v7064_v9  ;;  %32208 = vmatpush3.bf16.msra.mxu0 %v36595_v2  ;;  %v36656_v2 = vld [vmem:[%s44729_s1 + $0x1e8] sm:$0xff]  }
  0x8e   : > { %32801 = vmatprep.subr.bf16.mxu1 %v36596_v3  ;;  %32147 = vmatprep.mubr.msk.bf16.mxu0 %vm499_vm0, %v36601_v6  ;;  %v36660_v6 = vld [vmem:[%s44729_s1 + $0x1f8] sm:$0xff]   ;;  %v36662_v9 = vld [vmem:[%s44729_s1 + $0x8] sm:$0xff]  }
  0x8f   : > { %32273 = vmatprep.subr.bf16.mxu0 %v37876_v7 }
  0x90   : > { %32738 = vmatmul.mubr.msk.bf16.vlgmr.msra.gmra.mrb[0].mxu1 %vm499_vm0, %v36600_v8  ;;  %v36663_v8 = vld [vmem:[%s44729_s1] sm:$0xff]  }
  0x91   : > { %32802 = vmatpush3.bf16.msra.mxu1 %v36596_v3  ;;  %32741 = vmatprep.mubr.msk.bf16.mxu1 %vm499_vm0, %v36603_v10  ;;  %v36659_v3 = vld [vmem:[%s44729_s1 + $0x1f0] sm:$0xff]  }
  0x92   : > { %32867 = vmatprep.subr.bf16.mxu1 %v37890_v12  ;;  %v36665_v10 = vld [vmem:[%s44729_s1 + $0x10] sm:$0xff]  }
  0x94   : > { %32148 = vmatmul.mubr.msk.bf16.gmra.mrb[4].mxu0 %vm499_vm0, %v36602_v11  ;;  %v36664_v11 = vld [vmem:[%s44729_s1 + $0x8] sm:$0xff]  }
  0x95   : > { %32151 = vmatprep.mubr.msk.bf16.mxu0 %vm499_vm0, %v36605_v13  ;;  %v36667_v13 = vld [vmem:[%s44729_s1 + $0x10] sm:$0xff]  }
  0x98   : > { %32742 = vmatmul.mubr.msk.bf16.gmra.mrb[4].mxu1 %vm499_vm0, %v36604_v14  ;;  %v38146_v14 = vld [vmem:[%s37862_s23 + $0x14] sm:$0xff]  }
  0x99   : > { %32745 = vmatprep.mubr.msk.bf16.mxu1 %vm499_vm0, %v36607_v15  ;;  %v36666_v15 = vld [vmem:[%s44729_s1 + $0x18] sm:$0xff]   ;;  %3018 = vrot.lane.b32.xlu0 %v38146_v14, %s37807_s24 }
  0x9c   : > { %32152 = vmatmul.mubr.msk.bf16.gmra.mrb[8].mxu0 %vm499_vm0, %v36606_v16  ;;  %v38158_v16 = vld [vmem:[%s37862_s23 + $0x18] sm:$0xff]  }
  0x9d   : > { %32155 = vmatprep.mubr.msk.bf16.mxu0 %vm499_vm0, %v36609_v17  ;;  %9581 = vrot.lane.b32.xlu1 %v38158_v16, %s37807_s24  ;;  %v36671_v17 = vld [vmem:[%s44729_s1 + $0x20] sm:$0xff]  }
  0x9e   : > { %3695 = vrot.lane.b32.xlu0 %v38146_v14, %s37808_s25 }
  0xa0   : > { %32746 = vmatmul.mubr.msk.bf16.gmra.mrb[8].mxu1 %vm499_vm0, %v36608_v18  ;;  %v36670_v18 = vld [vmem:[%s44729_s1 + $0x28] sm:$0xff]  }
  0xa1   : > { %32749 = vmatprep.mubr.msk.bf16.mxu1 %vm499_vm0, %v36611_v19  ;;  %10257 = vrot.lane.b32.xlu1 %v38158_v16, %s37808_s25  ;;  %v36673_v19 = vld [vmem:[%s44729_s1 + $0x30] sm:$0xff]  }
  0xa4   : > { %32156 = vmatmul.mubr.msk.bf16.gmra.mrb[12].mxu0 %vm499_vm0, %v36610_v20  ;;  %v36672_v20 = vld [vmem:[%s44729_s1 + $0x28] sm:$0xff]  }
  0xa5   : > { %32159 = vmatprep.mubr.msk.bf16.mxu0 %vm499_vm0, %v36613_v21  ;;  %v36675_v21 = vld [vmem:[%s44729_s1 + $0x30] sm:$0xff]  }
  0xa8   : > { %32750 = vmatmul.mubr.msk.bf16.gmra.mrb[12].mxu1 %vm499_vm0, %v36612_v22  ;;  %v36674_v22 = vld [vmem:[%s44729_s1 + $0x38] sm:$0xff]  }
  0xa9   : > { %32753 = vmatprep.mubr.msk.bf16.mxu1 %vm499_vm0, %v36615_v23  ;;  %v36677_v23 = vld [vmem:[%s44729_s1 + $0x40] sm:$0xff]  }
  0xac   : > { %32160 = vmatmul.mubr.msk.bf16.gmra.mrb[16].mxu0 %vm499_vm0, %v36614_v24  ;;  %v36676_v24 = vld [vmem:[%s44729_s1 + $0x38] sm:$0xff]  }
  0xad   : > { %32163 = vmatprep.mubr.msk.bf16.mxu0 %vm499_vm0, %v36617_v25  ;;  %v36679_v25 = vld [vmem:[%s44729_s1 + $0x40] sm:$0xff]  }
  0xb0   : > { %32754 = vmatmul.mubr.msk.bf16.gmra.mrb[16].mxu1 %vm499_vm0, %v36616_v26  ;;  %v36678_v26 = vld [vmem:[%s44729_s1 + $0x48] sm:$0xff]  }
  0xb1   : > { %32757 = vmatprep.mubr.msk.bf16.mxu1 %vm499_vm0, %v36619_v27  ;;  %v36681_v27 = vld [vmem:[%s44729_s1 + $0x50] sm:$0xff]  }
  0xb4   : > { %32164 = vmatmul.mubr.msk.bf16.gmra.mrb[20].mxu0 %vm499_vm0, %v36618_v28  ;;  %v36680_v28 = vld [vmem:[%s44729_s1 + $0x48] sm:$0xff]  }
  0xb5   : > { %32167 = vmatprep.mubr.msk.bf16.mxu0 %vm499_vm0, %v36621_v29  ;;  %v36683_v29 = vld [vmem:[%s44729_s1 + $0x50] sm:$0xff]  }
  0xb8   : > { %32758 = vmatmul.mubr.msk.bf16.gmra.mrb[20].mxu1 %vm499_vm0, %v36620_v30  ;;  %v36682_v30 = vld [vmem:[%s44729_s1 + $0x58] sm:$0xff]  }
  0xb9   : > { %32761 = vmatprep.mubr.msk.bf16.mxu1 %vm499_vm0, %v36623_v31  ;;  %v36685_v31 = vld [vmem:[%s44729_s1 + $0x60] sm:$0xff]  }
  0xbc   : > { %32168 = vmatmul.mubr.msk.bf16.gmra.mrb[24].mxu0 %vm499_vm0, %v36622_v32  ;;  %v36684_v32 = vld [vmem:[%s44729_s1 + $0x58] sm:$0xff]  }
  0xbd   : > { %32171 = vmatprep.mubr.msk.bf16.mxu0 %vm499_vm0, %v36625_v33  ;;  %v36687_v33 = vld [vmem:[%s44729_s1 + $0x60] sm:$0xff]  }
  0xc0   : > { %32762 = vmatmul.mubr.msk.bf16.gmra.mrb[24].mxu1 %vm499_vm0, %v36624_v34  ;;  %v36686_v34 = vld [vmem:[%s44729_s1 + $0x68] sm:$0xff]  }
  0xc1   : > { %32765 = vmatprep.mubr.msk.bf16.mxu1 %vm499_vm0, %v36627_v35  ;;  %v36689_v35 = vld [vmem:[%s44729_s1 + $0x70] sm:$0xff]  }
  0xc4   : > { %32172 = vmatmul.mubr.msk.bf16.gmra.mrb[28].mxu0 %vm499_vm0, %v36626_v36  ;;  %v36688_v36 = vld [vmem:[%s44729_s1 + $0x68] sm:$0xff]  }
  0xc5   : > { %32175 = vmatprep.mubr.msk.bf16.mxu0 %vm499_vm0, %v36629_v37  ;;  %v36691_v37 = vld [vmem:[%s44729_s1 + $0x70] sm:$0xff]  }
  0xc8   : > { %32766 = vmatmul.mubr.msk.bf16.gmra.mrb[28].mxu1 %vm499_vm0, %v36628_v38  ;;  %v36690_v38 = vld [vmem:[%s44729_s1 + $0x78] sm:$0xff]  }
  0xc9   : > { %32769 = vmatprep.mubr.msk.bf16.mxu1 %vm499_vm0, %v36631_v39  ;;  %v36693_v39 = vld [vmem:[%s44729_s1 + $0x80] sm:$0xff]  }
  0xcc   : > { %32176 = vmatmul.mubr.msk.bf16.gmra.mrb[32].mxu0 %vm499_vm0, %v36630_v40  ;;  %v36692_v40 = vld [vmem:[%s44729_s1 + $0x78] sm:$0xff]  }
  0xcd   : > { %32179 = vmatprep.mubr.msk.bf16.mxu0 %vm499_vm0, %v36633_v41  ;;  %v36695_v41 = vld [vmem:[%s44729_s1 + $0x80] sm:$0xff]  }
  0xd0   : > { %32770 = vmatmul.mubr.msk.bf16.gmra.mrb[32].mxu1 %vm499_vm0, %v36632_v42  ;;  %v36694_v42 = vld [vmem:[%s44729_s1 + $0x88] sm:$0xff]  }
  0xd1   : > { %32773 = vmatprep.mubr.msk.bf16.mxu1 %vm499_vm0, %v36635_v43  ;;  %v36697_v43 = vld [vmem:[%s44729_s1 + $0x90] sm:$0xff]  }
  0xd4   : > { %32180 = vmatmul.mubr.msk.bf16.gmra.mrb[36].mxu0 %vm499_vm0, %v36634_v44  ;;  %v36696_v44 = vld [vmem:[%s44729_s1 + $0x88] sm:$0xff]  }
  0xd5   : > { %32183 = vmatprep.mubr.msk.bf16.mxu0 %vm499_vm0, %v36637_v45  ;;  %v36699_v45 = vld [vmem:[%s44729_s1 + $0x90] sm:$0xff]  }
  0xd8   : > { %32774 = vmatmul.mubr.msk.bf16.gmra.mrb[36].mxu1 %vm499_vm0, %v36636_v46  ;;  %v36698_v46 = vld [vmem:[%s44729_s1 + $0x98] sm:$0xff]  }
  0xd9   : > { %32777 = vmatprep.mubr.msk.bf16.mxu1 %vm499_vm0, %v36639_v47  ;;  %v36701_v47 = vld [vmem:[%s44729_s1 + $0xa0] sm:$0xff]  }
  0xdc   : > { %32184 = vmatmul.mubr.msk.bf16.gmra.mrb[40].mxu0 %vm499_vm0, %v36638_v48  ;;  %v36700_v48 = vld [vmem:[%s44729_s1 + $0x98] sm:$0xff]  }
  0xdd   : > { %32187 = vmatprep.mubr.msk.bf16.mxu0 %vm499_vm0, %v36641_v49  ;;  %v36703_v49 = vld [vmem:[%s44729_s1 + $0xa0] sm:$0xff]  }
  0xe0   : > { %32778 = vmatmul.mubr.msk.bf16.gmra.mrb[40].mxu1 %vm499_vm0, %v36640_v50  ;;  %v36702_v50 = vld [vmem:[%s44729_s1 + $0xa8] sm:$0xff]  }
  0xe1   : > { %32781 = vmatprep.mubr.msk.bf16.mxu1 %vm499_vm0, %v36643_v51  ;;  %v36705_v51 = vld [vmem:[%s44729_s1 + $0xb0] sm:$0xff]  }
  0xe4   : > { %32188 = vmatmul.mubr.msk.bf16.gmra.mrb[44].mxu0 %vm499_vm0, %v36642_v52  ;;  %v36704_v52 = vld [vmem:[%s44729_s1 + $0xa8] sm:$0xff]  }
  0xe5   : > { %32191 = vmatprep.mubr.msk.bf16.mxu0 %vm499_vm0, %v36645_v53  ;;  %v36707_v53 = vld [vmem:[%s44729_s1 + $0xb0] sm:$0xff]  }
  0xe8   : > { %32782 = vmatmul.mubr.msk.bf16.gmra.mrb[44].mxu1 %vm499_vm0, %v36644_v54  ;;  %v36706_v54 = vld [vmem:[%s44729_s1 + $0xb8] sm:$0xff]  }
  0xe9   : > { %32785 = vmatprep.mubr.msk.bf16.mxu1 %vm499_vm0, %v36647_v55  ;;  %v36709_v55 = vld [vmem:[%s44729_s1 + $0xc0] sm:$0xff]  }
  0xec   : > { %32192 = vmatmul.mubr.msk.bf16.gmra.mrb[48].mxu0 %vm499_vm0, %v36646_v56  ;;  %v36708_v56 = vld [vmem:[%s44729_s1 + $0xb8] sm:$0xff]  }
  0xed   : > { %32195 = vmatprep.mubr.msk.bf16.mxu0 %vm499_vm0, %v36649_v57  ;;  %v36711_v57 = vld [vmem:[%s44729_s1 + $0xc0] sm:$0xff]  }
  0xf0   : > { %32786 = vmatmul.mubr.msk.bf16.gmra.mrb[48].mxu1 %vm499_vm0, %v36648_v58  ;;  %v36710_v58 = vld [vmem:[%s44729_s1 + $0xc8] sm:$0xff]  }
  0xf1   : > { %32789 = vmatprep.mubr.msk.bf16.mxu1 %vm499_vm0, %v36651_v59  ;;  %v36713_v59 = vld [vmem:[%s44729_s1 + $0xd0] sm:$0xff]  }
  0xf4   : > { %32196 = vmatmul.mubr.msk.bf16.gmra.mrb[52].mxu0 %vm499_vm0, %v36650_v60  ;;  %v36712_v60 = vld [vmem:[%s44729_s1 + $0xc8] sm:$0xff]  }
  0xf5   : > { %32199 = vmatprep.mubr.msk.bf16.mxu0 %vm499_vm0, %v36653_v61  ;;  %v36715_v61 = vld [vmem:[%s44729_s1 + $0xd0] sm:$0xff]  }
  0xf8   : > { %32790 = vmatmul.mubr.msk.bf16.gmra.mrb[52].mxu1 %vm499_vm0, %v36652_v62  ;;  %v36714_v62 = vld [vmem:[%s44729_s1 + $0xd8] sm:$0xff]  }
  0xf9   : > { %32793 = vmatprep.mubr.msk.bf16.mxu1 %vm499_vm0, %v36655_v63  ;;  %v36717_v63 = vld [vmem:[%s44729_s1 + $0xe0] sm:$0xff]  }
  0xfc   : > { %32200 = vmatmul.mubr.msk.bf16.gmra.mrb[56].mxu0 %vm499_vm0, %v36654_v0  ;;  %v36716_v0 = vld [vmem:[%s44729_s1 + $0xd8] sm:$0xff]  }
  0xfd   : > { %32203 = vmatprep.mubr.msk.bf16.mxu0 %vm499_vm0, %v36657_v1  ;;  %v36719_v1 = vld [vmem:[%s44729_s1 + $0xe0] sm:$0xff]  }
 0x100   : > { %32794 = vmatmul.mubr.msk.bf16.gmra.mrb[56].mxu1 %vm499_vm0, %v36656_v2  ;;  %v36718_v2 = vld [vmem:[%s44729_s1 + $0xe8] sm:$0xff]  }
 0x101   : > { %32797 = vmatprep.mubr.msk.bf16.mxu1 %vm499_vm0, %v36659_v3  ;;  %v36721_v3 = vld [vmem:[%s44729_s1 + $0xf0] sm:$0xff]  }
 0x104   : > { %32204 = vmatmul.mubr.msk.bf16.gmra.mrb[60].mxu0 %vm499_vm0, %v36658_v4  ;;  %v36720_v4 = vld [vmem:[%s44729_s1 + $0xe8] sm:$0xff]  }
 0x105   : > { %32209 = vmatprep.mubr.msk.bf16.mxu0 %vm499_vm0, %v36661_v5  ;;  %v36723_v5 = vld [vmem:[%s44729_s1 + $0xf0] sm:$0xff]  }
 0x108   : > { %32798 = vmatmul.mubr.msk.bf16.gmra.mrb[60].mxu1 %vm499_vm0, %v36660_v6  ;;  %v36722_v6 = vld [vmem:[%s44729_s1 + $0xf8] sm:$0xff]  }
 0x109   : > { %32803 = vmatprep.mubr.msk.bf16.mxu1 %vm499_vm0, %v36663_v8  ;;  %v36725_v8 = vld [vmem:[%s44729_s1 + $0x200] sm:$0xff]  }
 0x10c   : > { %32210 = vmatmul.mubr.msk.bf16.vlgmr.msra.gmra.mrb[0].mxu0 %vm499_vm0, %v36662_v9  ;;  %v36724_v9 = vld [vmem:[%s44729_s1 + $0xf8] sm:$0xff]  }
 0x10d   : > { %32274 = vmatpush3.bf16.msra.mxu0 %v37876_v7  ;;  %32213 = vmatprep.mubr.msk.bf16.mxu0 %vm499_vm0, %v36665_v10  ;;  %v36669_v7 = vld [vmem:[%s44729_s1 + $0x20] sm:$0xff]  }
 0x10e   : > { %32339 = vmatprep.subr.bf16.mxu0 %v38146_v14  ;;  %v36727_v10 = vld [vmem:[%s44729_s1 + $0x200] sm:$0xff]  }
 0x110   : > { %32804 = vmatmul.mubr.msk.bf16.vlgmr.msra.gmra.mrb[0].mxu1 %vm499_vm0, %v36664_v11  ;;  %v36726_v11 = vld [vmem:[%s44729_s1 + $0x208] sm:$0xff]  }
 0x111   : > { %32868 = vmatpush3.bf16.msra.mxu1 %v37890_v12  ;;  %32807 = vmatprep.mubr.msk.bf16.mxu1 %vm499_vm0, %v36667_v13  ;;  %v36668_v12 = vld [vmem:[%s44729_s1 + $0x18] sm:$0xff]   ;;  %v36731_v13 = vld [vmem:[%s44729_s1 + $0x210] sm:$0xff]  }
 0x112   : > { %32933 = vmatprep.subr.bf16.mxu1 %v38158_v16 }
 0x114   : > { %32214 = vmatmul.mubr.msk.bf16.gmra.mrb[4].mxu0 %vm499_vm0, %v36666_v15  ;;  %v36729_v15 = vld [vmem:[%s44729_s1 + $0x208] sm:$0xff]  }
 0x115   : > { %32217 = vmatprep.mubr.msk.bf16.mxu0 %vm499_vm0, %v36669_v7  ;;  %v38416_v7 = vpop.permute.xlu0 %3018 }
 0x118   : > { %32808 = vmatmul.mubr.msk.bf16.gmra.mrb[4].mxu1 %vm499_vm0, %v36668_v12  ;;  %v36733_v12 = vld [vmem:[%s44729_s1 + $0x210] sm:$0xff]  }
 0x119   : > { %32811 = vmatprep.mubr.msk.bf16.mxu1 %vm499_vm0, %v36671_v17  ;;  %v36732_v17 = vld [vmem:[%s44729_s1 + $0x218] sm:$0xff]  }
 0x11c   : > { %32218 = vmatmul.mubr.msk.bf16.gmra.mrb[8].mxu0 %vm499_vm0, %v36670_v18  ;;  %v38427_v18 = vpop.permute.xlu1 %9581 }
 0x11d   : > { %32221 = vmatprep.mubr.msk.bf16.mxu0 %vm499_vm0, %v36673_v19  ;;  %v36734_v19 = vld [vmem:[%s44729_s1 + $0x218] sm:$0xff]  }
 0x120   : > { %32812 = vmatmul.mubr.msk.bf16.gmra.mrb[8].mxu1 %vm499_vm0, %v36672_v20  ;;  %v36737_v20 = vld [vmem:[%s44729_s1 + $0x220] sm:$0xff]  }
 0x121   : > { %32815 = vmatprep.mubr.msk.bf16.mxu1 %vm499_vm0, %v36675_v21  ;;  %v36739_v21 = vld [vmem:[%s44729_s1 + $0x230] sm:$0xff]  }
 0x124   : > { %32222 = vmatmul.mubr.msk.bf16.gmra.mrb[12].mxu0 %vm499_vm0, %v36674_v22  ;;  %v36738_v22 = vld [vmem:[%s44729_s1 + $0x228] sm:$0xff]  }
 0x125   : > { %32225 = vmatprep.mubr.msk.bf16.mxu0 %vm499_vm0, %v36677_v23  ;;  %v36741_v23 = vld [vmem:[%s44729_s1 + $0x230] sm:$0xff]  }
 0x128   : > { %32816 = vmatmul.mubr.msk.bf16.gmra.mrb[12].mxu1 %vm499_vm0, %v36676_v24  ;;  %v36740_v24 = vld [vmem:[%s44729_s1 + $0x238] sm:$0xff]  }
 0x129   : > { %32819 = vmatprep.mubr.msk.bf16.mxu1 %vm499_vm0, %v36679_v25  ;;  %v36743_v25 = vld [vmem:[%s44729_s1 + $0x240] sm:$0xff]  }
 0x12c   : > { %32226 = vmatmul.mubr.msk.bf16.gmra.mrb[16].mxu0 %vm499_vm0, %v36678_v26  ;;  %v36742_v26 = vld [vmem:[%s44729_s1 + $0x238] sm:$0xff]  }
 0x12d   : > { %32229 = vmatprep.mubr.msk.bf16.mxu0 %vm499_vm0, %v36681_v27  ;;  %v36745_v27 = vld [vmem:[%s44729_s1 + $0x240] sm:$0xff]  }
 0x130   : > { %32820 = vmatmul.mubr.msk.bf16.gmra.mrb[16].mxu1 %vm499_vm0, %v36680_v28  ;;  %v36744_v28 = vld [vmem:[%s44729_s1 + $0x248] sm:$0xff]  }
 0x131   : > { %32823 = vmatprep.mubr.msk.bf16.mxu1 %vm499_vm0, %v36683_v29  ;;  %v36747_v29 = vld [vmem:[%s44729_s1 + $0x250] sm:$0xff]  }
 0x134   : > { %32230 = vmatmul.mubr.msk.bf16.gmra.mrb[20].mxu0 %vm499_vm0, %v36682_v30  ;;  %v36746_v30 = vld [vmem:[%s44729_s1 + $0x248] sm:$0xff]  }
 0x135   : > { %32233 = vmatprep.mubr.msk.bf16.mxu0 %vm499_vm0, %v36685_v31  ;;  %v36749_v31 = vld [vmem:[%s44729_s1 + $0x250] sm:$0xff]  }
 0x138   : > { %32824 = vmatmul.mubr.msk.bf16.gmra.mrb[20].mxu1 %vm499_vm0, %v36684_v32  ;;  %v36748_v32 = vld [vmem:[%s44729_s1 + $0x258] sm:$0xff]  }
 0x139   : > { %32827 = vmatprep.mubr.msk.bf16.mxu1 %vm499_vm0, %v36687_v33  ;;  %v36751_v33 = vld [vmem:[%s44729_s1 + $0x260] sm:$0xff]  }
 0x13c   : > { %32234 = vmatmul.mubr.msk.bf16.gmra.mrb[24].mxu0 %vm499_vm0, %v36686_v34  ;;  %v36750_v34 = vld [vmem:[%s44729_s1 + $0x258] sm:$0xff]  }
 0x13d   : > { %32237 = vmatprep.mubr.msk.bf16.mxu0 %vm499_vm0, %v36689_v35  ;;  %v36753_v35 = vld [vmem:[%s44729_s1 + $0x260] sm:$0xff]  }
 0x140   : > { %32828 = vmatmul.mubr.msk.bf16.gmra.mrb[24].mxu1 %vm499_vm0, %v36688_v36  ;;  %v36752_v36 = vld [vmem:[%s44729_s1 + $0x268] sm:$0xff]  }
 0x141   : > { %32831 = vmatprep.mubr.msk.bf16.mxu1 %vm499_vm0, %v36691_v37  ;;  %v36755_v37 = vld [vmem:[%s44729_s1 + $0x270] sm:$0xff]  }
 0x144   : > { %32238 = vmatmul.mubr.msk.bf16.gmra.mrb[28].mxu0 %vm499_vm0, %v36690_v38  ;;  %v36754_v38 = vld [vmem:[%s44729_s1 + $0x268] sm:$0xff]  }
 0x145   : > { %32241 = vmatprep.mubr.msk.bf16.mxu0 %vm499_vm0, %v36693_v39  ;;  %v36757_v39 = vld [vmem:[%s44729_s1 + $0x270] sm:$0xff]  }
 0x148   : > { %32832 = vmatmul.mubr.msk.bf16.gmra.mrb[28].mxu1 %vm499_vm0, %v36692_v40  ;;  %v36756_v40 = vld [vmem:[%s44729_s1 + $0x278] sm:$0xff]  }
 0x149   : > { %32835 = vmatprep.mubr.msk.bf16.mxu1 %vm499_vm0, %v36695_v41  ;;  %v36759_v41 = vld [vmem:[%s44729_s1 + $0x280] sm:$0xff]  }
 0x14c   : > { %32242 = vmatmul.mubr.msk.bf16.gmra.mrb[32].mxu0 %vm499_vm0, %v36694_v42  ;;  %v36758_v42 = vld [vmem:[%s44729_s1 + $0x278] sm:$0xff]  }
 0x14d   : > { %32245 = vmatprep.mubr.msk.bf16.mxu0 %vm499_vm0, %v36697_v43  ;;  %v36761_v43 = vld [vmem:[%s44729_s1 + $0x280] sm:$0xff]  }
 0x150   : > { %32836 = vmatmul.mubr.msk.bf16.gmra.mrb[32].mxu1 %vm499_vm0, %v36696_v44  ;;  %v36760_v44 = vld [vmem:[%s44729_s1 + $0x288] sm:$0xff]  }
 0x151   : > { %32839 = vmatprep.mubr.msk.bf16.mxu1 %vm499_vm0, %v36699_v45  ;;  %v36763_v45 = vld [vmem:[%s44729_s1 + $0x290] sm:$0xff]  }
 0x154   : > { %32246 = vmatmul.mubr.msk.bf16.gmra.mrb[36].mxu0 %vm499_vm0, %v36698_v46  ;;  %v36762_v46 = vld [vmem:[%s44729_s1 + $0x288] sm:$0xff]  }
 0x155   : > { %32249 = vmatprep.mubr.msk.bf16.mxu0 %vm499_vm0, %v36701_v47  ;;  %v36765_v47 = vld [vmem:[%s44729_s1 + $0x290] sm:$0xff]  }
 0x158   : > { %32840 = vmatmul.mubr.msk.bf16.gmra.mrb[36].mxu1 %vm499_vm0, %v36700_v48  ;;  %v36764_v48 = vld [vmem:[%s44729_s1 + $0x298] sm:$0xff]  }
 0x159   : > { %32843 = vmatprep.mubr.msk.bf16.mxu1 %vm499_vm0, %v36703_v49  ;;  %v36767_v49 = vld [vmem:[%s44729_s1 + $0x2a0] sm:$0xff]  }
 0x15c   : > { %32250 = vmatmul.mubr.msk.bf16.gmra.mrb[40].mxu0 %vm499_vm0, %v36702_v50  ;;  %v36766_v50 = vld [vmem:[%s44729_s1 + $0x298] sm:$0xff]  }
 0x15d   : > { %32253 = vmatprep.mubr.msk.bf16.mxu0 %vm499_vm0, %v36705_v51  ;;  %v36769_v51 = vld [vmem:[%s44729_s1 + $0x2a0] sm:$0xff]  }
 0x160   : > { %32844 = vmatmul.mubr.msk.bf16.gmra.mrb[40].mxu1 %vm499_vm0, %v36704_v52  ;;  %v36768_v52 = vld [vmem:[%s44729_s1 + $0x2a8] sm:$0xff]  }
 0x161   : > { %32847 = vmatprep.mubr.msk.bf16.mxu1 %vm499_vm0, %v36707_v53  ;;  %v36771_v53 = vld [vmem:[%s44729_s1 + $0x2b0] sm:$0xff]  }
 0x164   : > { %32254 = vmatmul.mubr.msk.bf16.gmra.mrb[44].mxu0 %vm499_vm0, %v36706_v54  ;;  %v36770_v54 = vld [vmem:[%s44729_s1 + $0x2a8] sm:$0xff]  }
 0x165   : > { %32257 = vmatprep.mubr.msk.bf16.mxu0 %vm499_vm0, %v36709_v55  ;;  %v36773_v55 = vld [vmem:[%s44729_s1 + $0x2b0] sm:$0xff]  }
 0x168   : > { %32848 = vmatmul.mubr.msk.bf16.gmra.mrb[44].mxu1 %vm499_vm0, %v36708_v56  ;;  %v36772_v56 = vld [vmem:[%s44729_s1 + $0x2b8] sm:$0xff]  }
 0x169   : > { %32851 = vmatprep.mubr.msk.bf16.mxu1 %vm499_vm0, %v36711_v57  ;;  %v36775_v57 = vld [vmem:[%s44729_s1 + $0x2c0] sm:$0xff]  }
 0x16c   : > { %32258 = vmatmul.mubr.msk.bf16.gmra.mrb[48].mxu0 %vm499_vm0, %v36710_v58  ;;  %v36774_v58 = vld [vmem:[%s44729_s1 + $0x2b8] sm:$0xff]  }
 0x16d   : > { %32261 = vmatprep.mubr.msk.bf16.mxu0 %vm499_vm0, %v36713_v59  ;;  %v36777_v59 = vld [vmem:[%s44729_s1 + $0x2c0] sm:$0xff]  }
 0x170   : > { %32852 = vmatmul.mubr.msk.bf16.gmra.mrb[48].mxu1 %vm499_vm0, %v36712_v60  ;;  %v36776_v60 = vld [vmem:[%s44729_s1 + $0x2c8] sm:$0xff]  }
 0x171   : > { %32855 = vmatprep.mubr.msk.bf16.mxu1 %vm499_vm0, %v36715_v61  ;;  %v36779_v61 = vld [vmem:[%s44729_s1 + $0x2d0] sm:$0xff]  }
 0x174   : > { %32262 = vmatmul.mubr.msk.bf16.gmra.mrb[52].mxu0 %vm499_vm0, %v36714_v62  ;;  %v36778_v62 = vld [vmem:[%s44729_s1 + $0x2c8] sm:$0xff]  }
 0x175   : > { %32265 = vmatprep.mubr.msk.bf16.mxu0 %vm499_vm0, %v36717_v63  ;;  %v36781_v63 = vld [vmem:[%s44729_s1 + $0x2d0] sm:$0xff]  }
 0x178   : > { %32856 = vmatmul.mubr.msk.bf16.gmra.mrb[52].mxu1 %vm499_vm0, %v36716_v0  ;;  %v36780_v0 = vld [vmem:[%s44729_s1 + $0x2d8] sm:$0xff]  }
 0x179   : > { %32859 = vmatprep.mubr.msk.bf16.mxu1 %vm499_vm0, %v36719_v1  ;;  %v36783_v1 = vld [vmem:[%s44729_s1 + $0x2e0] sm:$0xff]  }
 0x17c   : > { %32266 = vmatmul.mubr.msk.bf16.gmra.mrb[56].mxu0 %vm499_vm0, %v36718_v2  ;;  %v36782_v2 = vld [vmem:[%s44729_s1 + $0x2d8] sm:$0xff]  }
 0x17d   : > { %32269 = vmatprep.mubr.msk.bf16.mxu0 %vm499_vm0, %v36721_v3  ;;  %v36785_v3 = vld [vmem:[%s44729_s1 + $0x2e0] sm:$0xff]  }
 0x180   : > { %32860 = vmatmul.mubr.msk.bf16.gmra.mrb[56].mxu1 %vm499_vm0, %v36720_v4  ;;  %v36784_v4 = vld [vmem:[%s44729_s1 + $0x2e8] sm:$0xff]  }
 0x181   : > { %32863 = vmatprep.mubr.msk.bf16.mxu1 %vm499_vm0, %v36723_v5  ;;  %v36787_v5 = vld [vmem:[%s44729_s1 + $0x2f0] sm:$0xff]  }
 0x184   : > { %32270 = vmatmul.mubr.msk.bf16.gmra.mrb[60].mxu0 %vm499_vm0, %v36722_v6  ;;  %v36786_v6 = vld [vmem:[%s44729_s1 + $0x2e8] sm:$0xff]  }
 0x185   : > { %32275 = vmatprep.mubr.msk.bf16.mxu0 %vm499_vm0, %v36725_v8  ;;  %v36789_v8 = vld [vmem:[%s44729_s1 + $0x2f0] sm:$0xff]  }
 0x188   : > { %32864 = vmatmul.mubr.msk.bf16.gmra.mrb[60].mxu1 %vm499_vm0, %v36724_v9  ;;  %v36788_v9 = vld [vmem:[%s44729_s1 + $0x2f8] sm:$0xff]  }
 0x189   : > { %32869 = vmatprep.mubr.msk.bf16.mxu1 %vm499_vm0, %v36727_v10  ;;  %v36791_v10 = vld [vmem:[%s44729_s1 + $0x300] sm:$0xff]  }
 0x18c   : > { %32276 = vmatmul.mubr.msk.bf16.vlgmr.msra.gmra.mrb[0].mxu0 %vm499_vm0, %v36726_v11  ;;  %v36790_v11 = vld [vmem:[%s44729_s1 + $0x2f8] sm:$0xff]  }
 0x18d   : > { %32340 = vmatpush3.bf16.msra.mxu0 %v38146_v14  ;;  %32279 = vmatprep.mubr.msk.bf16.mxu0 %vm499_vm0, %v36731_v13  ;;  %v36735_v14 = vld [vmem:[%s44729_s1 + $0x220] sm:$0xff]  }
 0x18e   : > { %32405 = vmatprep.subr.bf16.mxu0 %v38416_v7  ;;  %v36793_v13 = vld [vmem:[%s44729_s1 + $0x300] sm:$0xff]  }
 0x190   : > { %32870 = vmatmul.mubr.msk.bf16.vlgmr.msra.gmra.mrb[0].mxu1 %vm499_vm0, %v36729_v15  ;;  %v36792_v15 = vld [vmem:[%s44729_s1 + $0x308] sm:$0xff]  }
 0x191   : > { %32934 = vmatpush3.bf16.msra.mxu1 %v38158_v16  ;;  %32873 = vmatprep.mubr.msk.bf16.mxu1 %vm499_vm0, %v36733_v12  ;;  %v36736_v16 = vld [vmem:[%s44729_s1 + $0x228] sm:$0xff]   ;;  %v36795_v12 = vld [vmem:[%s44729_s1 + $0x310] sm:$0xff]  }
 0x192   : > { %32999 = vmatprep.subr.bf16.mxu1 %v38427_v18 }
 0x194   : > { %32280 = vmatmul.mubr.msk.bf16.gmra.mrb[4].mxu0 %vm499_vm0, %v36732_v17  ;;  %v36794_v17 = vld [vmem:[%s44729_s1 + $0x308] sm:$0xff]  }
 0x195   : > { %32283 = vmatprep.mubr.msk.bf16.mxu0 %vm499_vm0, %v36735_v14  ;;  %v38680_v14 = vpop.permute.xlu0 %3695 }
 0x198   : > { %32874 = vmatmul.mubr.msk.bf16.gmra.mrb[4].mxu1 %vm499_vm0, %v36734_v19  ;;  %v36797_v19 = vld [vmem:[%s44729_s1 + $0x310] sm:$0xff]  }
 0x199   : > { %32877 = vmatprep.mubr.msk.bf16.mxu1 %vm499_vm0, %v36737_v20  ;;  %v36796_v20 = vld [vmem:[%s44729_s1 + $0x318] sm:$0xff]  }
 0x19c   : > { %32284 = vmatmul.mubr.msk.bf16.gmra.mrb[8].mxu0 %vm499_vm0, %v36736_v16  ;;  %v38691_v16 = vpop.permute.xlu1 %10257 }
 0x19d   : > { %32287 = vmatprep.mubr.msk.bf16.mxu0 %vm499_vm0, %v36739_v21  ;;  %v36798_v21 = vld [vmem:[%s44729_s1 + $0x318] sm:$0xff]  }
 0x1a0   : > { %32878 = vmatmul.mubr.msk.bf16.gmra.mrb[8].mxu1 %vm499_vm0, %v36738_v22  ;;  %v36801_v22 = vld [vmem:[%s44729_s1 + $0x320] sm:$0xff]  }
 0x1a1   : > { %32881 = vmatprep.mubr.msk.bf16.mxu1 %vm499_vm0, %v36741_v23  ;;  %v36803_v23 = vld [vmem:[%s44729_s1 + $0x330] sm:$0xff]  }
 0x1a4   : > { %32288 = vmatmul.mubr.msk.bf16.gmra.mrb[12].mxu0 %vm499_vm0, %v36740_v24  ;;  %v36802_v24 = vld [vmem:[%s44729_s1 + $0x328] sm:$0xff]  }
 0x1a5   : > { %32291 = vmatprep.mubr.msk.bf16.mxu0 %vm499_vm0, %v36743_v25  ;;  %v36805_v25 = vld [vmem:[%s44729_s1 + $0x330] sm:$0xff]  }
 0x1a8   : > { %32882 = vmatmul.mubr.msk.bf16.gmra.mrb[12].mxu1 %vm499_vm0, %v36742_v26  ;;  %v36804_v26 = vld [vmem:[%s44729_s1 + $0x338] sm:$0xff]  }
 0x1a9   : > { %32885 = vmatprep.mubr.msk.bf16.mxu1 %vm499_vm0, %v36745_v27  ;;  %v36807_v27 = vld [vmem:[%s44729_s1 + $0x340] sm:$0xff]  }
 0x1ac   : > { %32292 = vmatmul.mubr.msk.bf16.gmra.mrb[16].mxu0 %vm499_vm0, %v36744_v28  ;;  %v36806_v28 = vld [vmem:[%s44729_s1 + $0x338] sm:$0xff]  }
 0x1ad   : > { %32295 = vmatprep.mubr.msk.bf16.mxu0 %vm499_vm0, %v36747_v29  ;;  %v36809_v29 = vld [vmem:[%s44729_s1 + $0x340] sm:$0xff]  }
 0x1b0   : > { %32886 = vmatmul.mubr.msk.bf16.gmra.mrb[16].mxu1 %vm499_vm0, %v36746_v30  ;;  %v36808_v30 = vld [vmem:[%s44729_s1 + $0x348] sm:$0xff]  }
 0x1b1   : > { %32889 = vmatprep.mubr.msk.bf16.mxu1 %vm499_vm0, %v36749_v31  ;;  %v36811_v31 = vld [vmem:[%s44729_s1 + $0x350] sm:$0xff]  }
 0x1b4   : > { %32296 = vmatmul.mubr.msk.bf16.gmra.mrb[20].mxu0 %vm499_vm0, %v36748_v32  ;;  %v36810_v32 = vld [vmem:[%s44729_s1 + $0x348] sm:$0xff]  }
 0x1b5   : > { %32299 = vmatprep.mubr.msk.bf16.mxu0 %vm499_vm0, %v36751_v33  ;;  %v36813_v33 = vld [vmem:[%s44729_s1 + $0x350] sm:$0xff]  }
 0x1b8   : > { %32890 = vmatmul.mubr.msk.bf16.gmra.mrb[20].mxu1 %vm499_vm0, %v36750_v34  ;;  %v36812_v34 = vld [vmem:[%s44729_s1 + $0x358] sm:$0xff]  }
 0x1b9   : > { %32893 = vmatprep.mubr.msk.bf16.mxu1 %vm499_vm0, %v36753_v35  ;;  %v36815_v35 = vld [vmem:[%s44729_s1 + $0x360] sm:$0xff]  }
 0x1bc   : > { %32300 = vmatmul.mubr.msk.bf16.gmra.mrb[24].mxu0 %vm499_vm0, %v36752_v36  ;;  %v36814_v36 = vld [vmem:[%s44729_s1 + $0x358] sm:$0xff]  }
 0x1bd   : > { %32303 = vmatprep.mubr.msk.bf16.mxu0 %vm499_vm0, %v36755_v37  ;;  %v36817_v37 = vld [vmem:[%s44729_s1 + $0x360] sm:$0xff]  }
 0x1c0   : > { %32894 = vmatmul.mubr.msk.bf16.gmra.mrb[24].mxu1 %vm499_vm0, %v36754_v38  ;;  %v36816_v38 = vld [vmem:[%s44729_s1 + $0x368] sm:$0xff]  }
 0x1c1   : > { %32897 = vmatprep.mubr.msk.bf16.mxu1 %vm499_vm0, %v36757_v39  ;;  %v36819_v39 = vld [vmem:[%s44729_s1 + $0x370] sm:$0xff]  }
 0x1c4   : > { %32304 = vmatmul.mubr.msk.bf16.gmra.mrb[28].mxu0 %vm499_vm0, %v36756_v40  ;;  %v36818_v40 = vld [vmem:[%s44729_s1 + $0x368] sm:$0xff]  }
 0x1c5   : > { %32307 = vmatprep.mubr.msk.bf16.mxu0 %vm499_vm0, %v36759_v41  ;;  %v36821_v41 = vld [vmem:[%s44729_s1 + $0x370] sm:$0xff]  }
 0x1c8   : > { %32898 = vmatmul.mubr.msk.bf16.gmra.mrb[28].mxu1 %vm499_vm0, %v36758_v42  ;;  %v36820_v42 = vld [vmem:[%s44729_s1 + $0x378] sm:$0xff]  }
 0x1c9   : > { %32901 = vmatprep.mubr.msk.bf16.mxu1 %vm499_vm0, %v36761_v43  ;;  %v36823_v43 = vld [vmem:[%s44729_s1 + $0x380] sm:$0xff]  }
 0x1cc   : > { %32308 = vmatmul.mubr.msk.bf16.gmra.mrb[32].mxu0 %vm499_vm0, %v36760_v44  ;;  %v36822_v44 = vld [vmem:[%s44729_s1 + $0x378] sm:$0xff]  }
 0x1cd   : > { %32311 = vmatprep.mubr.msk.bf16.mxu0 %vm499_vm0, %v36763_v45  ;;  %v36825_v45 = vld [vmem:[%s44729_s1 + $0x380] sm:$0xff]  }
 0x1d0   : > { %32902 = vmatmul.mubr.msk.bf16.gmra.mrb[32].mxu1 %vm499_vm0, %v36762_v46  ;;  %v36824_v46 = vld [vmem:[%s44729_s1 + $0x388] sm:$0xff]  }
 0x1d1   : > { %32905 = vmatprep.mubr.msk.bf16.mxu1 %vm499_vm0, %v36765_v47  ;;  %v36827_v47 = vld [vmem:[%s44729_s1 + $0x390] sm:$0xff]  }
 0x1d4   : > { %32312 = vmatmul.mubr.msk.bf16.gmra.mrb[36].mxu0 %vm499_vm0, %v36764_v48  ;;  %v36826_v48 = vld [vmem:[%s44729_s1 + $0x388] sm:$0xff]  }
 0x1d5   : > { %32315 = vmatprep.mubr.msk.bf16.mxu0 %vm499_vm0, %v36767_v49  ;;  %v36829_v49 = vld [vmem:[%s44729_s1 + $0x390] sm:$0xff]  }
 0x1d8   : > { %32906 = vmatmul.mubr.msk.bf16.gmra.mrb[36].mxu1 %vm499_vm0, %v36766_v50  ;;  %v36828_v50 = vld [vmem:[%s44729_s1 + $0x398] sm:$0xff]  }
 0x1d9   : > { %32909 = vmatprep.mubr.msk.bf16.mxu1 %vm499_vm0, %v36769_v51  ;;  %v36831_v51 = vld [vmem:[%s44729_s1 + $0x3a0] sm:$0xff]  }
 0x1dc   : > { %32316 = vmatmul.mubr.msk.bf16.gmra.mrb[40].mxu0 %vm499_vm0, %v36768_v52  ;;  %v36830_v52 = vld [vmem:[%s44729_s1 + $0x398] sm:$0xff]  }
 0x1dd   : > { %32319 = vmatprep.mubr.msk.bf16.mxu0 %vm499_vm0, %v36771_v53  ;;  %v36833_v53 = vld [vmem:[%s44729_s1 + $0x3a0] sm:$0xff]  }
 0x1e0   : > { %32910 = vmatmul.mubr.msk.bf16.gmra.mrb[40].mxu1 %vm499_vm0, %v36770_v54  ;;  %v36832_v54 = vld [vmem:[%s44729_s1 + $0x3a8] sm:$0xff]  }
 0x1e1   : > { %32913 = vmatprep.mubr.msk.bf16.mxu1 %vm499_vm0, %v36773_v55  ;;  %v36835_v55 = vld [vmem:[%s44729_s1 + $0x3b0] sm:$0xff]  }
 0x1e4   : > { %32320 = vmatmul.mubr.msk.bf16.gmra.mrb[44].mxu0 %vm499_vm0, %v36772_v56  ;;  %v36834_v56 = vld [vmem:[%s44729_s1 + $0x3a8] sm:$0xff]  }
 0x1e5   : > { %32323 = vmatprep.mubr.msk.bf16.mxu0 %vm499_vm0, %v36775_v57  ;;  %v36837_v57 = vld [vmem:[%s44729_s1 + $0x3b0] sm:$0xff]  }
 0x1e8   : > { %32914 = vmatmul.mubr.msk.bf16.gmra.mrb[44].mxu1 %vm499_vm0, %v36774_v58  ;;  %v36836_v58 = vld [vmem:[%s44729_s1 + $0x3b8] sm:$0xff]  }
 0x1e9   : > { %32917 = vmatprep.mubr.msk.bf16.mxu1 %vm499_vm0, %v36777_v59  ;;  %v36839_v59 = vld [vmem:[%s44729_s1 + $0x3c0] sm:$0xff]  }
 0x1ec   : > { %32324 = vmatmul.mubr.msk.bf16.gmra.mrb[48].mxu0 %vm499_vm0, %v36776_v60  ;;  %v36838_v60 = vld [vmem:[%s44729_s1 + $0x3b8] sm:$0xff]  }
 0x1ed   : > { %32327 = vmatprep.mubr.msk.bf16.mxu0 %vm499_vm0, %v36779_v61  ;;  %v36841_v61 = vld [vmem:[%s44729_s1 + $0x3c0] sm:$0xff]  }
 0x1f0   : > { %32918 = vmatmul.mubr.msk.bf16.gmra.mrb[48].mxu1 %vm499_vm0, %v36778_v62  ;;  %v36840_v62 = vld [vmem:[%s44729_s1 + $0x3c8] sm:$0xff]  }
 0x1f1   : > { %32921 = vmatprep.mubr.msk.bf16.mxu1 %vm499_vm0, %v36781_v63  ;;  %v36843_v63 = vld [vmem:[%s44729_s1 + $0x3d0] sm:$0xff]  }
 0x1f4   : > { %32328 = vmatmul.mubr.msk.bf16.gmra.mrb[52].mxu0 %vm499_vm0, %v36780_v0  ;;  %v36842_v0 = vld [vmem:[%s44729_s1 + $0x3c8] sm:$0xff]  }
 0x1f5   : > { %32331 = vmatprep.mubr.msk.bf16.mxu0 %vm499_vm0, %v36783_v1  ;;  %v36845_v1 = vld [vmem:[%s44729_s1 + $0x3d0] sm:$0xff]  }
 0x1f8   : > { %32922 = vmatmul.mubr.msk.bf16.gmra.mrb[52].mxu1 %vm499_vm0, %v36782_v2  ;;  %v36844_v2 = vld [vmem:[%s44729_s1 + $0x3d8] sm:$0xff]  }
 0x1f9   : > { %32925 = vmatprep.mubr.msk.bf16.mxu1 %vm499_vm0, %v36785_v3  ;;  %v36847_v3 = vld [vmem:[%s44729_s1 + $0x3e0] sm:$0xff]  }
 0x1fc   : > { %32332 = vmatmul.mubr.msk.bf16.gmra.mrb[56].mxu0 %vm499_vm0, %v36784_v4  ;;  %v36846_v4 = vld [vmem:[%s44729_s1 + $0x3d8] sm:$0xff]  }
 0x1fd   : > { %32335 = vmatprep.mubr.msk.bf16.mxu0 %vm499_vm0, %v36787_v5  ;;  %v36849_v5 = vld [vmem:[%s44729_s1 + $0x3e0] sm:$0xff]  }
 0x200   : > { %32926 = vmatmul.mubr.msk.bf16.gmra.mrb[56].mxu1 %vm499_vm0, %v36786_v6  ;;  %v36848_v6 = vld [vmem:[%s44729_s1 + $0x3e8] sm:$0xff]  }
 0x201   : > { %32929 = vmatprep.mubr.msk.bf16.mxu1 %vm499_vm0, %v36789_v8  ;;  %v36851_v8 = vld [vmem:[%s44729_s1 + $0x3f0] sm:$0xff]  }
 0x204   : > { %32336 = vmatmul.mubr.msk.bf16.gmra.mrb[60].mxu0 %vm499_vm0, %v36788_v9  ;;  %v36850_v9 = vld [vmem:[%s44729_s1 + $0x3e8] sm:$0xff]  }
 0x205   : > { %32341 = vmatprep.mubr.msk.bf16.mxu0 %vm499_vm0, %v36791_v10  ;;  %v36853_v10 = vld [vmem:[%s44729_s1 + $0x3f0] sm:$0xff]  }
 0x208   : > { %32930 = vmatmul.mubr.msk.bf16.gmra.mrb[60].mxu1 %vm499_vm0, %v36790_v11  ;;  %v36852_v11 = vld [vmem:[%s44729_s1 + $0x3f8] sm:$0xff]  }
 0x209   : > { %32935 = vmatprep.mubr.msk.bf16.mxu1 %vm499_vm0, %v36793_v13  ;;  %v36855_v13 = vld [vmem:[%s44729_s1 + $0x400] sm:$0xff]  }
 0x20c   : > { %32342 = vmatmul.mubr.msk.bf16.vlgmr.msra.gmra.mrb[0].mxu0 %vm499_vm0, %v36792_v15  ;;  %v36854_v15 = vld [vmem:[%s44729_s1 + $0x3f8] sm:$0xff]  }
 0x20d   : > { %32406 = vmatpush3.bf16.msra.mxu0 %v38416_v7  ;;  %32345 = vmatprep.mubr.msk.bf16.mxu0 %vm499_vm0, %v36795_v12  ;;  %v36799_v7 = vld [vmem:[%s44729_s1 + $0x320] sm:$0xff]  }
 0x20e   : > { %32471 = vmatprep.subr.bf16.mxu0 %v38680_v14  ;;  %v36857_v12 = vld [vmem:[%s44729_s1 + $0x400] sm:$0xff]  }
 0x210   : > { %32936 = vmatmul.mubr.msk.bf16.vlgmr.msra.gmra.mrb[0].mxu1 %vm499_vm0, %v36794_v17  ;;  %v36856_v17 = vld [vmem:[%s44729_s1 + $0x408] sm:$0xff]  }
 0x211   : > { %33000 = vmatpush3.bf16.msra.mxu1 %v38427_v18  ;;  %32939 = vmatprep.mubr.msk.bf16.mxu1 %vm499_vm0, %v36797_v19  ;;  %v36800_v18 = vld [vmem:[%s44729_s1 + $0x328] sm:$0xff]   ;;  %v36859_v19 = vld [vmem:[%s44729_s1 + $0x410] sm:$0xff]  }
 0x212   : > { %33065 = vmatprep.subr.bf16.mxu1 %v38691_v16 }
 0x214   : > { %32346 = vmatmul.mubr.msk.bf16.gmra.mrb[4].mxu0 %vm499_vm0, %v36796_v20  ;;  %v36858_v20 = vld [vmem:[%s44729_s1 + $0x408] sm:$0xff]  }
 0x215   : > { %32349 = vmatprep.mubr.msk.bf16.mxu0 %vm499_vm0, %v36799_v7  ;;  %v36861_v7 = vld [vmem:[%s44729_s1 + $0x410] sm:$0xff]  }
 0x218   : > { %32940 = vmatmul.mubr.msk.bf16.gmra.mrb[4].mxu1 %vm499_vm0, %v36798_v21  ;;  %v38948_v21 = vld [vmem:[%s37862_s23 + $0x28] sm:$0xff]  }
 0x219   : > { %32943 = vmatprep.mubr.msk.bf16.mxu1 %vm499_vm0, %v36801_v22  ;;  %v36860_v22 = vld [vmem:[%s44729_s1 + $0x418] sm:$0xff]   ;;  %5057 = vrot.lane.b32.xlu0 %v38948_v21, %s37807_s24 }
 0x21c   : > { %32350 = vmatmul.mubr.msk.bf16.gmra.mrb[8].mxu0 %vm499_vm0, %v36800_v18  ;;  %v38960_v18 = vld [vmem:[%s37862_s23 + $0x2c] sm:$0xff]  }
 0x21d   : > { %32353 = vmatprep.mubr.msk.bf16.mxu0 %vm499_vm0, %v36803_v23  ;;  %11617 = vrot.lane.b32.xlu1 %v38960_v18, %s37807_s24  ;;  %v36865_v23 = vld [vmem:[%s44729_s1 + $0x420] sm:$0xff]  }
 0x21e   : > { %5734 = vrot.lane.b32.xlu0 %v38948_v21, %s37808_s25 }
 0x220   : > { %32944 = vmatmul.mubr.msk.bf16.gmra.mrb[8].mxu1 %vm499_vm0, %v36802_v24  ;;  %v36864_v24 = vld [vmem:[%s44729_s1 + $0x428] sm:$0xff]  }
 0x221   : > { %32947 = vmatprep.mubr.msk.bf16.mxu1 %vm499_vm0, %v36805_v25  ;;  %12293 = vrot.lane.b32.xlu1 %v38960_v18, %s37808_s25  ;;  %v36867_v25 = vld [vmem:[%s44729_s1 + $0x430] sm:$0xff]  }
 0x224   : > { %32354 = vmatmul.mubr.msk.bf16.gmra.mrb[12].mxu0 %vm499_vm0, %v36804_v26  ;;  %v36866_v26 = vld [vmem:[%s44729_s1 + $0x428] sm:$0xff]  }
 0x225   : > { %32357 = vmatprep.mubr.msk.bf16.mxu0 %vm499_vm0, %v36807_v27  ;;  %v36869_v27 = vld [vmem:[%s44729_s1 + $0x430] sm:$0xff]  }
 0x228   : > { %32948 = vmatmul.mubr.msk.bf16.gmra.mrb[12].mxu1 %vm499_vm0, %v36806_v28  ;;  %v36868_v28 = vld [vmem:[%s44729_s1 + $0x438] sm:$0xff]  }
 0x229   : > { %32951 = vmatprep.mubr.msk.bf16.mxu1 %vm499_vm0, %v36809_v29  ;;  %v36871_v29 = vld [vmem:[%s44729_s1 + $0x440] sm:$0xff]  }
 0x22c   : > { %32358 = vmatmul.mubr.msk.bf16.gmra.mrb[16].mxu0 %vm499_vm0, %v36808_v30  ;;  %v36870_v30 = vld [vmem:[%s44729_s1 + $0x438] sm:$0xff]  }
 0x22d   : > { %32361 = vmatprep.mubr.msk.bf16.mxu0 %vm499_vm0, %v36811_v31  ;;  %v36873_v31 = vld [vmem:[%s44729_s1 + $0x440] sm:$0xff]  }
 0x230   : > { %32952 = vmatmul.mubr.msk.bf16.gmra.mrb[16].mxu1 %vm499_vm0, %v36810_v32  ;;  %v36872_v32 = vld [vmem:[%s44729_s1 + $0x448] sm:$0xff]  }
 0x231   : > { %32955 = vmatprep.mubr.msk.bf16.mxu1 %vm499_vm0, %v36813_v33  ;;  %v36875_v33 = vld [vmem:[%s44729_s1 + $0x450] sm:$0xff]  }
 0x234   : > { %32362 = vmatmul.mubr.msk.bf16.gmra.mrb[20].mxu0 %vm499_vm0, %v36812_v34  ;;  %v36874_v34 = vld [vmem:[%s44729_s1 + $0x448] sm:$0xff]  }
 0x235   : > { %32365 = vmatprep.mubr.msk.bf16.mxu0 %vm499_vm0, %v36815_v35  ;;  %v36877_v35 = vld [vmem:[%s44729_s1 + $0x450] sm:$0xff]  }
 0x238   : > { %32956 = vmatmul.mubr.msk.bf16.gmra.mrb[20].mxu1 %vm499_vm0, %v36814_v36  ;;  %v36876_v36 = vld [vmem:[%s44729_s1 + $0x458] sm:$0xff]  }
 0x239   : > { %32959 = vmatprep.mubr.msk.bf16.mxu1 %vm499_vm0, %v36817_v37  ;;  %v36879_v37 = vld [vmem:[%s44729_s1 + $0x460] sm:$0xff]  }
 0x23c   : > { %32366 = vmatmul.mubr.msk.bf16.gmra.mrb[24].mxu0 %vm499_vm0, %v36816_v38  ;;  %v36878_v38 = vld [vmem:[%s44729_s1 + $0x458] sm:$0xff]  }
 0x23d   : > { %32369 = vmatprep.mubr.msk.bf16.mxu0 %vm499_vm0, %v36819_v39  ;;  %v36881_v39 = vld [vmem:[%s44729_s1 + $0x460] sm:$0xff]  }
 0x240   : > { %32960 = vmatmul.mubr.msk.bf16.gmra.mrb[24].mxu1 %vm499_vm0, %v36818_v40  ;;  %v36880_v40 = vld [vmem:[%s44729_s1 + $0x468] sm:$0xff]  }
 0x241   : > { %32963 = vmatprep.mubr.msk.bf16.mxu1 %vm499_vm0, %v36821_v41  ;;  %v36883_v41 = vld [vmem:[%s44729_s1 + $0x470] sm:$0xff]  }
 0x244   : > { %32370 = vmatmul.mubr.msk.bf16.gmra.mrb[28].mxu0 %vm499_vm0, %v36820_v42  ;;  %v36882_v42 = vld [vmem:[%s44729_s1 + $0x468] sm:$0xff]  }
 0x245   : > { %32373 = vmatprep.mubr.msk.bf16.mxu0 %vm499_vm0, %v36823_v43  ;;  %v36885_v43 = vld [vmem:[%s44729_s1 + $0x470] sm:$0xff]  }
 0x248   : > { %32964 = vmatmul.mubr.msk.bf16.gmra.mrb[28].mxu1 %vm499_vm0, %v36822_v44  ;;  %v36884_v44 = vld [vmem:[%s44729_s1 + $0x478] sm:$0xff]  }
 0x249   : > { %32967 = vmatprep.mubr.msk.bf16.mxu1 %vm499_vm0, %v36825_v45  ;;  %v36887_v45 = vld [vmem:[%s44729_s1 + $0x480] sm:$0xff]  }
 0x24c   : > { %32374 = vmatmul.mubr.msk.bf16.gmra.mrb[32].mxu0 %vm499_vm0, %v36824_v46  ;;  %v36886_v46 = vld [vmem:[%s44729_s1 + $0x478] sm:$0xff]  }
 0x24d   : > { %32377 = vmatprep.mubr.msk.bf16.mxu0 %vm499_vm0, %v36827_v47  ;;  %v36889_v47 = vld [vmem:[%s44729_s1 + $0x480] sm:$0xff]  }
 0x250   : > { %32968 = vmatmul.mubr.msk.bf16.gmra.mrb[32].mxu1 %vm499_vm0, %v36826_v48  ;;  %v36888_v48 = vld [vmem:[%s44729_s1 + $0x488] sm:$0xff]  }
 0x251   : > { %32971 = vmatprep.mubr.msk.bf16.mxu1 %vm499_vm0, %v36829_v49  ;;  %v36891_v49 = vld [vmem:[%s44729_s1 + $0x490] sm:$0xff]  }
 0x254   : > { %32378 = vmatmul.mubr.msk.bf16.gmra.mrb[36].mxu0 %vm499_vm0, %v36828_v50  ;;  %v36890_v50 = vld [vmem:[%s44729_s1 + $0x488] sm:$0xff]  }
 0x255   : > { %32381 = vmatprep.mubr.msk.bf16.mxu0 %vm499_vm0, %v36831_v51  ;;  %v36893_v51 = vld [vmem:[%s44729_s1 + $0x490] sm:$0xff]  }
 0x258   : > { %32972 = vmatmul.mubr.msk.bf16.gmra.mrb[36].mxu1 %vm499_vm0, %v36830_v52  ;;  %v36892_v52 = vld [vmem:[%s44729_s1 + $0x498] sm:$0xff]  }
 0x259   : > { %32975 = vmatprep.mubr.msk.bf16.mxu1 %vm499_vm0, %v36833_v53  ;;  %v36895_v53 = vld [vmem:[%s44729_s1 + $0x4a0] sm:$0xff]  }
 0x25c   : > { %32382 = vmatmul.mubr.msk.bf16.gmra.mrb[40].mxu0 %vm499_vm0, %v36832_v54  ;;  %v36894_v54 = vld [vmem:[%s44729_s1 + $0x498] sm:$0xff]  }
 0x25d   : > { %32385 = vmatprep.mubr.msk.bf16.mxu0 %vm499_vm0, %v36835_v55  ;;  %v36897_v55 = vld [vmem:[%s44729_s1 + $0x4a0] sm:$0xff]  }
 0x260   : > { %32976 = vmatmul.mubr.msk.bf16.gmra.mrb[40].mxu1 %vm499_vm0, %v36834_v56  ;;  %v36896_v56 = vld [vmem:[%s44729_s1 + $0x4a8] sm:$0xff]  }
 0x261   : > { %32979 = vmatprep.mubr.msk.bf16.mxu1 %vm499_vm0, %v36837_v57  ;;  %v36899_v57 = vld [vmem:[%s44729_s1 + $0x4b0] sm:$0xff]  }
 0x264   : > { %32386 = vmatmul.mubr.msk.bf16.gmra.mrb[44].mxu0 %vm499_vm0, %v36836_v58  ;;  %v36898_v58 = vld [vmem:[%s44729_s1 + $0x4a8] sm:$0xff]  }
 0x265   : > { %32389 = vmatprep.mubr.msk.bf16.mxu0 %vm499_vm0, %v36839_v59  ;;  %v36901_v59 = vld [vmem:[%s44729_s1 + $0x4b0] sm:$0xff]  }
 0x268   : > { %32980 = vmatmul.mubr.msk.bf16.gmra.mrb[44].mxu1 %vm499_vm0, %v36838_v60  ;;  %v36900_v60 = vld [vmem:[%s44729_s1 + $0x4b8] sm:$0xff]  }
 0x269   : > { %32983 = vmatprep.mubr.msk.bf16.mxu1 %vm499_vm0, %v36841_v61  ;;  %v36903_v61 = vld [vmem:[%s44729_s1 + $0x4c0] sm:$0xff]  }
 0x26c   : > { %32390 = vmatmul.mubr.msk.bf16.gmra.mrb[48].mxu0 %vm499_vm0, %v36840_v62  ;;  %v36902_v62 = vld [vmem:[%s44729_s1 + $0x4b8] sm:$0xff]  }
 0x26d   : > { %32393 = vmatprep.mubr.msk.bf16.mxu0 %vm499_vm0, %v36843_v63  ;;  %v36905_v63 = vld [vmem:[%s44729_s1 + $0x4c0] sm:$0xff]  }
 0x270   : > { %32984 = vmatmul.mubr.msk.bf16.gmra.mrb[48].mxu1 %vm499_vm0, %v36842_v0  ;;  %v36904_v0 = vld [vmem:[%s44729_s1 + $0x4c8] sm:$0xff]  }
 0x271   : > { %32987 = vmatprep.mubr.msk.bf16.mxu1 %vm499_vm0, %v36845_v1  ;;  %v36907_v1 = vld [vmem:[%s44729_s1 + $0x4d0] sm:$0xff]  }
 0x274   : > { %32394 = vmatmul.mubr.msk.bf16.gmra.mrb[52].mxu0 %vm499_vm0, %v36844_v2  ;;  %v36906_v2 = vld [vmem:[%s44729_s1 + $0x4c8] sm:$0xff]  }
 0x275   : > { %32397 = vmatprep.mubr.msk.bf16.mxu0 %vm499_vm0, %v36847_v3  ;;  %v36909_v3 = vld [vmem:[%s44729_s1 + $0x4d0] sm:$0xff]  }
 0x278   : > { %32988 = vmatmul.mubr.msk.bf16.gmra.mrb[52].mxu1 %vm499_vm0, %v36846_v4  ;;  %v36908_v4 = vld [vmem:[%s44729_s1 + $0x4d8] sm:$0xff]  }
 0x279   : > { %32991 = vmatprep.mubr.msk.bf16.mxu1 %vm499_vm0, %v36849_v5  ;;  %v36911_v5 = vld [vmem:[%s44729_s1 + $0x4e0] sm:$0xff]  }
 0x27c   : > { %32398 = vmatmul.mubr.msk.bf16.gmra.mrb[56].mxu0 %vm499_vm0, %v36848_v6  ;;  %v36910_v6 = vld [vmem:[%s44729_s1 + $0x4d8] sm:$0xff]  }
 0x27d   : > { %32401 = vmatprep.mubr.msk.bf16.mxu0 %vm499_vm0, %v36851_v8  ;;  %v36913_v8 = vld [vmem:[%s44729_s1 + $0x4e0] sm:$0xff]  }
 0x280   : > { %32992 = vmatmul.mubr.msk.bf16.gmra.mrb[56].mxu1 %vm499_vm0, %v36850_v9  ;;  %v36912_v9 = vld [vmem:[%s44729_s1 + $0x4e8] sm:$0xff]  }
 0x281   : > { %32995 = vmatprep.mubr.msk.bf16.mxu1 %vm499_vm0, %v36853_v10  ;;  %v36915_v10 = vld [vmem:[%s44729_s1 + $0x4f0] sm:$0xff]  }
 0x284   : > { %32402 = vmatmul.mubr.msk.bf16.gmra.mrb[60].mxu0 %vm499_vm0, %v36852_v11  ;;  %v36914_v11 = vld [vmem:[%s44729_s1 + $0x4e8] sm:$0xff]  }
 0x285   : > { %32407 = vmatprep.mubr.msk.bf16.mxu0 %vm499_vm0, %v36855_v13  ;;  %v36917_v13 = vld [vmem:[%s44729_s1 + $0x4f0] sm:$0xff]  }
 0x288   : > { %32996 = vmatmul.mubr.msk.bf16.gmra.mrb[60].mxu1 %vm499_vm0, %v36854_v15  ;;  %v36916_v15 = vld [vmem:[%s44729_s1 + $0x4f8] sm:$0xff]  }
 0x289   : > { %33001 = vmatprep.mubr.msk.bf16.mxu1 %vm499_vm0, %v36857_v12  ;;  %v36919_v12 = vld [vmem:[%s44729_s1 + $0x500] sm:$0xff]  }
 0x28c   : > { %32408 = vmatmul.mubr.msk.bf16.vlgmr.msra.gmra.mrb[0].mxu0 %vm499_vm0, %v36856_v17  ;;  %v36918_v17 = vld [vmem:[%s44729_s1 + $0x4f8] sm:$0xff]  }
 0x28d   : > { %32472 = vmatpush3.bf16.msra.mxu0 %v38680_v14  ;;  %32411 = vmatprep.mubr.msk.bf16.mxu0 %vm499_vm0, %v36859_v19  ;;  %v36863_v14 = vld [vmem:[%s44729_s1 + $0x420] sm:$0xff]  }
 0x28e   : > { %32537 = vmatprep.subr.bf16.mxu0 %v38948_v21  ;;  %v36921_v19 = vld [vmem:[%s44729_s1 + $0x500] sm:$0xff]  }
 0x290   : > { %33002 = vmatmul.mubr.msk.bf16.vlgmr.msra.gmra.mrb[0].mxu1 %vm499_vm0, %v36858_v20  ;;  %v36920_v20 = vld [vmem:[%s44729_s1 + $0x508] sm:$0xff]  }
 0x291   : > { %33066 = vmatpush3.bf16.msra.mxu1 %v38691_v16  ;;  %33005 = vmatprep.mubr.msk.bf16.mxu1 %vm499_vm0, %v36861_v7  ;;  %v36862_v16 = vld [vmem:[%s44729_s1 + $0x418] sm:$0xff]   ;;  %v36925_v7 = vld [vmem:[%s44729_s1 + $0x510] sm:$0xff]  }
 0x292   : > { %33131 = vmatprep.subr.bf16.mxu1 %v38960_v18 }
 0x294   : > { %32412 = vmatmul.mubr.msk.bf16.gmra.mrb[4].mxu0 %vm499_vm0, %v36860_v22  ;;  %v36923_v22 = vld [vmem:[%s44729_s1 + $0x508] sm:$0xff]  }
 0x295   : > { %32415 = vmatprep.mubr.msk.bf16.mxu0 %vm499_vm0, %v36863_v14  ;;  %v39218_v14 = vpop.permute.xlu0 %5057 }
 0x298   : > { %33006 = vmatmul.mubr.msk.bf16.gmra.mrb[4].mxu1 %vm499_vm0, %v36862_v16  ;;  %v36927_v16 = vld [vmem:[%s44729_s1 + $0x510] sm:$0xff]  }
 0x299   : > { %33009 = vmatprep.mubr.msk.bf16.mxu1 %vm499_vm0, %v36865_v23  ;;  %v36926_v23 = vld [vmem:[%s44729_s1 + $0x518] sm:$0xff]  }
 0x29c   : > { %32416 = vmatmul.mubr.msk.bf16.gmra.mrb[8].mxu0 %vm499_vm0, %v36864_v24  ;;  %v39229_v24 = vpop.permute.xlu1 %11617 }
 0x29d   : > { %32419 = vmatprep.mubr.msk.bf16.mxu0 %vm499_vm0, %v36867_v25  ;;  %v36928_v25 = vld [vmem:[%s44729_s1 + $0x518] sm:$0xff]  }
 0x2a0   : > { %33010 = vmatmul.mubr.msk.bf16.gmra.mrb[8].mxu1 %vm499_vm0, %v36866_v26  ;;  %v36931_v26 = vld [vmem:[%s44729_s1 + $0x520] sm:$0xff]  }
 0x2a1   : > { %33013 = vmatprep.mubr.msk.bf16.mxu1 %vm499_vm0, %v36869_v27  ;;  %v36933_v27 = vld [vmem:[%s44729_s1 + $0x530] sm:$0xff]  }
 0x2a4   : > { %32420 = vmatmul.mubr.msk.bf16.gmra.mrb[12].mxu0 %vm499_vm0, %v36868_v28  ;;  %v36932_v28 = vld [vmem:[%s44729_s1 + $0x528] sm:$0xff]  }
 0x2a5   : > { %32423 = vmatprep.mubr.msk.bf16.mxu0 %vm499_vm0, %v36871_v29  ;;  %v36935_v29 = vld [vmem:[%s44729_s1 + $0x530] sm:$0xff]  }
 0x2a8   : > { %33014 = vmatmul.mubr.msk.bf16.gmra.mrb[12].mxu1 %vm499_vm0, %v36870_v30  ;;  %v36934_v30 = vld [vmem:[%s44729_s1 + $0x538] sm:$0xff]  }
 0x2a9   : > { %33017 = vmatprep.mubr.msk.bf16.mxu1 %vm499_vm0, %v36873_v31  ;;  %v36937_v31 = vld [vmem:[%s44729_s1 + $0x540] sm:$0xff]  }
 0x2ac   : > { %32424 = vmatmul.mubr.msk.bf16.gmra.mrb[16].mxu0 %vm499_vm0, %v36872_v32  ;;  %v36936_v32 = vld [vmem:[%s44729_s1 + $0x538] sm:$0xff]  }
 0x2ad   : > { %32427 = vmatprep.mubr.msk.bf16.mxu0 %vm499_vm0, %v36875_v33  ;;  %v36939_v33 = vld [vmem:[%s44729_s1 + $0x540] sm:$0xff]  }
 0x2b0   : > { %33018 = vmatmul.mubr.msk.bf16.gmra.mrb[16].mxu1 %vm499_vm0, %v36874_v34  ;;  %v36938_v34 = vld [vmem:[%s44729_s1 + $0x548] sm:$0xff]  }
 0x2b1   : > { %33021 = vmatprep.mubr.msk.bf16.mxu1 %vm499_vm0, %v36877_v35  ;;  %v36941_v35 = vld [vmem:[%s44729_s1 + $0x550] sm:$0xff]  }
 0x2b4   : > { %32428 = vmatmul.mubr.msk.bf16.gmra.mrb[20].mxu0 %vm499_vm0, %v36876_v36  ;;  %v36940_v36 = vld [vmem:[%s44729_s1 + $0x548] sm:$0xff]  }
 0x2b5   : > { %32431 = vmatprep.mubr.msk.bf16.mxu0 %vm499_vm0, %v36879_v37  ;;  %v36943_v37 = vld [vmem:[%s44729_s1 + $0x550] sm:$0xff]  }
 0x2b8   : > { %33022 = vmatmul.mubr.msk.bf16.gmra.mrb[20].mxu1 %vm499_vm0, %v36878_v38  ;;  %v36942_v38 = vld [vmem:[%s44729_s1 + $0x558] sm:$0xff]  }
 0x2b9   : > { %33025 = vmatprep.mubr.msk.bf16.mxu1 %vm499_vm0, %v36881_v39  ;;  %v36945_v39 = vld [vmem:[%s44729_s1 + $0x560] sm:$0xff]  }
 0x2bc   : > { %32432 = vmatmul.mubr.msk.bf16.gmra.mrb[24].mxu0 %vm499_vm0, %v36880_v40  ;;  %v36944_v40 = vld [vmem:[%s44729_s1 + $0x558] sm:$0xff]  }
 0x2bd   : > { %32435 = vmatprep.mubr.msk.bf16.mxu0 %vm499_vm0, %v36883_v41  ;;  %v36947_v41 = vld [vmem:[%s44729_s1 + $0x560] sm:$0xff]  }
 0x2c0   : > { %33026 = vmatmul.mubr.msk.bf16.gmra.mrb[24].mxu1 %vm499_vm0, %v36882_v42  ;;  %v36946_v42 = vld [vmem:[%s44729_s1 + $0x568] sm:$0xff]  }
 0x2c1   : > { %33029 = vmatprep.mubr.msk.bf16.mxu1 %vm499_vm0, %v36885_v43  ;;  %v37010_v43 = vld [vmem:[%s37862_s23 + $0xc] sm:$0xff]  }
 0x2c2   : > { %20179 = vrot.lane.b32.xlu1 %v37010_v43, %s37807_s24 }
 0x2c4   : > { %32436 = vmatmul.mubr.msk.bf16.gmra.mrb[28].mxu0 %vm499_vm0, %v36884_v44  ;;  %v37011_v44 = vld [vmem:[%s37862_s23 + $0x8] sm:$0xff]  }
 0x2c5   : > { %32439 = vmatprep.mubr.msk.bf16.mxu0 %vm499_vm0, %v36887_v45  ;;  %v36949_v45 = vld [vmem:[%s44729_s1 + $0x570] sm:$0xff]   ;;  %13621 = vrot.lane.b32.xlu0 %v37011_v44, %s37807_s24 }
 0x2c6   : > { %21337 = vrot.lane.b32.xlu1 %v37010_v43, %s37808_s25  ;;  %v36978_v43 = vld [vmem:[%s44729_s1 + $0x5e8] sm:$0xff]  }
 0x2c8   : > { %33030 = vmatmul.mubr.msk.bf16.gmra.mrb[28].mxu1 %vm499_vm0, %v36886_v46  ;;  %v36948_v46 = vld [vmem:[%s44729_s1 + $0x568] sm:$0xff]  }
 0x2c9   : > { %33033 = vmatprep.mubr.msk.bf16.mxu1 %vm499_vm0, %v36889_v47  ;;  %v36951_v47 = vld [vmem:[%s44729_s1 + $0x570] sm:$0xff]   ;;  %14779 = vrot.lane.b32.xlu0 %v37011_v44, %s37808_s25  ;;  %v39565_v44 = vld [vmem:[%s44730_s2 + $0xe0] sm:$0xff] }
 0x2cc   : > { %32440 = vmatmul.mubr.msk.bf16.gmra.mrb[32].mxu0 %vm499_vm0, %v36888_v48  ;;  %v36950_v48 = vld [vmem:[%s44729_s1 + $0x578] sm:$0xff]  }
 0x2cd   : > { %32443 = vmatprep.mubr.msk.bf16.mxu0 %vm499_vm0, %v36891_v49  ;;  %v6187_v49 = vld [vmem:[%s44730_s2 + $0x8] sm:$0xff] }
 0x2d0   : > { %33034 = vmatmul.mubr.msk.bf16.gmra.mrb[32].mxu1 %vm499_vm0, %v36890_v50  ;;  %v6186_v50 = vld [vmem:[%s44730_s2] sm:$0xff] }
 0x2d1   : > { %33037 = vmatprep.mubr.msk.bf16.mxu1 %vm499_vm0, %v36893_v51  ;;  %v36953_v51 = vld [vmem:[%s44729_s1 + $0x580] sm:$0xff]  }
 0x2d4   : > { %32444 = vmatmul.mubr.msk.bf16.gmra.mrb[36].mxu0 %vm499_vm0, %v36892_v52  ;;  %v37809_v52 = vmov 0  }
 0x2d5   : > { %32447 = vmatprep.mubr.msk.bf16.mxu0 %vm499_vm0, %v36895_v53  ;;  %36594 = vset.pattern.permute.xlu1 %v37809_v52  ;;  %v36952_v53 = vld [vmem:[%s44729_s1 + $0x578] sm:$0xff]  }
 0x2d6   : > { %36593 = vset.pattern.permute.xlu0 %v37809_v52  ;;  %6257 = vperm.xlu1 %36594, %v6187_v49   ;;  %v39590_v49 = vld [vmem:[%s44730_s2 + $0xf8] sm:$0xff] }
 0x2d7   : > { %6252 = vperm.xlu0 %36593, %v6186_v50   ;;  %v36983_v50 = vld [vmem:[%s44729_s1 + $0x5f0] sm:$0xff]   ;;  %v39603_v52 = vld [vmem:[%s37862_s23 + $0x1c] sm:$0xff]  }
 0x2d8   : > { %33038 = vmatmul.mubr.msk.bf16.gmra.mrb[36].mxu1 %vm499_vm0, %v36894_v54  ;;  %v6188_v54 = vld [vmem:[%s44730_s2 + $0x10] sm:$0xff] }
 0x2d9   : > { %33041 = vmatprep.mubr.msk.bf16.mxu1 %vm499_vm0, %v36897_v55  ;;  %v6189_v55 = vld [vmem:[%s44730_s2 + $0x18] sm:$0xff] }
 0x2da   : > { %6262 = vperm.xlu1 %36594, %v6188_v54   ;;  %v36985_v54 = vld [vmem:[%s44729_s1 + $0x600] sm:$0xff]  }
 0x2db   : > { %6267 = vperm.xlu0 %36593, %v6189_v55   ;;  %v36984_v55 = vld [vmem:[%s44729_s1 + $0x5f8] sm:$0xff]  }
 0x2dc   : > { %32448 = vmatmul.mubr.msk.bf16.gmra.mrb[40].mxu0 %vm499_vm0, %v36896_v56  ;;  %v36955_v56 = vld [vmem:[%s44729_s1 + $0x580] sm:$0xff]  }
 0x2dd   : > { %32451 = vmatprep.mubr.msk.bf16.mxu0 %vm499_vm0, %v36899_v57  ;;  %v36954_v57 = vld [vmem:[%s44729_s1 + $0x588] sm:$0xff]  }
 0x2e0   : > { %33042 = vmatmul.mubr.msk.bf16.gmra.mrb[40].mxu1 %vm499_vm0, %v36898_v58  ;;  %v6190_v58 = vld [vmem:[%s44730_s2 + $0x20] sm:$0xff] }
 0x2e1   : > { %33045 = vmatprep.mubr.msk.bf16.mxu1 %vm499_vm0, %v36901_v59  ;;  %v6191_v59 = vld [vmem:[%s44730_s2 + $0x28] sm:$0xff]  ;;  %6272 = vperm.xlu1 %36594, %v6190_v58   ;;  %v36987_v58 = vld [vmem:[%s44729_s1 + $0x600] sm:$0xff]  }
 0x2e2   : > { %6277 = vperm.xlu0 %36593, %v6191_v59   ;;  %v36986_v59 = vld [vmem:[%s44729_s1 + $0x608] sm:$0xff]  }
 0x2e4   : > { %32452 = vmatmul.mubr.msk.bf16.gmra.mrb[44].mxu0 %vm499_vm0, %v36900_v60  ;;  %v36957_v60 = vld [vmem:[%s44729_s1 + $0x590] sm:$0xff]  }
 0x2e5   : > { %32455 = vmatprep.mubr.msk.bf16.mxu0 %vm499_vm0, %v36903_v61  ;;  %v36956_v61 = vld [vmem:[%s44729_s1 + $0x588] sm:$0xff]  }
 0x2e8   : > { %33046 = vmatmul.mubr.msk.bf16.gmra.mrb[44].mxu1 %vm499_vm0, %v36902_v62  ;;  %v6192_v62 = vld [vmem:[%s44730_s2 + $0x30] sm:$0xff] }
 0x2e9   : > { %33049 = vmatprep.mubr.msk.bf16.mxu1 %vm499_vm0, %v36905_v63  ;;  %v6193_v63 = vld [vmem:[%s44730_s2 + $0x38] sm:$0xff]  ;;  %6282 = vperm.xlu1 %36594, %v6192_v62   ;;  %v36989_v62 = vld [vmem:[%s44729_s1 + $0x610] sm:$0xff]  }
 0x2ea   : > { %6287 = vperm.xlu0 %36593, %v6193_v63   ;;  %v36988_v63 = vld [vmem:[%s44729_s1 + $0x608] sm:$0xff]  }
 0x2ec   : > { %32456 = vmatmul.mubr.msk.bf16.gmra.mrb[48].mxu0 %vm499_vm0, %v36904_v0  ;;  %v36959_v0 = vld [vmem:[%s44729_s1 + $0x590] sm:$0xff]  }
 0x2ed   : > { %32459 = vmatprep.mubr.msk.bf16.mxu0 %vm499_vm0, %v36907_v1  ;;  %v36958_v1 = vld [vmem:[%s44729_s1 + $0x598] sm:$0xff]  }
 0x2f0   : > { %33050 = vmatmul.mubr.msk.bf16.gmra.mrb[48].mxu1 %vm499_vm0, %v36906_v2  ;;  %v6194_v2 = vld [vmem:[%s44730_s2 + $0x40] sm:$0xff] }
 0x2f1   : > { %33053 = vmatprep.mubr.msk.bf16.mxu1 %vm499_vm0, %v36909_v3  ;;  %v6195_v3 = vld [vmem:[%s44730_s2 + $0x48] sm:$0xff]  ;;  %6292 = vperm.xlu1 %36594, %v6194_v2  }
 0x2f2   : > { %6297 = vperm.xlu0 %36593, %v6195_v3   ;;  %v39670_v2 = vld [vmem:[%s44730_s2 + $0x128] sm:$0xff]  ;;  %v36991_v3 = vld [vmem:[%s44729_s1 + $0x610] sm:$0xff]  }
 0x2f4   : > { %32460 = vmatmul.mubr.msk.bf16.gmra.mrb[52].mxu0 %vm499_vm0, %v36908_v4  ;;  %v36961_v4 = vld [vmem:[%s44729_s1 + $0x5a0] sm:$0xff]  }
 0x2f5   : > { %32463 = vmatprep.mubr.msk.bf16.mxu0 %vm499_vm0, %v36911_v5  ;;  %v36960_v5 = vld [vmem:[%s44729_s1 + $0x598] sm:$0xff]  }
 0x2f8   : > { %33054 = vmatmul.mubr.msk.bf16.gmra.mrb[52].mxu1 %vm499_vm0, %v36910_v6  ;;  %v6196_v6 = vld [vmem:[%s44730_s2 + $0x50] sm:$0xff] }
 0x2f9   : > { %33057 = vmatprep.mubr.msk.bf16.mxu1 %vm499_vm0, %v36913_v8  ;;  %v6197_v8 = vld [vmem:[%s44730_s2 + $0x58] sm:$0xff]  ;;  %6302 = vperm.xlu1 %36594, %v6196_v6   ;;  %v39694_v6 = vld [vmem:[%s44730_s2 + $0x130] sm:$0xff] }
 0x2fa   : > { %6307 = vperm.xlu0 %36593, %v6197_v8   ;;  %v39699_v8 = vld [vmem:[%s44730_s2 + $0x138] sm:$0xff] }
 0x2fc   : > { %32464 = vmatmul.mubr.msk.bf16.gmra.mrb[56].mxu0 %vm499_vm0, %v36912_v9  ;;  %v36963_v9 = vld [vmem:[%s44729_s1 + $0x5a0] sm:$0xff]  }
 0x2fd   : > { %32467 = vmatprep.mubr.msk.bf16.mxu0 %vm499_vm0, %v36915_v10  ;;  %v36962_v10 = vld [vmem:[%s44729_s1 + $0x5a8] sm:$0xff]  }
 0x300   : > { %33058 = vmatmul.mubr.msk.bf16.gmra.mrb[56].mxu1 %vm499_vm0, %v36914_v11  ;;  %v6198_v11 = vld [vmem:[%s44730_s2 + $0x60] sm:$0xff] }
 0x301   : > { %33061 = vmatprep.mubr.msk.bf16.mxu1 %vm499_vm0, %v36917_v13  ;;  %v6199_v13 = vld [vmem:[%s44730_s2 + $0x68] sm:$0xff]  ;;  %6312 = vperm.xlu1 %36594, %v6198_v11   ;;  %v36995_v11 = vld [vmem:[%s44729_s1 + $0x620] sm:$0xff]  }
 0x302   : > { %6317 = vperm.xlu0 %36593, %v6199_v13   ;;  %v36994_v13 = vld [vmem:[%s44729_s1 + $0x628] sm:$0xff]  }
 0x304   : > { %32468 = vmatmul.mubr.msk.bf16.gmra.mrb[60].mxu0 %vm499_vm0, %v36916_v15  ;;  %v36965_v15 = vld [vmem:[%s44729_s1 + $0x5b0] sm:$0xff]  }
 0x305   : > { %32473 = vmatprep.mubr.msk.bf16.mxu0 %vm499_vm0, %v36919_v12  ;;  %v36964_v12 = vld [vmem:[%s44729_s1 + $0x5a8] sm:$0xff]  }
 0x308   : > { %33062 = vmatmul.mubr.msk.bf16.gmra.mrb[60].mxu1 %vm499_vm0, %v36918_v17  ;;  %v6200_v17 = vld [vmem:[%s44730_s2 + $0x70] sm:$0xff] }
 0x309   : > { %33067 = vmatprep.mubr.msk.bf16.mxu1 %vm499_vm0, %v36921_v19  ;;  %v6201_v19 = vld [vmem:[%s44730_s2 + $0x78] sm:$0xff]  ;;  %6322 = vperm.xlu1 %36594, %v6200_v17   ;;  %v36997_v17 = vld [vmem:[%s44729_s1 + $0x630] sm:$0xff]  }
 0x30a   : > { %6327 = vperm.xlu0 %36593, %v6201_v19   ;;  %v36996_v19 = vld [vmem:[%s44729_s1 + $0x628] sm:$0xff]  }
 0x30c   : > { %32474 = vmatmul.mubr.msk.bf16.vlgmr.msra.gmra.mrb[0].mxu0 %vm499_vm0, %v36920_v20  ;;  %v36967_v20 = vld [vmem:[%s44729_s1 + $0x5b0] sm:$0xff]  }
 0x30d   : > { %32538 = vmatpush3.bf16.msra.mxu0 %v38948_v21  ;;  %32477 = vmatprep.mubr.msk.bf16.mxu0 %vm499_vm0, %v36925_v7  ;;  %v36929_v21 = vld [vmem:[%s44729_s1 + $0x520] sm:$0xff]   ;;  %v36966_v7 = vld [vmem:[%s44729_s1 + $0x5b8] sm:$0xff]  }
 0x30e   : > { %32603 = vmatprep.subr.bf16.mxu0 %v39218_v14 }
 0x310   : > { %33068 = vmatmul.mubr.msk.bf16.vlgmr.msra.gmra.mrb[0].mxu1 %vm499_vm0, %v36923_v22  ;;  %v6202_v22 = vld [vmem:[%s44730_s2 + $0x80] sm:$0xff] }
 0x311   : > { %33132 = vmatpush3.bf16.msra.mxu1 %v38960_v18  ;;  %33071 = vmatprep.mubr.msk.bf16.mxu1 %vm499_vm0, %v36927_v16  ;;  %v36930_v18 = vld [vmem:[%s44729_s1 + $0x528] sm:$0xff]  }
 0x312   : > { %33197 = vmatprep.subr.bf16.mxu1 %v39229_v24  ;;  %v6203_v16 = vld [vmem:[%s44730_s2 + $0x88] sm:$0xff]  ;;  %6332 = vperm.xlu1 %36594, %v6202_v22   ;;  %v36999_v22 = vld [vmem:[%s44729_s1 + $0x630] sm:$0xff]  }
 0x313   : > { %6337 = vperm.xlu0 %36593, %v6203_v16   ;;  %v36998_v16 = vld [vmem:[%s44729_s1 + $0x638] sm:$0xff]  }
 0x314   : > { %32478 = vmatmul.mubr.msk.bf16.gmra.mrb[4].mxu0 %vm499_vm0, %v36926_v23  ;;  %v36969_v23 = vld [vmem:[%s44729_s1 + $0x5c0] sm:$0xff]  }
 0x315   : > { %32481 = vmatprep.mubr.msk.bf16.mxu0 %vm499_vm0, %v36929_v21  ;;  %v36968_v21 = vld [vmem:[%s44729_s1 + $0x5b8] sm:$0xff]  }
 0x318   : > { %33072 = vmatmul.mubr.msk.bf16.gmra.mrb[4].mxu1 %vm499_vm0, %v36928_v25  ;;  %v39465_v25 = vld [vmem:[%s44730_s2 + $0x90] sm:$0xff] }
 0x319   : > { %33075 = vmatprep.mubr.msk.bf16.mxu1 %vm499_vm0, %v36931_v26  ;;  %v39470_v26 = vld [vmem:[%s44730_s2 + $0x98] sm:$0xff]  ;;  %6342 = vperm.xlu1 %36594, %v39465_v25  }
 0x31a   : > { %6347 = vperm.xlu0 %36593, %v39470_v26  }
 0x31c   : > { %32482 = vmatmul.mubr.msk.bf16.gmra.mrb[8].mxu0 %vm499_vm0, %v36930_v18  ;;  %v36971_v18 = vld [vmem:[%s44729_s1 + $0x5c0] sm:$0xff]  }
 0x31d   : > { %32485 = vmatprep.mubr.msk.bf16.mxu0 %vm499_vm0, %v36933_v27  ;;  %v36970_v27 = vld [vmem:[%s44729_s1 + $0x5c8] sm:$0xff]  }
 0x320   : > { %33076 = vmatmul.mubr.msk.bf16.gmra.mrb[8].mxu1 %vm499_vm0, %v36932_v28  ;;  %v39485_v28 = vld [vmem:[%s44730_s2 + $0xa0] sm:$0xff] }
 0x321   : > { %33079 = vmatprep.mubr.msk.bf16.mxu1 %vm499_vm0, %v36935_v29  ;;  %v39490_v29 = vld [vmem:[%s44730_s2 + $0xa8] sm:$0xff]  ;;  %6352 = vperm.xlu1 %36594, %v39485_v28  }
 0x322   : > { %6357 = vperm.xlu0 %36593, %v39490_v29  }
 0x324   : > { %32486 = vmatmul.mubr.msk.bf16.gmra.mrb[12].mxu0 %vm499_vm0, %v36934_v30  ;;  %v36973_v30 = vld [vmem:[%s44729_s1 + $0x5d0] sm:$0xff]  }
 0x325   : > { %32489 = vmatprep.mubr.msk.bf16.mxu0 %vm499_vm0, %v36937_v31  ;;  %v36972_v31 = vld [vmem:[%s44729_s1 + $0x5c8] sm:$0xff]  }
 0x328   : > { %33080 = vmatmul.mubr.msk.bf16.gmra.mrb[12].mxu1 %vm499_vm0, %v36936_v32  ;;  %v39505_v32 = vld [vmem:[%s44730_s2 + $0xb0] sm:$0xff] }
 0x329   : > { %33083 = vmatprep.mubr.msk.bf16.mxu1 %vm499_vm0, %v36939_v33  ;;  %v39510_v33 = vld [vmem:[%s44730_s2 + $0xb8] sm:$0xff]  ;;  %6362 = vperm.xlu1 %36594, %v39505_v32  }
 0x32a   : > { %6367 = vperm.xlu0 %36593, %v39510_v33  }
 0x32c   : > { %32490 = vmatmul.mubr.msk.bf16.gmra.mrb[16].mxu0 %vm499_vm0, %v36938_v34  ;;  %v36975_v34 = vld [vmem:[%s44729_s1 + $0x5d0] sm:$0xff]  }
 0x32d   : > { %32493 = vmatprep.mubr.msk.bf16.mxu0 %vm499_vm0, %v36941_v35  ;;  %v36974_v35 = vld [vmem:[%s44729_s1 + $0x5d8] sm:$0xff]  }
 0x330   : > { %33084 = vmatmul.mubr.msk.bf16.gmra.mrb[16].mxu1 %vm499_vm0, %v36940_v36  ;;  %v39525_v36 = vld [vmem:[%s44730_s2 + $0xc0] sm:$0xff] }
 0x331   : > { %33087 = vmatprep.mubr.msk.bf16.mxu1 %vm499_vm0, %v36943_v37  ;;  %v39530_v37 = vld [vmem:[%s44730_s2 + $0xc8] sm:$0xff]  ;;  %6372 = vperm.xlu1 %36594, %v39525_v36  }
 0x332   : > { %6377 = vperm.xlu0 %36593, %v39530_v37  }
 0x334   : > { %32494 = vmatmul.mubr.msk.bf16.gmra.mrb[20].mxu0 %vm499_vm0, %v36942_v38  ;;  %v36977_v38 = vld [vmem:[%s44729_s1 + $0x5e0] sm:$0xff]  }
 0x335   : > { %32497 = vmatprep.mubr.msk.bf16.mxu0 %vm499_vm0, %v36945_v39  ;;  %v36976_v39 = vld [vmem:[%s44729_s1 + $0x5d8] sm:$0xff]  }
 0x338   : > { %33088 = vmatmul.mubr.msk.bf16.gmra.mrb[20].mxu1 %vm499_vm0, %v36944_v40  ;;  %v39545_v40 = vld [vmem:[%s44730_s2 + $0xd0] sm:$0xff] }
 0x339   : > { %33091 = vmatprep.mubr.msk.bf16.mxu1 %vm499_vm0, %v36947_v41  ;;  %v39550_v41 = vld [vmem:[%s44730_s2 + $0xd8] sm:$0xff]  ;;  %6382 = vperm.xlu1 %36594, %v39545_v40  }
 0x33a   : > { %6387 = vperm.xlu0 %36593, %v39550_v41  }
 0x33c   : > { %32498 = vmatmul.mubr.msk.bf16.gmra.mrb[24].mxu0 %vm499_vm0, %v36946_v42  ;;  %v36979_v42 = vld [vmem:[%s44729_s1 + $0x5e0] sm:$0xff]  }
 0x33d   : > { %32501 = vmatprep.mubr.msk.bf16.mxu0 %vm499_vm0, %v36949_v45  ;;  %v39570_v45 = vld [vmem:[%s44730_s2 + $0xe8] sm:$0xff]  ;;  %6392 = vperm.xlu1 %36594, %v39565_v44  }
 0x33e   : > { %6397 = vperm.xlu0 %36593, %v39570_v45  }
 0x340   : > { %33092 = vmatmul.mubr.msk.bf16.gmra.mrb[24].mxu1 %vm499_vm0, %v36948_v46  ;;  %v36981_v46 = vld [vmem:[%s44729_s1 + $0x5f0] sm:$0xff]  }
 0x341   : > { %33095 = vmatprep.mubr.msk.bf16.mxu1 %vm499_vm0, %v36951_v47  ;;  %v36980_v47 = vld [vmem:[%s44729_s1 + $0x5e8] sm:$0xff]  }
 0x342   : > { %6407 = vperm.xlu0 %36593, %v39590_v49  }
 0x344   : > { %32502 = vmatmul.mubr.msk.bf16.gmra.mrb[28].mxu0 %vm499_vm0, %v36950_v48  ;;  %v39585_v48 = vld [vmem:[%s44730_s2 + $0xf0] sm:$0xff] }
 0x345   : > { %32505 = vmatprep.mubr.msk.bf16.mxu0 %vm499_vm0, %v36953_v51  ;;  %6402 = vperm.xlu1 %36594, %v39585_v48   ;;  %v36982_v51 = vld [vmem:[%s44729_s1 + $0x5f8] sm:$0xff]  }
 0x348   : > { %33096 = vmatmul.mubr.msk.bf16.gmra.mrb[28].mxu1 %vm499_vm0, %v36952_v53  ;;  %v39606_v53 = vld [vmem:[%s37862_s23 + $0x20] sm:$0xff]  }
 0x349   : > { %33099 = vmatprep.mubr.msk.bf16.mxu1 %vm499_vm0, %v36955_v56  ;;  %16139 = vrot.lane.b32.xlu1 %v39603_v52, %s37807_s24  ;;  %v39623_v56 = vld [vmem:[%s44730_s2 + $0x100] sm:$0xff] }
 0x34a   : > { %22697 = vrot.lane.b32.xlu0 %v39606_v53, %s37807_s24 }
 0x34c   : > { %32506 = vmatmul.mubr.msk.bf16.gmra.mrb[32].mxu0 %vm499_vm0, %v36954_v57  ;;  %v39628_v57 = vld [vmem:[%s44730_s2 + $0x108] sm:$0xff] }
 0x34d   : > { %32509 = vmatprep.mubr.msk.bf16.mxu0 %vm499_vm0, %v36957_v60  ;;  %6412 = vperm.xlu1 %36594, %v39623_v56   ;;  %v39643_v60 = vld [vmem:[%s44730_s2 + $0x110] sm:$0xff] }
 0x34e   : > { %6417 = vperm.xlu0 %36593, %v39628_v57  }
 0x350   : > { %33100 = vmatmul.mubr.msk.bf16.gmra.mrb[32].mxu1 %vm499_vm0, %v36956_v61  ;;  %v39648_v61 = vld [vmem:[%s44730_s2 + $0x118] sm:$0xff] }
 0x351   : > { %33103 = vmatprep.mubr.msk.bf16.mxu1 %vm499_vm0, %v36959_v0  ;;  %6422 = vperm.xlu1 %36594, %v39643_v60   ;;  %v39660_v0 = vpop.permute.xlu0 %5734 }
 0x352   : > { %6427 = vperm.xlu0 %36593, %v39648_v61  }
 0x354   : > { %32510 = vmatmul.mubr.msk.bf16.gmra.mrb[36].mxu0 %vm499_vm0, %v36958_v1  ;;  %v39665_v1 = vld [vmem:[%s44730_s2 + $0x120] sm:$0xff] }
 0x355   : > { %32513 = vmatprep.mubr.msk.bf16.mxu0 %vm499_vm0, %v36961_v4  ;;  %v36990_v4 = vld [vmem:[%s44729_s1 + $0x618] sm:$0xff]   ;;  %6432 = vperm.xlu1 %36594, %v39665_v1  }
 0x356   : > { %6437 = vperm.xlu0 %36593, %v39670_v2  }
 0x358   : > { %33104 = vmatmul.mubr.msk.bf16.gmra.mrb[36].mxu1 %vm499_vm0, %v36960_v5  ;;  %v39682_v5 = vpop.permute.xlu1 %12293 }
 0x359   : > { %33107 = vmatprep.mubr.msk.bf16.mxu1 %vm499_vm0, %v36963_v9  ;;  %6442 = vperm.xlu1 %36594, %v39694_v6   ;;  %v39711_v9 = vld [vmem:[%s44730_s2 + $0x140] sm:$0xff] }
 0x35a   : > { %6447 = vperm.xlu0 %36593, %v39699_v8  }
 0x35c   : > { %32514 = vmatmul.mubr.msk.bf16.gmra.mrb[40].mxu0 %vm499_vm0, %v36962_v10  ;;  %v39716_v10 = vld [vmem:[%s44730_s2 + $0x148] sm:$0xff] }
 0x35d   : > { %32517 = vmatprep.mubr.msk.bf16.mxu0 %vm499_vm0, %v36965_v15  ;;  %6452 = vperm.xlu1 %36594, %v39711_v9   ;;  %v39731_v15 = vld [vmem:[%s44730_s2 + $0x150] sm:$0xff] }
 0x35e   : > { %6457 = vperm.xlu0 %36593, %v39716_v10  }
 0x360   : > { %33108 = vmatmul.mubr.msk.bf16.gmra.mrb[40].mxu1 %vm499_vm0, %v36964_v12  ;;  %v39736_v12 = vld [vmem:[%s44730_s2 + $0x158] sm:$0xff] }
 0x361   : > { %33111 = vmatprep.mubr.msk.bf16.mxu1 %vm499_vm0, %v36967_v20  ;;  %6462 = vperm.xlu1 %36594, %v39731_v15   ;;  %v39751_v20 = vld [vmem:[%s44730_s2 + $0x160] sm:$0xff] }
 0x362   : > { %6467 = vperm.xlu0 %36593, %v39736_v12  }
 0x364   : > { %32518 = vmatmul.mubr.msk.bf16.gmra.mrb[44].mxu0 %vm499_vm0, %v36966_v7  ;;  %v39756_v7 = vld [vmem:[%s44730_s2 + $0x168] sm:$0xff] }
 0x365   : > { %32521 = vmatprep.mubr.msk.bf16.mxu0 %vm499_vm0, %v36969_v23  ;;  %6472 = vperm.xlu1 %36594, %v39751_v20   ;;  %v39771_v23 = vld [vmem:[%s44730_s2 + $0x170] sm:$0xff] }
 0x366   : > { %6477 = vperm.xlu0 %36593, %v39756_v7  }
 0x368   : > { %33112 = vmatmul.mubr.msk.bf16.gmra.mrb[44].mxu1 %vm499_vm0, %v36968_v21  ;;  %v39776_v21 = vld [vmem:[%s44730_s2 + $0x178] sm:$0xff] }
 0x369   : > { %33115 = vmatprep.mubr.msk.bf16.mxu1 %vm499_vm0, %v36971_v18  ;;  %v37001_v18 = vld [vmem:[%s44729_s1 + $0x640] sm:$0xff]   ;;  %6482 = vperm.xlu1 %36594, %v39771_v23  }
 0x36a   : > { %6487 = vperm.xlu0 %36593, %v39776_v21  }
 0x36c   : > { %32522 = vmatmul.mubr.msk.bf16.gmra.mrb[48].mxu0 %vm499_vm0, %v36970_v27  ;;  %v37000_v27 = vld [vmem:[%s44729_s1 + $0x638] sm:$0xff]  }
 0x36d   : > { %32525 = vmatprep.mubr.msk.bf16.mxu0 %vm499_vm0, %v36973_v30  ;;  %v39791_v30 = vld [vmem:[%s44730_s2 + $0x180] sm:$0xff] }
 0x36e   : > { %6492 = vperm.xlu1 %36594, %v39791_v30  }
 0x370   : > { %33116 = vmatmul.mubr.msk.bf16.gmra.mrb[48].mxu1 %vm499_vm0, %v36972_v31  ;;  %v39796_v31 = vld [vmem:[%s44730_s2 + $0x188] sm:$0xff] }
 0x371   : > { %33119 = vmatprep.mubr.msk.bf16.mxu1 %vm499_vm0, %v36975_v34  ;;  %v37003_v34 = vld [vmem:[%s44729_s1 + $0x640] sm:$0xff]   ;;  %6497 = vperm.xlu0 %36593, %v39796_v31  }
 0x374   : > { %32526 = vmatmul.mubr.msk.bf16.gmra.mrb[52].mxu0 %vm499_vm0, %v36974_v35  ;;  %v37002_v35 = vld [vmem:[%s44729_s1 + $0x648] sm:$0xff]  }
 0x375   : > { %32529 = vmatprep.mubr.msk.bf16.mxu0 %vm499_vm0, %v36977_v38  ;;  %v39811_v38 = vld [vmem:[%s44730_s2 + $0x190] sm:$0xff] }
 0x376   : > { %6502 = vperm.xlu1 %36594, %v39811_v38  }
 0x378   : > { %33120 = vmatmul.mubr.msk.bf16.gmra.mrb[52].mxu1 %vm499_vm0, %v36976_v39  ;;  %v39816_v39 = vld [vmem:[%s44730_s2 + $0x198] sm:$0xff] }
 0x379   : > { %33123 = vmatprep.mubr.msk.bf16.mxu1 %vm499_vm0, %v36979_v42  ;;  %v37005_v42 = vld [vmem:[%s44729_s1 + $0x650] sm:$0xff]   ;;  %6507 = vperm.xlu0 %36593, %v39816_v39  }
 0x37c   : > { %32530 = vmatmul.mubr.msk.bf16.gmra.mrb[56].mxu0 %vm499_vm0, %v36978_v43  ;;  %v37004_v43 = vld [vmem:[%s44729_s1 + $0x648] sm:$0xff]  }
 0x37d   : > { %32533 = vmatprep.mubr.msk.bf16.mxu0 %vm499_vm0, %v36981_v46  ;;  %v39831_v46 = vld [vmem:[%s44730_s2 + $0x1a0] sm:$0xff] }
 0x37e   : > { %6512 = vperm.xlu1 %36594, %v39831_v46  }
 0x380   : > { %33124 = vmatmul.mubr.msk.bf16.gmra.mrb[56].mxu1 %vm499_vm0, %v36980_v47  ;;  %v39836_v47 = vld [vmem:[%s44730_s2 + $0x1a8] sm:$0xff] }
 0x381   : > { %33127 = vmatprep.mubr.msk.bf16.mxu1 %vm499_vm0, %v36983_v50  ;;  %v37007_v50 = vld [vmem:[%s44729_s1 + $0x650] sm:$0xff]   ;;  %6517 = vperm.xlu0 %36593, %v39836_v47  }
 0x384   : > { %32534 = vmatmul.mubr.msk.bf16.gmra.mrb[60].mxu0 %vm499_vm0, %v36982_v51  ;;  %v37006_v51 = vld [vmem:[%s44729_s1 + $0x658] sm:$0xff]  }
 0x385   : > { %32539 = vmatprep.mubr.msk.bf16.mxu0 %vm499_vm0, %v36985_v54  ;;  %v39851_v54 = vld [vmem:[%s44730_s2 + $0x1b0] sm:$0xff] }
 0x386   : > { %6522 = vperm.xlu1 %36594, %v39851_v54  }
 0x388   : > { %33128 = vmatmul.mubr.msk.bf16.gmra.mrb[60].mxu1 %vm499_vm0, %v36984_v55  ;;  %v39856_v55 = vld [vmem:[%s44730_s2 + $0x1b8] sm:$0xff] }
 0x389   : > { %33133 = vmatprep.mubr.msk.bf16.mxu1 %vm499_vm0, %v36987_v58  ;;  %v37009_v58 = vld [vmem:[%s44729_s1 + $0x660] sm:$0xff]   ;;  %6527 = vperm.xlu0 %36593, %v39856_v55  }
 0x38c   : > { %32540 = vmatmul.mubr.msk.bf16.vlgmr.msra.gmra.mrb[0].mxu0 %vm499_vm0, %v36986_v59  ;;  %v37008_v59 = vld [vmem:[%s44729_s1 + $0x658] sm:$0xff]  }
 0x38d   : > { %32604 = vmatpush3.bf16.msra.mxu0 %v39218_v14  ;;  %32543 = vmatprep.mubr.msk.bf16.mxu0 %vm499_vm0, %v36989_v62  ;;  %v36993_v14 = vld [vmem:[%s44729_s1 + $0x620] sm:$0xff]  }
 0x38e   : > { %32669 = vmatprep.subr.bf16.mxu0 %v39660_v0  ;;  %v39871_v62 = vld [vmem:[%s44730_s2 + $0x1c0] sm:$0xff] }
 0x38f   : > { %6532 = vperm.xlu1 %36594, %v39871_v62  }
 0x390   : > { %33134 = vmatmul.mubr.msk.bf16.vlgmr.msra.gmra.mrb[0].mxu1 %vm499_vm0, %v36988_v63  ;;  %v39876_v63 = vld [vmem:[%s44730_s2 + $0x1c8] sm:$0xff] }
 0x391   : > { %33198 = vmatpush3.bf16.msra.mxu1 %v39229_v24  ;;  %33137 = vmatprep.mubr.msk.bf16.mxu1 %vm499_vm0, %v36991_v3  ;;  %v36992_v24 = vld [vmem:[%s44729_s1 + $0x618] sm:$0xff]   ;;  %v37013_v3 = vld [vmem:[%s44729_s1 + $0x660] sm:$0xff]  }
 0x392   : > { %33263 = vmatprep.subr.bf16.mxu1 %v39682_v5  ;;  %6537 = vperm.xlu0 %36593, %v39876_v63  }
 0x394   : > { %32544 = vmatmul.mubr.msk.bf16.gmra.mrb[4].mxu0 %vm499_vm0, %v36990_v4  ;;  %v37012_v4 = vld [vmem:[%s44729_s1 + $0x668] sm:$0xff]  }
 0x395   : > { %32547 = vmatprep.mubr.msk.bf16.mxu0 %vm499_vm0, %v36993_v14  ;;  %v39888_v14 = vpop.permute.xlu1 %20179 }
 0x398   : > { %33138 = vmatmul.mubr.msk.bf16.gmra.mrb[4].mxu1 %vm499_vm0, %v36992_v24  ;;  %v39890_v24 = vpop.permute.xlu0 %13621 }
 0x399   : > { %33141 = vmatprep.mubr.msk.bf16.mxu1 %vm499_vm0, %v36995_v11  ;;  %v39895_v11 = vld [vmem:[%s44730_s2 + $0x1d0] sm:$0xff] }
 0x39a   : > { %6542 = vperm.xlu1 %36594, %v39895_v11  }
 0x39c   : > { %32548 = vmatmul.mubr.msk.bf16.gmra.mrb[8].mxu0 %vm499_vm0, %v36994_v13  ;;  %v39900_v13 = vld [vmem:[%s44730_s2 + $0x1d8] sm:$0xff] }
 0x39d   : > { %32551 = vmatprep.mubr.msk.bf16.mxu0 %vm499_vm0, %v36997_v17  ;;  %v37015_v17 = vld [vmem:[%s44729_s1 + $0x670] sm:$0xff]   ;;  %6547 = vperm.xlu0 %36593, %v39900_v13  }
 0x3a0   : > { %33142 = vmatmul.mubr.msk.bf16.gmra.mrb[8].mxu1 %vm499_vm0, %v36996_v19  ;;  %v37014_v19 = vld [vmem:[%s44729_s1 + $0x668] sm:$0xff]  }
 0x3a1   : > { %33145 = vmatprep.mubr.msk.bf16.mxu1 %vm499_vm0, %v36999_v22  ;;  %v39912_v22 = vpop.permute.xlu1 %21337 }
 0x3a4   : > { %32552 = vmatmul.mubr.msk.bf16.gmra.mrb[12].mxu0 %vm499_vm0, %v36998_v16  ;;  %v39914_v16 = vpop.permute.xlu0 %14779 }
 0x3a5   : > { %32555 = vmatprep.mubr.msk.bf16.mxu0 %vm499_vm0, %v37001_v18  ;;  %v39919_v18 = vld [vmem:[%s44730_s2 + $0x1e0] sm:$0xff] }
 0x3a6   : > { %6552 = vperm.xlu1 %36594, %v39919_v18  }
 0x3a8   : > { %33146 = vmatmul.mubr.msk.bf16.gmra.mrb[12].mxu1 %vm499_vm0, %v37000_v27  ;;  %v39924_v27 = vld [vmem:[%s44730_s2 + $0x1e8] sm:$0xff] }
 0x3a9   : > { %33149 = vmatprep.mubr.msk.bf16.mxu1 %vm499_vm0, %v37003_v34  ;;  %v37017_v34 = vld [vmem:[%s44729_s1 + $0x670] sm:$0xff]   ;;  %6557 = vperm.xlu0 %36593, %v39924_v27  }
 0x3ac   : > { %32556 = vmatmul.mubr.msk.bf16.gmra.mrb[16].mxu0 %vm499_vm0, %v37002_v35  ;;  %v37016_v35 = vld [vmem:[%s44729_s1 + $0x678] sm:$0xff]  }
 0x3ad   : > { %32559 = vmatprep.mubr.msk.bf16.mxu0 %vm499_vm0, %v37005_v42  ;;  %v37019_v42 = vld [vmem:[%s44729_s1 + $0x680] sm:$0xff]   ;;  %16815 = vrot.lane.b32.xlu0 %v39603_v52, %s37808_s25 }
 0x3b0   : > { %33150 = vmatmul.mubr.msk.bf16.gmra.mrb[16].mxu1 %vm499_vm0, %v37004_v43  ;;  %v39942_v43 = vld [vmem:[%s44730_s2 + $0x1f0] sm:$0xff] }
 0x3b1   : > { %33153 = vmatprep.mubr.msk.bf16.mxu1 %vm499_vm0, %v37007_v50  ;;  %v39945_v50 = vpop.permute.xlu1 %6257  ;;  %6562 = vperm.xlu1 %36594, %v39942_v43  }
 0x3b4   : > { %32560 = vmatmul.mubr.msk.bf16.gmra.mrb[20].mxu0 %vm499_vm0, %v37006_v51  ;;  %v39947_v51 = vpop.permute.xlu0 %6252 }
 0x3b5   : > { %32563 = vmatprep.mubr.msk.bf16.mxu0 %vm499_vm0, %v37009_v58  ;;  %v37018_v58 = vld [vmem:[%s44729_s1 + $0x678] sm:$0xff]   ;;  %23373 = vrot.lane.b32.xlu1 %v39606_v53, %s37808_s25  ;;  %v37759_v53 = vld [vmem:[%s44730_s2] sm:$0xff] }
 0x3b8   : > { %33154 = vmatmul.mubr.msk.bf16.gmra.mrb[20].mxu1 %vm499_vm0, %v37008_v59  ;;  %v37021_v59 = vld [vmem:[%s44729_s1 + $0x680] sm:$0xff]   ;;  %v39967_v52 = vpop.permute.xlu0 %6267 }
 0x3b9   : > { %33157 = vmatprep.mubr.msk.bf16.mxu1 %vm499_vm0, %v37013_v3  ;;  %v39962_v3 = vld [vmem:[%s44730_s2 + $0x1f8] sm:$0xff]  ;;  %12811 = vperm.xlu1 %36594, %v37759_v53  }
 0x3ba   : > { %6567 = vperm.xlu0 %36593, %v39962_v3  }
 0x3bc   : > { %32564 = vmatmul.mubr.msk.bf16.gmra.mrb[24].mxu0 %vm499_vm0, %v37012_v4  ;;  %v39965_v4 = vpop.permute.xlu1 %6262 }
 0x3bd   : > { %32567 = vmatprep.mubr.msk.bf16.mxu0 %vm499_vm0, %v37015_v17  ;;  %v37020_v17 = vld [vmem:[%s44729_s1 + $0x688] sm:$0xff]  }
 0x3c0   : > { %33158 = vmatmul.mubr.msk.bf16.gmra.mrb[24].mxu1 %vm499_vm0, %v37014_v19  ;;  %v37023_v19 = vld [vmem:[%s44729_s1 + $0x690] sm:$0xff]  }
 0x3c1   : > { %33161 = vmatprep.mubr.msk.bf16.mxu1 %vm499_vm0, %v37017_v34  ;;  %v39980_v34 = vpop.permute.xlu1 %6272 }
 0x3c2   : > { %44740 = vst [vmem:[#allocation2_spill] sm:$0xff] %v39980_v34 }
 0x3c4   : > { %32568 = vmatmul.mubr.msk.bf16.gmra.mrb[28].mxu0 %vm499_vm0, %v37016_v35  ;;  %v39982_v35 = vpop.permute.xlu0 %6277 }
 0x3c5   : > { %32571 = vmatprep.mubr.msk.bf16.mxu0 %vm499_vm0, %v37019_v42  ;;  %44741 = vst [vmem:[#allocation3_spill] sm:$0xff] %v39982_v35  ;;  %v37760_v42 = vld [vmem:[%s44730_s2 + $0x8] sm:$0xff]  ;;  %v39998_v35 = vpop.permute.xlu1 %6282 }
 0x3c6   : > { %12816 = vperm.xlu0 %36593, %v37760_v42   ;;  %v37761_v42 = vld [vmem:[%s44730_s2 + $0x10] sm:$0xff] }
 0x3c7   : > { %12821 = vperm.xlu1 %36594, %v37761_v42  }
 0x3c8   : > { %33162 = vmatmul.mubr.msk.bf16.gmra.mrb[28].mxu1 %vm499_vm0, %v37018_v58  ;;  %v37022_v58 = vld [vmem:[%s44729_s1 + $0x688] sm:$0xff]   ;;  %v40000_v53 = vpop.permute.xlu0 %6287 }
 0x3c9   : > { %33165 = vmatprep.mubr.msk.bf16.mxu1 %vm499_vm0, %v37021_v59  ;;  %v37025_v59 = vld [vmem:[%s44729_s1 + $0x690] sm:$0xff]   ;;  %44742 = vst [vmem:[#allocation4_spill] sm:$0xff] %v40000_v53  ;;  %v37027_v53 = vld [vmem:[%s44729_s1 + $0x6a0] sm:$0xff]   ;;  %v40016_v34 = vpop.permute.xlu1 %6292 }
 0x3ca   : > { %44743 = vst [vmem:[#allocation5_spill] sm:$0xff] %v40016_v34 }
 0x3cc   : > { %32572 = vmatmul.mubr.msk.bf16.gmra.mrb[32].mxu0 %vm499_vm0, %v37020_v17  ;;  %v37762_v17 = vld [vmem:[%s44730_s2 + $0x18] sm:$0xff]  ;;  %v40018_v42 = vpop.permute.xlu0 %6297 }
 0x3cd   : > { %32575 = vmatprep.mubr.msk.bf16.mxu0 %vm499_vm0, %v37023_v19  ;;  %12826 = vperm.xlu0 %36593, %v37762_v17   ;;  %v37024_v19 = vld [vmem:[%s44729_s1 + $0x698] sm:$0xff]   ;;  %44744 = vst [vmem:[#allocation6_spill] sm:$0xff] %v40018_v42  ;;  %v37763_v17 = vld [vmem:[%s44730_s2 + $0x20] sm:$0xff]  ;;  %v40034_v34 = vpop.permute.xlu1 %6302 }
 0x3ce   : > { %12831 = vperm.xlu1 %36594, %v37763_v17   ;;  %v37029_v42 = vld [vmem:[%s44729_s1 + $0x6a0] sm:$0xff]   ;;  %44745 = vst [vmem:[#allocation7_spill] sm:$0xff] %v40034_v34 }
 0x3d0   : > { %33166 = vmatmul.mubr.msk.bf16.gmra.mrb[32].mxu1 %vm499_vm0, %v37022_v58  ;;  %v37764_v58 = vld [vmem:[%s44730_s2 + $0x28] sm:$0xff]  ;;  %v40036_v17 = vpop.permute.xlu0 %6307 }
 0x3d1   : > { %33169 = vmatprep.mubr.msk.bf16.mxu1 %vm499_vm0, %v37025_v59  ;;  %12836 = vperm.xlu0 %36593, %v37764_v58   ;;  %v37026_v59 = vld [vmem:[%s44729_s1 + $0x698] sm:$0xff]   ;;  %44746 = vst [vmem:[#allocation8_spill] sm:$0xff] %v40036_v17  ;;  %v37765_v58 = vld [vmem:[%s44730_s2 + $0x30] sm:$0xff]  ;;  %v40052_v34 = vpop.permute.xlu1 %6312 }
 0x3d2   : > { %12841 = vperm.xlu1 %36594, %v37765_v58   ;;  %v37031_v17 = vld [vmem:[%s44729_s1 + $0x6b0] sm:$0xff]   ;;  %44747 = vst [vmem:[#allocation9_spill] sm:$0xff] %v40052_v34 }
 0x3d4   : > { %32576 = vmatmul.mubr.msk.bf16.gmra.mrb[36].mxu0 %vm499_vm0, %v37024_v19  ;;  %v37766_v19 = vld [vmem:[%s44730_s2 + $0x38] sm:$0xff]  ;;  %v40054_v58 = vpop.permute.xlu0 %6317 }
 0x3d5   : > { %32579 = vmatprep.mubr.msk.bf16.mxu0 %vm499_vm0, %v37027_v53  ;;  %12846 = vperm.xlu0 %36593, %v37766_v19   ;;  %v37028_v53 = vld [vmem:[%s44729_s1 + $0x6a8] sm:$0xff]   ;;  %44748 = vst [vmem:[#allocation10_spill] sm:$0xff] %v40054_v58  ;;  %v37767_v19 = vld [vmem:[%s44730_s2 + $0x40] sm:$0xff]  ;;  %v37033_v58 = vld [vmem:[%s44729_s1 + $0x6b0] sm:$0xff]   ;;  %v40070_v34 = vpop.permute.xlu1 %6322 }
 0x3d6   : > { %12851 = vperm.xlu1 %36594, %v37767_v19   ;;  %44749 = vst [vmem:[#allocation11_spill] sm:$0xff] %v40070_v34 }
 0x3d8   : > { %33170 = vmatmul.mubr.msk.bf16.gmra.mrb[36].mxu1 %vm499_vm0, %v37026_v59  ;;  %v37768_v59 = vld [vmem:[%s44730_s2 + $0x48] sm:$0xff]  ;;  %v40072_v19 = vpop.permute.xlu0 %6327 }
 0x3d9   : > { %33173 = vmatprep.mubr.msk.bf16.mxu1 %vm499_vm0, %v37029_v42  ;;  %12856 = vperm.xlu0 %36593, %v37768_v59   ;;  %v37030_v42 = vld [vmem:[%s44729_s1 + $0x6a8] sm:$0xff]   ;;  %44750 = vst [vmem:[#allocation12_spill] sm:$0xff] %v40072_v19  ;;  %v37769_v59 = vld [vmem:[%s44730_s2 + $0x50] sm:$0xff]  ;;  %v37035_v19 = vld [vmem:[%s44729_s1 + $0x6c0] sm:$0xff]   ;;  %v40088_v34 = vpop.permute.xlu1 %6332 }
 0x3da   : > { %12861 = vperm.xlu1 %36594, %v37769_v59   ;;  %44751 = vst [vmem:[#allocation13_spill] sm:$0xff] %v40088_v34 }
 0x3dc   : > { %32580 = vmatmul.mubr.msk.bf16.gmra.mrb[40].mxu0 %vm499_vm0, %v37028_v53  ;;  %v37770_v53 = vld [vmem:[%s44730_s2 + $0x58] sm:$0xff]  ;;  %v40090_v59 = vpop.permute.xlu0 %6337 }
 0x3dd   : > { %32583 = vmatprep.mubr.msk.bf16.mxu0 %vm499_vm0, %v37031_v17  ;;  %12866 = vperm.xlu0 %36593, %v37770_v53   ;;  %v37032_v17 = vld [vmem:[%s44729_s1 + $0x6b8] sm:$0xff]   ;;  %44752 = vst [vmem:[#allocation14_spill] sm:$0xff] %v40090_v59  ;;  %v37771_v53 = vld [vmem:[%s44730_s2 + $0x60] sm:$0xff]  ;;  %v40106_v34 = vpop.permute.xlu1 %6342 }
 0x3de   : > { %12871 = vperm.xlu1 %36594, %v37771_v53   ;;  %v37037_v59 = vld [vmem:[%s44729_s1 + $0x6c0] sm:$0xff]   ;;  %44753 = vst [vmem:[#allocation15_spill] sm:$0xff] %v40106_v34 }
 0x3e0   : > { %33174 = vmatmul.mubr.msk.bf16.gmra.mrb[40].mxu1 %vm499_vm0, %v37030_v42  ;;  %v37772_v42 = vld [vmem:[%s44730_s2 + $0x68] sm:$0xff]  ;;  %v40108_v53 = vpop.permute.xlu0 %6347 }
 0x3e1   : > { %33177 = vmatprep.mubr.msk.bf16.mxu1 %vm499_vm0, %v37033_v58  ;;  %12876 = vperm.xlu0 %36593, %v37772_v42   ;;  %v37034_v58 = vld [vmem:[%s44729_s1 + $0x6b8] sm:$0xff]   ;;  %44754 = vst [vmem:[#allocation16_spill] sm:$0xff] %v40108_v53  ;;  %v37773_v42 = vld [vmem:[%s44730_s2 + $0x70] sm:$0xff]  ;;  %v40124_v34 = vpop.permute.xlu1 %6352 }
 0x3e2   : > { %12881 = vperm.xlu1 %36594, %v37773_v42   ;;  %v37039_v53 = vld [vmem:[%s44729_s1 + $0x6d0] sm:$0xff]   ;;  %44755 = vst [vmem:[#allocation17_spill] sm:$0xff] %v40124_v34 }
 0x3e4   : > { %32584 = vmatmul.mubr.msk.bf16.gmra.mrb[44].mxu0 %vm499_vm0, %v37032_v17  ;;  %v37774_v17 = vld [vmem:[%s44730_s2 + $0x78] sm:$0xff]  ;;  %v40126_v42 = vpop.permute.xlu0 %6357 }
 0x3e5   : > { %32587 = vmatprep.mubr.msk.bf16.mxu0 %vm499_vm0, %v37035_v19  ;;  %12886 = vperm.xlu0 %36593, %v37774_v17   ;;  %v37036_v19 = vld [vmem:[%s44729_s1 + $0x6c8] sm:$0xff]   ;;  %44756 = vst [vmem:[#allocation18_spill] sm:$0xff] %v40126_v42  ;;  %v37775_v17 = vld [vmem:[%s44730_s2 + $0x80] sm:$0xff]  ;;  %v37041_v42 = vld [vmem:[%s44729_s1 + $0x6d0] sm:$0xff]   ;;  %v40142_v34 = vpop.permute.xlu1 %6362 }
 0x3e6   : > { %12891 = vperm.xlu1 %36594, %v37775_v17   ;;  %44757 = vst [vmem:[#allocation19_spill] sm:$0xff] %v40142_v34 }
 0x3e8   : > { %33178 = vmatmul.mubr.msk.bf16.gmra.mrb[44].mxu1 %vm499_vm0, %v37034_v58  ;;  %v37776_v58 = vld [vmem:[%s44730_s2 + $0x88] sm:$0xff]  ;;  %v40144_v17 = vpop.permute.xlu0 %6367 }
 0x3e9   : > { %33181 = vmatprep.mubr.msk.bf16.mxu1 %vm499_vm0, %v37037_v59  ;;  %12896 = vperm.xlu0 %36593, %v37776_v58   ;;  %v37038_v59 = vld [vmem:[%s44729_s1 + $0x6c8] sm:$0xff]   ;;  %v40156_v58 = vpop.permute.xlu1 %6372 }
 0x3ea   : > { %12901 = vperm.xlu1 %36594, %v39465_v25   ;;  %v37042_v25 = vld [vmem:[%s44729_s1 + $0x6d8] sm:$0xff]  }
 0x3ec   : > { %32588 = vmatmul.mubr.msk.bf16.gmra.mrb[48].mxu0 %vm499_vm0, %v37036_v19  ;;  %v37040_v19 = vld [vmem:[%s44729_s1 + $0x6d8] sm:$0xff]   ;;  %v40158_v34 = vpop.permute.xlu0 %6377 }
 0x3ed   : > { %32591 = vmatprep.mubr.msk.bf16.mxu0 %vm499_vm0, %v37039_v53  ;;  %12906 = vperm.xlu0 %36593, %v39470_v26   ;;  %v37043_v53 = vld [vmem:[%s44729_s1 + $0x6e0] sm:$0xff]  }
 0x3ee   : > { %12911 = vperm.xlu1 %36594, %v39485_v28   ;;  %v37045_v26 = vld [vmem:[%s44729_s1 + $0x6e0] sm:$0xff]   ;;  %v37044_v28 = vld [vmem:[%s44729_s1 + $0x6e8] sm:$0xff]  }
 0x3f0   : > { %33182 = vmatmul.mubr.msk.bf16.gmra.mrb[48].mxu1 %vm499_vm0, %v37038_v59  ;;  %v40172_v59 = vpop.permute.xlu0 %6387 }
 0x3f1   : > { %33185 = vmatprep.mubr.msk.bf16.mxu1 %vm499_vm0, %v37041_v42  ;;  %12916 = vperm.xlu0 %36593, %v39490_v29   ;;  %v40170_v42 = vpop.permute.xlu1 %6382  ;;  %v37047_v29 = vld [vmem:[%s44729_s1 + $0x6f0] sm:$0xff]  }
 0x3f2   : > { %12921 = vperm.xlu1 %36594, %v39505_v32   ;;  %v37046_v32 = vld [vmem:[%s44729_s1 + $0x6e8] sm:$0xff]  }
 0x3f4   : > { %32592 = vmatmul.mubr.msk.bf16.gmra.mrb[52].mxu0 %vm499_vm0, %v37040_v19 }
 0x3f5   : > { %32595 = vmatprep.mubr.msk.bf16.mxu0 %vm499_vm0, %v37043_v53  ;;  %12926 = vperm.xlu0 %36593, %v39510_v33   ;;  %v40184_v19 = vpop.permute.xlu1 %6392  ;;  %v40186_v53 = vpop.permute.xlu0 %6397  ;;  %v37051_v33 = vld [vmem:[%s44729_s1 + $0x6f0] sm:$0xff]  }
 0x3f6   : > { %44758 = vst [vmem:[#allocation20_spill] sm:$0xff] %v40184_v19  ;;  %44759 = vst [vmem:[#allocation21_spill] sm:$0xff] %v40186_v53  ;;  %12931 = vperm.xlu1 %36594, %v39525_v36   ;;  %v37050_v36 = vld [vmem:[%s44729_s1 + $0x6f8] sm:$0xff]   ;;  %v19328_v53 = vld [vmem:[%s44730_s2 + $0xc8] sm:$0xff] }
 0x3f7   : > { %v19330_v19 = vld [vmem:[%s44730_s2 + $0xd8] sm:$0xff] }
 0x3f8   : > { %33186 = vmatmul.mubr.msk.bf16.gmra.mrb[52].mxu1 %vm499_vm0, %v37042_v25 }
 0x3f9   : > { %33189 = vmatprep.mubr.msk.bf16.mxu1 %vm499_vm0, %v37045_v26  ;;  %12936 = vperm.xlu0 %36593, %v39530_v37   ;;  %v40198_v25 = vpop.permute.xlu1 %6402  ;;  %v40200_v26 = vpop.permute.xlu0 %6407  ;;  %v37053_v37 = vld [vmem:[%s44729_s1 + $0x700] sm:$0xff]  }
 0x3fa   : > { %44760 = vst [vmem:[#allocation22_spill] sm:$0xff] %v40198_v25  ;;  %44761 = vst [vmem:[#allocation23_spill] sm:$0xff] %v40200_v26  ;;  %12941 = vperm.xlu1 %36594, %v39545_v40   ;;  %v37052_v40 = vld [vmem:[%s44729_s1 + $0x6f8] sm:$0xff]  }
 0x3fc   : > { %32596 = vmatmul.mubr.msk.bf16.gmra.mrb[56].mxu0 %vm499_vm0, %v37044_v28 }
 0x3fd   : > { %32599 = vmatprep.mubr.msk.bf16.mxu0 %vm499_vm0, %v37047_v29  ;;  %12946 = vperm.xlu0 %36593, %v39550_v41   ;;  %v40212_v28 = vpop.permute.xlu1 %16139  ;;  %v40214_v29 = vpop.permute.xlu0 %22697  ;;  %v37055_v41 = vld [vmem:[%s44729_s1 + $0x700] sm:$0xff]  }
 0x3fe   : > { %44762 = vst [vmem:[#allocation24_spill] sm:$0xff] %v40212_v28  ;;  %44763 = vst [vmem:[#allocation25_spill] sm:$0xff] %v40214_v29  ;;  %12951 = vperm.xlu1 %36594, %v39565_v44   ;;  %v37054_v44 = vld [vmem:[%s44729_s1 + $0x708] sm:$0xff]   ;;  %v37092_v29 = vld [vmem:[%s44729_s1 + $0x798] sm:$0xff]  }
 0x3ff   : > { %v40528_v28 = vld [vmem:[%s44730_s2 + $0x18] sm:$0xff] }
 0x400   : > { %33190 = vmatmul.mubr.msk.bf16.gmra.mrb[56].mxu1 %vm499_vm0, %v37046_v32 }
 0x401   : > { %33193 = vmatprep.mubr.msk.bf16.mxu1 %vm499_vm0, %v37051_v33  ;;  %12956 = vperm.xlu0 %36593, %v39570_v45   ;;  %v40226_v32 = vpop.permute.xlu1 %6412  ;;  %v40228_v33 = vpop.permute.xlu0 %6417  ;;  %v37057_v45 = vld [vmem:[%s44729_s1 + $0x710] sm:$0xff]  }
 0x402   : > { %44764 = vst [vmem:[#allocation26_spill] sm:$0xff] %v40226_v32  ;;  %44765 = vst [vmem:[#allocation27_spill] sm:$0xff] %v40228_v33  ;;  %12961 = vperm.xlu1 %36594, %v39585_v48   ;;  %v37056_v48 = vld [vmem:[%s44729_s1 + $0x708] sm:$0xff]   ;;  %v19322_v33 = vld [vmem:[%s44730_s2 + $0x98] sm:$0xff] }
 0x403   : > { %v19324_v32 = vld [vmem:[%s44730_s2 + $0xa8] sm:$0xff] }
 0x404   : > { %32600 = vmatmul.mubr.msk.bf16.gmra.mrb[60].mxu0 %vm499_vm0, %v37050_v36 }
 0x405   : > { %32605 = vmatprep.mubr.msk.bf16.mxu0 %vm499_vm0, %v37053_v37  ;;  %12966 = vperm.xlu0 %36593, %v39590_v49   ;;  %v40240_v36 = vpop.permute.xlu1 %6422  ;;  %v40242_v37 = vpop.permute.xlu0 %6427  ;;  %v37059_v49 = vld [vmem:[%s44729_s1 + $0x710] sm:$0xff]  }
 0x406   : > { %44766 = vst [vmem:[#allocation28_spill] sm:$0xff] %v40240_v36  ;;  %44767 = vst [vmem:[#allocation29_spill] sm:$0xff] %v40242_v37  ;;  %12971 = vperm.xlu1 %36594, %v39623_v56   ;;  %v37114_v36 = vld [vmem:[%s44729_s1 + $0x7f8] sm:$0xff]  }
 0x408   : > { %33194 = vmatmul.mubr.msk.bf16.gmra.mrb[60].mxu1 %vm499_vm0, %v37052_v40 }
 0x409   : > { %33199 = vmatprep.mubr.msk.bf16.mxu1 %vm499_vm0, %v37055_v41  ;;  %12976 = vperm.xlu0 %36593, %v39628_v57   ;;  %v40255_v40 = vpop.permute.xlu1 %6432  ;;  %v40258_v56 = vpop.permute.xlu0 %6437  ;;  %v37058_v57 = vld [vmem:[%s44729_s1 + $0x718] sm:$0xff]  }
 0x40a   : > { %44768 = vst [vmem:[#allocation30_spill] sm:$0xff] %v40255_v40  ;;  %44769 = vst [vmem:[#allocation31_spill] sm:$0xff] %v40258_v56  ;;  %12981 = vperm.xlu1 %36594, %v39643_v60   ;;  %v19320_v40 = vld [vmem:[%s44730_s2 + $0x88] sm:$0xff] }
 0x40c   : > { %32606 = vmatmul.mubr.msk.bf16.vlgmr.msra.gmra.mrb[0].mxu0 %vm499_vm0, %v37054_v44 }
 0x40d   : > { %32670 = vmatpush3.bf16.msra.mxu0 %v39660_v0  ;;  %32609 = vmatprep.mubr.msk.bf16.mxu0 %vm499_vm0, %v37057_v45  ;;  %v37061_v0 = vld [vmem:[%s44729_s1 + $0x720] sm:$0xff]   ;;  %v40271_v41 = vpop.permute.xlu1 %6442  ;;  %v40274_v60 = vpop.permute.xlu0 %6447 }
 0x40e   : > { %33329 = vmatprep.subr.bf16.mxu0 %v39890_v24  ;;  %12986 = vperm.xlu0 %36593, %v39648_v61   ;;  %44770 = vst [vmem:[#allocation32_spill] sm:$0xff] %v40271_v41  ;;  %44771 = vst [vmem:[#allocation33_spill] sm:$0xff] %v40274_v60  ;;  %v37060_v61 = vld [vmem:[%s44729_s1 + $0x718] sm:$0xff]  }
 0x40f   : > { %12991 = vperm.xlu1 %36594, %v39665_v1   ;;  %v37062_v1 = vld [vmem:[%s44729_s1 + $0x728] sm:$0xff]   ;;  %v37106_v60 = vld [vmem:[%s44729_s1 + $0x7d8] sm:$0xff]  }
 0x410   : > { %33200 = vmatmul.mubr.msk.bf16.vlgmr.msra.gmra.mrb[0].mxu1 %vm499_vm0, %v37056_v48  ;;  %v37108_v41 = vld [vmem:[%s44729_s1 + $0x7d8] sm:$0xff]  }
 0x411   : > { %33264 = vmatpush3.bf16.msra.mxu1 %v39682_v5  ;;  %33203 = vmatprep.mubr.msk.bf16.mxu1 %vm499_vm0, %v37059_v49  ;;  %v37063_v5 = vld [vmem:[%s44729_s1 + $0x720] sm:$0xff]   ;;  %v40286_v44 = vpop.permute.xlu1 %6452  ;;  %v40288_v45 = vpop.permute.xlu0 %6457 }
 0x412   : > { %33923 = vmatprep.subr.bf16.mxu1 %v39888_v14  ;;  %12996 = vperm.xlu0 %36593, %v39670_v2   ;;  %44772 = vst [vmem:[#allocation34_spill] sm:$0xff] %v40286_v44  ;;  %44773 = vst [vmem:[#allocation35_spill] sm:$0xff] %v40288_v45  ;;  %v37065_v2 = vld [vmem:[%s44729_s1 + $0x730] sm:$0xff]   ;;  %v37104_v44 = vld [vmem:[%s44729_s1 + $0x7c8] sm:$0xff]  }
 0x413   : > { %13001 = vperm.xlu1 %36594, %v39694_v6   ;;  %v37064_v6 = vld [vmem:[%s44729_s1 + $0x728] sm:$0xff]   ;;  %v37105_v45 = vld [vmem:[%s44729_s1 + $0x7d0] sm:$0xff]  }
 0x414   : > { %32610 = vmatmul.mubr.msk.bf16.gmra.mrb[4].mxu0 %vm499_vm0, %v37058_v57 }
 0x415   : > { %32613 = vmatprep.mubr.msk.bf16.mxu0 %vm499_vm0, %v37061_v0  ;;  %v40300_v48 = vpop.permute.xlu1 %6462  ;;  %v40302_v49 = vpop.permute.xlu0 %6467 }
 0x416   : > { %13006 = vperm.xlu0 %36593, %v39699_v8   ;;  %44774 = vst [vmem:[#allocation36_spill] sm:$0xff] %v40300_v48  ;;  %44775 = vst [vmem:[#allocation37_spill] sm:$0xff] %v40302_v49  ;;  %v37067_v8 = vld [vmem:[%s44729_s1 + $0x730] sm:$0xff]   ;;  %v19318_v48 = vld [vmem:[%s44730_s2 + $0x78] sm:$0xff] }
 0x417   : > { %13011 = vperm.xlu1 %36594, %v39711_v9   ;;  %v37066_v9 = vld [vmem:[%s44729_s1 + $0x738] sm:$0xff]  }
 0x418   : > { %33204 = vmatmul.mubr.msk.bf16.gmra.mrb[4].mxu1 %vm499_vm0, %v37060_v61 }
 0x419   : > { %33207 = vmatprep.mubr.msk.bf16.mxu1 %vm499_vm0, %v37063_v5  ;;  %v40314_v57 = vpop.permute.xlu1 %6472  ;;  %v40316_v0 = vpop.permute.xlu0 %6477 }
 0x41a   : > { %13016 = vperm.xlu0 %36593, %v39716_v10   ;;  %44776 = vst [vmem:[#allocation38_spill] sm:$0xff] %v40314_v57  ;;  %44777 = vst [vmem:[#allocation39_spill] sm:$0xff] %v40316_v0  ;;  %v37069_v10 = vld [vmem:[%s44729_s1 + $0x740] sm:$0xff]   ;;  %v37102_v57 = vld [vmem:[%s44729_s1 + $0x7c8] sm:$0xff]  }
 0x41b   : > { %13021 = vperm.xlu1 %36594, %v39731_v15   ;;  %v37068_v15 = vld [vmem:[%s44729_s1 + $0x738] sm:$0xff]  }
 0x41c   : > { %32614 = vmatmul.mubr.msk.bf16.gmra.mrb[8].mxu0 %vm499_vm0, %v37062_v1 }
 0x41d   : > { %32617 = vmatprep.mubr.msk.bf16.mxu0 %vm499_vm0, %v37065_v2  ;;  %v40328_v61 = vpop.permute.xlu1 %6482  ;;  %v40330_v5 = vpop.permute.xlu0 %6487 }
 0x41e   : > { %13026 = vperm.xlu0 %36593, %v39736_v12   ;;  %44778 = vst [vmem:[#allocation40_spill] sm:$0xff] %v40328_v61  ;;  %44779 = vst [vmem:[#allocation41_spill] sm:$0xff] %v40330_v5  ;;  %v37071_v12 = vld [vmem:[%s44729_s1 + $0x740] sm:$0xff]   ;;  %v19316_v61 = vld [vmem:[%s44730_s2 + $0x68] sm:$0xff] }
 0x41f   : > { %13031 = vperm.xlu1 %36594, %v39751_v20   ;;  %v37070_v20 = vld [vmem:[%s44729_s1 + $0x748] sm:$0xff]  }
 0x420   : > { %33208 = vmatmul.mubr.msk.bf16.gmra.mrb[8].mxu1 %vm499_vm0, %v37064_v6 }
 0x421   : > { %33211 = vmatprep.mubr.msk.bf16.mxu1 %vm499_vm0, %v37067_v8  ;;  %v40342_v1 = vpop.permute.xlu1 %6492  ;;  %v40344_v2 = vpop.permute.xlu0 %6497 }
 0x422   : > { %13036 = vperm.xlu0 %36593, %v39756_v7   ;;  %44780 = vst [vmem:[#allocation42_spill] sm:$0xff] %v40342_v1  ;;  %44781 = vst [vmem:[#allocation43_spill] sm:$0xff] %v40344_v2  ;;  %v37073_v7 = vld [vmem:[%s44729_s1 + $0x750] sm:$0xff]   ;;  %v37100_v1 = vld [vmem:[%s44729_s1 + $0x7b8] sm:$0xff]  }
 0x423   : > { %13041 = vperm.xlu1 %36594, %v39771_v23   ;;  %v37072_v23 = vld [vmem:[%s44729_s1 + $0x748] sm:$0xff]  }
 0x424   : > { %32618 = vmatmul.mubr.msk.bf16.gmra.mrb[12].mxu0 %vm499_vm0, %v37066_v9 }
 0x425   : > { %32621 = vmatprep.mubr.msk.bf16.mxu0 %vm499_vm0, %v37069_v10  ;;  %v40356_v6 = vpop.permute.xlu1 %6502  ;;  %v40358_v8 = vpop.permute.xlu0 %6507 }
 0x426   : > { %13046 = vperm.xlu0 %36593, %v39776_v21   ;;  %44782 = vst [vmem:[#allocation44_spill] sm:$0xff] %v40356_v6  ;;  %44783 = vst [vmem:[#allocation45_spill] sm:$0xff] %v40358_v8  ;;  %v37075_v21 = vld [vmem:[%s44729_s1 + $0x750] sm:$0xff]   ;;  %v40624_v6 = vld [vmem:[%s44730_s2 + $0x58] sm:$0xff] }
 0x427   : > { %13051 = vperm.xlu1 %36594, %v39791_v30   ;;  %v37074_v30 = vld [vmem:[%s44729_s1 + $0x758] sm:$0xff]  }
 0x428   : > { %33212 = vmatmul.mubr.msk.bf16.gmra.mrb[12].mxu1 %vm499_vm0, %v37068_v15 }
 0x429   : > { %33215 = vmatprep.mubr.msk.bf16.mxu1 %vm499_vm0, %v37071_v12  ;;  %v40370_v9 = vpop.permute.xlu1 %6512  ;;  %v40372_v10 = vpop.permute.xlu0 %6517 }
 0x42a   : > { %13056 = vperm.xlu0 %36593, %v39796_v31   ;;  %44784 = vst [vmem:[#allocation46_spill] sm:$0xff] %v40370_v9  ;;  %44785 = vst [vmem:[#allocation47_spill] sm:$0xff] %v40372_v10  ;;  %v37077_v31 = vld [vmem:[%s44729_s1 + $0x760] sm:$0xff]   ;;  %v37098_v9 = vld [vmem:[%s44729_s1 + $0x7b8] sm:$0xff]  }
 0x42b   : > { %13061 = vperm.xlu1 %36594, %v39811_v38   ;;  %v37076_v38 = vld [vmem:[%s44729_s1 + $0x758] sm:$0xff]  }
 0x42c   : > { %32622 = vmatmul.mubr.msk.bf16.gmra.mrb[16].mxu0 %vm499_vm0, %v37070_v20 }
 0x42d   : > { %32625 = vmatprep.mubr.msk.bf16.mxu0 %vm499_vm0, %v37073_v7  ;;  %v40384_v15 = vpop.permute.xlu1 %6522  ;;  %v40386_v12 = vpop.permute.xlu0 %6527 }
 0x42e   : > { %13066 = vperm.xlu0 %36593, %v39816_v39   ;;  %44786 = vst [vmem:[#allocation48_spill] sm:$0xff] %v40384_v15  ;;  %44787 = vst [vmem:[#allocation49_spill] sm:$0xff] %v40386_v12  ;;  %v37079_v39 = vld [vmem:[%s44729_s1 + $0x760] sm:$0xff]   ;;  %v40600_v15 = vld [vmem:[%s44730_s2 + $0x48] sm:$0xff] }
 0x42f   : > { %13071 = vperm.xlu1 %36594, %v39831_v46   ;;  %v37078_v46 = vld [vmem:[%s44729_s1 + $0x768] sm:$0xff]  }
 0x430   : > { %33216 = vmatmul.mubr.msk.bf16.gmra.mrb[16].mxu1 %vm499_vm0, %v37072_v23 }
 0x431   : > { %33219 = vmatprep.mubr.msk.bf16.mxu1 %vm499_vm0, %v37075_v21  ;;  %v40398_v20 = vpop.permute.xlu1 %6532  ;;  %v40400_v7 = vpop.permute.xlu0 %6537 }
 0x432   : > { %13076 = vperm.xlu0 %36593, %v39836_v47   ;;  %44788 = vst [vmem:[#allocation50_spill] sm:$0xff] %v40398_v20  ;;  %44789 = vst [vmem:[#allocation51_spill] sm:$0xff] %v40400_v7  ;;  %v37081_v47 = vld [vmem:[%s44729_s1 + $0x770] sm:$0xff]   ;;  %v37096_v20 = vld [vmem:[%s44729_s1 + $0x7a8] sm:$0xff]  }
 0x433   : > { %13081 = vperm.xlu1 %36594, %v39851_v54   ;;  %v37080_v54 = vld [vmem:[%s44729_s1 + $0x768] sm:$0xff]  }
 0x434   : > { %32626 = vmatmul.mubr.msk.bf16.gmra.mrb[20].mxu0 %vm499_vm0, %v37074_v30 }
 0x435   : > { %32629 = vmatprep.mubr.msk.bf16.mxu0 %vm499_vm0, %v37077_v31  ;;  %v40412_v23 = vpop.permute.xlu1 %6542  ;;  %v40414_v21 = vpop.permute.xlu0 %6547 }
 0x436   : > { %13086 = vperm.xlu0 %36593, %v39856_v55   ;;  %44790 = vst [vmem:[#allocation52_spill] sm:$0xff] %v40412_v23  ;;  %44791 = vst [vmem:[#allocation53_spill] sm:$0xff] %v40414_v21  ;;  %v37083_v55 = vld [vmem:[%s44729_s1 + $0x770] sm:$0xff]   ;;  %v40576_v23 = vld [vmem:[%s44730_s2 + $0x38] sm:$0xff] }
 0x437   : > { %13091 = vperm.xlu1 %36594, %v39871_v62   ;;  %v37082_v62 = vld [vmem:[%s44729_s1 + $0x778] sm:$0xff]  }
 0x438   : > { %33220 = vmatmul.mubr.msk.bf16.gmra.mrb[20].mxu1 %vm499_vm0, %v37076_v38 }
 0x439   : > { %33223 = vmatprep.mubr.msk.bf16.mxu1 %vm499_vm0, %v37079_v39  ;;  %v40426_v30 = vpop.permute.xlu1 %6552  ;;  %v40428_v31 = vpop.permute.xlu0 %6557 }
 0x43a   : > { %13096 = vperm.xlu0 %36593, %v39876_v63   ;;  %44792 = vst [vmem:[#allocation54_spill] sm:$0xff] %v40426_v30  ;;  %44793 = vst [vmem:[#allocation55_spill] sm:$0xff] %v40428_v31  ;;  %v37085_v63 = vld [vmem:[%s44729_s1 + $0x780] sm:$0xff]   ;;  %v37094_v30 = vld [vmem:[%s44729_s1 + $0x7a8] sm:$0xff]  }
 0x43b   : > { %13101 = vperm.xlu1 %36594, %v39895_v11   ;;  %v37084_v11 = vld [vmem:[%s44729_s1 + $0x778] sm:$0xff]  }
 0x43c   : > { %32630 = vmatmul.mubr.msk.bf16.gmra.mrb[24].mxu0 %vm499_vm0, %v37078_v46  ;;  %v37087_v46 = vld [vmem:[%s44729_s1 + $0x780] sm:$0xff]  }
 0x43d   : > { %32633 = vmatprep.mubr.msk.bf16.mxu0 %vm499_vm0, %v37081_v47  ;;  %v40440_v38 = vpop.permute.xlu1 %6562  ;;  %v40442_v39 = vpop.permute.xlu0 %16815 }
 0x43e   : > { %13106 = vperm.xlu0 %36593, %v39900_v13   ;;  %44794 = vst [vmem:[#allocation56_spill] sm:$0xff] %v40440_v38  ;;  %44795 = vst [vmem:[#allocation57_spill] sm:$0xff] %v40442_v39  ;;  %v37148_v13 = vld [vmem:[%s37862_s23 + $0x30] sm:$0xff]   ;;  %v40552_v38 = vld [vmem:[%s44730_s2 + $0x28] sm:$0xff] }
 0x43f   : > { %13111 = vperm.xlu1 %36594, %v39919_v18   ;;  %v37086_v18 = vld [vmem:[%s44729_s1 + $0x788] sm:$0xff]  }
 0x440   : > { %33224 = vmatmul.mubr.msk.bf16.gmra.mrb[24].mxu1 %vm499_vm0, %v37080_v54 }
 0x441   : > { %33227 = vmatprep.mubr.msk.bf16.mxu1 %vm499_vm0, %v37083_v55  ;;  %v40455_v47 = vpop.permute.xlu1 %23373  ;;  %v40457_v54 = vpop.permute.xlu0 %6567  ;;  %v37089_v55 = vld [vmem:[%s44729_s1 + $0x790] sm:$0xff]  }
 0x442   : > { %13116 = vperm.xlu0 %36593, %v39924_v27   ;;  %44796 = vst [vmem:[#allocation58_spill] sm:$0xff] %v40455_v47  ;;  %44797 = vst [vmem:[#allocation59_spill] sm:$0xff] %v40457_v54  ;;  %v40465_v27 = vld [vmem:[%s37862_s23 + $0x34] sm:$0xff]  }
 0x443   : > { %18175 = vrot.lane.b32.xlu1 %v37148_v13, %s37807_s24 }
 0x444   : > { %32634 = vmatmul.mubr.msk.bf16.gmra.mrb[28].mxu0 %vm499_vm0, %v37082_v62 }
 0x445   : > { %32637 = vmatprep.mubr.msk.bf16.mxu0 %vm499_vm0, %v37085_v63  ;;  %v40471_v62 = vpop.permute.xlu1 %12811  ;;  %v40475_v63 = vpop.permute.xlu0 %12816 }
 0x446   : > { %24733 = vrot.lane.b32.xlu0 %v40465_v27, %s37807_s24 }
 0x447   : > { %13121 = vperm.xlu1 %36594, %v39942_v43   ;;  %v37090_v43 = vld [vmem:[%s44729_s1 + $0x798] sm:$0xff]  }
 0x448   : > { %33228 = vmatmul.mubr.msk.bf16.gmra.mrb[28].mxu1 %vm499_vm0, %v37084_v11  ;;  %v37088_v11 = vld [vmem:[%s44729_s1 + $0x788] sm:$0xff]  }
 0x449   : > { %33231 = vmatprep.mubr.msk.bf16.mxu1 %vm499_vm0, %v37087_v46  ;;  %v37091_v46 = vld [vmem:[%s44729_s1 + $0x790] sm:$0xff]   ;;  %v40486_v47 = vpop.permute.xlu1 %12821 }
 0x44a   : > { %13126 = vperm.xlu0 %36593, %v39962_v3   ;;  %v37093_v3 = vld [vmem:[%s44729_s1 + $0x7a0] sm:$0xff]  }
 0x44b   : > { %18851 = vrot.lane.b32.xlu1 %v37148_v13, %s37808_s25 }
 0x44c   : > { %32638 = vmatmul.mubr.msk.bf16.gmra.mrb[32].mxu0 %vm499_vm0, %v37086_v18  ;;  %v40489_v39 = vpop.permute.xlu0 %12826  ;;  %v40499_v18 = vld [vmem:[%s44730_s2] sm:$0xff] }
 0x44d   : > { %32641 = vmatprep.mubr.msk.bf16.mxu0 %vm499_vm0, %v37089_v55  ;;  %v40504_v55 = vld [vmem:[%s44730_s2 + $0x8] sm:$0xff]  ;;  %v40510_v13 = vpop.permute.xlu1 %12831 }
 0x44e   : > { %19369 = vperm.xlu0 %36593, %v40499_v18  }
 0x44f   : > { %19374 = vperm.xlu1 %36594, %v40504_v55  }
 0x450   : > { %33232 = vmatmul.mubr.msk.bf16.gmra.mrb[32].mxu1 %vm499_vm0, %v37088_v11  ;;  %v40513_v11 = vpop.permute.xlu0 %12836 }
 0x451   : > { %33235 = vmatprep.mubr.msk.bf16.mxu1 %vm499_vm0, %v37091_v46  ;;  %v40523_v46 = vld [vmem:[%s44730_s2 + $0x10] sm:$0xff]  ;;  %v40534_v31 = vpop.permute.xlu1 %12841 }
 0x452   : > { %19379 = vperm.xlu0 %36593, %v40523_v46  }
 0x453   : > { %19384 = vperm.xlu1 %36594, %v40528_v28  }
 0x454   : > { %32642 = vmatmul.mubr.msk.bf16.gmra.mrb[36].mxu0 %vm499_vm0, %v37090_v43  ;;  %v37095_v43 = vld [vmem:[%s44729_s1 + $0x7a0] sm:$0xff]   ;;  %v40537_v54 = vpop.permute.xlu0 %12846 }
 0x455   : > { %32645 = vmatprep.mubr.msk.bf16.mxu0 %vm499_vm0, %v37093_v3  ;;  %v40547_v3 = vld [vmem:[%s44730_s2 + $0x20] sm:$0xff]  ;;  %v40558_v7 = vpop.permute.xlu1 %12851 }
 0x456   : > { %19389 = vperm.xlu0 %36593, %v40547_v3  }
 0x457   : > { %19394 = vperm.xlu1 %36594, %v40552_v38  }
 0x458   : > { %33236 = vmatmul.mubr.msk.bf16.gmra.mrb[36].mxu1 %vm499_vm0, %v37092_v29  ;;  %v37097_v29 = vld [vmem:[%s44729_s1 + $0x7b0] sm:$0xff]   ;;  %v40561_v21 = vpop.permute.xlu0 %12856 }
 0x459   : > { %33239 = vmatprep.mubr.msk.bf16.mxu1 %vm499_vm0, %v37095_v43  ;;  %v40571_v43 = vld [vmem:[%s44730_s2 + $0x30] sm:$0xff]  ;;  %v40582_v10 = vpop.permute.xlu1 %12861 }
 0x45a   : > { %19399 = vperm.xlu0 %36593, %v40571_v43  }
 0x45b   : > { %19404 = vperm.xlu1 %36594, %v40576_v23  }
 0x45c   : > { %32646 = vmatmul.mubr.msk.bf16.gmra.mrb[40].mxu0 %vm499_vm0, %v37094_v30  ;;  %v37099_v30 = vld [vmem:[%s44729_s1 + $0x7b0] sm:$0xff]   ;;  %v40585_v12 = vpop.permute.xlu0 %12866 }
 0x45d   : > { %32649 = vmatprep.mubr.msk.bf16.mxu0 %vm499_vm0, %v37097_v29  ;;  %v40595_v29 = vld [vmem:[%s44730_s2 + $0x40] sm:$0xff]  ;;  %v40606_v2 = vpop.permute.xlu1 %12871 }
 0x45e   : > { %19409 = vperm.xlu0 %36593, %v40595_v29  }
 0x45f   : > { %19414 = vperm.xlu1 %36594, %v40600_v15  }
 0x460   : > { %33240 = vmatmul.mubr.msk.bf16.gmra.mrb[40].mxu1 %vm499_vm0, %v37096_v20  ;;  %v37101_v20 = vld [vmem:[%s44729_s1 + $0x7c0] sm:$0xff]   ;;  %v40609_v8 = vpop.permute.xlu0 %12876 }
 0x461   : > { %33243 = vmatprep.mubr.msk.bf16.mxu1 %vm499_vm0, %v37099_v30  ;;  %v40619_v30 = vld [vmem:[%s44730_s2 + $0x50] sm:$0xff]  ;;  %v40630_v0 = vpop.permute.xlu1 %12881 }
 0x462   : > { %19419 = vperm.xlu0 %36593, %v40619_v30  }
 0x463   : > { %19424 = vperm.xlu1 %36594, %v40624_v6  }
 0x464   : > { %32650 = vmatmul.mubr.msk.bf16.gmra.mrb[44].mxu0 %vm499_vm0, %v37098_v9  ;;  %v37103_v9 = vld [vmem:[%s44729_s1 + $0x7c0] sm:$0xff]   ;;  %v40633_v5 = vpop.permute.xlu0 %12886 }
 0x465   : > { %32653 = vmatprep.mubr.msk.bf16.mxu0 %vm499_vm0, %v37101_v20  ;;  %v40643_v20 = vld [vmem:[%s44730_s2 + $0x60] sm:$0xff] }
 0x466   : > { %19429 = vperm.xlu0 %36593, %v40643_v20  }
 0x467   : > { %19434 = vperm.xlu1 %36594, %v19316_v61   ;;  %v37107_v61 = vld [vmem:[%s44729_s1 + $0x7d0] sm:$0xff]  }
 0x468   : > { %33244 = vmatmul.mubr.msk.bf16.gmra.mrb[44].mxu1 %vm499_vm0, %v37100_v1  ;;  %v40652_v1 = vpop.permute.xlu1 %12891  ;;  %v40655_v49 = vpop.permute.xlu0 %12896 }
 0x469   : > { %33247 = vmatprep.mubr.msk.bf16.mxu1 %vm499_vm0, %v37103_v9  ;;  %v19317_v9 = vld [vmem:[%s44730_s2 + $0x70] sm:$0xff] }
 0x46a   : > { %19439 = vperm.xlu0 %36593, %v19317_v9  }
 0x46b   : > { %19444 = vperm.xlu1 %36594, %v19318_v48   ;;  %v37109_v48 = vld [vmem:[%s44729_s1 + $0x7e0] sm:$0xff]  }
 0x46c   : > { %32654 = vmatmul.mubr.msk.bf16.gmra.mrb[48].mxu0 %vm499_vm0, %v37102_v57  ;;  %v40671_v56 = vpop.permute.xlu1 %12901  ;;  %v40673_v57 = vpop.permute.xlu0 %12906 }
 0x46d   : > { %32657 = vmatprep.mubr.msk.bf16.mxu0 %vm499_vm0, %v37105_v45  ;;  %v19319_v45 = vld [vmem:[%s44730_s2 + $0x80] sm:$0xff] }
 0x46e   : > { %19449 = vperm.xlu0 %36593, %v19319_v45  }
 0x46f   : > { %19454 = vperm.xlu1 %36594, %v19320_v40   ;;  %v37111_v40 = vld [vmem:[%s44729_s1 + $0x7e0] sm:$0xff]  }
 0x470   : > { %33248 = vmatmul.mubr.msk.bf16.gmra.mrb[48].mxu1 %vm499_vm0, %v37104_v44  ;;  %v40689_v44 = vpop.permute.xlu1 %12911  ;;  %v40691_v9 = vpop.permute.xlu0 %12916 }
 0x471   : > { %33251 = vmatprep.mubr.msk.bf16.mxu1 %vm499_vm0, %v37107_v61  ;;  %v19321_v61 = vld [vmem:[%s44730_s2 + $0x90] sm:$0xff] }
 0x472   : > { %19459 = vperm.xlu0 %36593, %v19321_v61   ;;  %v19325_v61 = vld [vmem:[%s44730_s2 + $0xb0] sm:$0xff] }
 0x473   : > { %19464 = vperm.xlu1 %36594, %v19322_v33   ;;  %v37113_v33 = vld [vmem:[%s44729_s1 + $0x7f0] sm:$0xff]  }
 0x474   : > { %32658 = vmatmul.mubr.msk.bf16.gmra.mrb[52].mxu0 %vm499_vm0, %v37106_v60  ;;  %v37110_v60 = vld [vmem:[%s44729_s1 + $0x7e8] sm:$0xff]   ;;  %v40711_v45 = vpop.permute.xlu1 %12921  ;;  %v40713_v37 = vpop.permute.xlu0 %12926 }
 0x475   : > { %32661 = vmatprep.mubr.msk.bf16.mxu0 %vm499_vm0, %v37109_v48  ;;  %v19323_v48 = vld [vmem:[%s44730_s2 + $0xa0] sm:$0xff] }
 0x476   : > { %19469 = vperm.xlu0 %36593, %v19323_v48  }
 0x477   : > { %19474 = vperm.xlu1 %36594, %v19324_v32   ;;  %v37115_v32 = vld [vmem:[%s44729_s1 + $0x7f0] sm:$0xff]  }
 0x478   : > { %33252 = vmatmul.mubr.msk.bf16.gmra.mrb[52].mxu1 %vm499_vm0, %v37108_v41  ;;  %v37112_v41 = vld [vmem:[%s44729_s1 + $0x7e8] sm:$0xff]   ;;  %v40739_v48 = vpop.permute.xlu1 %12931 }
 0x479   : > { %33255 = vmatprep.mubr.msk.bf16.mxu1 %vm499_vm0, %v37111_v40  ;;  %v19326_v40 = vld [vmem:[%s44730_s2 + $0xb8] sm:$0xff] }
 0x47a   : > { %19479 = vperm.xlu0 %36593, %v19325_v61   ;;  %v37117_v61 = vld [vmem:[%s44729_s1 + $0x800] sm:$0xff]  }
 0x47b   : > { %19484 = vperm.xlu1 %36594, %v19326_v40  }
 0x47c   : > { %32662 = vmatmul.mubr.msk.bf16.gmra.mrb[56].mxu0 %vm499_vm0, %v37110_v60  ;;  %v40741_v60 = vpop.permute.xlu0 %12936  ;;  %v40761_v40 = vpop.permute.xlu1 %12941 }
 0x47d   : > { %32665 = vmatprep.mubr.msk.bf16.mxu0 %vm499_vm0, %v37113_v33  ;;  %v19327_v33 = vld [vmem:[%s44730_s2 + $0xc0] sm:$0xff] }
 0x47e   : > { %19489 = vperm.xlu0 %36593, %v19327_v33   ;;  %v19331_v33 = vld [vmem:[%s44730_s2 + $0xe0] sm:$0xff] }
 0x47f   : > { %19494 = vperm.xlu1 %36594, %v19328_v53   ;;  %v37119_v53 = vld [vmem:[%s44729_s1 + $0x800] sm:$0xff]  }
 0x480   : > { %33256 = vmatmul.mubr.msk.bf16.gmra.mrb[56].mxu1 %vm499_vm0, %v37112_v41  ;;  %v37116_v41 = vld [vmem:[%s44729_s1 + $0x7f8] sm:$0xff]   ;;  %v40763_v26 = vpop.permute.xlu0 %12946  ;;  %v40786_v25 = vpop.permute.xlu1 %12951 }
 0x481   : > { %33259 = vmatprep.mubr.msk.bf16.mxu1 %vm499_vm0, %v37115_v32  ;;  %v19329_v32 = vld [vmem:[%s44730_s2 + $0xd0] sm:$0xff]  ;;  %44798 = vst [vmem:[#allocation60_spill] sm:$0xff] %v40786_v25  ;;  %v37126_v25 = vld [vmem:[%s44729_s1 + $0x828] sm:$0xff]  }
 0x482   : > { %19499 = vperm.xlu0 %36593, %v19329_v32   ;;  %v19332_v32 = vld [vmem:[%s44730_s2 + $0xe8] sm:$0xff] }
 0x483   : > { %19504 = vperm.xlu1 %36594, %v19330_v19  }
 0x484   : > { %32666 = vmatmul.mubr.msk.bf16.gmra.mrb[60].mxu0 %vm499_vm0, %v37114_v36  ;;  %v37118_v36 = vld [vmem:[%s44729_s1 + $0x808] sm:$0xff]   ;;  %v40788_v19 = vpop.permute.xlu0 %12956 }
 0x485   : > { %32671 = vmatprep.mubr.msk.bf16.mxu0 %vm499_vm0, %v37117_v61  ;;  %v37121_v61 = vld [vmem:[%s44729_s1 + $0x810] sm:$0xff]   ;;  %44799 = vst [vmem:[#allocation61_spill] sm:$0xff] %v40788_v19 }
 0x486   : > { %19509 = vperm.xlu0 %36593, %v19331_v33   ;;  %v37122_v33 = vld [vmem:[%s44729_s1 + $0x818] sm:$0xff]  }
 0x487   : > { %25409 = vrot.lane.b32.xlu1 %v40465_v27, %s37808_s25  ;;  %v37123_v27 = vld [vmem:[%s44729_s1 + $0x810] sm:$0xff]  }
 0x488   : > { %33260 = vmatmul.mubr.msk.bf16.gmra.mrb[60].mxu1 %vm499_vm0, %v37116_v41  ;;  %v37120_v41 = vld [vmem:[%s44729_s1 + $0x808] sm:$0xff]   ;;  %v40817_v19 = vpop.permute.xlu0 %12966 }
 0x489   : > { %33265 = vmatprep.mubr.msk.bf16.mxu1 %vm499_vm0, %v37119_v53  ;;  %v19333_v53 = vld [vmem:[%s44730_s2 + $0xf0] sm:$0xff]  ;;  %44801 = vst [vmem:[#allocation63_spill] sm:$0xff] %v40817_v19 }
 0x48a   : > { %19514 = vperm.xlu0 %36593, %v19332_v32   ;;  %v19335_v32 = vld [vmem:[%s44730_s2 + $0x100] sm:$0xff]  ;;  %v19337_v19 = vld [vmem:[%s44730_s2 + $0x110] sm:$0xff] }
 0x48b   : > { %19519 = vperm.xlu1 %36594, %v19333_v53   ;;  %v40831_v53 = vld [vmem:[%s37862_s23 + $0xc] sm:$0xff]  }
 0x48c   : > { %32672 = vmatmul.mubr.msk.bf16.vlgmr.msra.gmra.mrb[0].mxu0 %vm499_vm0, %v37118_v36  ;;  %v40808_v36 = vld [vmem:[%s37862_s23 + $0x8] sm:$0xff]  }
 0x48d   : > { %33330 = vmatpush3.bf16.msra.mxu0 %v39890_v24  ;;  %32675 = vmatprep.mubr.msk.bf16.mxu0 %vm499_vm0, %v37121_v61  ;;  %v40815_v24 = vpop.permute.xlu1 %12961  ;;  %v19334_v61 = vld [vmem:[%s44730_s2 + $0xf8] sm:$0xff] }
 0x48e   : > { %33395 = vmatprep.subr.bf16.mxu0 %v40808_v36  ;;  %44800 = vst [vmem:[#allocation62_spill] sm:$0xff] %v40815_v24  ;;  %19524 = vperm.xlu0 %36593, %v19334_v61   ;;  %v37127_v61 = vld [vmem:[%s44729_s1 + $0x820] sm:$0xff]  }
 0x48f   : > { %19529 = vperm.xlu1 %36594, %v19335_v32   ;;  %v19339_v24 = vld [vmem:[%s44730_s2 + $0x120] sm:$0xff] }
 0x490   : > { %33266 = vmatmul.mubr.msk.bf16.vlgmr.msra.gmra.mrb[0].mxu1 %vm499_vm0, %v37120_v41  ;;  %v37125_v41 = vld [vmem:[%s44729_s1 + $0x820] sm:$0xff]  }
 0x491   : > { %33924 = vmatpush3.bf16.msra.mxu1 %v39888_v14  ;;  %33269 = vmatprep.mubr.msk.bf16.mxu1 %vm499_vm0, %v37123_v27  ;;  %v37124_v14 = vld [vmem:[%s44729_s1 + $0x818] sm:$0xff]   ;;  %v19336_v27 = vld [vmem:[%s44730_s2 + $0x108] sm:$0xff]  ;;  %v40848_v32 = vpop.permute.xlu1 %12971 }
 0x492   : > { %33989 = vmatprep.subr.bf16.mxu1 %v40831_v53  ;;  %44802 = vst [vmem:[#allocation64_spill] sm:$0xff] %v40848_v32  ;;  %19534 = vperm.xlu0 %36593, %v19336_v27   ;;  %v19341_v32 = vld [vmem:[%s44730_s2 + $0x130] sm:$0xff] }
 0x493   : > { %19539 = vperm.xlu1 %36594, %v19337_v19   ;;  %v37129_v19 = vld [vmem:[%s44729_s1 + $0x830] sm:$0xff]  }
 0x494   : > { %32676 = vmatmul.mubr.msk.bf16.gmra.mrb[4].mxu0 %vm499_vm0, %v37122_v33  ;;  %v40850_v33 = vpop.permute.xlu0 %12976 }
 0x495   : > { %32679 = vmatprep.mubr.msk.bf16.mxu0 %vm499_vm0, %v37125_v41  ;;  %44803 = vst [vmem:[#allocation65_spill] sm:$0xff] %v40850_v33  ;;  %v19338_v41 = vld [vmem:[%s44730_s2 + $0x118] sm:$0xff]  ;;  %v40870_v27 = vpop.permute.xlu1 %12981 }
 0x496   : > { %19544 = vperm.xlu0 %36593, %v19338_v41   ;;  %44804 = vst [vmem:[#allocation66_spill] sm:$0xff] %v40870_v27  ;;  %v19342_v41 = vld [vmem:[%s44730_s2 + $0x138] sm:$0xff]  ;;  %v19345_v27 = vld [vmem:[%s44730_s2 + $0x150] sm:$0xff] }
 0x497   : > { %19549 = vperm.xlu1 %36594, %v19339_v24   ;;  %v37130_v24 = vld [vmem:[%s44729_s1 + $0x838] sm:$0xff]  }
 0x498   : > { %33270 = vmatmul.mubr.msk.bf16.gmra.mrb[4].mxu1 %vm499_vm0, %v37124_v14  ;;  %v37128_v14 = vld [vmem:[%s44729_s1 + $0x828] sm:$0xff]   ;;  %v40872_v33 = vpop.permute.xlu0 %12986 }
 0x499   : > { %33273 = vmatprep.mubr.msk.bf16.mxu1 %vm499_vm0, %v37127_v61  ;;  %44805 = vst [vmem:[#allocation67_spill] sm:$0xff] %v40872_v33  ;;  %v19340_v61 = vld [vmem:[%s44730_s2 + $0x128] sm:$0xff]  ;;  %v37132_v33 = vld [vmem:[%s44729_s1 + $0x838] sm:$0xff]  }
 0x49a   : > { %19554 = vperm.xlu0 %36593, %v19340_v61   ;;  %v40898_v61 = vpop.permute.xlu1 %12991 }
 0x49b   : > { %19559 = vperm.xlu1 %36594, %v19341_v32   ;;  %v37133_v32 = vld [vmem:[%s44729_s1 + $0x840] sm:$0xff]   ;;  %44806 = vst [vmem:[#allocation68_spill] sm:$0xff] %v40898_v61 }
 0x49c   : > { %32680 = vmatmul.mubr.msk.bf16.gmra.mrb[8].mxu0 %vm499_vm0, %v37126_v25  ;;  %v37131_v25 = vld [vmem:[%s44729_s1 + $0x830] sm:$0xff]   ;;  %v19347_v61 = vld [vmem:[%s44730_s2 + $0x160] sm:$0xff] }
 0x49d   : > { %32683 = vmatprep.mubr.msk.bf16.mxu0 %vm499_vm0, %v37129_v19  ;;  %v19343_v19 = vld [vmem:[%s44730_s2 + $0x140] sm:$0xff] }
 0x49e   : > { %19564 = vperm.xlu0 %36593, %v19342_v41   ;;  %v37135_v41 = vld [vmem:[%s44729_s1 + $0x840] sm:$0xff]  }
 0x49f   : > { %19569 = vperm.xlu1 %36594, %v19343_v19   ;;  %v40920_v19 = vpop.permute.xlu1 %13001 }
 0x4a0   : > { %33274 = vmatmul.mubr.msk.bf16.gmra.mrb[8].mxu1 %vm499_vm0, %v37128_v14  ;;  %v40900_v14 = vpop.permute.xlu0 %12996  ;;  %44808 = vst [vmem:[#allocation70_spill] sm:$0xff] %v40920_v19  ;;  %v19351_v19 = vld [vmem:[%s44730_s2 + $0x180] sm:$0xff] }
 0x4a1   : > { %33277 = vmatprep.mubr.msk.bf16.mxu1 %vm499_vm0, %v37131_v25  ;;  %44807 = vst [vmem:[#allocation69_spill] sm:$0xff] %v40900_v14  ;;  %v19344_v25 = vld [vmem:[%s44730_s2 + $0x148] sm:$0xff] }
 0x4a2   : > { %19574 = vperm.xlu0 %36593, %v19344_v25   ;;  %v19348_v25 = vld [vmem:[%s44730_s2 + $0x168] sm:$0xff] }
 0x4a3   : > { %19579 = vperm.xlu1 %36594, %v19345_v27   ;;  %v37136_v27 = vld [vmem:[%s44729_s1 + $0x848] sm:$0xff]  }
 0x4a4   : > { %32684 = vmatmul.mubr.msk.bf16.gmra.mrb[12].mxu0 %vm499_vm0, %v37130_v24  ;;  %v37134_v24 = vld [vmem:[%s44729_s1 + $0x848] sm:$0xff]   ;;  %v40922_v14 = vpop.permute.xlu0 %13006 }
 0x4a5   : > { %32687 = vmatprep.mubr.msk.bf16.mxu0 %vm499_vm0, %v37133_v32  ;;  %44809 = vst [vmem:[#allocation71_spill] sm:$0xff] %v40922_v14  ;;  %v19346_v32 = vld [vmem:[%s44730_s2 + $0x158] sm:$0xff] }
 0x4a6   : > { %19584 = vperm.xlu0 %36593, %v19346_v32   ;;  %v40948_v32 = vpop.permute.xlu1 %13011  ;;  %v37138_v14 = vld [vmem:[%s44729_s1 + $0x858] sm:$0xff]  }
 0x4a7   : > { %19589 = vperm.xlu1 %36594, %v19347_v61   ;;  %v37139_v61 = vld [vmem:[%s44729_s1 + $0x850] sm:$0xff]   ;;  %44810 = vst [vmem:[#allocation72_spill] sm:$0xff] %v40948_v32 }
 0x4a8   : > { %33278 = vmatmul.mubr.msk.bf16.gmra.mrb[12].mxu1 %vm499_vm0, %v37132_v33  ;;  %v37137_v33 = vld [vmem:[%s44729_s1 + $0x850] sm:$0xff]  }
 0x4a9   : > { %33281 = vmatprep.mubr.msk.bf16.mxu1 %vm499_vm0, %v37135_v41  ;;  %v19349_v41 = vld [vmem:[%s44730_s2 + $0x170] sm:$0xff] }
 0x4aa   : > { %19594 = vperm.xlu0 %36593, %v19348_v25   ;;  %v37141_v25 = vld [vmem:[%s44729_s1 + $0x860] sm:$0xff]   ;;  %v19353_v32 = vld [vmem:[%s44730_s2 + $0x190] sm:$0xff] }
 0x4ab   : > { %19599 = vperm.xlu1 %36594, %v19349_v41   ;;  %v40970_v41 = vpop.permute.xlu1 %13021 }
 0x4ac   : > { %32688 = vmatmul.mubr.msk.bf16.gmra.mrb[16].mxu0 %vm499_vm0, %v37134_v24  ;;  %v40950_v24 = vpop.permute.xlu0 %13016  ;;  %44812 = vst [vmem:[#allocation74_spill] sm:$0xff] %v40970_v41  ;;  %v19357_v41 = vld [vmem:[%s44730_s2 + $0x1b0] sm:$0xff] }
 0x4ad   : > { %32691 = vmatprep.mubr.msk.bf16.mxu0 %vm499_vm0, %v37137_v33  ;;  %44811 = vst [vmem:[#allocation73_spill] sm:$0xff] %v40950_v24  ;;  %v19350_v33 = vld [vmem:[%s44730_s2 + $0x178] sm:$0xff] }
 0x4ae   : > { %19604 = vperm.xlu0 %36593, %v19350_v33   ;;  %v19354_v33 = vld [vmem:[%s44730_s2 + $0x198] sm:$0xff] }
 0x4af   : > { %19609 = vperm.xlu1 %36594, %v19351_v19   ;;  %v37142_v19 = vld [vmem:[%s44729_s1 + $0x868] sm:$0xff]  }
 0x4b0   : > { %33282 = vmatmul.mubr.msk.bf16.gmra.mrb[16].mxu1 %vm499_vm0, %v37136_v27  ;;  %v37140_v27 = vld [vmem:[%s44729_s1 + $0x858] sm:$0xff]   ;;  %v40972_v24 = vpop.permute.xlu0 %13026 }
 0x4b1   : > { %33285 = vmatprep.mubr.msk.bf16.mxu1 %vm499_vm0, %v37139_v61  ;;  %44813 = vst [vmem:[#allocation75_spill] sm:$0xff] %v40972_v24  ;;  %v19352_v61 = vld [vmem:[%s44730_s2 + $0x188] sm:$0xff] }
 0x4b2   : > { %19614 = vperm.xlu0 %36593, %v19352_v61   ;;  %v40998_v61 = vpop.permute.xlu1 %13031  ;;  %v37144_v24 = vld [vmem:[%s44729_s1 + $0x868] sm:$0xff]  }
 0x4b3   : > { %19619 = vperm.xlu1 %36594, %v19353_v32   ;;  %v37145_v32 = vld [vmem:[%s44729_s1 + $0x870] sm:$0xff]   ;;  %44814 = vst [vmem:[#allocation76_spill] sm:$0xff] %v40998_v61  ;;  %v19359_v61 = vld [vmem:[%s44730_s2 + $0x1c0] sm:$0xff] }
 0x4b4   : > { %32692 = vmatmul.mubr.msk.bf16.gmra.mrb[20].mxu0 %vm499_vm0, %v37138_v14  ;;  %v37143_v14 = vld [vmem:[%s44729_s1 + $0x860] sm:$0xff]  }
 0x4b5   : > { %32695 = vmatprep.mubr.msk.bf16.mxu0 %vm499_vm0, %v37141_v25  ;;  %v19355_v25 = vld [vmem:[%s44730_s2 + $0x1a0] sm:$0xff] }
 0x4b6   : > { %19624 = vperm.xlu0 %36593, %v19354_v33   ;;  %v37147_v33 = vld [vmem:[%s44729_s1 + $0x870] sm:$0xff]  }
 0x4b7   : > { %19629 = vperm.xlu1 %36594, %v19355_v25   ;;  %v41020_v25 = vpop.permute.xlu1 %13041 }
 0x4b8   : > { %33286 = vmatmul.mubr.msk.bf16.gmra.mrb[20].mxu1 %vm499_vm0, %v37140_v27  ;;  %v41000_v27 = vpop.permute.xlu0 %13036  ;;  %44816 = vst [vmem:[#allocation78_spill] sm:$0xff] %v41020_v25  ;;  %v19363_v25 = vld [vmem:[%s44730_s2 + $0x1e0] sm:$0xff] }
 0x4b9   : > { %33289 = vmatprep.mubr.msk.bf16.mxu1 %vm499_vm0, %v37143_v14  ;;  %44815 = vst [vmem:[#allocation77_spill] sm:$0xff] %v41000_v27  ;;  %v19356_v14 = vld [vmem:[%s44730_s2 + $0x1a8] sm:$0xff] }
 0x4ba   : > { %19634 = vperm.xlu0 %36593, %v19356_v14   ;;  %v19360_v14 = vld [vmem:[%s44730_s2 + $0x1c8] sm:$0xff] }
 0x4bb   : > { %19639 = vperm.xlu1 %36594, %v19357_v41   ;;  %v37149_v41 = vld [vmem:[%s44729_s1 + $0x878] sm:$0xff]  }
 0x4bc   : > { %32696 = vmatmul.mubr.msk.bf16.gmra.mrb[24].mxu0 %vm499_vm0, %v37142_v19  ;;  %v37146_v19 = vld [vmem:[%s44729_s1 + $0x878] sm:$0xff]   ;;  %v41022_v27 = vpop.permute.xlu0 %13046 }
 0x4bd   : > { %32699 = vmatprep.mubr.msk.bf16.mxu0 %vm499_vm0, %v37145_v32  ;;  %44817 = vst [vmem:[#allocation79_spill] sm:$0xff] %v41022_v27  ;;  %v19358_v32 = vld [vmem:[%s44730_s2 + $0x1b8] sm:$0xff]  ;;  %v37152_v27 = vld [vmem:[%s44729_s1 + $0x888] sm:$0xff]  }
 0x4be   : > { %19644 = vperm.xlu0 %36593, %v19358_v32   ;;  %v41048_v32 = vpop.permute.xlu1 %13051 }
 0x4bf   : > { %19649 = vperm.xlu1 %36594, %v19359_v61   ;;  %v37153_v61 = vld [vmem:[%s44729_s1 + $0x880] sm:$0xff]   ;;  %44818 = vst [vmem:[#allocation80_spill] sm:$0xff] %v41048_v32  ;;  %v19365_v32 = vld [vmem:[%s44730_s2 + $0x1f0] sm:$0xff] }
 0x4c0   : > { %33290 = vmatmul.mubr.msk.bf16.gmra.mrb[24].mxu1 %vm499_vm0, %v37144_v24  ;;  %v37151_v24 = vld [vmem:[%s44729_s1 + $0x880] sm:$0xff]  }
 0x4c1   : > { %33293 = vmatprep.mubr.msk.bf16.mxu1 %vm499_vm0, %v37147_v33  ;;  %v19361_v33 = vld [vmem:[%s44730_s2 + $0x1d0] sm:$0xff] }
 0x4c2   : > { %19654 = vperm.xlu0 %36593, %v19360_v14   ;;  %v37155_v14 = vld [vmem:[%s44729_s1 + $0x890] sm:$0xff]  }
 0x4c3   : > { %19659 = vperm.xlu1 %36594, %v19361_v33   ;;  %v41070_v33 = vpop.permute.xlu1 %13061 }
 0x4c4   : > { %32700 = vmatmul.mubr.msk.bf16.gmra.mrb[28].mxu0 %vm499_vm0, %v37146_v19  ;;  %v41050_v19 = vpop.permute.xlu0 %13056 }
 0x4c5   : > { %32703 = vmatprep.mubr.msk.bf16.mxu0 %vm499_vm0, %v37151_v24  ;;  %44819 = vst [vmem:[#allocation81_spill] sm:$0xff] %v41050_v19  ;;  %v19362_v24 = vld [vmem:[%s44730_s2 + $0x1d8] sm:$0xff] }
 0x4c6   : > { %19664 = vperm.xlu0 %36593, %v19362_v24   ;;  %v19366_v24 = vld [vmem:[%s44730_s2 + $0x1f8] sm:$0xff] }
 0x4c7   : > { %19669 = vperm.xlu1 %36594, %v19363_v25   ;;  %v37156_v25 = vld [vmem:[%s44729_s1 + $0x898] sm:$0xff]  }
 0x4c8   : > { %33294 = vmatmul.mubr.msk.bf16.gmra.mrb[28].mxu1 %vm499_vm0, %v37149_v41  ;;  %v37154_v41 = vld [vmem:[%s44729_s1 + $0x888] sm:$0xff]   ;;  %v41072_v19 = vpop.permute.xlu0 %13066 }
 0x4c9   : > { %33297 = vmatprep.mubr.msk.bf16.mxu1 %vm499_vm0, %v37153_v61  ;;  %44820 = vst [vmem:[#allocation82_spill] sm:$0xff] %v41072_v19  ;;  %v19364_v61 = vld [vmem:[%s44730_s2 + $0x1e8] sm:$0xff]  ;;  %v41095_v19 = vpop.permute.xlu1 %13071 }
 0x4ca   : > { %19674 = vperm.xlu0 %36593, %v19364_v61  }
 0x4cb   : > { %19679 = vperm.xlu1 %36594, %v19365_v32   ;;  %v37158_v32 = vld [vmem:[%s44729_s1 + $0x898] sm:$0xff]  }
 0x4cc   : > { %32704 = vmatmul.mubr.msk.bf16.gmra.mrb[32].mxu0 %vm499_vm0, %v37152_v27  ;;  %v37157_v27 = vld [vmem:[%s44729_s1 + $0x890] sm:$0xff]   ;;  %v41097_v61 = vpop.permute.xlu0 %13076 }
 0x4cd   : > { %32707 = vmatprep.mubr.msk.bf16.mxu0 %vm499_vm0, %v37155_v14  ;;  %v37159_v14 = vld [vmem:[%s44729_s1 + $0x8a0] sm:$0xff]  }
 0x4ce   : > { %19684 = vperm.xlu0 %36593, %v19366_v24   ;;  %v37163_v24 = vld [vmem:[%s44729_s1 + $0x8b0] sm:$0xff]  }
 0x4cf   : > { %25927 = vperm.xlu1 %36594, %v40499_v18   ;;  %v37160_v18 = vld [vmem:[%s44729_s1 + $0x8a8] sm:$0xff]  }
 0x4d0   : > { %33298 = vmatmul.mubr.msk.bf16.gmra.mrb[32].mxu1 %vm499_vm0, %v37154_v41  ;;  %v37161_v41 = vld [vmem:[%s44729_s1 + $0x8a0] sm:$0xff]  }
 0x4d1   : > { %33301 = vmatprep.mubr.msk.bf16.mxu1 %vm499_vm0, %v37157_v27  ;;  %v41114_v27 = vpop.permute.xlu1 %13081 }
 0x4d2   : > { %25932 = vperm.xlu0 %36593, %v40504_v55   ;;  %v37162_v55 = vld [vmem:[%s44729_s1 + $0x8a8] sm:$0xff]  }
 0x4d3   : > { %25937 = vperm.xlu1 %36594, %v40523_v46   ;;  %v37165_v46 = vld [vmem:[%s44729_s1 + $0x8b0] sm:$0xff]  }
 0x4d4   : > { %32708 = vmatmul.mubr.msk.bf16.gmra.mrb[36].mxu0 %vm499_vm0, %v37156_v25  ;;  %v41116_v25 = vpop.permute.xlu0 %13086 }
 0x4d5   : > { %32711 = vmatprep.mubr.msk.bf16.mxu0 %vm499_vm0, %v37159_v14  ;;  %v41132_v14 = vpop.permute.xlu1 %13091 }
 0x4d6   : > { %25942 = vperm.xlu0 %36593, %v40528_v28   ;;  %v37164_v28 = vld [vmem:[%s44729_s1 + $0x8b8] sm:$0xff]  }
 0x4d7   : > { %25947 = vperm.xlu1 %36594, %v40547_v3   ;;  %v37167_v3 = vld [vmem:[%s44729_s1 + $0x8c0] sm:$0xff]  }
 0x4d8   : > { %33302 = vmatmul.mubr.msk.bf16.gmra.mrb[36].mxu1 %vm499_vm0, %v37158_v32  ;;  %v41134_v32 = vpop.permute.xlu0 %13096 }
 0x4d9   : > { %33305 = vmatprep.mubr.msk.bf16.mxu1 %vm499_vm0, %v37161_v41 }
 0x4da   : > { %25952 = vperm.xlu0 %36593, %v40552_v38   ;;  %v37166_v38 = vld [vmem:[%s44729_s1 + $0x8b8] sm:$0xff]  }
 0x4db   : > { %25957 = vperm.xlu1 %36594, %v40571_v43   ;;  %v41152_v43 = vpop.permute.xlu1 %13101 }
 0x4dc   : > { %32712 = vmatmul.mubr.msk.bf16.gmra.mrb[40].mxu0 %vm499_vm0, %v37160_v18  ;;  %v41154_v41 = vpop.permute.xlu0 %13106  ;;  %v37169_v18 = vld [vmem:[%s44729_s1 + $0x8c0] sm:$0xff]  }
 0x4dd   : > { %32715 = vmatprep.mubr.msk.bf16.mxu0 %vm499_vm0, %v37163_v24 }
 0x4de   : > { %25962 = vperm.xlu0 %36593, %v40576_v23   ;;  %v37168_v23 = vld [vmem:[%s44729_s1 + $0x8c8] sm:$0xff]  }
 0x4df   : > { %25967 = vperm.xlu1 %36594, %v40595_v29   ;;  %v37171_v29 = vld [vmem:[%s44729_s1 + $0x8d0] sm:$0xff]   ;;  %v41170_v24 = vpop.permute.xlu1 %13111 }
 0x4e0   : > { %33306 = vmatmul.mubr.msk.bf16.gmra.mrb[40].mxu1 %vm499_vm0, %v37162_v55  ;;  %v41172_v55 = vpop.permute.xlu0 %13116 }
 0x4e1   : > { %33309 = vmatprep.mubr.msk.bf16.mxu1 %vm499_vm0, %v37165_v46  ;;  %44821 = vst [vmem:[#allocation83_spill] sm:$0xff] %v41172_v55 }
 0x4e2   : > { %25972 = vperm.xlu0 %36593, %v40600_v15   ;;  %v37170_v15 = vld [vmem:[%s44729_s1 + $0x8c8] sm:$0xff]  }
 0x4e3   : > { %25977 = vperm.xlu1 %36594, %v40619_v30   ;;  %v37173_v30 = vld [vmem:[%s44729_s1 + $0x8d0] sm:$0xff]   ;;  %v41188_v46 = vpop.permute.xlu1 %18175 }
 0x4e4   : > { %32716 = vmatmul.mubr.msk.bf16.gmra.mrb[44].mxu0 %vm499_vm0, %v37164_v28  ;;  %44822 = vst [vmem:[#allocation84_spill] sm:$0xff] %v41188_v46  ;;  %v37175_v28 = vld [vmem:[%s44729_s1 + $0x8e0] sm:$0xff]  }
 0x4e5   : > { %32719 = vmatprep.mubr.msk.bf16.mxu0 %vm499_vm0, %v37167_v3  ;;  %v25874_v3 = vld [vmem:[%s44730_s2 + $0x68] sm:$0xff] }
 0x4e6   : > { %25982 = vperm.xlu0 %36593, %v40624_v6   ;;  %v37172_v6 = vld [vmem:[%s44729_s1 + $0x8d8] sm:$0xff]  }
 0x4e7   : > { %25987 = vperm.xlu1 %36594, %v40643_v20   ;;  %v41190_v20 = vpop.permute.xlu0 %24733 }
 0x4e8   : > { %33310 = vmatmul.mubr.msk.bf16.gmra.mrb[44].mxu1 %vm499_vm0, %v37166_v38  ;;  %44823 = vst [vmem:[#allocation85_spill] sm:$0xff] %v41190_v20  ;;  %v37174_v38 = vld [vmem:[%s44729_s1 + $0x8d8] sm:$0xff]  }
 0x4e9   : > { %33313 = vmatprep.mubr.msk.bf16.mxu1 %vm499_vm0, %v37169_v18  ;;  %v25875_v18 = vld [vmem:[%s44730_s2 + $0x70] sm:$0xff] }
 0x4ea   : > { %25992 = vperm.xlu0 %36593, %v25874_v3   ;;  %v37179_v3 = vld [vmem:[%s44729_s1 + $0x8f0] sm:$0xff]  }
 0x4eb   : > { %25997 = vperm.xlu1 %36594, %v25875_v18   ;;  %v25878_v18 = vld [vmem:[%s44730_s2 + $0x88] sm:$0xff] }
 0x4ec   : > { %32720 = vmatmul.mubr.msk.bf16.gmra.mrb[48].mxu0 %vm499_vm0, %v37168_v23  ;;  %v37177_v23 = vld [vmem:[%s44729_s1 + $0x8e0] sm:$0xff]  }
 0x4ed   : > { %32723 = vmatprep.mubr.msk.bf16.mxu0 %vm499_vm0, %v37171_v29  ;;  %v25876_v29 = vld [vmem:[%s44730_s2 + $0x78] sm:$0xff] }
 0x4ee   : > { %26002 = vperm.xlu0 %36593, %v25876_v29  }
 0x4f0   : > { %33314 = vmatmul.mubr.msk.bf16.gmra.mrb[48].mxu1 %vm499_vm0, %v37170_v15  ;;  %v41213_v15 = vpop.permute.xlu1 %13121 }
 0x4f1   : > { %33317 = vmatprep.mubr.msk.bf16.mxu1 %vm499_vm0, %v37173_v30  ;;  %v41215_v30 = vpop.permute.xlu0 %13126 }
 0x4f2   : > { %26012 = vperm.xlu0 %36593, %v25878_v18   ;;  %v37180_v18 = vld [vmem:[%s44729_s1 + $0x8f8] sm:$0xff]  }
 0x4f4   : > { %32724 = vmatmul.mubr.msk.bf16.gmra.mrb[52].mxu0 %vm499_vm0, %v37172_v6  ;;  %v37176_v6 = vld [vmem:[%s44729_s1 + $0x8e8] sm:$0xff]   ;;  %v41235_v29 = vpop.permute.xlu1 %18851 }
 0x4f5   : > { %32727 = vmatprep.mubr.msk.bf16.mxu0 %vm499_vm0, %v37175_v28  ;;  %v25877_v28 = vld [vmem:[%s44730_s2 + $0x80] sm:$0xff]  ;;  %44824 = vst [vmem:[#allocation86_spill] sm:$0xff] %v41235_v29  ;;  %v41237_v20 = vpop.permute.xlu0 %19369  ;;  %v25883_v29 = vld [vmem:[%s44730_s2 + $0xb0] sm:$0xff] }
 0x4f6   : > { %26007 = vperm.xlu1 %36594, %v25877_v28   ;;  %44825 = vst [vmem:[#allocation87_spill] sm:$0xff] %v41237_v20  ;;  %v37181_v28 = vld [vmem:[%s44729_s1 + $0x8f0] sm:$0xff]  }
 0x4f8   : > { %33318 = vmatmul.mubr.msk.bf16.gmra.mrb[52].mxu1 %vm499_vm0, %v37174_v38  ;;  %v37178_v38 = vld [vmem:[%s44729_s1 + $0x8e8] sm:$0xff]  }
 0x4f9   : > { %33321 = vmatprep.mubr.msk.bf16.mxu1 %vm499_vm0, %v37177_v23  ;;  %v25879_v23 = vld [vmem:[%s44730_s2 + $0x90] sm:$0xff]  ;;  %v41265_v20 = vpop.permute.xlu0 %19379 }
 0x4fa   : > { %26017 = vperm.xlu1 %36594, %v25879_v23   ;;  %v37183_v23 = vld [vmem:[%s44729_s1 + $0x100] sm:$0xff]   ;;  %44827 = vst [vmem:[#allocation89_spill] sm:$0xff] %v41265_v20 }
 0x4fc   : > { %32728 = vmatmul.mubr.msk.bf16.gmra.mrb[56].mxu0 %vm499_vm0, %v37176_v6  ;;  %v25880_v6 = vld [vmem:[%s44730_s2 + $0x98] sm:$0xff] }
 0x4fd   : > { %32731 = vmatprep.mubr.msk.bf16.mxu0 %vm499_vm0, %v37179_v3  ;;  %26022 = vperm.xlu0 %36593, %v25880_v6   ;;  %v25881_v3 = vld [vmem:[%s44730_s2 + $0xa0] sm:$0xff]  ;;  %v25882_v6 = vld [vmem:[%s44730_s2 + $0xa8] sm:$0xff]  ;;  %v41287_v20 = vpop.permute.xlu0 %19389 }
 0x4fe   : > { %26027 = vperm.xlu1 %36594, %v25881_v3   ;;  %v37185_v3 = vld [vmem:[%s44729_s1 + $0x100] sm:$0xff]   ;;  %44829 = vst [vmem:[#allocation91_spill] sm:$0xff] %v41287_v20 }
 0x500   : > { %33322 = vmatmul.mubr.msk.bf16.gmra.mrb[56].mxu1 %vm499_vm0, %v37178_v38  ;;  %v41263_v38 = vpop.permute.xlu1 %19374 }
 0x501   : > { %33325 = vmatprep.mubr.msk.bf16.mxu1 %vm499_vm0, %v37181_v28  ;;  %44826 = vst [vmem:[#allocation88_spill] sm:$0xff] %v41263_v38  ;;  %26032 = vperm.xlu0 %36593, %v25882_v6   ;;  %v37182_v28 = vld [vmem:[%s44729_s1 + $0x8f8] sm:$0xff]   ;;  %v41316_v20 = vpop.permute.xlu0 %19399 }
 0x502   : > { %26037 = vperm.xlu1 %36594, %v25883_v29   ;;  %v25884_v6 = vld [vmem:[%s44730_s2 + $0xb8] sm:$0xff]  ;;  %v37187_v29 = vld [vmem:[%s44729_s1 + $0x110] sm:$0xff]   ;;  %44831 = vst [vmem:[#allocation93_spill] sm:$0xff] %v41316_v20 }
 0x504   : > { %32732 = vmatmul.mubr.msk.bf16.gmra.mrb[60].mxu0 %vm499_vm0, %v37180_v18  ;;  %v37184_v18 = vld [vmem:[%s44729_s1 + $0x108] sm:$0xff]   ;;  %v41285_v38 = vpop.permute.xlu1 %19384 }
 0x505   : > { %33331 = vmatprep.mubr.msk.bf16.mxu0 %vm499_vm0, %v37183_v23  ;;  %26042 = vperm.xlu0 %36593, %v25884_v6   ;;  %44828 = vst [vmem:[#allocation90_spill] sm:$0xff] %v41285_v38  ;;  %v25885_v23 = vld [vmem:[%s44730_s2 + $0xc0] sm:$0xff]  ;;  %v37186_v6 = vld [vmem:[%s44729_s1 + $0x108] sm:$0xff]  }
 0x506   : > { %26047 = vperm.xlu1 %36594, %v25885_v23   ;;  %v37189_v23 = vld [vmem:[%s44729_s1 + $0x110] sm:$0xff]  }
 0x508   : > { %33326 = vmatmul.mubr.msk.bf16.gmra.mrb[60].mxu1 %vm499_vm0, %v37182_v28  ;;  %v25886_v28 = vld [vmem:[%s44730_s2 + $0xc8] sm:$0xff] }
 0x509   : > { %33925 = vmatprep.mubr.msk.bf16.mxu1 %vm499_vm0, %v37185_v3  ;;  %26052 = vperm.xlu0 %36593, %v25886_v28   ;;  %v25887_v3 = vld [vmem:[%s44730_s2 + $0xd0] sm:$0xff]  ;;  %v41314_v28 = vpop.permute.xlu1 %19394 }
 0x50a   : > { %44830 = vst [vmem:[#allocation92_spill] sm:$0xff] %v41314_v28  ;;  %26057 = vperm.xlu1 %36594, %v25887_v3   ;;  %v37191_v3 = vld [vmem:[%s44729_s1 + $0x120] sm:$0xff]   ;;  %v25891_v28 = vld [vmem:[%s44730_s2 + $0xf0] sm:$0xff] }
 0x50c   : > { %33332 = vmatmul.mubr.msk.bf16.vlgmr.msra.gmra.mrb[64].mxu0 %vm499_vm0, %v37184_v18  ;;  %v25888_v18 = vld [vmem:[%s44730_s2 + $0xd8] sm:$0xff] }
 0x50d   : > { %33396 = vmatpush3.bf16.msra.mxu0 %v40808_v36  ;;  %33335 = vmatprep.mubr.msk.bf16.mxu0 %vm499_vm0, %v37187_v29  ;;  %v37188_v36 = vld [vmem:[%s44729_s1 + $0x118] sm:$0xff]   ;;  %v25889_v29 = vld [vmem:[%s44730_s2 + $0xe0] sm:$0xff] }
 0x50e   : > { %26062 = vperm.xlu0 %36593, %v25888_v18   ;;  %33461 = vmatprep.subr.bf16.mxu0 %v39914_v16  ;;  %v41339_v18 = vpop.permute.xlu1 %19404 }
 0x50f   : > { %26067 = vperm.xlu1 %36594, %v25889_v29   ;;  %44832 = vst [vmem:[#allocation94_spill] sm:$0xff] %v41339_v18  ;;  %v37193_v29 = vld [vmem:[%s44729_s1 + $0x120] sm:$0xff]   ;;  %v25895_v18 = vld [vmem:[%s44730_s2 + $0x110] sm:$0xff] }
 0x510   : > { %33926 = vmatmul.mubr.msk.bf16.vlgmr.msra.gmra.mrb[64].mxu1 %vm499_vm0, %v37186_v6  ;;  %v25890_v6 = vld [vmem:[%s44730_s2 + $0xe8] sm:$0xff] }
 0x511   : > { %33990 = vmatpush3.bf16.msra.mxu1 %v40831_v53  ;;  %33929 = vmatprep.mubr.msk.bf16.mxu1 %vm499_vm0, %v37189_v23  ;;  %v37190_v53 = vld [vmem:[%s44729_s1 + $0x118] sm:$0xff]   ;;  %v41341_v23 = vpop.permute.xlu0 %19409 }
 0x512   : > { %26072 = vperm.xlu0 %36593, %v25890_v6   ;;  %34055 = vmatprep.subr.bf16.mxu1 %v39912_v22  ;;  %44833 = vst [vmem:[#allocation95_spill] sm:$0xff] %v41341_v23  ;;  %v37192_v6 = vld [vmem:[%s44729_s1 + $0x128] sm:$0xff]   ;;  %v37195_v23 = vld [vmem:[%s44729_s1 + $0x130] sm:$0xff]  }
 0x513   : > { %26077 = vperm.xlu1 %36594, %v25891_v28   ;;  %v25894_v28 = vld [vmem:[%s44730_s2 + $0x108] sm:$0xff] }
 0x514   : > { %33336 = vmatmul.mubr.msk.bf16.gmra.mrb[68].mxu0 %vm499_vm0, %v37188_v36  ;;  %v25892_v36 = vld [vmem:[%s44730_s2 + $0xf8] sm:$0xff] }
 0x515   : > { %33339 = vmatprep.mubr.msk.bf16.mxu0 %vm499_vm0, %v37191_v3  ;;  %v25893_v3 = vld [vmem:[%s44730_s2 + $0x100] sm:$0xff] }
 0x516   : > { %26082 = vperm.xlu0 %36593, %v25892_v36   ;;  %v41367_v36 = vpop.permute.xlu1 %19414 }
 0x517   : > { %44834 = vst [vmem:[#allocation96_spill] sm:$0xff] %v41367_v36  ;;  %26087 = vperm.xlu1 %36594, %v25893_v3   ;;  %v37197_v36 = vld [vmem:[%s44729_s1 + $0x130] sm:$0xff]   ;;  %v25896_v3 = vld [vmem:[%s44730_s2 + $0x118] sm:$0xff] }
 0x518   : > { %33930 = vmatmul.mubr.msk.bf16.gmra.mrb[68].mxu1 %vm499_vm0, %v37190_v53  ;;  %v41369_v53 = vpop.permute.xlu0 %19419 }
 0x519   : > { %33933 = vmatprep.mubr.msk.bf16.mxu1 %vm499_vm0, %v37193_v29  ;;  %44835 = vst [vmem:[#allocation97_spill] sm:$0xff] %v41369_v53  ;;  %v37194_v29 = vld [vmem:[%s44729_s1 + $0x128] sm:$0xff]  }
 0x51a   : > { %26092 = vperm.xlu0 %36593, %v25894_v28   ;;  %v41389_v28 = vpop.permute.xlu1 %19424 }
 0x51b   : > { %26097 = vperm.xlu1 %36594, %v25895_v18   ;;  %44836 = vst [vmem:[#allocation98_spill] sm:$0xff] %v41389_v28  ;;  %v37199_v18 = vld [vmem:[%s44729_s1 + $0x140] sm:$0xff]  }
 0x51c   : > { %33340 = vmatmul.mubr.msk.bf16.gmra.mrb[72].mxu0 %vm499_vm0, %v37192_v6  ;;  %v37196_v6 = vld [vmem:[%s44729_s1 + $0x138] sm:$0xff]   ;;  %v41391_v53 = vpop.permute.xlu0 %19429  ;;  %v25901_v28 = vld [vmem:[%s44730_s2 + $0x140] sm:$0xff] }
 0x51d   : > { %33343 = vmatprep.mubr.msk.bf16.mxu0 %vm499_vm0, %v37195_v23  ;;  %44837 = vst [vmem:[#allocation99_spill] sm:$0xff] %v41391_v53  ;;  %v25897_v23 = vld [vmem:[%s44730_s2 + $0x120] sm:$0xff] }
 0x51e   : > { %26102 = vperm.xlu0 %36593, %v25896_v3   ;;  %v37198_v3 = vld [vmem:[%s44729_s1 + $0x138] sm:$0xff]   ;;  %v37201_v53 = vld [vmem:[%s44729_s1 + $0x140] sm:$0xff]  }
 0x51f   : > { %26107 = vperm.xlu1 %36594, %v25897_v23   ;;  %v25900_v23 = vld [vmem:[%s44730_s2 + $0x138] sm:$0xff] }
 0x520   : > { %33934 = vmatmul.mubr.msk.bf16.gmra.mrb[72].mxu1 %vm499_vm0, %v37194_v29  ;;  %v25898_v29 = vld [vmem:[%s44730_s2 + $0x128] sm:$0xff] }
 0x521   : > { %33937 = vmatprep.mubr.msk.bf16.mxu1 %vm499_vm0, %v37197_v36  ;;  %v25899_v36 = vld [vmem:[%s44730_s2 + $0x130] sm:$0xff] }
 0x522   : > { %26112 = vperm.xlu0 %36593, %v25898_v29   ;;  %v41417_v29 = vpop.permute.xlu1 %19434 }
 0x523   : > { %44838 = vst [vmem:[#allocation100_spill] sm:$0xff] %v41417_v29  ;;  %26117 = vperm.xlu1 %36594, %v25899_v36   ;;  %v37203_v29 = vld [vmem:[%s44729_s1 + $0x150] sm:$0xff]   ;;  %v25902_v36 = vld [vmem:[%s44730_s2 + $0x148] sm:$0xff] }
 0x524   : > { %33344 = vmatmul.mubr.msk.bf16.gmra.mrb[76].mxu0 %vm499_vm0, %v37196_v6  ;;  %v41419_v6 = vpop.permute.xlu0 %19439 }
 0x525   : > { %33347 = vmatprep.mubr.msk.bf16.mxu0 %vm499_vm0, %v37199_v18  ;;  %44839 = vst [vmem:[#allocation101_spill] sm:$0xff] %v41419_v6  ;;  %v37200_v18 = vld [vmem:[%s44729_s1 + $0x148] sm:$0xff]  }
 0x526   : > { %26122 = vperm.xlu0 %36593, %v25900_v23   ;;  %v41439_v23 = vpop.permute.xlu1 %19444 }
 0x527   : > { %26127 = vperm.xlu1 %36594, %v25901_v28   ;;  %44840 = vst [vmem:[#allocation102_spill] sm:$0xff] %v41439_v23  ;;  %v37205_v28 = vld [vmem:[%s44729_s1 + $0x150] sm:$0xff]  }
 0x528   : > { %33938 = vmatmul.mubr.msk.bf16.gmra.mrb[76].mxu1 %vm499_vm0, %v37198_v3  ;;  %v37202_v3 = vld [vmem:[%s44729_s1 + $0x148] sm:$0xff]   ;;  %v41441_v6 = vpop.permute.xlu0 %19449  ;;  %v25907_v23 = vld [vmem:[%s44730_s2 + $0x170] sm:$0xff] }
 0x529   : > { %33941 = vmatprep.mubr.msk.bf16.mxu1 %vm499_vm0, %v37201_v53  ;;  %44841 = vst [vmem:[#allocation103_spill] sm:$0xff] %v41441_v6  ;;  %v25903_v53 = vld [vmem:[%s44730_s2 + $0x150] sm:$0xff]  ;;  %v37207_v6 = vld [vmem:[%s44729_s1 + $0x160] sm:$0xff]  }
 0x52a   : > { %26132 = vperm.xlu0 %36593, %v25902_v36   ;;  %v37204_v36 = vld [vmem:[%s44729_s1 + $0x158] sm:$0xff]  }
 0x52b   : > { %26137 = vperm.xlu1 %36594, %v25903_v53   ;;  %v25906_v53 = vld [vmem:[%s44730_s2 + $0x168] sm:$0xff] }
 0x52c   : > { %33348 = vmatmul.mubr.msk.bf16.gmra.mrb[80].mxu0 %vm499_vm0, %v37200_v18  ;;  %v25904_v18 = vld [vmem:[%s44730_s2 + $0x158] sm:$0xff] }
 0x52d   : > { %33351 = vmatprep.mubr.msk.bf16.mxu0 %vm499_vm0, %v37203_v29  ;;  %v25905_v29 = vld [vmem:[%s44730_s2 + $0x160] sm:$0xff] }
 0x52e   : > { %26142 = vperm.xlu0 %36593, %v25904_v18   ;;  %v41467_v18 = vpop.permute.xlu1 %19454 }
 0x52f   : > { %44842 = vst [vmem:[#allocation104_spill] sm:$0xff] %v41467_v18  ;;  %26147 = vperm.xlu1 %36594, %v25905_v29   ;;  %v37209_v18 = vld [vmem:[%s44729_s1 + $0x160] sm:$0xff]   ;;  %v25908_v29 = vld [vmem:[%s44730_s2 + $0x178] sm:$0xff] }
 0x530   : > { %33942 = vmatmul.mubr.msk.bf16.gmra.mrb[80].mxu1 %vm499_vm0, %v37202_v3  ;;  %v41469_v3 = vpop.permute.xlu0 %19459 }
 0x531   : > { %33945 = vmatprep.mubr.msk.bf16.mxu1 %vm499_vm0, %v37205_v28  ;;  %44843 = vst [vmem:[#allocation105_spill] sm:$0xff] %v41469_v3  ;;  %v37206_v28 = vld [vmem:[%s44729_s1 + $0x158] sm:$0xff]  }
 0x532   : > { %26152 = vperm.xlu0 %36593, %v25906_v53   ;;  %v41489_v53 = vpop.permute.xlu1 %19464 }
 0x533   : > { %26157 = vperm.xlu1 %36594, %v25907_v23   ;;  %44844 = vst [vmem:[#allocation106_spill] sm:$0xff] %v41489_v53  ;;  %v37211_v23 = vld [vmem:[%s44729_s1 + $0x170] sm:$0xff]   ;;  %v25913_v53 = vld [vmem:[%s44730_s2 + $0x1a0] sm:$0xff] }
 0x534   : > { %33352 = vmatmul.mubr.msk.bf16.gmra.mrb[84].mxu0 %vm499_vm0, %v37204_v36  ;;  %v37208_v36 = vld [vmem:[%s44729_s1 + $0x168] sm:$0xff]   ;;  %v41491_v3 = vpop.permute.xlu0 %19469 }
 0x535   : > { %33355 = vmatprep.mubr.msk.bf16.mxu0 %vm499_vm0, %v37207_v6  ;;  %44845 = vst [vmem:[#allocation107_spill] sm:$0xff] %v41491_v3  ;;  %v25909_v6 = vld [vmem:[%s44730_s2 + $0x180] sm:$0xff]  ;;  %v37213_v3 = vld [vmem:[%s44729_s1 + $0x170] sm:$0xff]  }
 0x536   : > { %26162 = vperm.xlu0 %36593, %v25908_v29   ;;  %v37210_v29 = vld [vmem:[%s44729_s1 + $0x168] sm:$0xff]  }
 0x537   : > { %26167 = vperm.xlu1 %36594, %v25909_v6   ;;  %v25912_v6 = vld [vmem:[%s44730_s2 + $0x198] sm:$0xff] }
 0x538   : > { %33946 = vmatmul.mubr.msk.bf16.gmra.mrb[84].mxu1 %vm499_vm0, %v37206_v28  ;;  %v25910_v28 = vld [vmem:[%s44730_s2 + $0x188] sm:$0xff] }
 0x539   : > { %33949 = vmatprep.mubr.msk.bf16.mxu1 %vm499_vm0, %v37209_v18  ;;  %v25911_v18 = vld [vmem:[%s44730_s2 + $0x190] sm:$0xff] }
 0x53a   : > { %26172 = vperm.xlu0 %36593, %v25910_v28   ;;  %v41517_v28 = vpop.permute.xlu1 %19474 }
 0x53b   : > { %44846 = vst [vmem:[#allocation108_spill] sm:$0xff] %v41517_v28  ;;  %26177 = vperm.xlu1 %36594, %v25911_v18   ;;  %v37215_v28 = vld [vmem:[%s44729_s1 + $0x180] sm:$0xff]   ;;  %v25914_v18 = vld [vmem:[%s44730_s2 + $0x1a8] sm:$0xff] }
 0x53c   : > { %33356 = vmatmul.mubr.msk.bf16.gmra.mrb[88].mxu0 %vm499_vm0, %v37208_v36  ;;  %v41519_v36 = vpop.permute.xlu0 %19479 }
 0x53d   : > { %33359 = vmatprep.mubr.msk.bf16.mxu0 %vm499_vm0, %v37211_v23  ;;  %44847 = vst [vmem:[#allocation109_spill] sm:$0xff] %v41519_v36  ;;  %v37212_v23 = vld [vmem:[%s44729_s1 + $0x178] sm:$0xff]  }
 0x53e   : > { %26182 = vperm.xlu0 %36593, %v25912_v6   ;;  %v41539_v6 = vpop.permute.xlu1 %19484 }
 0x53f   : > { %26187 = vperm.xlu1 %36594, %v25913_v53   ;;  %44848 = vst [vmem:[#allocation110_spill] sm:$0xff] %v41539_v6  ;;  %v37217_v53 = vld [vmem:[%s44729_s1 + $0x180] sm:$0xff]   ;;  %v25919_v6 = vld [vmem:[%s44730_s2 + $0x1d0] sm:$0xff] }
 0x540   : > { %33950 = vmatmul.mubr.msk.bf16.gmra.mrb[88].mxu1 %vm499_vm0, %v37210_v29  ;;  %v37214_v29 = vld [vmem:[%s44729_s1 + $0x178] sm:$0xff]   ;;  %v41541_v36 = vpop.permute.xlu0 %19489 }
 0x541   : > { %33953 = vmatprep.mubr.msk.bf16.mxu1 %vm499_vm0, %v37213_v3  ;;  %44849 = vst [vmem:[#allocation111_spill] sm:$0xff] %v41541_v36  ;;  %v25915_v3 = vld [vmem:[%s44730_s2 + $0x1b0] sm:$0xff] }
 0x542   : > { %26192 = vperm.xlu0 %36593, %v25914_v18   ;;  %v37216_v18 = vld [vmem:[%s44729_s1 + $0x188] sm:$0xff]   ;;  %v37219_v36 = vld [vmem:[%s44729_s1 + $0x190] sm:$0xff]  }
 0x543   : > { %26197 = vperm.xlu1 %36594, %v25915_v3   ;;  %v25918_v3 = vld [vmem:[%s44730_s2 + $0x1c8] sm:$0xff] }
 0x544   : > { %33360 = vmatmul.mubr.msk.bf16.gmra.mrb[92].mxu0 %vm499_vm0, %v37212_v23  ;;  %v25916_v23 = vld [vmem:[%s44730_s2 + $0x1b8] sm:$0xff] }
 0x545   : > { %33363 = vmatprep.mubr.msk.bf16.mxu0 %vm499_vm0, %v37215_v28  ;;  %v25917_v28 = vld [vmem:[%s44730_s2 + $0x1c0] sm:$0xff] }
 0x546   : > { %26202 = vperm.xlu0 %36593, %v25916_v23   ;;  %v41567_v23 = vpop.permute.xlu1 %19494 }
 0x547   : > { %44850 = vst [vmem:[#allocation112_spill] sm:$0xff] %v41567_v23  ;;  %26207 = vperm.xlu1 %36594, %v25917_v28   ;;  %v37221_v23 = vld [vmem:[%s44729_s1 + $0x190] sm:$0xff]   ;;  %v25920_v28 = vld [vmem:[%s44730_s2 + $0x1d8] sm:$0xff] }
 0x548   : > { %33954 = vmatmul.mubr.msk.bf16.gmra.mrb[92].mxu1 %vm499_vm0, %v37214_v29  ;;  %v41569_v29 = vpop.permute.xlu0 %19499 }
 0x549   : > { %33957 = vmatprep.mubr.msk.bf16.mxu1 %vm499_vm0, %v37217_v53  ;;  %44851 = vst [vmem:[#allocation113_spill] sm:$0xff] %v41569_v29  ;;  %v37218_v53 = vld [vmem:[%s44729_s1 + $0x188] sm:$0xff]  }
 0x54a   : > { %26212 = vperm.xlu0 %36593, %v25918_v3   ;;  %v41589_v3 = vpop.permute.xlu1 %19504 }
 0x54b   : > { %26217 = vperm.xlu1 %36594, %v25919_v6   ;;  %44852 = vst [vmem:[#allocation114_spill] sm:$0xff] %v41589_v3  ;;  %v37223_v6 = vld [vmem:[%s44729_s1 + $0x1a0] sm:$0xff]   ;;  %v37227_v3 = vld [vmem:[%s44729_s1 + $0x1b0] sm:$0xff]  }
 0x54c   : > { %33364 = vmatmul.mubr.msk.bf16.gmra.mrb[96].mxu0 %vm499_vm0, %v37216_v18  ;;  %v37220_v18 = vld [vmem:[%s44729_s1 + $0x198] sm:$0xff]   ;;  %v41591_v29 = vpop.permute.xlu0 %19509 }
 0x54d   : > { %33367 = vmatprep.mubr.msk.bf16.mxu0 %vm499_vm0, %v37219_v36  ;;  %44853 = vst [vmem:[#allocation115_spill] sm:$0xff] %v41591_v29  ;;  %v25921_v36 = vld [vmem:[%s44730_s2 + $0x1e0] sm:$0xff] }
 0x54e   : > { %26222 = vperm.xlu0 %36593, %v25920_v28   ;;  %v37222_v28 = vld [vmem:[%s44729_s1 + $0x198] sm:$0xff]   ;;  %v37225_v29 = vld [vmem:[%s44729_s1 + $0x1a0] sm:$0xff]  }
 0x54f   : > { %26227 = vperm.xlu1 %36594, %v25921_v36   ;;  %v25924_v36 = vld [vmem:[%s44730_s2 + $0x1f8] sm:$0xff] }
 0x550   : > { %33958 = vmatmul.mubr.msk.bf16.gmra.mrb[96].mxu1 %vm499_vm0, %v37218_v53  ;;  %v25922_v53 = vld [vmem:[%s44730_s2 + $0x1e8] sm:$0xff] }
 0x551   : > { %33961 = vmatprep.mubr.msk.bf16.mxu1 %vm499_vm0, %v37221_v23  ;;  %v25923_v23 = vld [vmem:[%s44730_s2 + $0x1f0] sm:$0xff] }
 0x552   : > { %26232 = vperm.xlu0 %36593, %v25922_v53   ;;  %v41619_v53 = vpop.permute.xlu0 %19514 }
 0x553   : > { %44855 = vst [vmem:[#allocation117_spill] sm:$0xff] %v41619_v53  ;;  %v37226_v53 = vld [vmem:[%s44729_s1 + $0x1a8] sm:$0xff]  }
 0x554   : > { %33368 = vmatmul.mubr.msk.bf16.gmra.mrb[100].mxu0 %vm499_vm0, %v37220_v18  ;;  %v41617_v18 = vpop.permute.xlu1 %25409  ;;  %26237 = vperm.xlu1 %36594, %v25923_v23  }
 0x555   : > { %33371 = vmatprep.mubr.msk.bf16.mxu0 %vm499_vm0, %v37223_v6  ;;  %44854 = vst [vmem:[#allocation116_spill] sm:$0xff] %v41617_v18  ;;  %v37224_v6 = vld [vmem:[%s44729_s1 + $0x1a8] sm:$0xff]  }
 0x556   : > { %26242 = vperm.xlu0 %36593, %v25924_v36  }
 0x558   : > { %33962 = vmatmul.mubr.msk.bf16.gmra.mrb[100].mxu1 %vm499_vm0, %v37222_v28  ;;  %v37229_v28 = vld [vmem:[%s44729_s1 + $0x1b0] sm:$0xff]  }
 0x559   : > { %33965 = vmatprep.mubr.msk.bf16.mxu1 %vm499_vm0, %v37225_v29 }
 0x55c   : > { %33372 = vmatmul.mubr.msk.bf16.gmra.mrb[104].mxu0 %vm499_vm0, %v37224_v6  ;;  %v37228_v6 = vld [vmem:[%s44729_s1 + $0x1b8] sm:$0xff]  }
 0x55d   : > { %33375 = vmatprep.mubr.msk.bf16.mxu0 %vm499_vm0, %v37227_v3 }
 0x55f   : > { %v32673_v23 = vpop.f32.mrb[0].mxu0 }
 0x560   : > { %v6572_v29 = vadd.f32 %v32673_v23, %v39965_v4  ;;  %v5867_v36 = vpop.f32.mrb[1].mxu0  ;;  %33966 = vmatmul.mubr.msk.bf16.gmra.mrb[104].mxu1 %vm499_vm0, %v37226_v53  ;;  %v37231_v4 = vld [vmem:[%s44729_s1 + $0x1c0] sm:$0xff]  }
 0x561   : > { %v6570_v3 = vadd.f32 %v39947_v51, %v5867_v36  ;;  %v32674_v20 = vpop.f32.mrb[2].mxu0  ;;  %33969 = vmatprep.mubr.msk.bf16.mxu1 %vm499_vm0, %v37229_v28 }
 0x562   : > { %v6636_v53 = vmax.f32 %v6572_v29, 0.0  ;;  %v6573_v23 = vadd.f32 %v32674_v20, %v39967_v52  ;;  %v5870_v38 = vpop.f32.mrb[3].mxu0  ;;  %v37230_v52 = vld [vmem:[%s44729_s1 + $0x1b8] sm:$0xff]  }
 0x563   : > { %v6634_v18 = vmax.f32 %v6570_v3, 0.0  ;;  %v6571_v46 = vadd.f32 %v39945_v50, %v5870_v38  ;;  %v33267_v55 = vpop.f32.mrb[0].mxu1 }
 0x564   : > { %6701 = vst.msk [vmem:[%s41646_s20 + $0x40] sm:$0xff] %vm6698_vm1, %v6636_v53  ;;  %v6637_v51 = vmax.f32 %v6573_v23, 0.0  ;;  %v13131_v36 = vadd.f32 %v33267_v55, %v40486_v47  ;;  %v12426_v28 = vpop.f32.mrb[1].mxu1  ;;  %33376 = vmatmul.mubr.msk.bf16.gmra.mrb[108].mxu0 %vm499_vm0, %v37228_v6  ;;  %v37233_v47 = vld [vmem:[%s44729_s1 + $0x1c0] sm:$0xff]  }
 0x565   : > { %6699 = vst.msk [vmem:[%s41646_s20] sm:$0xff] %vm6698_vm1, %v6634_v18  ;;  %v6635_v20 = vmax.f32 %v6571_v46, 0.0  ;;  %v13129_v50 = vadd.f32 %v40471_v62, %v12426_v28  ;;  %v33268_v38 = vpop.f32.mrb[2].mxu1  ;;  %33379 = vmatprep.mubr.msk.bf16.mxu0 %vm499_vm0, %v37231_v4 }
 0x566   : > { %6702 = vst.msk [vmem:[%s41646_s20 + $0x60] sm:$0xff] %vm6698_vm1, %v6637_v51  ;;  %v13195_v55 = vmax.f32 %v13131_v36, 0.0  ;;  %v13132_v29 = vadd.f32 %v33268_v38, %v40489_v39  ;;  %v12429_v6 = vpop.f32.mrb[3].mxu1  ;;  %v37232_v39 = vld [vmem:[%s44729_s1 + $0x1c8] sm:$0xff]   ;;  %v44856_v51 = vld [vmem:[#allocation2_spill] sm:$0xff] }
 0x567   : > { %6700 = vst.msk [vmem:[%s41646_s20 + $0x20] sm:$0xff] %vm6698_vm1, %v6635_v20  ;;  %v13193_v46 = vmax.f32 %v13129_v50, 0.0  ;;  %v13130_v62 = vadd.f32 %v40475_v63, %v12429_v6  ;;  %v32677_v18 = vpop.f32.mrb[4].mxu0 }
 0x568   : > { %13259 = vst.msk [vmem:[%s41646_s20 + $0x48] sm:$0xff] %vm6698_vm1, %v13195_v55  ;;  %v13196_v3 = vmax.f32 %v13132_v29, 0.0  ;;  %v6576_v4 = vadd.f32 %v32677_v18, %v39998_v35  ;;  %v5883_v53 = vpop.f32.mrb[5].mxu0  ;;  %33970 = vmatmul.mubr.msk.bf16.gmra.mrb[108].mxu1 %vm499_vm0, %v37230_v52  ;;  %v37235_v35 = vld [vmem:[%s44729_s1 + $0x1d0] sm:$0xff]   ;;  %v44858_v55 = vld [vmem:[#allocation3_spill] sm:$0xff] }
 0x569   : > { %13257 = vst.msk [vmem:[%s41646_s20 + $0x8] sm:$0xff] %vm6698_vm1, %v13193_v46  ;;  %v13194_v23 = vmax.f32 %v13130_v62, 0.0  ;;  %v6574_v63 = vadd.f32 %v44856_v51, %v5883_v53  ;;  %v32678_v36 = vpop.f32.mrb[6].mxu0  ;;  %33973 = vmatprep.mubr.msk.bf16.mxu1 %vm499_vm0, %v37233_v47  ;;  %v44857_v52 = vld [vmem:[#allocation4_spill] sm:$0xff]  ;;  %v37234_v18 = vld [vmem:[%s44729_s1 + $0x1c8] sm:$0xff]  }
 0x56a   : > { %13260 = vst.msk [vmem:[%s41646_s20 + $0x68] sm:$0xff] %vm6698_vm1, %v13196_v3  ;;  %v6640_v28 = vmax.f32 %v6576_v4, 0.0  ;;  %v6577_v20 = vadd.f32 %v32678_v36, %v44857_v52  ;;  %v5886_v50 = vpop.f32.mrb[7].mxu0 }
 0x56b   : > { %13258 = vst.msk [vmem:[%s41646_s20 + $0x28] sm:$0xff] %vm6698_vm1, %v13194_v23  ;;  %v6638_v38 = vmax.f32 %v6574_v63, 0.0  ;;  %v6575_v29 = vadd.f32 %v44858_v55, %v5886_v50  ;;  %v33271_v6 = vpop.f32.mrb[4].mxu1 }
 0x56c   : > { %6705 = vst.msk [vmem:[%s41646_s20 + $0xc0] sm:$0xff] %vm6698_vm1, %v6640_v28  ;;  %v6641_v47 = vmax.f32 %v6577_v20, 0.0  ;;  %v13135_v46 = vadd.f32 %v33271_v6, %v40534_v31  ;;  %v12442_v62 = vpop.f32.mrb[5].mxu1  ;;  %33380 = vmatmul.mubr.msk.bf16.gmra.mrb[112].mxu0 %vm499_vm0, %v37232_v39  ;;  %v37237_v31 = vld [vmem:[%s44729_s1 + $0x1d0] sm:$0xff]   ;;  %v44859_v28 = vld [vmem:[#allocation7_spill] sm:$0xff] }
 0x56d   : > { %6703 = vst.msk [vmem:[%s41646_s20 + $0x80] sm:$0xff] %vm6698_vm1, %v6638_v38  ;;  %v6639_v3 = vmax.f32 %v6575_v29, 0.0  ;;  %v13133_v4 = vadd.f32 %v40510_v13, %v12442_v62  ;;  %v33272_v53 = vpop.f32.mrb[6].mxu1  ;;  %33383 = vmatprep.mubr.msk.bf16.mxu0 %vm499_vm0, %v37235_v35  ;;  %v44860_v38 = vld [vmem:[#allocation5_spill] sm:$0xff]  ;;  %v37239_v29 = vld [vmem:[%s44729_s1 + $0x1e0] sm:$0xff]  }
 0x56e   : > { %6706 = vst.msk [vmem:[%s41646_s20 + $0xe0] sm:$0xff] %vm6698_vm1, %v6641_v47  ;;  %v13199_v39 = vmax.f32 %v13135_v46, 0.0  ;;  %v13136_v23 = vadd.f32 %v33272_v53, %v40537_v54  ;;  %v12445_v51 = vpop.f32.mrb[7].mxu1  ;;  %v37236_v54 = vld [vmem:[%s44729_s1 + $0x1d8] sm:$0xff]   ;;  %v44861_v47 = vld [vmem:[#allocation8_spill] sm:$0xff] }
 0x56f   : > { %6704 = vst.msk [vmem:[%s41646_s20 + $0xa0] sm:$0xff] %vm6698_vm1, %v6639_v3  ;;  %v13197_v63 = vmax.f32 %v13133_v4, 0.0  ;;  %v13134_v13 = vadd.f32 %v40513_v11, %v12445_v51  ;;  %v32681_v36 = vpop.f32.mrb[8].mxu0  ;;  %v44862_v3 = vld [vmem:[#allocation6_spill] sm:$0xff]  ;;  %v37238_v51 = vld [vmem:[%s44729_s1 + $0x1d8] sm:$0xff]  }
 0x570   : > { %13263 = vst.msk [vmem:[%s41646_s20 + $0xc8] sm:$0xff] %vm6698_vm1, %v13199_v39  ;;  %v13200_v35 = vmax.f32 %v13136_v23, 0.0  ;;  %v6580_v52 = vadd.f32 %v32681_v36, %v44859_v28  ;;  %v5899_v20 = vpop.f32.mrb[9].mxu0  ;;  %33974 = vmatmul.mubr.msk.bf16.gmra.mrb[112].mxu1 %vm499_vm0, %v37234_v18 }
 0x571   : > { %13261 = vst.msk [vmem:[%s41646_s20 + $0x88] sm:$0xff] %vm6698_vm1, %v13197_v63  ;;  %v13198_v50 = vmax.f32 %v13134_v13, 0.0  ;;  %v6578_v11 = vadd.f32 %v44860_v38, %v5899_v20  ;;  %v32682_v55 = vpop.f32.mrb[10].mxu0  ;;  %33977 = vmatprep.mubr.msk.bf16.mxu1 %vm499_vm0, %v37237_v31  ;;  %v44863_v38 = vld [vmem:[#allocation11_spill] sm:$0xff] }
 0x572   : > { %13264 = vst.msk [vmem:[%s41646_s20 + $0xe8] sm:$0xff] %vm6698_vm1, %v13200_v35  ;;  %v6644_v6 = vmax.f32 %v6580_v52, 0.0  ;;  %v6581_v46 = vadd.f32 %v32682_v55, %v44861_v47  ;;  %v5902_v62 = vpop.f32.mrb[11].mxu0 }
 0x573   : > { %13262 = vst.msk [vmem:[%s41646_s20 + $0xa8] sm:$0xff] %vm6698_vm1, %v13198_v50  ;;  %v6642_v18 = vmax.f32 %v6578_v11, 0.0  ;;  %v6579_v4 = vadd.f32 %v44862_v3, %v5902_v62  ;;  %v33275_v53 = vpop.f32.mrb[8].mxu1 }
 0x574   : > { %6709 = vst.msk [vmem:[%s41646_s20 + $0x140] sm:$0xff] %vm6698_vm1, %v6644_v6  ;;  %v6645_v31 = vmax.f32 %v6581_v46, 0.0  ;;  %v13139_v39 = vadd.f32 %v33275_v53, %v40582_v10  ;;  %v12458_v23 = vpop.f32.mrb[9].mxu1  ;;  %33384 = vmatmul.mubr.msk.bf16.gmra.mrb[116].mxu0 %vm499_vm0, %v37236_v54  ;;  %v37241_v10 = vld [vmem:[%s44729_s1 + $0x1e0] sm:$0xff]   ;;  %v44864_v6 = vld [vmem:[#allocation9_spill] sm:$0xff]  ;;  %v37243_v46 = vld [vmem:[%s44729_s1 + $0x1f0] sm:$0xff]  }
 0x575   : > { %6707 = vst.msk [vmem:[%s41646_s20 + $0x100] sm:$0xff] %vm6698_vm1, %v6642_v18  ;;  %v6643_v63 = vmax.f32 %v6579_v4, 0.0  ;;  %v13137_v13 = vadd.f32 %v40558_v7, %v12458_v23  ;;  %v33276_v36 = vpop.f32.mrb[10].mxu1  ;;  %33387 = vmatprep.mubr.msk.bf16.mxu0 %vm499_vm0, %v37239_v29  ;;  %v44865_v18 = vld [vmem:[#allocation12_spill] sm:$0xff] }
 0x576   : > { %6710 = vst.msk [vmem:[%s41646_s20 + $0x160] sm:$0xff] %vm6698_vm1, %v6645_v31  ;;  %v13203_v35 = vmax.f32 %v13139_v39, 0.0  ;;  %v13140_v28 = vadd.f32 %v33276_v36, %v40585_v12  ;;  %v12461_v52 = vpop.f32.mrb[11].mxu1  ;;  %v37240_v12 = vld [vmem:[%s44729_s1 + $0x1e8] sm:$0xff]   ;;  %v44866_v31 = vld [vmem:[#allocation10_spill] sm:$0xff] }
 0x577   : > { %6708 = vst.msk [vmem:[%s41646_s20 + $0x120] sm:$0xff] %vm6698_vm1, %v6643_v63  ;;  %v13201_v20 = vmax.f32 %v13137_v13, 0.0  ;;  %v13138_v7 = vadd.f32 %v40561_v21, %v12461_v52  ;;  %v32685_v54 = vpop.f32.mrb[12].mxu0  ;;  %v37242_v36 = vld [vmem:[%s44729_s1 + $0x1e8] sm:$0xff]  }
 0x578   : > { %13267 = vst.msk [vmem:[%s41646_s20 + $0x148] sm:$0xff] %vm6698_vm1, %v13203_v35  ;;  %v13204_v50 = vmax.f32 %v13140_v28, 0.0  ;;  %v6584_v11 = vadd.f32 %v32685_v54, %v44863_v38  ;;  %v5915_v55 = vpop.f32.mrb[13].mxu0  ;;  %33978 = vmatmul.mubr.msk.bf16.gmra.mrb[116].mxu1 %vm499_vm0, %v37238_v51 }
 0x579   : > { %13265 = vst.msk [vmem:[%s41646_s20 + $0x108] sm:$0xff] %vm6698_vm1, %v13201_v20  ;;  %v13202_v29 = vmax.f32 %v13138_v7, 0.0  ;;  %v6582_v21 = vadd.f32 %v44864_v6, %v5915_v55  ;;  %v32686_v47 = vpop.f32.mrb[14].mxu0  ;;  %33981 = vmatprep.mubr.msk.bf16.mxu1 %vm499_vm0, %v37241_v10  ;;  %v44868_v6 = vld [vmem:[#allocation13_spill] sm:$0xff] }
 0x57a   : > { %13268 = vst.msk [vmem:[%s41646_s20 + $0x168] sm:$0xff] %vm6698_vm1, %v13204_v50  ;;  %v6648_v62 = vmax.f32 %v6584_v11, 0.0  ;;  %v6585_v3 = vadd.f32 %v32686_v47, %v44865_v18  ;;  %v5918_v4 = vpop.f32.mrb[15].mxu0  ;;  %v44867_v11 = vld [vmem:[#allocation15_spill] sm:$0xff]  ;;  %v37247_v47 = vld [vmem:[%s44729_s1] sm:$0xff]  }
 0x57b   : > { %13266 = vst.msk [vmem:[%s41646_s20 + $0x128] sm:$0xff] %vm6698_vm1, %v13202_v29  ;;  %v6646_v53 = vmax.f32 %v6582_v21, 0.0  ;;  %v6583_v39 = vadd.f32 %v44866_v31, %v5918_v4  ;;  %v33279_v23 = vpop.f32.mrb[12].mxu1 }
 0x57c   : > { %6713 = vst.msk [vmem:[%s41646_s20 + $0x1c0] sm:$0xff] %vm6698_vm1, %v6648_v62  ;;  %v6649_v51 = vmax.f32 %v6585_v3, 0.0  ;;  %v13143_v63 = vadd.f32 %v33279_v23, %v40630_v0  ;;  %v12474_v13 = vpop.f32.mrb[13].mxu1  ;;  %33388 = vmatmul.mubr.msk.bf16.gmra.mrb[120].mxu0 %vm499_vm0, %v37240_v12  ;;  %v37245_v0 = vld [vmem:[%s44729_s1 + $0x1f0] sm:$0xff]  }
 0x57d   : > { %6711 = vst.msk [vmem:[%s41646_s20 + $0x180] sm:$0xff] %vm6698_vm1, %v6646_v53  ;;  %v6647_v10 = vmax.f32 %v6583_v39, 0.0  ;;  %v13141_v35 = vadd.f32 %v40606_v2, %v12474_v13  ;;  %v33280_v28 = vpop.f32.mrb[14].mxu1  ;;  %33391 = vmatprep.mubr.msk.bf16.mxu0 %vm499_vm0, %v37243_v46  ;;  %v44869_v62 = vld [vmem:[#allocation16_spill] sm:$0xff]  ;;  %v44870_v53 = vld [vmem:[#allocation14_spill] sm:$0xff]  ;;  %v37246_v13 = vld [vmem:[%s44729_s1 + $0x1f8] sm:$0xff]  }
 0x57e   : > { %6714 = vst.msk [vmem:[%s41646_s20 + $0x1e0] sm:$0xff] %vm6698_vm1, %v6649_v51  ;;  %v13207_v52 = vmax.f32 %v13143_v63, 0.0  ;;  %v13144_v20 = vadd.f32 %v33280_v28, %v40633_v5  ;;  %v12477_v7 = vpop.f32.mrb[15].mxu1  ;;  %v37244_v5 = vld [vmem:[%s44729_s1 + $0x1f8] sm:$0xff]  }
 0x57f   : > { %6712 = vst.msk [vmem:[%s41646_s20 + $0x1a0] sm:$0xff] %vm6698_vm1, %v6647_v10  ;;  %v13205_v54 = vmax.f32 %v13141_v35, 0.0  ;;  %v13142_v2 = vadd.f32 %v40609_v8, %v12477_v7  ;;  %v32689_v50 = vpop.f32.mrb[16].mxu0 }
 0x580   : > { %13271 = vst.msk [vmem:[%s41646_s20 + $0x1c8] sm:$0xff] %vm6698_vm1, %v13207_v52  ;;  %v13208_v38 = vmax.f32 %v13144_v20, 0.0  ;;  %v6588_v55 = vadd.f32 %v32689_v50, %v44867_v11  ;;  %v5931_v12 = vpop.f32.mrb[17].mxu0  ;;  %33982 = vmatmul.mubr.msk.bf16.gmra.mrb[120].mxu1 %vm499_vm0, %v37242_v36 }
 0x581   : > { %13269 = vst.msk [vmem:[%s41646_s20 + $0x188] sm:$0xff] %vm6698_vm1, %v13205_v54  ;;  %v13206_v29 = vmax.f32 %v13142_v2, 0.0  ;;  %v6586_v8 = vadd.f32 %v44868_v6, %v5931_v12  ;;  %v32690_v21 = vpop.f32.mrb[18].mxu0  ;;  %33985 = vmatprep.mubr.msk.bf16.mxu1 %vm499_vm0, %v37245_v0  ;;  %v44871_v2 = vld [vmem:[#allocation19_spill] sm:$0xff] }
 0x582   : > { %13272 = vst.msk [vmem:[%s41646_s20 + $0x1e8] sm:$0xff] %vm6698_vm1, %v13208_v38  ;;  %v6652_v46 = vmax.f32 %v6588_v55, 0.0  ;;  %v6589_v18 = vadd.f32 %v32690_v21, %v44869_v62  ;;  %v5934_v3 = vpop.f32.mrb[19].mxu0  ;;  %v44872_v55 = vld [vmem:[#allocation17_spill] sm:$0xff] }
 0x583   : > { %13270 = vst.msk [vmem:[%s41646_s20 + $0x1a8] sm:$0xff] %vm6698_vm1, %v13206_v29  ;;  %v6650_v4 = vmax.f32 %v6586_v8, 0.0  ;;  %v6587_v31 = vadd.f32 %v44870_v53, %v5934_v3  ;;  %v33283_v39 = vpop.f32.mrb[16].mxu1 }
 0x584   : > { %6717 = vst.msk [vmem:[%s41646_s20 + $0x240] sm:$0xff] %vm6698_vm1, %v6652_v46  ;;  %v6653_v23 = vmax.f32 %v6589_v18, 0.0  ;;  %v13147_v51 = vadd.f32 %v33283_v39, %v40671_v56  ;;  %v12490_v63 = vpop.f32.mrb[17].mxu1  ;;  %33392 = vmatmul.mubr.msk.bf16.gmra.mrb[124].mxu0 %vm499_vm0, %v37244_v5  ;;  %v37249_v56 = vld [vmem:[%s44729_s1] sm:$0xff]   ;;  %v37251_v5 = vld [vmem:[%s44729_s1 + $0x10] sm:$0xff]  }
 0x585   : > { %6715 = vst.msk [vmem:[%s41646_s20 + $0x200] sm:$0xff] %vm6698_vm1, %v6650_v4  ;;  %v6651_v36 = vmax.f32 %v6587_v31, 0.0  ;;  %v13145_v10 = vadd.f32 %v40652_v1, %v12490_v63  ;;  %v33284_v35 = vpop.f32.mrb[18].mxu1  ;;  %33397 = vmatprep.mubr.msk.bf16.mxu0 %vm499_vm0, %v37247_v47  ;;  %v44873_v47 = vld [vmem:[#allocation18_spill] sm:$0xff] }
 0x586   : > { %6718 = vst.msk [vmem:[%s41646_s20 + $0x260] sm:$0xff] %vm6698_vm1, %v6653_v23  ;;  %v13211_v28 = vmax.f32 %v13147_v51, 0.0  ;;  %v13148_v0 = vadd.f32 %v33284_v35, %v40673_v57  ;;  %v12493_v52 = vpop.f32.mrb[19].mxu1  ;;  %v37248_v57 = vld [vmem:[%s44729_s1 + $0x8] sm:$0xff]  }
 0x587   : > { %6716 = vst.msk [vmem:[%s41646_s20 + $0x220] sm:$0xff] %vm6698_vm1, %v6651_v36  ;;  %v13209_v20 = vmax.f32 %v13145_v10, 0.0  ;;  %v13146_v1 = vadd.f32 %v40655_v49, %v12493_v52  ;;  %v32693_v7 = vpop.f32.mrb[20].mxu0 }
 0x588   : > { %13275 = vst.msk [vmem:[%s41646_s20 + $0x248] sm:$0xff] %vm6698_vm1, %v13211_v28  ;;  %v13212_v54 = vmax.f32 %v13148_v0, 0.0  ;;  %v6592_v50 = vadd.f32 %v32693_v7, %v44871_v2  ;;  %v5947_v38 = vpop.f32.mrb[21].mxu0  ;;  %33986 = vmatmul.mubr.msk.bf16.gmra.mrb[124].mxu1 %vm499_vm0, %v37246_v13  ;;  %v41874_v13 = vld [vmem:[%s37862_s23 + $0x1c] sm:$0xff]  }
 0x589   : > { %13273 = vst.msk [vmem:[%s41646_s20 + $0x208] sm:$0xff] %vm6698_vm1, %v13209_v20  ;;  %v13210_v11 = vmax.f32 %v13146_v1, 0.0  ;;  %v6590_v49 = vadd.f32 %v44872_v55, %v5947_v38  ;;  %v32694_v12 = vpop.f32.mrb[22].mxu0  ;;  %33991 = vmatprep.mubr.msk.bf16.mxu1 %vm499_vm0, %v37249_v56  ;;  %v41899_v7 = vld [vmem:[%s37862_s23 + $0x20] sm:$0xff]  }
 0x58a   : > { %13276 = vst.msk [vmem:[%s41646_s20 + $0x268] sm:$0xff] %vm6698_vm1, %v13212_v54  ;;  %v6656_v29 = vmax.f32 %v6592_v50, 0.0  ;;  %v6593_v6 = vadd.f32 %v32694_v12, %v40144_v17  ;;  %v5950_v8 = vpop.f32.mrb[23].mxu0  ;;  %v37250_v17 = vld [vmem:[%s44729_s1 + $0x8] sm:$0xff]  }
 0x58b   : > { %13274 = vst.msk [vmem:[%s41646_s20 + $0x228] sm:$0xff] %vm6698_vm1, %v13210_v11  ;;  %v6654_v21 = vmax.f32 %v6590_v49, 0.0  ;;  %v6591_v46 = vadd.f32 %v44873_v47, %v5950_v8  ;;  %v33287_v62 = vpop.f32.mrb[20].mxu1  ;;  %v44874_v8 = vld [vmem:[#allocation22_spill] sm:$0xff] }
 0x58c   : > { %6721 = vst.msk [vmem:[%s41646_s20 + $0x2c0] sm:$0xff] %vm6698_vm1, %v6656_v29  ;;  %v6657_v18 = vmax.f32 %v6593_v6, 0.0  ;;  %v13151_v3 = vadd.f32 %v33287_v62, %v40711_v45  ;;  %v12506_v4 = vpop.f32.mrb[21].mxu1  ;;  %33398 = vmatmul.mubr.msk.bf16.vlgmr.msra.gmra.mrb[64].mxu0 %vm499_vm0, %v37248_v57  ;;  %v37253_v45 = vld [vmem:[%s44729_s1 + $0x10] sm:$0xff]  }
 0x58d   : > { %6719 = vst.msk [vmem:[%s41646_s20 + $0x280] sm:$0xff] %vm6698_vm1, %v6654_v21  ;;  %v6655_v53 = vmax.f32 %v6591_v46, 0.0  ;;  %v13149_v31 = vadd.f32 %v40689_v44, %v12506_v4  ;;  %v33288_v39 = vpop.f32.mrb[22].mxu1  ;;  %33462 = vmatpush3.bf16.msra.mxu0 %v39914_v16  ;;  %33401 = vmatprep.mubr.msk.bf16.mxu0 %vm499_vm0, %v37251_v5  ;;  %v44875_v62 = vld [vmem:[#allocation20_spill] sm:$0xff] }
 0x58e   : > { %6722 = vst.msk [vmem:[%s41646_s20 + $0x2e0] sm:$0xff] %vm6698_vm1, %v6657_v18  ;;  %v13215_v23 = vmax.f32 %v13151_v3, 0.0  ;;  %v13152_v51 = vadd.f32 %v33288_v39, %v40713_v37  ;;  %v12509_v63 = vpop.f32.mrb[23].mxu1  ;;  %33527 = vmatprep.subr.bf16.mxu0 %v41874_v13  ;;  %v37252_v37 = vld [vmem:[%s44729_s1 + $0x18] sm:$0xff]   ;;  %v37259_v3 = vld [vmem:[%s44729_s1 + $0x30] sm:$0xff]  }
 0x58f   : > { %6720 = vst.msk [vmem:[%s41646_s20 + $0x2a0] sm:$0xff] %vm6698_vm1, %v6655_v53  ;;  %v13213_v16 = vmax.f32 %v13149_v31, 0.0  ;;  %v13150_v44 = vadd.f32 %v40691_v9, %v12509_v63  ;;  %v32697_v36 = vpop.f32.mrb[24].mxu0 }
 0x590   : > { %13279 = vst.msk [vmem:[%s41646_s20 + $0x2c8] sm:$0xff] %vm6698_vm1, %v13215_v23  ;;  %v13216_v10 = vmax.f32 %v13152_v51, 0.0  ;;  %v6596_v35 = vadd.f32 %v32697_v36, %v40170_v42  ;;  %v5963_v56 = vpop.f32.mrb[25].mxu0  ;;  %33992 = vmatmul.mubr.msk.bf16.vlgmr.msra.gmra.mrb[64].mxu1 %vm499_vm0, %v37250_v17  ;;  %v37255_v42 = vld [vmem:[%s44729_s1 + $0x20] sm:$0xff]   ;;  %v44876_v17 = vld [vmem:[#allocation23_spill] sm:$0xff] }
 0x591   : > { %13277 = vst.msk [vmem:[%s41646_s20 + $0x288] sm:$0xff] %vm6698_vm1, %v13213_v16  ;;  %v13214_v28 = vmax.f32 %v13150_v44, 0.0  ;;  %v6594_v9 = vadd.f32 %v40156_v58, %v5963_v56  ;;  %34056 = vmatpush3.bf16.msra.mxu1 %v39912_v22  ;;  %v32698_v0 = vpop.f32.mrb[26].mxu0  ;;  %33995 = vmatprep.mubr.msk.bf16.mxu1 %vm499_vm0, %v37253_v45  ;;  %v44877_v45 = vld [vmem:[#allocation21_spill] sm:$0xff]  ;;  %v44878_v16 = vld [vmem:[#allocation62_spill] sm:$0xff]  ;;  %v44879_v56 = vld [vmem:[#allocation60_spill] sm:$0xff] }
 0x592   : > { %13280 = vst.msk [vmem:[%s41646_s20 + $0x2e8] sm:$0xff] %vm6698_vm1, %v13216_v10  ;;  %v6660_v52 = vmax.f32 %v6596_v35, 0.0  ;;  %v6597_v20 = vadd.f32 %v32698_v0, %v40172_v59  ;;  %v5966_v1 = vpop.f32.mrb[27].mxu0  ;;  %34121 = vmatprep.subr.bf16.mxu1 %v41899_v7  ;;  %v37254_v59 = vld [vmem:[%s44729_s1 + $0x18] sm:$0xff]   ;;  %v37258_v10 = vld [vmem:[%s44729_s1 + $0x28] sm:$0xff]  }
 0x593   : > { %13278 = vst.msk [vmem:[%s41646_s20 + $0x2a8] sm:$0xff] %vm6698_vm1, %v13214_v28  ;;  %v6658_v22 = vmax.f32 %v6594_v9, 0.0  ;;  %v6595_v58 = vadd.f32 %v40158_v34, %v5966_v1  ;;  %v33291_v54 = vpop.f32.mrb[24].mxu1  ;;  %v37261_v9 = vld [vmem:[%s44729_s1 + $0x30] sm:$0xff]  }
 0x594   : > { %6725 = vst.msk [vmem:[%s41646_s20 + $0x340] sm:$0xff] %vm6698_vm1, %v6660_v52  ;;  %v6661_v2 = vmax.f32 %v6597_v20, 0.0  ;;  %v13155_v50 = vadd.f32 %v33291_v54, %v40761_v40  ;;  %v12522_v38 = vpop.f32.mrb[25].mxu1  ;;  %33402 = vmatmul.mubr.msk.bf16.gmra.mrb[68].mxu0 %vm499_vm0, %v37252_v37  ;;  %v37257_v40 = vld [vmem:[%s44729_s1 + $0x20] sm:$0xff]  }
 0x595   : > { %6723 = vst.msk [vmem:[%s41646_s20 + $0x300] sm:$0xff] %vm6698_vm1, %v6658_v22  ;;  %v6659_v57 = vmax.f32 %v6595_v58, 0.0  ;;  %v13153_v34 = vadd.f32 %v40739_v48, %v12522_v38  ;;  %v33292_v11 = vpop.f32.mrb[26].mxu1  ;;  %33405 = vmatprep.mubr.msk.bf16.mxu0 %vm499_vm0, %v37255_v42  ;;  %v44880_v42 = vld [vmem:[#allocation63_spill] sm:$0xff]  ;;  %v44881_v22 = vld [vmem:[#allocation61_spill] sm:$0xff] }
 0x596   : > { %6726 = vst.msk [vmem:[%s41646_s20 + $0x360] sm:$0xff] %vm6698_vm1, %v6661_v2  ;;  %v13219_v55 = vmax.f32 %v13155_v50, 0.0  ;;  %v13156_v49 = vadd.f32 %v33292_v11, %v40763_v26  ;;  %v12525_v12 = vpop.f32.mrb[27].mxu1  ;;  %v37256_v26 = vld [vmem:[%s44729_s1 + $0x28] sm:$0xff]   ;;  %v44882_v50 = vld [vmem:[#allocation28_spill] sm:$0xff]  ;;  %v44883_v11 = vld [vmem:[#allocation26_spill] sm:$0xff] }
 0x597   : > { %6724 = vst.msk [vmem:[%s41646_s20 + $0x320] sm:$0xff] %vm6698_vm1, %v6659_v57  ;;  %v13217_v5 = vmax.f32 %v13153_v34, 0.0  ;;  %v13154_v48 = vadd.f32 %v40741_v60, %v12525_v12  ;;  %v32701_v29 = vpop.f32.mrb[28].mxu0  ;;  %v37260_v57 = vld [vmem:[%s44729_s1 + $0x38] sm:$0xff]  }
 0x598   : > { %13283 = vst.msk [vmem:[%s41646_s20 + $0x348] sm:$0xff] %vm6698_vm1, %v13219_v55  ;;  %v13220_v6 = vmax.f32 %v13156_v49, 0.0  ;;  %v6600_v21 = vadd.f32 %v32701_v29, %v44874_v8  ;;  %v5979_v47 = vpop.f32.mrb[29].mxu0  ;;  %33996 = vmatmul.mubr.msk.bf16.gmra.mrb[68].mxu1 %vm499_vm0, %v37254_v59  ;;  %v37263_v49 = vld [vmem:[%s44729_s1 + $0x40] sm:$0xff]   ;;  %v44885_v8 = vld [vmem:[#allocation27_spill] sm:$0xff] }
 0x599   : > { %13281 = vst.msk [vmem:[%s41646_s20 + $0x308] sm:$0xff] %vm6698_vm1, %v13217_v5  ;;  %v13218_v46 = vmax.f32 %v13154_v48, 0.0  ;;  %v6598_v60 = vadd.f32 %v44875_v62, %v5979_v47  ;;  %v32702_v18 = vpop.f32.mrb[30].mxu0  ;;  %33999 = vmatprep.mubr.msk.bf16.mxu1 %vm499_vm0, %v37257_v40  ;;  %v44884_v5 = vld [vmem:[#allocation29_spill] sm:$0xff] }
 0x59a   : > { %13284 = vst.msk [vmem:[%s41646_s20 + $0x368] sm:$0xff] %vm6698_vm1, %v13220_v6  ;;  %v6664_v4 = vmax.f32 %v6600_v21, 0.0  ;;  %v6601_v53 = vadd.f32 %v32702_v18, %v44876_v17  ;;  %v5982_v31 = vpop.f32.mrb[31].mxu0  ;;  %v37262_v18 = vld [vmem:[%s44729_s1 + $0x38] sm:$0xff]  }
 0x59b   : > { %13282 = vst.msk [vmem:[%s41646_s20 + $0x328] sm:$0xff] %vm6698_vm1, %v13218_v46  ;;  %v6662_v39 = vmax.f32 %v6598_v60, 0.0  ;;  %v6599_v23 = vadd.f32 %v44877_v45, %v5982_v31  ;;  %v33295_v51 = vpop.f32.mrb[28].mxu1  ;;  %v44886_v46 = vld [vmem:[#allocation66_spill] sm:$0xff]  ;;  %v44888_v45 = vld [vmem:[#allocation67_spill] sm:$0xff] }
 0x59c   : > { %6729 = vst.msk [vmem:[%s41646_s20 + $0x3c0] sm:$0xff] %vm6698_vm1, %v6664_v4  ;;  %v6665_v63 = vmax.f32 %v6601_v53, 0.0  ;;  %v13159_v44 = vadd.f32 %v33295_v51, %v44878_v16  ;;  %v12538_v36 = vpop.f32.mrb[29].mxu1  ;;  %33406 = vmatmul.mubr.msk.bf16.gmra.mrb[72].mxu0 %vm499_vm0, %v37256_v26  ;;  %v44887_v4 = vld [vmem:[#allocation64_spill] sm:$0xff]  ;;  %v37265_v31 = vld [vmem:[%s44729_s1 + $0x40] sm:$0xff]   ;;  %v44889_v16 = vld [vmem:[#allocation65_spill] sm:$0xff] }
 0x59d   : > { %6727 = vst.msk [vmem:[%s41646_s20 + $0x380] sm:$0xff] %vm6698_vm1, %v6662_v39  ;;  %v6663_v35 = vmax.f32 %v6599_v23, 0.0  ;;  %v13157_v37 = vadd.f32 %v44879_v56, %v12538_v36  ;;  %v33296_v28 = vpop.f32.mrb[30].mxu1  ;;  %33409 = vmatprep.mubr.msk.bf16.mxu0 %vm499_vm0, %v37259_v3 }
 0x59e   : > { %6730 = vst.msk [vmem:[%s41646_s20 + $0x3e0] sm:$0xff] %vm6698_vm1, %v6665_v63  ;;  %v13223_v0 = vmax.f32 %v13159_v44, 0.0  ;;  %v13160_v52 = vadd.f32 %v33296_v28, %v44880_v42  ;;  %v12541_v20 = vpop.f32.mrb[31].mxu1  ;;  %v37264_v28 = vld [vmem:[%s44729_s1 + $0x48] sm:$0xff]  }
 0x59f   : > { %6728 = vst.msk [vmem:[%s41646_s20 + $0x3a0] sm:$0xff] %vm6698_vm1, %v6663_v35  ;;  %v13221_v1 = vmax.f32 %v13157_v37, 0.0  ;;  %v13158_v58 = vadd.f32 %v44881_v22, %v12541_v20  ;;  %v32705_v54 = vpop.f32.mrb[32].mxu0  ;;  %v44890_v35 = vld [vmem:[#allocation32_spill] sm:$0xff]  ;;  %v44892_v22 = vld [vmem:[#allocation33_spill] sm:$0xff] }
 0x5a0   : > { %13287 = vst.msk [vmem:[%s41646_s20 + $0x3c8] sm:$0xff] %vm6698_vm1, %v13223_v0  ;;  %v13224_v2 = vmax.f32 %v13160_v52, 0.0  ;;  %v6604_v38 = vadd.f32 %v32705_v54, %v44882_v50  ;;  %v5995_v59 = vpop.f32.mrb[33].mxu0  ;;  %34000 = vmatmul.mubr.msk.bf16.gmra.mrb[72].mxu1 %vm499_vm0, %v37258_v10  ;;  %v44891_v0 = vld [vmem:[#allocation30_spill] sm:$0xff]  ;;  %v37267_v20 = vld [vmem:[%s44729_s1 + $0x50] sm:$0xff]   ;;  %v44893_v50 = vld [vmem:[#allocation31_spill] sm:$0xff] }
 0x5a1   : > { %13285 = vst.msk [vmem:[%s41646_s20 + $0x388] sm:$0xff] %vm6698_vm1, %v13221_v1  ;;  %v13222_v34 = vmax.f32 %v13158_v58, 0.0  ;;  %v6602_v40 = vadd.f32 %v44883_v11, %v5995_v59  ;;  %v32706_v55 = vpop.f32.mrb[34].mxu0  ;;  %34003 = vmatprep.mubr.msk.bf16.mxu1 %vm499_vm0, %v37261_v9 }
 0x5a2   : > { %13288 = vst.msk [vmem:[%s41646_s20 + $0x3e8] sm:$0xff] %vm6698_vm1, %v13224_v2  ;;  %v6668_v12 = vmax.f32 %v6604_v38, 0.0  ;;  %v6605_v48 = vadd.f32 %v32706_v55, %v44884_v5  ;;  %v5998_v29 = vpop.f32.mrb[35].mxu0  ;;  %v37266_v55 = vld [vmem:[%s44729_s1 + $0x48] sm:$0xff]  }
 0x5a3   : > { %13286 = vst.msk [vmem:[%s41646_s20 + $0x3a8] sm:$0xff] %vm6698_vm1, %v13222_v34  ;;  %v6666_v6 = vmax.f32 %v6602_v40, 0.0  ;;  %v6603_v21 = vadd.f32 %v44885_v8, %v5998_v29  ;;  %v33299_v47 = vpop.f32.mrb[32].mxu1  ;;  %v44894_v34 = vld [vmem:[#allocation70_spill] sm:$0xff]  ;;  %v37269_v29 = vld [vmem:[%s44729_s1 + $0x50] sm:$0xff]   ;;  %v44896_v8 = vld [vmem:[#allocation71_spill] sm:$0xff] }
 0x5a4   : > { %6733 = vst.msk [vmem:[%s41646_s20 + $0x440] sm:$0xff] %vm6698_vm1, %v6668_v12  ;;  %v6669_v26 = vmax.f32 %v6605_v48, 0.0  ;;  %v13163_v62 = vadd.f32 %v33299_v47, %v44886_v46  ;;  %v12554_v60 = vpop.f32.mrb[33].mxu1  ;;  %33410 = vmatmul.mubr.msk.bf16.gmra.mrb[76].mxu0 %vm499_vm0, %v37260_v57  ;;  %v44895_v12 = vld [vmem:[#allocation68_spill] sm:$0xff]  ;;  %v44897_v46 = vld [vmem:[#allocation69_spill] sm:$0xff] }
 0x5a5   : > { %6731 = vst.msk [vmem:[%s41646_s20 + $0x400] sm:$0xff] %vm6698_vm1, %v6666_v6  ;;  %v6667_v3 = vmax.f32 %v6603_v21, 0.0  ;;  %v13161_v17 = vadd.f32 %v44887_v4, %v12554_v60  ;;  %v33300_v53 = vpop.f32.mrb[34].mxu1  ;;  %33413 = vmatprep.mubr.msk.bf16.mxu0 %vm499_vm0, %v37263_v49 }
 0x5a6   : > { %6734 = vst.msk [vmem:[%s41646_s20 + $0x460] sm:$0xff] %vm6698_vm1, %v6669_v26  ;;  %v13227_v39 = vmax.f32 %v13163_v62, 0.0  ;;  %v13164_v23 = vadd.f32 %v33300_v53, %v44888_v45  ;;  %v12557_v51 = vpop.f32.mrb[35].mxu1  ;;  %v37268_v53 = vld [vmem:[%s44729_s1 + $0x58] sm:$0xff]  }
 0x5a7   : > { %6732 = vst.msk [vmem:[%s41646_s20 + $0x420] sm:$0xff] %vm6698_vm1, %v6667_v3  ;;  %v13225_v63 = vmax.f32 %v13161_v17, 0.0  ;;  %v13162_v44 = vadd.f32 %v44889_v16, %v12557_v51  ;;  %v32709_v36 = vpop.f32.mrb[36].mxu0  ;;  %v44898_v3 = vld [vmem:[#allocation36_spill] sm:$0xff]  ;;  %v37271_v51 = vld [vmem:[%s44729_s1 + $0x60] sm:$0xff]   ;;  %v44900_v16 = vld [vmem:[#allocation37_spill] sm:$0xff] }
 0x5a8   : > { %13291 = vst.msk [vmem:[%s41646_s20 + $0x448] sm:$0xff] %vm6698_vm1, %v13227_v39  ;;  %v13228_v10 = vmax.f32 %v13164_v23, 0.0  ;;  %v6608_v56 = vadd.f32 %v32709_v36, %v44890_v35  ;;  %v6011_v37 = vpop.f32.mrb[37].mxu0  ;;  %34004 = vmatmul.mubr.msk.bf16.gmra.mrb[76].mxu1 %vm499_vm0, %v37262_v18  ;;  %v44899_v39 = vld [vmem:[#allocation34_spill] sm:$0xff]  ;;  %v44901_v35 = vld [vmem:[#allocation35_spill] sm:$0xff] }
 0x5a9   : > { %13289 = vst.msk [vmem:[%s41646_s20 + $0x408] sm:$0xff] %vm6698_vm1, %v13225_v63  ;;  %v13226_v9 = vmax.f32 %v13162_v44, 0.0  ;;  %v6606_v42 = vadd.f32 %v44891_v0, %v6011_v37  ;;  %v32710_v52 = vpop.f32.mrb[38].mxu0  ;;  %34007 = vmatprep.mubr.msk.bf16.mxu1 %vm499_vm0, %v37265_v31 }
 0x5aa   : > { %13292 = vst.msk [vmem:[%s41646_s20 + $0x468] sm:$0xff] %vm6698_vm1, %v13228_v10  ;;  %v6672_v1 = vmax.f32 %v6608_v56, 0.0  ;;  %v6609_v58 = vadd.f32 %v32710_v52, %v44892_v22  ;;  %v6014_v54 = vpop.f32.mrb[39].mxu0  ;;  %v37270_v52 = vld [vmem:[%s44729_s1 + $0x58] sm:$0xff]  }
 0x5ab   : > { %13290 = vst.msk [vmem:[%s41646_s20 + $0x428] sm:$0xff] %vm6698_vm1, %v13226_v9  ;;  %v6670_v2 = vmax.f32 %v6606_v42, 0.0  ;;  %v6607_v38 = vadd.f32 %v44893_v50, %v6014_v54  ;;  %v33303_v59 = vpop.f32.mrb[36].mxu1  ;;  %v44902_v9 = vld [vmem:[#allocation74_spill] sm:$0xff]  ;;  %v44904_v50 = vld [vmem:[#allocation75_spill] sm:$0xff] }
 0x5ac   : > { %6737 = vst.msk [vmem:[%s41646_s20 + $0x4c0] sm:$0xff] %vm6698_vm1, %v6672_v1  ;;  %v6673_v57 = vmax.f32 %v6609_v58, 0.0  ;;  %v13167_v11 = vadd.f32 %v33303_v59, %v44894_v34  ;;  %v12570_v40 = vpop.f32.mrb[37].mxu1  ;;  %33414 = vmatmul.mubr.msk.bf16.gmra.mrb[80].mxu0 %vm499_vm0, %v37264_v28  ;;  %v44903_v1 = vld [vmem:[#allocation72_spill] sm:$0xff]  ;;  %v37273_v54 = vld [vmem:[%s44729_s1 + $0x60] sm:$0xff]   ;;  %v44905_v34 = vld [vmem:[#allocation73_spill] sm:$0xff] }
 0x5ad   : > { %6735 = vst.msk [vmem:[%s41646_s20 + $0x480] sm:$0xff] %vm6698_vm1, %v6670_v2  ;;  %v6671_v49 = vmax.f32 %v6607_v38, 0.0  ;;  %v13165_v5 = vadd.f32 %v44895_v12, %v12570_v40  ;;  %v33304_v48 = vpop.f32.mrb[38].mxu1  ;;  %33417 = vmatprep.mubr.msk.bf16.mxu0 %vm499_vm0, %v37267_v20 }
 0x5ae   : > { %6738 = vst.msk [vmem:[%s41646_s20 + $0x4e0] sm:$0xff] %vm6698_vm1, %v6673_v57  ;;  %v13231_v6 = vmax.f32 %v13167_v11, 0.0  ;;  %v13168_v21 = vadd.f32 %v33304_v48, %v44896_v8  ;;  %v12573_v47 = vpop.f32.mrb[39].mxu1  ;;  %v37272_v48 = vld [vmem:[%s44729_s1 + $0x68] sm:$0xff]  }
 0x5af   : > { %6736 = vst.msk [vmem:[%s41646_s20 + $0x4a0] sm:$0xff] %vm6698_vm1, %v6671_v49  ;;  %v13229_v26 = vmax.f32 %v13165_v5, 0.0  ;;  %v13166_v62 = vadd.f32 %v44897_v46, %v12573_v47  ;;  %v32713_v60 = vpop.f32.mrb[40].mxu0  ;;  %v44906_v49 = vld [vmem:[#allocation40_spill] sm:$0xff]  ;;  %v44908_v46 = vld [vmem:[#allocation41_spill] sm:$0xff] }
 0x5b0   : > { %13295 = vst.msk [vmem:[%s41646_s20 + $0x4c8] sm:$0xff] %vm6698_vm1, %v13231_v6  ;;  %v13232_v18 = vmax.f32 %v13168_v21, 0.0  ;;  %v6612_v4 = vadd.f32 %v32713_v60, %v44898_v3  ;;  %v6027_v17 = vpop.f32.mrb[41].mxu0  ;;  %34008 = vmatmul.mubr.msk.bf16.gmra.mrb[80].mxu1 %vm499_vm0, %v37266_v55  ;;  %v44907_v6 = vld [vmem:[#allocation38_spill] sm:$0xff]  ;;  %v37275_v47 = vld [vmem:[%s44729_s1 + $0x70] sm:$0xff]   ;;  %v44909_v3 = vld [vmem:[#allocation39_spill] sm:$0xff] }
 0x5b1   : > { %13293 = vst.msk [vmem:[%s41646_s20 + $0x488] sm:$0xff] %vm6698_vm1, %v13229_v26  ;;  %v13230_v31 = vmax.f32 %v13166_v62, 0.0  ;;  %v6610_v45 = vadd.f32 %v44899_v39, %v6027_v17  ;;  %v32714_v23 = vpop.f32.mrb[42].mxu0  ;;  %34011 = vmatprep.mubr.msk.bf16.mxu1 %vm499_vm0, %v37269_v29 }
 0x5b2   : > { %13296 = vst.msk [vmem:[%s41646_s20 + $0x4e8] sm:$0xff] %vm6698_vm1, %v13232_v18  ;;  %v6676_v63 = vmax.f32 %v6612_v4, 0.0  ;;  %v6613_v44 = vadd.f32 %v32714_v23, %v44900_v16  ;;  %v6030_v36 = vpop.f32.mrb[43].mxu0  ;;  %v37274_v23 = vld [vmem:[%s44729_s1 + $0x68] sm:$0xff]  }
 0x5b3   : > { %13294 = vst.msk [vmem:[%s41646_s20 + $0x4a8] sm:$0xff] %vm6698_vm1, %v13230_v31  ;;  %v6674_v10 = vmax.f32 %v6610_v45, 0.0  ;;  %v6611_v56 = vadd.f32 %v44901_v35, %v6030_v36  ;;  %v33307_v37 = vpop.f32.mrb[40].mxu1  ;;  %v44910_v31 = vld [vmem:[#allocation78_spill] sm:$0xff]  ;;  %v37277_v36 = vld [vmem:[%s44729_s1 + $0x70] sm:$0xff]   ;;  %v44912_v35 = vld [vmem:[#allocation79_spill] sm:$0xff] }
 0x5b4   : > { %6741 = vst.msk [vmem:[%s41646_s20 + $0x540] sm:$0xff] %vm6698_vm1, %v6676_v63  ;;  %v6677_v28 = vmax.f32 %v6613_v44, 0.0  ;;  %v13171_v0 = vadd.f32 %v33307_v37, %v44902_v9  ;;  %v12586_v42 = vpop.f32.mrb[41].mxu1  ;;  %33418 = vmatmul.mubr.msk.bf16.gmra.mrb[84].mxu0 %vm499_vm0, %v37268_v53  ;;  %v44911_v63 = vld [vmem:[#allocation76_spill] sm:$0xff]  ;;  %v44913_v9 = vld [vmem:[#allocation77_spill] sm:$0xff] }
 0x5b5   : > { %6739 = vst.msk [vmem:[%s41646_s20 + $0x500] sm:$0xff] %vm6698_vm1, %v6674_v10  ;;  %v6675_v20 = vmax.f32 %v6611_v56, 0.0  ;;  %v13169_v22 = vadd.f32 %v44903_v1, %v12586_v42  ;;  %v33308_v58 = vpop.f32.mrb[42].mxu1  ;;  %33421 = vmatprep.mubr.msk.bf16.mxu0 %vm499_vm0, %v37271_v51 }
 0x5b6   : > { %6742 = vst.msk [vmem:[%s41646_s20 + $0x560] sm:$0xff] %vm6698_vm1, %v6677_v28  ;;  %v13235_v2 = vmax.f32 %v13171_v0, 0.0  ;;  %v13172_v38 = vadd.f32 %v33308_v58, %v44904_v50  ;;  %v12589_v59 = vpop.f32.mrb[43].mxu1  ;;  %v37276_v58 = vld [vmem:[%s44729_s1 + $0x78] sm:$0xff]  }
 0x5b7   : > { %6740 = vst.msk [vmem:[%s41646_s20 + $0x520] sm:$0xff] %vm6698_vm1, %v6675_v20  ;;  %v13233_v57 = vmax.f32 %v13169_v22, 0.0  ;;  %v13170_v11 = vadd.f32 %v44905_v34, %v12589_v59  ;;  %v32717_v40 = vpop.f32.mrb[44].mxu0  ;;  %v44914_v20 = vld [vmem:[#allocation44_spill] sm:$0xff]  ;;  %v37279_v59 = vld [vmem:[%s44729_s1 + $0x80] sm:$0xff]   ;;  %v44916_v34 = vld [vmem:[#allocation45_spill] sm:$0xff] }
 0x5b8   : > { %13299 = vst.msk [vmem:[%s41646_s20 + $0x548] sm:$0xff] %vm6698_vm1, %v13235_v2  ;;  %v13236_v55 = vmax.f32 %v13172_v38, 0.0  ;;  %v6616_v12 = vadd.f32 %v32717_v40, %v44906_v49  ;;  %v6043_v5 = vpop.f32.mrb[45].mxu0  ;;  %34012 = vmatmul.mubr.msk.bf16.gmra.mrb[84].mxu1 %vm499_vm0, %v37270_v52  ;;  %v44915_v2 = vld [vmem:[#allocation42_spill] sm:$0xff]  ;;  %v44917_v49 = vld [vmem:[#allocation43_spill] sm:$0xff] }
 0x5b9   : > { %13297 = vst.msk [vmem:[%s41646_s20 + $0x508] sm:$0xff] %vm6698_vm1, %v13233_v57  ;;  %v13234_v29 = vmax.f32 %v13170_v11, 0.0  ;;  %v6614_v8 = vadd.f32 %v44907_v6, %v6043_v5  ;;  %v32718_v21 = vpop.f32.mrb[46].mxu0  ;;  %34015 = vmatprep.mubr.msk.bf16.mxu1 %vm499_vm0, %v37273_v54 }
 0x5ba   : > { %13300 = vst.msk [vmem:[%s41646_s20 + $0x568] sm:$0xff] %vm6698_vm1, %v13236_v55  ;;  %v6680_v26 = vmax.f32 %v6616_v12, 0.0  ;;  %v6617_v62 = vadd.f32 %v32718_v21, %v44908_v46  ;;  %v6046_v60 = vpop.f32.mrb[47].mxu0 }
 0x5bb   : > { %13298 = vst.msk [vmem:[%s41646_s20 + $0x528] sm:$0xff] %vm6698_vm1, %v13234_v29  ;;  %v6678_v18 = vmax.f32 %v6614_v8, 0.0  ;;  %v6615_v4 = vadd.f32 %v44909_v3, %v6046_v60  ;;  %v33311_v17 = vpop.f32.mrb[44].mxu1  ;;  %v37278_v8 = vld [vmem:[%s44729_s1 + $0x78] sm:$0xff]   ;;  %v44919_v60 = vld [vmem:[#allocation82_spill] sm:$0xff] }
 0x5bc   : > { %6745 = vst.msk [vmem:[%s41646_s20 + $0x5c0] sm:$0xff] %vm6698_vm1, %v6680_v26  ;;  %v6681_v53 = vmax.f32 %v6617_v62, 0.0  ;;  %v13175_v39 = vadd.f32 %v33311_v17, %v44910_v31  ;;  %v12602_v45 = vpop.f32.mrb[45].mxu1  ;;  %33422 = vmatmul.mubr.msk.bf16.gmra.mrb[88].mxu0 %vm499_vm0, %v37272_v48  ;;  %v44920_v17 = vld [vmem:[#allocation81_spill] sm:$0xff] }
 0x5bd   : > { %6743 = vst.msk [vmem:[%s41646_s20 + $0x580] sm:$0xff] %vm6698_vm1, %v6678_v18  ;;  %v6679_v51 = vmax.f32 %v6615_v4, 0.0  ;;  %v13173_v16 = vadd.f32 %v44911_v63, %v12602_v45  ;;  %v33312_v44 = vpop.f32.mrb[46].mxu1  ;;  %33425 = vmatprep.mubr.msk.bf16.mxu0 %vm499_vm0, %v37275_v47  ;;  %v44918_v47 = vld [vmem:[#allocation80_spill] sm:$0xff]  ;;  %v37280_v63 = vld [vmem:[%s44729_s1 + $0x88] sm:$0xff]  }
 0x5be   : > { %6746 = vst.msk [vmem:[%s41646_s20 + $0x5e0] sm:$0xff] %vm6698_vm1, %v6681_v53  ;;  %v13239_v10 = vmax.f32 %v13175_v39, 0.0  ;;  %v13176_v56 = vadd.f32 %v33312_v44, %v44912_v35  ;;  %v12605_v37 = vpop.f32.mrb[47].mxu1  ;;  %v44921_v45 = vld [vmem:[#allocation48_spill] sm:$0xff]  ;;  %v44922_v44 = vld [vmem:[#allocation46_spill] sm:$0xff] }
 0x5bf   : > { %6744 = vst.msk [vmem:[%s41646_s20 + $0x5a0] sm:$0xff] %vm6698_vm1, %v6679_v51  ;;  %v13237_v28 = vmax.f32 %v13173_v16, 0.0  ;;  %v13174_v0 = vadd.f32 %v44913_v9, %v12605_v37  ;;  %v32721_v42 = vpop.f32.mrb[48].mxu0  ;;  %v37283_v35 = vld [vmem:[%s44729_s1 + $0x90] sm:$0xff]   ;;  %v44923_v37 = vld [vmem:[#allocation49_spill] sm:$0xff] }
 0x5c0   : > { %13303 = vst.msk [vmem:[%s41646_s20 + $0x5c8] sm:$0xff] %vm6698_vm1, %v13239_v10  ;;  %v13240_v52 = vmax.f32 %v13176_v56, 0.0  ;;  %v6620_v1 = vadd.f32 %v32721_v42, %v44914_v20  ;;  %v6059_v22 = vpop.f32.mrb[49].mxu0  ;;  %34016 = vmatmul.mubr.msk.bf16.gmra.mrb[88].mxu1 %vm499_vm0, %v37274_v23  ;;  %v44924_v42 = vld [vmem:[#allocation47_spill] sm:$0xff] }
 0x5c1   : > { %13301 = vst.msk [vmem:[%s41646_s20 + $0x588] sm:$0xff] %vm6698_vm1, %v13237_v28  ;;  %v13238_v54 = vmax.f32 %v13174_v0, 0.0  ;;  %v6618_v50 = vadd.f32 %v44915_v2, %v6059_v22  ;;  %v32722_v38 = vpop.f32.mrb[50].mxu0  ;;  %34019 = vmatprep.mubr.msk.bf16.mxu1 %vm499_vm0, %v37277_v36 }
 0x5c2   : > { %13304 = vst.msk [vmem:[%s41646_s20 + $0x5e8] sm:$0xff] %vm6698_vm1, %v13240_v52  ;;  %v6684_v57 = vmax.f32 %v6620_v1, 0.0  ;;  %v6621_v11 = vadd.f32 %v32722_v38, %v44916_v34  ;;  %v6062_v40 = vpop.f32.mrb[51].mxu0 }
 0x5c3   : > { %13302 = vst.msk [vmem:[%s41646_s20 + $0x5a8] sm:$0xff] %vm6698_vm1, %v13238_v54  ;;  %v6682_v55 = vmax.f32 %v6618_v50, 0.0  ;;  %v6619_v12 = vadd.f32 %v44917_v49, %v6062_v40  ;;  %v33315_v5 = vpop.f32.mrb[48].mxu1  ;;  %v37282_v54 = vld [vmem:[%s44729_s1 + $0x88] sm:$0xff]   ;;  %v44925_v49 = vld [vmem:[#allocation52_spill] sm:$0xff] }
 0x5c4   : > { %6749 = vst.msk [vmem:[%s41646_s20 + $0x640] sm:$0xff] %vm6698_vm1, %v6684_v57  ;;  %v6685_v48 = vmax.f32 %v6621_v11, 0.0  ;;  %v13179_v29 = vadd.f32 %v33315_v5, %v41070_v33  ;;  %v12618_v6 = vpop.f32.mrb[49].mxu1  ;;  %33426 = vmatmul.mubr.msk.bf16.gmra.mrb[92].mxu0 %vm499_vm0, %v37276_v58  ;;  %v37281_v33 = vld [vmem:[%s44729_s1 + $0x80] sm:$0xff]  }
 0x5c5   : > { %6747 = vst.msk [vmem:[%s41646_s20 + $0x600] sm:$0xff] %vm6698_vm1, %v6682_v55  ;;  %v6683_v21 = vmax.f32 %v6619_v12, 0.0  ;;  %v13177_v26 = vadd.f32 %v44918_v47, %v12618_v6  ;;  %v33316_v46 = vpop.f32.mrb[50].mxu1  ;;  %33429 = vmatprep.mubr.msk.bf16.mxu0 %vm499_vm0, %v37279_v59  ;;  %v44927_v47 = vld [vmem:[#allocation53_spill] sm:$0xff] }
 0x5c6   : > { %6750 = vst.msk [vmem:[%s41646_s20 + $0x660] sm:$0xff] %vm6698_vm1, %v6685_v48  ;;  %v13243_v62 = vmax.f32 %v13179_v29, 0.0  ;;  %v13180_v18 = vadd.f32 %v33316_v46, %v44919_v60  ;;  %v12621_v3 = vpop.f32.mrb[51].mxu1  ;;  %v44926_v29 = vld [vmem:[#allocation50_spill] sm:$0xff] }
 0x5c7   : > { %6748 = vst.msk [vmem:[%s41646_s20 + $0x620] sm:$0xff] %vm6698_vm1, %v6683_v21  ;;  %v13241_v4 = vmax.f32 %v13177_v26, 0.0  ;;  %v13178_v53 = vadd.f32 %v44920_v17, %v12621_v3  ;;  %v32725_v31 = vpop.f32.mrb[52].mxu0 }
 0x5c8   : > { %13307 = vst.msk [vmem:[%s41646_s20 + $0x648] sm:$0xff] %vm6698_vm1, %v13243_v62  ;;  %v13244_v39 = vmax.f32 %v13180_v18, 0.0  ;;  %v6624_v23 = vadd.f32 %v32725_v31, %v44921_v45  ;;  %v6075_v51 = vpop.f32.mrb[53].mxu0  ;;  %34020 = vmatmul.mubr.msk.bf16.gmra.mrb[92].mxu1 %vm499_vm0, %v37278_v8  ;;  %v37287_v8 = vld [vmem:[%s44729_s1 + $0xa0] sm:$0xff]   ;;  %v44928_v62 = vld [vmem:[#allocation51_spill] sm:$0xff] }
 0x5c9   : > { %13305 = vst.msk [vmem:[%s41646_s20 + $0x608] sm:$0xff] %vm6698_vm1, %v13241_v4  ;;  %v13242_v16 = vmax.f32 %v13178_v53, 0.0  ;;  %v6622_v36 = vadd.f32 %v44922_v44, %v6075_v51  ;;  %v32726_v10 = vpop.f32.mrb[54].mxu0  ;;  %34023 = vmatprep.mubr.msk.bf16.mxu1 %vm499_vm0, %v37281_v33  ;;  %v37286_v53 = vld [vmem:[%s44729_s1 + $0x98] sm:$0xff]  }
 0x5ca   : > { %13308 = vst.msk [vmem:[%s41646_s20 + $0x668] sm:$0xff] %vm6698_vm1, %v13244_v39  ;;  %v6688_v56 = vmax.f32 %v6624_v23, 0.0  ;;  %v6625_v28 = vadd.f32 %v32726_v10, %v44923_v37  ;;  %v6078_v9 = vpop.f32.mrb[55].mxu0  ;;  %v44929_v10 = vld [vmem:[#allocation56_spill] sm:$0xff] }
 0x5cb   : > { %13306 = vst.msk [vmem:[%s41646_s20 + $0x628] sm:$0xff] %vm6698_vm1, %v13242_v16  ;;  %v6686_v0 = vmax.f32 %v6622_v36, 0.0  ;;  %v6623_v52 = vadd.f32 %v44924_v42, %v6078_v9  ;;  %v33319_v20 = vpop.f32.mrb[52].mxu1 }
 0x5cc   : > { %6753 = vst.msk [vmem:[%s41646_s20 + $0x6c0] sm:$0xff] %vm6698_vm1, %v6688_v56  ;;  %v6689_v1 = vmax.f32 %v6625_v28, 0.0  ;;  %v13183_v22 = vadd.f32 %v33319_v20, %v41114_v27  ;;  %v12634_v58 = vpop.f32.mrb[53].mxu1  ;;  %33430 = vmatmul.mubr.msk.bf16.gmra.mrb[96].mxu0 %vm499_vm0, %v37280_v63  ;;  %v37285_v27 = vld [vmem:[%s44729_s1 + $0x90] sm:$0xff]   ;;  %v44930_v28 = vld [vmem:[#allocation54_spill] sm:$0xff] }
 0x5cd   : > { %6751 = vst.msk [vmem:[%s41646_s20 + $0x680] sm:$0xff] %vm6698_vm1, %v6686_v0  ;;  %v6687_v2 = vmax.f32 %v6623_v52, 0.0  ;;  %v13181_v50 = vadd.f32 %v41095_v19, %v12634_v58  ;;  %v33320_v38 = vpop.f32.mrb[54].mxu1  ;;  %33433 = vmatprep.mubr.msk.bf16.mxu0 %vm499_vm0, %v37283_v35  ;;  %v37291_v0 = vld [vmem:[%s44729_s1 + $0xb0] sm:$0xff]   ;;  %v44931_v52 = vld [vmem:[#allocation59_spill] sm:$0xff] }
 0x5ce   : > { %6754 = vst.msk [vmem:[%s41646_s20 + $0x6e0] sm:$0xff] %vm6698_vm1, %v6689_v1  ;;  %v13247_v59 = vmax.f32 %v13183_v22, 0.0  ;;  %v13184_v57 = vadd.f32 %v33320_v38, %v41116_v25  ;;  %v12637_v34 = vpop.f32.mrb[55].mxu1  ;;  %v37284_v25 = vld [vmem:[%s44729_s1 + $0x98] sm:$0xff]   ;;  %v44932_v58 = vld [vmem:[#allocation55_spill] sm:$0xff] }
 0x5cf   : > { %6752 = vst.msk [vmem:[%s41646_s20 + $0x6a0] sm:$0xff] %vm6698_vm1, %v6687_v2  ;;  %v13245_v11 = vmax.f32 %v13181_v50, 0.0  ;;  %v13182_v19 = vadd.f32 %v41097_v61, %v12637_v34  ;;  %v32729_v40 = vpop.f32.mrb[56].mxu0 }
 0x5d0   : > { %13311 = vst.msk [vmem:[%s41646_s20 + $0x6c8] sm:$0xff] %vm6698_vm1, %v13247_v59  ;;  %v13248_v55 = vmax.f32 %v13184_v57, 0.0  ;;  %v6628_v12 = vadd.f32 %v32729_v40, %v44925_v49  ;;  %v6091_v5 = vpop.f32.mrb[57].mxu0  ;;  %34024 = vmatmul.mubr.msk.bf16.gmra.mrb[96].mxu1 %vm499_vm0, %v37282_v54  ;;  %v37290_v59 = vld [vmem:[%s44729_s1 + $0xa8] sm:$0xff]  }
 0x5d1   : > { %13309 = vst.msk [vmem:[%s41646_s20 + $0x688] sm:$0xff] %vm6698_vm1, %v13245_v11  ;;  %v13246_v48 = vmax.f32 %v13182_v19, 0.0  ;;  %v6626_v61 = vadd.f32 %v44926_v29, %v6091_v5  ;;  %v32730_v6 = vpop.f32.mrb[58].mxu0  ;;  %34027 = vmatprep.mubr.msk.bf16.mxu1 %vm499_vm0, %v37285_v27  ;;  %v37294_v29 = vld [vmem:[%s44729_s1 + $0xb8] sm:$0xff]  }
 0x5d2   : > { %13312 = vst.msk [vmem:[%s41646_s20 + $0x6e8] sm:$0xff] %vm6698_vm1, %v13248_v55  ;;  %v6692_v21 = vmax.f32 %v6628_v12, 0.0  ;;  %v6629_v26 = vadd.f32 %v32730_v6, %v44927_v47  ;;  %v6094_v46 = vpop.f32.mrb[59].mxu0  ;;  %v44933_v12 = vld [vmem:[#allocation83_spill] sm:$0xff]  ;;  %v37301_v47 = vld [vmem:[%s44729_s1 + $0xd0] sm:$0xff]  }
 0x5d3   : > { %13310 = vst.msk [vmem:[%s41646_s20 + $0x6a8] sm:$0xff] %vm6698_vm1, %v13246_v48  ;;  %v6690_v33 = vmax.f32 %v6626_v61, 0.0  ;;  %v6627_v60 = vadd.f32 %v44928_v62, %v6094_v46  ;;  %v33323_v18 = vpop.f32.mrb[56].mxu1  ;;  %v37297_v61 = vld [vmem:[%s44729_s1 + $0xc0] sm:$0xff]   ;;  %v37296_v6 = vld [vmem:[%s44729_s1 + $0xc8] sm:$0xff]  }
 0x5d4   : > { %6757 = vst.msk [vmem:[%s41646_s20 + $0x740] sm:$0xff] %vm6698_vm1, %v6692_v21  ;;  %v6693_v3 = vmax.f32 %v6629_v26, 0.0  ;;  %v13187_v4 = vadd.f32 %v33323_v18, %v41152_v43  ;;  %v12650_v17 = vpop.f32.mrb[57].mxu1  ;;  %33434 = vmatmul.mubr.msk.bf16.gmra.mrb[100].mxu0 %vm499_vm0, %v37284_v25  ;;  %v37289_v43 = vld [vmem:[%s44729_s1 + $0xa0] sm:$0xff]   ;;  %v37292_v25 = vld [vmem:[%s44729_s1 + $0xb8] sm:$0xff]   ;;  %v37298_v21 = vld [vmem:[%s44729_s1 + $0xc8] sm:$0xff]  }
 0x5d5   : > { %6755 = vst.msk [vmem:[%s41646_s20 + $0x700] sm:$0xff] %vm6698_vm1, %v6690_v33  ;;  %v6691_v31 = vmax.f32 %v6627_v60, 0.0  ;;  %v13185_v39 = vadd.f32 %v41132_v14, %v12650_v17  ;;  %v33324_v45 = vpop.f32.mrb[58].mxu1  ;;  %33437 = vmatprep.mubr.msk.bf16.mxu0 %vm499_vm0, %v37287_v8  ;;  %v37299_v8 = vld [vmem:[%s44729_s1 + $0xd0] sm:$0xff]   ;;  %v37300_v26 = vld [vmem:[%s44729_s1 + $0xd8] sm:$0xff]   ;;  %v37303_v46 = vld [vmem:[%s44729_s1 + $0xe0] sm:$0xff]  }
 0x5d6   : > { %6758 = vst.msk [vmem:[%s41646_s20 + $0x760] sm:$0xff] %vm6698_vm1, %v6693_v3  ;;  %v13251_v23 = vmax.f32 %v13187_v4, 0.0  ;;  %v13188_v51 = vadd.f32 %v33324_v45, %v41154_v41  ;;  %v12653_v63 = vpop.f32.mrb[59].mxu1  ;;  %v37288_v41 = vld [vmem:[%s44729_s1 + $0xa8] sm:$0xff]   ;;  %v37302_v33 = vld [vmem:[%s44729_s1 + $0xd8] sm:$0xff]   ;;  %v37305_v62 = vld [vmem:[%s44729_s1 + $0xe0] sm:$0xff]  }
 0x5d7   : > { %6756 = vst.msk [vmem:[%s41646_s20 + $0x720] sm:$0xff] %vm6698_vm1, %v6691_v31  ;;  %v13249_v16 = vmax.f32 %v13185_v39, 0.0  ;;  %v13186_v14 = vadd.f32 %v41134_v32, %v12653_v63  ;;  %v32733_v44 = vpop.f32.mrb[60].mxu0  ;;  %v37304_v60 = vld [vmem:[%s44729_s1 + $0xe8] sm:$0xff]   ;;  %v37307_v18 = vld [vmem:[%s44729_s1 + $0xf0] sm:$0xff]   ;;  %v37308_v17 = vld [vmem:[%s44729_s1 + $0xf8] sm:$0xff]  }
 0x5d8   : > { %13315 = vst.msk [vmem:[%s41646_s20 + $0x748] sm:$0xff] %vm6698_vm1, %v13251_v23  ;;  %v13252_v36 = vmax.f32 %v13188_v51, 0.0  ;;  %v6632_v35 = vadd.f32 %v32733_v44, %v44929_v10  ;;  %v6107_v56 = vpop.f32.mrb[61].mxu0  ;;  %34028 = vmatmul.mubr.msk.bf16.gmra.mrb[100].mxu1 %vm499_vm0, %v37286_v53  ;;  %v37306_v3 = vld [vmem:[%s44729_s1 + $0xe8] sm:$0xff]   ;;  %v37309_v4 = vld [vmem:[%s44729_s1 + $0xf0] sm:$0xff]   ;;  %v37311_v53 = vld [vmem:[%s44729_s1 + $0x200] sm:$0xff]  }
 0x5d9   : > { %13313 = vst.msk [vmem:[%s41646_s20 + $0x708] sm:$0xff] %vm6698_vm1, %v13249_v16  ;;  %v13250_v37 = vmax.f32 %v13186_v14, 0.0  ;;  %v6630_v32 = vadd.f32 %v44930_v28, %v6107_v56  ;;  %v32734_v9 = vpop.f32.mrb[62].mxu0  ;;  %34031 = vmatprep.mubr.msk.bf16.mxu1 %vm499_vm0, %v37289_v43  ;;  %v37310_v31 = vld [vmem:[%s44729_s1 + $0xf8] sm:$0xff]   ;;  %v37313_v39 = vld [vmem:[%s44729_s1 + $0x200] sm:$0xff]   ;;  %v37312_v45 = vld [vmem:[%s44729_s1 + $0x208] sm:$0xff]  }
 0x5da   : > { %13316 = vst.msk [vmem:[%s41646_s20 + $0x768] sm:$0xff] %vm6698_vm1, %v13252_v36  ;;  %v6696_v42 = vmax.f32 %v6632_v35, 0.0  ;;  %v6633_v20 = vadd.f32 %v32734_v9, %v44931_v52  ;;  %v6110_v1 = vpop.f32.mrb[63].mxu0  ;;  %v37315_v43 = vld [vmem:[%s44729_s1 + $0x210] sm:$0xff]   ;;  %v37314_v23 = vld [vmem:[%s44729_s1 + $0x208] sm:$0xff]   ;;  %v37316_v16 = vld [vmem:[%s44729_s1 + $0x218] sm:$0xff]  }
 0x5db   : > { %13314 = vst.msk [vmem:[%s41646_s20 + $0x728] sm:$0xff] %vm6698_vm1, %v13250_v37  ;;  %v6694_v22 = vmax.f32 %v6630_v32, 0.0  ;;  %v6631_v54 = vadd.f32 %v44932_v58, %v6110_v1  ;;  %v33327_v2 = vpop.f32.mrb[60].mxu1  ;;  %v37317_v51 = vld [vmem:[%s44729_s1 + $0x210] sm:$0xff]   ;;  %v44935_v14 = vld [vmem:[#allocation25_spill] sm:$0xff]  ;;  %v37320_v36 = vld [vmem:[%s44729_s1 + $0x228] sm:$0xff]  }
 0x5dc   : > { %6761 = vst.msk [vmem:[%s41646_s20 + $0x7c0] sm:$0xff] %vm6698_vm1, %v6696_v42  ;;  %v6697_v50 = vmax.f32 %v6633_v20, 0.0  ;;  %v13191_v38 = vadd.f32 %v33327_v2, %v41213_v15  ;;  %v12666_v27 = vpop.f32.mrb[61].mxu1  ;;  %33438 = vmatmul.mubr.msk.bf16.gmra.mrb[104].mxu0 %vm499_vm0, %v37288_v41  ;;  %v37293_v15 = vld [vmem:[%s44729_s1 + $0xb0] sm:$0xff]   ;;  %v37318_v44 = vld [vmem:[%s44729_s1 + $0x218] sm:$0xff]   ;;  %v37322_v35 = vld [vmem:[%s44729_s1 + $0x228] sm:$0xff]  }
 0x5dd   : > { %6759 = vst.msk [vmem:[%s41646_s20 + $0x780] sm:$0xff] %vm6698_vm1, %v6694_v22  ;;  %v6695_v57 = vmax.f32 %v6631_v54, 0.0  ;;  %v13189_v34 = vadd.f32 %v41170_v24, %v12666_v27  ;;  %v33328_v11 = vpop.f32.mrb[62].mxu1  ;;  %33441 = vmatprep.mubr.msk.bf16.mxu0 %vm499_vm0, %v37291_v0  ;;  %v44934_v63 = vld [vmem:[#allocation24_spill] sm:$0xff]  ;;  %v37324_v41 = vld [vmem:[%s44729_s1 + $0x238] sm:$0xff]   ;;  %v37327_v37 = vld [vmem:[%s44729_s1 + $0x240] sm:$0xff]  }
 0x5de   : > { %6762 = vst.msk [vmem:[%s41646_s20 + $0x7e0] sm:$0xff] %vm6698_vm1, %v6697_v50  ;;  %v13255_v19 = vmax.f32 %v13191_v38, 0.0  ;;  %v13192_v40 = vadd.f32 %v33328_v11, %v41215_v30  ;;  %v12669_v55 = vpop.f32.mrb[63].mxu1  ;;  %v37295_v30 = vld [vmem:[%s44729_s1 + $0xc0] sm:$0xff]   ;;  %v37323_v10 = vld [vmem:[%s44729_s1 + $0x230] sm:$0xff]   ;;  %v37326_v28 = vld [vmem:[%s44729_s1 + $0x238] sm:$0xff]  }
 0x5df   : > { %6760 = vst.msk [vmem:[%s41646_s20 + $0x7a0] sm:$0xff] %vm6698_vm1, %v6695_v57  ;;  %v13253_v49 = vmax.f32 %v13189_v34, 0.0  ;;  %v13190_v24 = vadd.f32 %v44933_v12, %v12669_v55  ;;  %v37325_v56 = vld [vmem:[%s44729_s1 + $0x230] sm:$0xff]   ;;  %v37329_v32 = vld [vmem:[%s44729_s1 + $0x240] sm:$0xff]   ;;  %v37328_v9 = vld [vmem:[%s44729_s1 + $0x248] sm:$0xff]  }
 0x5e0   : > { %13319 = vst.msk [vmem:[%s41646_s20 + $0x7c8] sm:$0xff] %vm6698_vm1, %v13255_v19  ;;  %v13256_v5 = vmax.f32 %v13192_v40, 0.0  ;;  %34032 = vmatmul.mubr.msk.bf16.gmra.mrb[104].mxu1 %vm499_vm0, %v37290_v59  ;;  %v37331_v0 = vld [vmem:[%s44729_s1 + $0x250] sm:$0xff]   ;;  %v37330_v42 = vld [vmem:[%s44729_s1 + $0x248] sm:$0xff]   ;;  %v37332_v20 = vld [vmem:[%s44729_s1 + $0x258] sm:$0xff]  }
 0x5e1   : > { %13317 = vst.msk [vmem:[%s41646_s20 + $0x788] sm:$0xff] %vm6698_vm1, %v13253_v49  ;;  %v13254_v48 = vmax.f32 %v13190_v24, 0.0  ;;  %34035 = vmatprep.mubr.msk.bf16.mxu1 %vm499_vm0, %v37293_v15  ;;  %v37333_v52 = vld [vmem:[%s44729_s1 + $0x250] sm:$0xff]   ;;  %v37335_v1 = vld [vmem:[%s44729_s1 + $0x260] sm:$0xff]   ;;  %v37334_v22 = vld [vmem:[%s44729_s1 + $0x258] sm:$0xff]  }
 0x5e2   : > { %13320 = vst.msk [vmem:[%s41646_s20 + $0x7e8] sm:$0xff] %vm6698_vm1, %v13256_v5  ;;  %v37337_v58 = vld [vmem:[%s44729_s1 + $0x260] sm:$0xff]   ;;  %v37336_v54 = vld [vmem:[%s44729_s1 + $0x268] sm:$0xff]   ;;  %v37339_v2 = vld [vmem:[%s44729_s1 + $0x270] sm:$0xff]  }
 0x5e3   : > { %13318 = vst.msk [vmem:[%s41646_s20 + $0x7a8] sm:$0xff] %vm6698_vm1, %v13254_v48  ;;  %v37338_v50 = vld [vmem:[%s44729_s1 + $0x268] sm:$0xff]   ;;  %v37341_v38 = vld [vmem:[%s44729_s1 + $0x270] sm:$0xff]   ;;  %v37340_v27 = vld [vmem:[%s44729_s1 + $0x278] sm:$0xff]  }
 0x5e4   : > { %33442 = vmatmul.mubr.msk.bf16.gmra.mrb[108].mxu0 %vm499_vm0, %v37292_v25  ;;  %v37343_v59 = vld [vmem:[%s44729_s1 + $0x280] sm:$0xff]   ;;  %v37342_v57 = vld [vmem:[%s44729_s1 + $0x278] sm:$0xff]   ;;  %v37344_v11 = vld [vmem:[%s44729_s1 + $0x288] sm:$0xff]  }
 0x5e5   : > { %33445 = vmatprep.mubr.msk.bf16.mxu0 %vm499_vm0, %v37295_v30  ;;  %v37345_v34 = vld [vmem:[%s44729_s1 + $0x280] sm:$0xff]   ;;  %v37347_v15 = vld [vmem:[%s44729_s1 + $0x290] sm:$0xff]   ;;  %v37346_v19 = vld [vmem:[%s44729_s1 + $0x288] sm:$0xff]  }
 0x5e6   : > { %v37349_v40 = vld [vmem:[%s44729_s1 + $0x290] sm:$0xff]   ;;  %v37348_v55 = vld [vmem:[%s44729_s1 + $0x298] sm:$0xff]   ;;  %v37351_v49 = vld [vmem:[%s44729_s1 + $0x2a0] sm:$0xff]  }
 0x5e7   : > { %v37350_v12 = vld [vmem:[%s44729_s1 + $0x298] sm:$0xff]   ;;  %v37353_v24 = vld [vmem:[%s44729_s1 + $0x2a0] sm:$0xff]   ;;  %v37352_v5 = vld [vmem:[%s44729_s1 + $0x2a8] sm:$0xff]  }
 0x5e8   : > { %34036 = vmatmul.mubr.msk.bf16.gmra.mrb[108].mxu1 %vm499_vm0, %v37294_v29  ;;  %v37355_v25 = vld [vmem:[%s44729_s1 + $0x2b0] sm:$0xff]   ;;  %v37354_v48 = vld [vmem:[%s44729_s1 + $0x2a8] sm:$0xff]   ;;  %v37356_v29 = vld [vmem:[%s44729_s1 + $0x2b8] sm:$0xff]  }
 0x5e9   : > { %34039 = vmatprep.mubr.msk.bf16.mxu1 %vm499_vm0, %v37297_v61  ;;  %v37357_v30 = vld [vmem:[%s44729_s1 + $0x2b0] sm:$0xff]   ;;  %v37359_v61 = vld [vmem:[%s44729_s1 + $0x2c0] sm:$0xff]  }
 0x5ec   : > { %33446 = vmatmul.mubr.msk.bf16.gmra.mrb[112].mxu0 %vm499_vm0, %v37296_v6  ;;  %v37358_v6 = vld [vmem:[%s44729_s1 + $0x2b8] sm:$0xff]  }
 0x5ed   : > { %33449 = vmatprep.mubr.msk.bf16.mxu0 %vm499_vm0, %v37299_v8  ;;  %v37361_v8 = vld [vmem:[%s44729_s1 + $0x2c0] sm:$0xff]  }
 0x5f0   : > { %34040 = vmatmul.mubr.msk.bf16.gmra.mrb[112].mxu1 %vm499_vm0, %v37298_v21  ;;  %v37360_v21 = vld [vmem:[%s44729_s1 + $0x2c8] sm:$0xff]  }
 0x5f1   : > { %34043 = vmatprep.mubr.msk.bf16.mxu1 %vm499_vm0, %v37301_v47  ;;  %v37363_v47 = vld [vmem:[%s44729_s1 + $0x2d0] sm:$0xff]  }
 0x5f4   : > { %33450 = vmatmul.mubr.msk.bf16.gmra.mrb[116].mxu0 %vm499_vm0, %v37300_v26  ;;  %v37362_v26 = vld [vmem:[%s44729_s1 + $0x2c8] sm:$0xff]  }
 0x5f5   : > { %33453 = vmatprep.mubr.msk.bf16.mxu0 %vm499_vm0, %v37303_v46  ;;  %v37365_v46 = vld [vmem:[%s44729_s1 + $0x2d0] sm:$0xff]  }
 0x5f8   : > { %34044 = vmatmul.mubr.msk.bf16.gmra.mrb[116].mxu1 %vm499_vm0, %v37302_v33  ;;  %v37364_v33 = vld [vmem:[%s44729_s1 + $0x2d8] sm:$0xff]  }
 0x5f9   : > { %34047 = vmatprep.mubr.msk.bf16.mxu1 %vm499_vm0, %v37305_v62  ;;  %v37367_v62 = vld [vmem:[%s44729_s1 + $0x2e0] sm:$0xff]  }
 0x5fc   : > { %33454 = vmatmul.mubr.msk.bf16.gmra.mrb[120].mxu0 %vm499_vm0, %v37304_v60  ;;  %v37366_v60 = vld [vmem:[%s44729_s1 + $0x2d8] sm:$0xff]  }
 0x5fd   : > { %33457 = vmatprep.mubr.msk.bf16.mxu0 %vm499_vm0, %v37307_v18  ;;  %v37369_v18 = vld [vmem:[%s44729_s1 + $0x2e0] sm:$0xff]  }
 0x600   : > { %34048 = vmatmul.mubr.msk.bf16.gmra.mrb[120].mxu1 %vm499_vm0, %v37306_v3  ;;  %v37368_v3 = vld [vmem:[%s44729_s1 + $0x2e8] sm:$0xff]  }
 0x601   : > { %34051 = vmatprep.mubr.msk.bf16.mxu1 %vm499_vm0, %v37309_v4  ;;  %v37371_v4 = vld [vmem:[%s44729_s1 + $0x2f0] sm:$0xff]  }
 0x604   : > { %33458 = vmatmul.mubr.msk.bf16.gmra.mrb[124].mxu0 %vm499_vm0, %v37308_v17  ;;  %v37370_v17 = vld [vmem:[%s44729_s1 + $0x2e8] sm:$0xff]  }
 0x605   : > { %33463 = vmatprep.mubr.msk.bf16.mxu0 %vm499_vm0, %v37311_v53  ;;  %v37373_v53 = vld [vmem:[%s44729_s1 + $0x2f0] sm:$0xff]  }
 0x608   : > { %34052 = vmatmul.mubr.msk.bf16.gmra.mrb[124].mxu1 %vm499_vm0, %v37310_v31  ;;  %v37372_v31 = vld [vmem:[%s44729_s1 + $0x2f8] sm:$0xff]  }
 0x609   : > { %34057 = vmatprep.mubr.msk.bf16.mxu1 %vm499_vm0, %v37313_v39  ;;  %v37375_v39 = vld [vmem:[%s44729_s1 + $0x300] sm:$0xff]  }
 0x60c   : > { %33464 = vmatmul.mubr.msk.bf16.vlgmr.msra.gmra.mrb[64].mxu0 %vm499_vm0, %v37312_v45  ;;  %v37374_v45 = vld [vmem:[%s44729_s1 + $0x2f8] sm:$0xff]  }
 0x60d   : > { %33528 = vmatpush3.bf16.msra.mxu0 %v41874_v13  ;;  %33467 = vmatprep.mubr.msk.bf16.mxu0 %vm499_vm0, %v37315_v43  ;;  %v37319_v13 = vld [vmem:[%s44729_s1 + $0x220] sm:$0xff]  }
 0x60e   : > { %33593 = vmatprep.subr.bf16.mxu0 %v44934_v63  ;;  %v37377_v43 = vld [vmem:[%s44729_s1 + $0x300] sm:$0xff]  }
 0x610   : > { %34058 = vmatmul.mubr.msk.bf16.vlgmr.msra.gmra.mrb[64].mxu1 %vm499_vm0, %v37314_v23  ;;  %v37376_v23 = vld [vmem:[%s44729_s1 + $0x308] sm:$0xff]  }
 0x611   : > { %34122 = vmatpush3.bf16.msra.mxu1 %v41899_v7  ;;  %34061 = vmatprep.mubr.msk.bf16.mxu1 %vm499_vm0, %v37317_v51  ;;  %v37321_v7 = vld [vmem:[%s44729_s1 + $0x220] sm:$0xff]   ;;  %v37379_v51 = vld [vmem:[%s44729_s1 + $0x310] sm:$0xff]  }
 0x612   : > { %34187 = vmatprep.subr.bf16.mxu1 %v44935_v14 }
 0x614   : > { %33468 = vmatmul.mubr.msk.bf16.gmra.mrb[68].mxu0 %vm499_vm0, %v37316_v16  ;;  %v37378_v16 = vld [vmem:[%s44729_s1 + $0x308] sm:$0xff]  }
 0x615   : > { %33471 = vmatprep.mubr.msk.bf16.mxu0 %vm499_vm0, %v37319_v13  ;;  %v37381_v13 = vld [vmem:[%s44729_s1 + $0x310] sm:$0xff]  }
 0x618   : > { %34062 = vmatmul.mubr.msk.bf16.gmra.mrb[68].mxu1 %vm499_vm0, %v37318_v44  ;;  %v44936_v44 = vld [vmem:[#allocation57_spill] sm:$0xff] }
 0x619   : > { %34065 = vmatprep.mubr.msk.bf16.mxu1 %vm499_vm0, %v37321_v7  ;;  %v37380_v7 = vld [vmem:[%s44729_s1 + $0x318] sm:$0xff]  }
 0x61c   : > { %33472 = vmatmul.mubr.msk.bf16.gmra.mrb[72].mxu0 %vm499_vm0, %v37320_v36  ;;  %v44937_v36 = vld [vmem:[#allocation58_spill] sm:$0xff] }
 0x61d   : > { %33475 = vmatprep.mubr.msk.bf16.mxu0 %vm499_vm0, %v37323_v10  ;;  %v37382_v10 = vld [vmem:[%s44729_s1 + $0x318] sm:$0xff]  }
 0x620   : > { %34066 = vmatmul.mubr.msk.bf16.gmra.mrb[72].mxu1 %vm499_vm0, %v37322_v35  ;;  %v37384_v35 = vld [vmem:[%s44729_s1 + $0x328] sm:$0xff]  }
 0x621   : > { %34069 = vmatprep.mubr.msk.bf16.mxu1 %vm499_vm0, %v37325_v56  ;;  %v37387_v56 = vld [vmem:[%s44729_s1 + $0x330] sm:$0xff]  }
 0x624   : > { %33476 = vmatmul.mubr.msk.bf16.gmra.mrb[76].mxu0 %vm499_vm0, %v37324_v41  ;;  %v37386_v41 = vld [vmem:[%s44729_s1 + $0x328] sm:$0xff]  }
 0x625   : > { %33479 = vmatprep.mubr.msk.bf16.mxu0 %vm499_vm0, %v37327_v37  ;;  %v37389_v37 = vld [vmem:[%s44729_s1 + $0x330] sm:$0xff]  }
 0x628   : > { %34070 = vmatmul.mubr.msk.bf16.gmra.mrb[76].mxu1 %vm499_vm0, %v37326_v28  ;;  %v37388_v28 = vld [vmem:[%s44729_s1 + $0x338] sm:$0xff]  }
 0x629   : > { %34073 = vmatprep.mubr.msk.bf16.mxu1 %vm499_vm0, %v37329_v32  ;;  %v37391_v32 = vld [vmem:[%s44729_s1 + $0x340] sm:$0xff]  }
 0x62c   : > { %33480 = vmatmul.mubr.msk.bf16.gmra.mrb[80].mxu0 %vm499_vm0, %v37328_v9  ;;  %v37390_v9 = vld [vmem:[%s44729_s1 + $0x338] sm:$0xff]  }
 0x62d   : > { %33483 = vmatprep.mubr.msk.bf16.mxu0 %vm499_vm0, %v37331_v0  ;;  %v37393_v0 = vld [vmem:[%s44729_s1 + $0x340] sm:$0xff]  }
 0x630   : > { %34074 = vmatmul.mubr.msk.bf16.gmra.mrb[80].mxu1 %vm499_vm0, %v37330_v42  ;;  %v37392_v42 = vld [vmem:[%s44729_s1 + $0x348] sm:$0xff]  }
 0x631   : > { %34077 = vmatprep.mubr.msk.bf16.mxu1 %vm499_vm0, %v37333_v52  ;;  %v37395_v52 = vld [vmem:[%s44729_s1 + $0x350] sm:$0xff]  }
 0x634   : > { %33484 = vmatmul.mubr.msk.bf16.gmra.mrb[84].mxu0 %vm499_vm0, %v37332_v20  ;;  %v37394_v20 = vld [vmem:[%s44729_s1 + $0x348] sm:$0xff]  }
 0x635   : > { %33487 = vmatprep.mubr.msk.bf16.mxu0 %vm499_vm0, %v37335_v1  ;;  %v37397_v1 = vld [vmem:[%s44729_s1 + $0x350] sm:$0xff]  }
 0x638   : > { %34078 = vmatmul.mubr.msk.bf16.gmra.mrb[84].mxu1 %vm499_vm0, %v37334_v22  ;;  %v37396_v22 = vld [vmem:[%s44729_s1 + $0x358] sm:$0xff]  }
 0x639   : > { %34081 = vmatprep.mubr.msk.bf16.mxu1 %vm499_vm0, %v37337_v58  ;;  %v37399_v58 = vld [vmem:[%s44729_s1 + $0x360] sm:$0xff]  }
 0x63c   : > { %33488 = vmatmul.mubr.msk.bf16.gmra.mrb[88].mxu0 %vm499_vm0, %v37336_v54  ;;  %v37398_v54 = vld [vmem:[%s44729_s1 + $0x358] sm:$0xff]  }
 0x63d   : > { %33491 = vmatprep.mubr.msk.bf16.mxu0 %vm499_vm0, %v37339_v2  ;;  %v37401_v2 = vld [vmem:[%s44729_s1 + $0x360] sm:$0xff]  }
 0x640   : > { %34082 = vmatmul.mubr.msk.bf16.gmra.mrb[88].mxu1 %vm499_vm0, %v37338_v50  ;;  %v37400_v50 = vld [vmem:[%s44729_s1 + $0x368] sm:$0xff]  }
 0x641   : > { %34085 = vmatprep.mubr.msk.bf16.mxu1 %vm499_vm0, %v37341_v38  ;;  %v37403_v38 = vld [vmem:[%s44729_s1 + $0x370] sm:$0xff]  }
 0x644   : > { %33492 = vmatmul.mubr.msk.bf16.gmra.mrb[92].mxu0 %vm499_vm0, %v37340_v27  ;;  %v37402_v27 = vld [vmem:[%s44729_s1 + $0x368] sm:$0xff]  }
 0x645   : > { %33495 = vmatprep.mubr.msk.bf16.mxu0 %vm499_vm0, %v37343_v59  ;;  %v37405_v59 = vld [vmem:[%s44729_s1 + $0x370] sm:$0xff]  }
 0x648   : > { %34086 = vmatmul.mubr.msk.bf16.gmra.mrb[92].mxu1 %vm499_vm0, %v37342_v57  ;;  %v37404_v57 = vld [vmem:[%s44729_s1 + $0x378] sm:$0xff]  }
 0x649   : > { %34089 = vmatprep.mubr.msk.bf16.mxu1 %vm499_vm0, %v37345_v34  ;;  %v37407_v34 = vld [vmem:[%s44729_s1 + $0x380] sm:$0xff]  }
 0x64c   : > { %33496 = vmatmul.mubr.msk.bf16.gmra.mrb[96].mxu0 %vm499_vm0, %v37344_v11  ;;  %v37406_v11 = vld [vmem:[%s44729_s1 + $0x378] sm:$0xff]  }
 0x64d   : > { %33499 = vmatprep.mubr.msk.bf16.mxu0 %vm499_vm0, %v37347_v15  ;;  %v37409_v15 = vld [vmem:[%s44729_s1 + $0x380] sm:$0xff]  }
 0x650   : > { %34090 = vmatmul.mubr.msk.bf16.gmra.mrb[96].mxu1 %vm499_vm0, %v37346_v19  ;;  %v37408_v19 = vld [vmem:[%s44729_s1 + $0x388] sm:$0xff]  }
 0x651   : > { %34093 = vmatprep.mubr.msk.bf16.mxu1 %vm499_vm0, %v37349_v40  ;;  %v37411_v40 = vld [vmem:[%s44729_s1 + $0x390] sm:$0xff]  }
 0x654   : > { %33500 = vmatmul.mubr.msk.bf16.gmra.mrb[100].mxu0 %vm499_vm0, %v37348_v55  ;;  %v37410_v55 = vld [vmem:[%s44729_s1 + $0x388] sm:$0xff]  }
 0x655   : > { %33503 = vmatprep.mubr.msk.bf16.mxu0 %vm499_vm0, %v37351_v49  ;;  %v37413_v49 = vld [vmem:[%s44729_s1 + $0x390] sm:$0xff]  }
 0x658   : > { %34094 = vmatmul.mubr.msk.bf16.gmra.mrb[100].mxu1 %vm499_vm0, %v37350_v12  ;;  %v37412_v12 = vld [vmem:[%s44729_s1 + $0x398] sm:$0xff]  }
 0x659   : > { %34097 = vmatprep.mubr.msk.bf16.mxu1 %vm499_vm0, %v37353_v24  ;;  %v37415_v24 = vld [vmem:[%s44729_s1 + $0x3a0] sm:$0xff]  }
 0x65c   : > { %33504 = vmatmul.mubr.msk.bf16.gmra.mrb[104].mxu0 %vm499_vm0, %v37352_v5  ;;  %v37414_v5 = vld [vmem:[%s44729_s1 + $0x398] sm:$0xff]  }
 0x65d   : > { %33507 = vmatprep.mubr.msk.bf16.mxu0 %vm499_vm0, %v37355_v25  ;;  %v37417_v25 = vld [vmem:[%s44729_s1 + $0x3a0] sm:$0xff]  }
 0x660   : > { %34098 = vmatmul.mubr.msk.bf16.gmra.mrb[104].mxu1 %vm499_vm0, %v37354_v48  ;;  %v37416_v48 = vld [vmem:[%s44729_s1 + $0x3a8] sm:$0xff]  }
 0x661   : > { %34101 = vmatprep.mubr.msk.bf16.mxu1 %vm499_vm0, %v37357_v30  ;;  %v37419_v30 = vld [vmem:[%s44729_s1 + $0x3b0] sm:$0xff]  }
 0x664   : > { %33508 = vmatmul.mubr.msk.bf16.gmra.mrb[108].mxu0 %vm499_vm0, %v37356_v29  ;;  %v37418_v29 = vld [vmem:[%s44729_s1 + $0x3a8] sm:$0xff]  }
 0x665   : > { %33511 = vmatprep.mubr.msk.bf16.mxu0 %vm499_vm0, %v37359_v61  ;;  %v37421_v61 = vld [vmem:[%s44729_s1 + $0x3b0] sm:$0xff]  }
 0x668   : > { %34102 = vmatmul.mubr.msk.bf16.gmra.mrb[108].mxu1 %vm499_vm0, %v37358_v6  ;;  %v37420_v6 = vld [vmem:[%s44729_s1 + $0x3b8] sm:$0xff]  }
 0x669   : > { %34105 = vmatprep.mubr.msk.bf16.mxu1 %vm499_vm0, %v37361_v8  ;;  %v37423_v8 = vld [vmem:[%s44729_s1 + $0x3c0] sm:$0xff]  }
 0x66c   : > { %33512 = vmatmul.mubr.msk.bf16.gmra.mrb[112].mxu0 %vm499_vm0, %v37360_v21  ;;  %v37422_v21 = vld [vmem:[%s44729_s1 + $0x3b8] sm:$0xff]  }
 0x66d   : > { %33515 = vmatprep.mubr.msk.bf16.mxu0 %vm499_vm0, %v37363_v47  ;;  %v37425_v47 = vld [vmem:[%s44729_s1 + $0x3c0] sm:$0xff]  }
 0x670   : > { %34106 = vmatmul.mubr.msk.bf16.gmra.mrb[112].mxu1 %vm499_vm0, %v37362_v26  ;;  %v37424_v26 = vld [vmem:[%s44729_s1 + $0x3c8] sm:$0xff]  }
 0x671   : > { %34109 = vmatprep.mubr.msk.bf16.mxu1 %vm499_vm0, %v37365_v46  ;;  %v37427_v46 = vld [vmem:[%s44729_s1 + $0x3d0] sm:$0xff]  }
 0x674   : > { %33516 = vmatmul.mubr.msk.bf16.gmra.mrb[116].mxu0 %vm499_vm0, %v37364_v33  ;;  %v37426_v33 = vld [vmem:[%s44729_s1 + $0x3c8] sm:$0xff]  }
 0x675   : > { %33519 = vmatprep.mubr.msk.bf16.mxu0 %vm499_vm0, %v37367_v62  ;;  %v37429_v62 = vld [vmem:[%s44729_s1 + $0x3d0] sm:$0xff]  }
 0x678   : > { %34110 = vmatmul.mubr.msk.bf16.gmra.mrb[116].mxu1 %vm499_vm0, %v37366_v60  ;;  %v37428_v60 = vld [vmem:[%s44729_s1 + $0x3d8] sm:$0xff]  }
 0x679   : > { %34113 = vmatprep.mubr.msk.bf16.mxu1 %vm499_vm0, %v37369_v18  ;;  %v37431_v18 = vld [vmem:[%s44729_s1 + $0x3e0] sm:$0xff]  }
 0x67c   : > { %33520 = vmatmul.mubr.msk.bf16.gmra.mrb[120].mxu0 %vm499_vm0, %v37368_v3  ;;  %v37430_v3 = vld [vmem:[%s44729_s1 + $0x3d8] sm:$0xff]  }
 0x67d   : > { %33523 = vmatprep.mubr.msk.bf16.mxu0 %vm499_vm0, %v37371_v4  ;;  %v37433_v4 = vld [vmem:[%s44729_s1 + $0x3e0] sm:$0xff]  }
 0x680   : > { %34114 = vmatmul.mubr.msk.bf16.gmra.mrb[120].mxu1 %vm499_vm0, %v37370_v17  ;;  %v37432_v17 = vld [vmem:[%s44729_s1 + $0x3e8] sm:$0xff]  }
 0x681   : > { %34117 = vmatprep.mubr.msk.bf16.mxu1 %vm499_vm0, %v37373_v53  ;;  %v37435_v53 = vld [vmem:[%s44729_s1 + $0x3f0] sm:$0xff]  }
 0x684   : > { %33524 = vmatmul.mubr.msk.bf16.gmra.mrb[124].mxu0 %vm499_vm0, %v37372_v31  ;;  %v37434_v31 = vld [vmem:[%s44729_s1 + $0x3e8] sm:$0xff]  }
 0x685   : > { %33529 = vmatprep.mubr.msk.bf16.mxu0 %vm499_vm0, %v37375_v39  ;;  %v37437_v39 = vld [vmem:[%s44729_s1 + $0x3f0] sm:$0xff]  }
 0x688   : > { %34118 = vmatmul.mubr.msk.bf16.gmra.mrb[124].mxu1 %vm499_vm0, %v37374_v45  ;;  %v37436_v45 = vld [vmem:[%s44729_s1 + $0x3f8] sm:$0xff]  }
 0x689   : > { %34123 = vmatprep.mubr.msk.bf16.mxu1 %vm499_vm0, %v37377_v43  ;;  %v37439_v43 = vld [vmem:[%s44729_s1 + $0x400] sm:$0xff]  }
 0x68c   : > { %33530 = vmatmul.mubr.msk.bf16.vlgmr.msra.gmra.mrb[64].mxu0 %vm499_vm0, %v37376_v23  ;;  %v37438_v23 = vld [vmem:[%s44729_s1 + $0x3f8] sm:$0xff]  }
 0x68d   : > { %33594 = vmatpush3.bf16.msra.mxu0 %v44934_v63  ;;  %33533 = vmatprep.mubr.msk.bf16.mxu0 %vm499_vm0, %v37379_v51  ;;  %v37383_v63 = vld [vmem:[%s44729_s1 + $0x320] sm:$0xff]  }
 0x68e   : > { %33659 = vmatprep.subr.bf16.mxu0 %v44936_v44  ;;  %v37441_v51 = vld [vmem:[%s44729_s1 + $0x400] sm:$0xff]  }
 0x690   : > { %34124 = vmatmul.mubr.msk.bf16.vlgmr.msra.gmra.mrb[64].mxu1 %vm499_vm0, %v37378_v16  ;;  %v37440_v16 = vld [vmem:[%s44729_s1 + $0x408] sm:$0xff]  }
 0x691   : > { %34188 = vmatpush3.bf16.msra.mxu1 %v44935_v14  ;;  %34127 = vmatprep.mubr.msk.bf16.mxu1 %vm499_vm0, %v37381_v13  ;;  %v37385_v14 = vld [vmem:[%s44729_s1 + $0x320] sm:$0xff]   ;;  %v37443_v13 = vld [vmem:[%s44729_s1 + $0x410] sm:$0xff]  }
 0x692   : > { %34253 = vmatprep.subr.bf16.mxu1 %v44937_v36 }
 0x694   : > { %33534 = vmatmul.mubr.msk.bf16.gmra.mrb[68].mxu0 %vm499_vm0, %v37380_v7  ;;  %v37442_v7 = vld [vmem:[%s44729_s1 + $0x408] sm:$0xff]  }
 0x695   : > { %33537 = vmatprep.mubr.msk.bf16.mxu0 %vm499_vm0, %v37383_v63  ;;  %v37445_v63 = vld [vmem:[%s44729_s1 + $0x410] sm:$0xff]  }
 0x698   : > { %34128 = vmatmul.mubr.msk.bf16.gmra.mrb[68].mxu1 %vm499_vm0, %v37382_v10  ;;  %v42911_v10 = vld [vmem:[%s37862_s23 + $0x30] sm:$0xff]  }
 0x699   : > { %34131 = vmatprep.mubr.msk.bf16.mxu1 %vm499_vm0, %v37385_v14  ;;  %v37444_v14 = vld [vmem:[%s44729_s1 + $0x418] sm:$0xff]  }
 0x69c   : > { %33538 = vmatmul.mubr.msk.bf16.gmra.mrb[72].mxu0 %vm499_vm0, %v37384_v35  ;;  %v42924_v35 = vld [vmem:[%s37862_s23 + $0x34] sm:$0xff]  }
 0x69d   : > { %33541 = vmatprep.mubr.msk.bf16.mxu0 %vm499_vm0, %v37387_v56  ;;  %v37446_v56 = vld [vmem:[%s44729_s1 + $0x418] sm:$0xff]  }
 0x6a0   : > { %34132 = vmatmul.mubr.msk.bf16.gmra.mrb[72].mxu1 %vm499_vm0, %v37386_v41  ;;  %v37448_v41 = vld [vmem:[%s44729_s1 + $0x428] sm:$0xff]  }
 0x6a1   : > { %34135 = vmatprep.mubr.msk.bf16.mxu1 %vm499_vm0, %v37389_v37  ;;  %v37451_v37 = vld [vmem:[%s44729_s1 + $0x430] sm:$0xff]  }
 0x6a4   : > { %33542 = vmatmul.mubr.msk.bf16.gmra.mrb[76].mxu0 %vm499_vm0, %v37388_v28  ;;  %v37450_v28 = vld [vmem:[%s44729_s1 + $0x428] sm:$0xff]  }
 0x6a5   : > { %33545 = vmatprep.mubr.msk.bf16.mxu0 %vm499_vm0, %v37391_v32  ;;  %v37453_v32 = vld [vmem:[%s44729_s1 + $0x430] sm:$0xff]  }
 0x6a8   : > { %34136 = vmatmul.mubr.msk.bf16.gmra.mrb[76].mxu1 %vm499_vm0, %v37390_v9  ;;  %v37452_v9 = vld [vmem:[%s44729_s1 + $0x438] sm:$0xff]  }
 0x6a9   : > { %34139 = vmatprep.mubr.msk.bf16.mxu1 %vm499_vm0, %v37393_v0  ;;  %v37455_v0 = vld [vmem:[%s44729_s1 + $0x440] sm:$0xff]  }
 0x6ac   : > { %33546 = vmatmul.mubr.msk.bf16.gmra.mrb[80].mxu0 %vm499_vm0, %v37392_v42  ;;  %v37454_v42 = vld [vmem:[%s44729_s1 + $0x438] sm:$0xff]  }
 0x6ad   : > { %33549 = vmatprep.mubr.msk.bf16.mxu0 %vm499_vm0, %v37395_v52  ;;  %v37457_v52 = vld [vmem:[%s44729_s1 + $0x440] sm:$0xff]  }
 0x6b0   : > { %34140 = vmatmul.mubr.msk.bf16.gmra.mrb[80].mxu1 %vm499_vm0, %v37394_v20  ;;  %v37456_v20 = vld [vmem:[%s44729_s1 + $0x448] sm:$0xff]  }
 0x6b1   : > { %34143 = vmatprep.mubr.msk.bf16.mxu1 %vm499_vm0, %v37397_v1  ;;  %v37459_v1 = vld [vmem:[%s44729_s1 + $0x450] sm:$0xff]  }
 0x6b4   : > { %33550 = vmatmul.mubr.msk.bf16.gmra.mrb[84].mxu0 %vm499_vm0, %v37396_v22  ;;  %v37458_v22 = vld [vmem:[%s44729_s1 + $0x448] sm:$0xff]  }
 0x6b5   : > { %33553 = vmatprep.mubr.msk.bf16.mxu0 %vm499_vm0, %v37399_v58  ;;  %v37461_v58 = vld [vmem:[%s44729_s1 + $0x450] sm:$0xff]  }
 0x6b8   : > { %34144 = vmatmul.mubr.msk.bf16.gmra.mrb[84].mxu1 %vm499_vm0, %v37398_v54  ;;  %v37460_v54 = vld [vmem:[%s44729_s1 + $0x458] sm:$0xff]  }
 0x6b9   : > { %34147 = vmatprep.mubr.msk.bf16.mxu1 %vm499_vm0, %v37401_v2  ;;  %v37463_v2 = vld [vmem:[%s44729_s1 + $0x460] sm:$0xff]  }
 0x6bc   : > { %33554 = vmatmul.mubr.msk.bf16.gmra.mrb[88].mxu0 %vm499_vm0, %v37400_v50  ;;  %v37462_v50 = vld [vmem:[%s44729_s1 + $0x458] sm:$0xff]  }
 0x6bd   : > { %33557 = vmatprep.mubr.msk.bf16.mxu0 %vm499_vm0, %v37403_v38  ;;  %v37465_v38 = vld [vmem:[%s44729_s1 + $0x460] sm:$0xff]  }
 0x6c0   : > { %34148 = vmatmul.mubr.msk.bf16.gmra.mrb[88].mxu1 %vm499_vm0, %v37402_v27  ;;  %v37464_v27 = vld [vmem:[%s44729_s1 + $0x468] sm:$0xff]  }
 0x6c1   : > { %34151 = vmatprep.mubr.msk.bf16.mxu1 %vm499_vm0, %v37405_v59  ;;  %v37467_v59 = vld [vmem:[%s44729_s1 + $0x470] sm:$0xff]  }
 0x6c4   : > { %33558 = vmatmul.mubr.msk.bf16.gmra.mrb[92].mxu0 %vm499_vm0, %v37404_v57  ;;  %v37466_v57 = vld [vmem:[%s44729_s1 + $0x468] sm:$0xff]  }
 0x6c5   : > { %33561 = vmatprep.mubr.msk.bf16.mxu0 %vm499_vm0, %v37407_v34  ;;  %v37469_v34 = vld [vmem:[%s44729_s1 + $0x470] sm:$0xff]  }
 0x6c8   : > { %34152 = vmatmul.mubr.msk.bf16.gmra.mrb[92].mxu1 %vm499_vm0, %v37406_v11  ;;  %v37468_v11 = vld [vmem:[%s44729_s1 + $0x478] sm:$0xff]  }
 0x6c9   : > { %34155 = vmatprep.mubr.msk.bf16.mxu1 %vm499_vm0, %v37409_v15  ;;  %v37471_v15 = vld [vmem:[%s44729_s1 + $0x480] sm:$0xff]  }
 0x6cc   : > { %33562 = vmatmul.mubr.msk.bf16.gmra.mrb[96].mxu0 %vm499_vm0, %v37408_v19  ;;  %v37470_v19 = vld [vmem:[%s44729_s1 + $0x478] sm:$0xff]  }
 0x6cd   : > { %33565 = vmatprep.mubr.msk.bf16.mxu0 %vm499_vm0, %v37411_v40  ;;  %v37473_v40 = vld [vmem:[%s44729_s1 + $0x480] sm:$0xff]  }
 0x6d0   : > { %34156 = vmatmul.mubr.msk.bf16.gmra.mrb[96].mxu1 %vm499_vm0, %v37410_v55  ;;  %v37472_v55 = vld [vmem:[%s44729_s1 + $0x488] sm:$0xff]  }
 0x6d1   : > { %34159 = vmatprep.mubr.msk.bf16.mxu1 %vm499_vm0, %v37413_v49  ;;  %v37475_v49 = vld [vmem:[%s44729_s1 + $0x490] sm:$0xff]  }
 0x6d4   : > { %33566 = vmatmul.mubr.msk.bf16.gmra.mrb[100].mxu0 %vm499_vm0, %v37412_v12  ;;  %v37474_v12 = vld [vmem:[%s44729_s1 + $0x488] sm:$0xff]  }
 0x6d5   : > { %33569 = vmatprep.mubr.msk.bf16.mxu0 %vm499_vm0, %v37415_v24  ;;  %v37477_v24 = vld [vmem:[%s44729_s1 + $0x490] sm:$0xff]  }
 0x6d8   : > { %34160 = vmatmul.mubr.msk.bf16.gmra.mrb[100].mxu1 %vm499_vm0, %v37414_v5  ;;  %v37476_v5 = vld [vmem:[%s44729_s1 + $0x498] sm:$0xff]  }
 0x6d9   : > { %34163 = vmatprep.mubr.msk.bf16.mxu1 %vm499_vm0, %v37417_v25  ;;  %v37479_v25 = vld [vmem:[%s44729_s1 + $0x4a0] sm:$0xff]  }
 0x6dc   : > { %33570 = vmatmul.mubr.msk.bf16.gmra.mrb[104].mxu0 %vm499_vm0, %v37416_v48  ;;  %v37478_v48 = vld [vmem:[%s44729_s1 + $0x498] sm:$0xff]  }
 0x6dd   : > { %33573 = vmatprep.mubr.msk.bf16.mxu0 %vm499_vm0, %v37419_v30  ;;  %v37481_v30 = vld [vmem:[%s44729_s1 + $0x4a0] sm:$0xff]  }
 0x6e0   : > { %34164 = vmatmul.mubr.msk.bf16.gmra.mrb[104].mxu1 %vm499_vm0, %v37418_v29  ;;  %v37480_v29 = vld [vmem:[%s44729_s1 + $0x4a8] sm:$0xff]  }
 0x6e1   : > { %34167 = vmatprep.mubr.msk.bf16.mxu1 %vm499_vm0, %v37421_v61  ;;  %v37483_v61 = vld [vmem:[%s44729_s1 + $0x4b0] sm:$0xff]  }
 0x6e4   : > { %33574 = vmatmul.mubr.msk.bf16.gmra.mrb[108].mxu0 %vm499_vm0, %v37420_v6  ;;  %v37482_v6 = vld [vmem:[%s44729_s1 + $0x4a8] sm:$0xff]  }
 0x6e5   : > { %33577 = vmatprep.mubr.msk.bf16.mxu0 %vm499_vm0, %v37423_v8  ;;  %v37485_v8 = vld [vmem:[%s44729_s1 + $0x4b0] sm:$0xff]  }
 0x6e8   : > { %34168 = vmatmul.mubr.msk.bf16.gmra.mrb[108].mxu1 %vm499_vm0, %v37422_v21  ;;  %v37484_v21 = vld [vmem:[%s44729_s1 + $0x4b8] sm:$0xff]  }
 0x6e9   : > { %34171 = vmatprep.mubr.msk.bf16.mxu1 %vm499_vm0, %v37425_v47  ;;  %v37487_v47 = vld [vmem:[%s44729_s1 + $0x4c0] sm:$0xff]  }
 0x6ec   : > { %33578 = vmatmul.mubr.msk.bf16.gmra.mrb[112].mxu0 %vm499_vm0, %v37424_v26  ;;  %v37486_v26 = vld [vmem:[%s44729_s1 + $0x4b8] sm:$0xff]  }
 0x6ed   : > { %33581 = vmatprep.mubr.msk.bf16.mxu0 %vm499_vm0, %v37427_v46  ;;  %v37489_v46 = vld [vmem:[%s44729_s1 + $0x4c0] sm:$0xff]  }
 0x6f0   : > { %34172 = vmatmul.mubr.msk.bf16.gmra.mrb[112].mxu1 %vm499_vm0, %v37426_v33  ;;  %v37488_v33 = vld [vmem:[%s44729_s1 + $0x4c8] sm:$0xff]  }
 0x6f1   : > { %34175 = vmatprep.mubr.msk.bf16.mxu1 %vm499_vm0, %v37429_v62  ;;  %v37491_v62 = vld [vmem:[%s44729_s1 + $0x4d0] sm:$0xff]  }
 0x6f4   : > { %33582 = vmatmul.mubr.msk.bf16.gmra.mrb[116].mxu0 %vm499_vm0, %v37428_v60  ;;  %v37490_v60 = vld [vmem:[%s44729_s1 + $0x4c8] sm:$0xff]  }
 0x6f5   : > { %33585 = vmatprep.mubr.msk.bf16.mxu0 %vm499_vm0, %v37431_v18  ;;  %v37493_v18 = vld [vmem:[%s44729_s1 + $0x4d0] sm:$0xff]  }
 0x6f8   : > { %34176 = vmatmul.mubr.msk.bf16.gmra.mrb[116].mxu1 %vm499_vm0, %v37430_v3  ;;  %v37492_v3 = vld [vmem:[%s44729_s1 + $0x4d8] sm:$0xff]  }
 0x6f9   : > { %34179 = vmatprep.mubr.msk.bf16.mxu1 %vm499_vm0, %v37433_v4  ;;  %v37495_v4 = vld [vmem:[%s44729_s1 + $0x4e0] sm:$0xff]  }
 0x6fc   : > { %33586 = vmatmul.mubr.msk.bf16.gmra.mrb[120].mxu0 %vm499_vm0, %v37432_v17  ;;  %v37494_v17 = vld [vmem:[%s44729_s1 + $0x4d8] sm:$0xff]  }
 0x6fd   : > { %33589 = vmatprep.mubr.msk.bf16.mxu0 %vm499_vm0, %v37435_v53  ;;  %v37497_v53 = vld [vmem:[%s44729_s1 + $0x4e0] sm:$0xff]  }
 0x700   : > { %34180 = vmatmul.mubr.msk.bf16.gmra.mrb[120].mxu1 %vm499_vm0, %v37434_v31  ;;  %v37496_v31 = vld [vmem:[%s44729_s1 + $0x4e8] sm:$0xff]  }
 0x701   : > { %34183 = vmatprep.mubr.msk.bf16.mxu1 %vm499_vm0, %v37437_v39  ;;  %v37499_v39 = vld [vmem:[%s44729_s1 + $0x4f0] sm:$0xff]  }
 0x704   : > { %33590 = vmatmul.mubr.msk.bf16.gmra.mrb[124].mxu0 %vm499_vm0, %v37436_v45  ;;  %v37498_v45 = vld [vmem:[%s44729_s1 + $0x4e8] sm:$0xff]  }
 0x705   : > { %33595 = vmatprep.mubr.msk.bf16.mxu0 %vm499_vm0, %v37439_v43  ;;  %v37501_v43 = vld [vmem:[%s44729_s1 + $0x4f0] sm:$0xff]  }
 0x708   : > { %34184 = vmatmul.mubr.msk.bf16.gmra.mrb[124].mxu1 %vm499_vm0, %v37438_v23  ;;  %v37500_v23 = vld [vmem:[%s44729_s1 + $0x4f8] sm:$0xff]  }
 0x709   : > { %34189 = vmatprep.mubr.msk.bf16.mxu1 %vm499_vm0, %v37441_v51  ;;  %v37503_v51 = vld [vmem:[%s44729_s1 + $0x500] sm:$0xff]  }
 0x70c   : > { %33596 = vmatmul.mubr.msk.bf16.vlgmr.msra.gmra.mrb[64].mxu0 %vm499_vm0, %v37440_v16  ;;  %v37502_v16 = vld [vmem:[%s44729_s1 + $0x4f8] sm:$0xff]  }
 0x70d   : > { %33660 = vmatpush3.bf16.msra.mxu0 %v44936_v44  ;;  %33599 = vmatprep.mubr.msk.bf16.mxu0 %vm499_vm0, %v37443_v13  ;;  %v37447_v44 = vld [vmem:[%s44729_s1 + $0x420] sm:$0xff]  }
 0x70e   : > { %33725 = vmatprep.subr.bf16.mxu0 %v42911_v10  ;;  %v37505_v13 = vld [vmem:[%s44729_s1 + $0x500] sm:$0xff]  }
 0x710   : > { %34190 = vmatmul.mubr.msk.bf16.vlgmr.msra.gmra.mrb[64].mxu1 %vm499_vm0, %v37442_v7  ;;  %v37504_v7 = vld [vmem:[%s44729_s1 + $0x508] sm:$0xff]  }
 0x711   : > { %34254 = vmatpush3.bf16.msra.mxu1 %v44937_v36  ;;  %34193 = vmatprep.mubr.msk.bf16.mxu1 %vm499_vm0, %v37445_v63  ;;  %v37449_v36 = vld [vmem:[%s44729_s1 + $0x420] sm:$0xff]   ;;  %v37507_v63 = vld [vmem:[%s44729_s1 + $0x510] sm:$0xff]  }
 0x712   : > { %34319 = vmatprep.subr.bf16.mxu1 %v42924_v35 }
 0x714   : > { %33600 = vmatmul.mubr.msk.bf16.gmra.mrb[68].mxu0 %vm499_vm0, %v37444_v14  ;;  %v37506_v14 = vld [vmem:[%s44729_s1 + $0x508] sm:$0xff]  }
 0x715   : > { %33603 = vmatprep.mubr.msk.bf16.mxu0 %vm499_vm0, %v37447_v44  ;;  %v37509_v44 = vld [vmem:[%s44729_s1 + $0x510] sm:$0xff]  }
 0x718   : > { %34194 = vmatmul.mubr.msk.bf16.gmra.mrb[68].mxu1 %vm499_vm0, %v37446_v56  ;;  %v44938_v56 = vld [vmem:[#allocation84_spill] sm:$0xff] }
 0x719   : > { %34197 = vmatprep.mubr.msk.bf16.mxu1 %vm499_vm0, %v37449_v36  ;;  %v37508_v36 = vld [vmem:[%s44729_s1 + $0x518] sm:$0xff]  }
 0x71c   : > { %33604 = vmatmul.mubr.msk.bf16.gmra.mrb[72].mxu0 %vm499_vm0, %v37448_v41  ;;  %v44939_v41 = vld [vmem:[#allocation85_spill] sm:$0xff] }
 0x71d   : > { %33607 = vmatprep.mubr.msk.bf16.mxu0 %vm499_vm0, %v37451_v37  ;;  %v37510_v37 = vld [vmem:[%s44729_s1 + $0x518] sm:$0xff]  }
 0x720   : > { %34198 = vmatmul.mubr.msk.bf16.gmra.mrb[72].mxu1 %vm499_vm0, %v37450_v28  ;;  %v37512_v28 = vld [vmem:[%s44729_s1 + $0x528] sm:$0xff]  }
 0x721   : > { %34201 = vmatprep.mubr.msk.bf16.mxu1 %vm499_vm0, %v37453_v32  ;;  %v37515_v32 = vld [vmem:[%s44729_s1 + $0x530] sm:$0xff]  }
 0x724   : > { %33608 = vmatmul.mubr.msk.bf16.gmra.mrb[76].mxu0 %vm499_vm0, %v37452_v9  ;;  %v37514_v9 = vld [vmem:[%s44729_s1 + $0x528] sm:$0xff]  }
 0x725   : > { %33611 = vmatprep.mubr.msk.bf16.mxu0 %vm499_vm0, %v37455_v0  ;;  %v37517_v0 = vld [vmem:[%s44729_s1 + $0x530] sm:$0xff]  }
 0x728   : > { %34202 = vmatmul.mubr.msk.bf16.gmra.mrb[76].mxu1 %vm499_vm0, %v37454_v42  ;;  %v37516_v42 = vld [vmem:[%s44729_s1 + $0x538] sm:$0xff]  }
 0x729   : > { %34205 = vmatprep.mubr.msk.bf16.mxu1 %vm499_vm0, %v37457_v52  ;;  %v37519_v52 = vld [vmem:[%s44729_s1 + $0x540] sm:$0xff]  }
 0x72c   : > { %33612 = vmatmul.mubr.msk.bf16.gmra.mrb[80].mxu0 %vm499_vm0, %v37456_v20  ;;  %v37518_v20 = vld [vmem:[%s44729_s1 + $0x538] sm:$0xff]  }
 0x72d   : > { %33615 = vmatprep.mubr.msk.bf16.mxu0 %vm499_vm0, %v37459_v1  ;;  %v37521_v1 = vld [vmem:[%s44729_s1 + $0x540] sm:$0xff]  }
 0x730   : > { %34206 = vmatmul.mubr.msk.bf16.gmra.mrb[80].mxu1 %vm499_vm0, %v37458_v22  ;;  %v37520_v22 = vld [vmem:[%s44729_s1 + $0x548] sm:$0xff]  }
 0x731   : > { %34209 = vmatprep.mubr.msk.bf16.mxu1 %vm499_vm0, %v37461_v58  ;;  %v37523_v58 = vld [vmem:[%s44729_s1 + $0x550] sm:$0xff]  }
 0x734   : > { %33616 = vmatmul.mubr.msk.bf16.gmra.mrb[84].mxu0 %vm499_vm0, %v37460_v54  ;;  %v37522_v54 = vld [vmem:[%s44729_s1 + $0x548] sm:$0xff]  }
 0x735   : > { %33619 = vmatprep.mubr.msk.bf16.mxu0 %vm499_vm0, %v37463_v2  ;;  %v37525_v2 = vld [vmem:[%s44729_s1 + $0x550] sm:$0xff]  }
 0x738   : > { %34210 = vmatmul.mubr.msk.bf16.gmra.mrb[84].mxu1 %vm499_vm0, %v37462_v50  ;;  %v37524_v50 = vld [vmem:[%s44729_s1 + $0x558] sm:$0xff]  }
 0x739   : > { %34213 = vmatprep.mubr.msk.bf16.mxu1 %vm499_vm0, %v37465_v38  ;;  %v37527_v38 = vld [vmem:[%s44729_s1 + $0x560] sm:$0xff]  }
 0x73c   : > { %33620 = vmatmul.mubr.msk.bf16.gmra.mrb[88].mxu0 %vm499_vm0, %v37464_v27  ;;  %v37526_v27 = vld [vmem:[%s44729_s1 + $0x558] sm:$0xff]  }
 0x73d   : > { %33623 = vmatprep.mubr.msk.bf16.mxu0 %vm499_vm0, %v37467_v59  ;;  %v37529_v59 = vld [vmem:[%s44729_s1 + $0x560] sm:$0xff]  }
 0x740   : > { %34214 = vmatmul.mubr.msk.bf16.gmra.mrb[88].mxu1 %vm499_vm0, %v37466_v57  ;;  %v37528_v57 = vld [vmem:[%s44729_s1 + $0x568] sm:$0xff]  }
 0x741   : > { %34217 = vmatprep.mubr.msk.bf16.mxu1 %vm499_vm0, %v37469_v34  ;;  %v37531_v34 = vld [vmem:[%s44729_s1 + $0x570] sm:$0xff]  }
 0x744   : > { %33624 = vmatmul.mubr.msk.bf16.gmra.mrb[92].mxu0 %vm499_vm0, %v37468_v11  ;;  %v37530_v11 = vld [vmem:[%s44729_s1 + $0x568] sm:$0xff]  }
 0x745   : > { %33627 = vmatprep.mubr.msk.bf16.mxu0 %vm499_vm0, %v37471_v15  ;;  %v37533_v15 = vld [vmem:[%s44729_s1 + $0x570] sm:$0xff]  }
 0x748   : > { %34218 = vmatmul.mubr.msk.bf16.gmra.mrb[92].mxu1 %vm499_vm0, %v37470_v19  ;;  %v37532_v19 = vld [vmem:[%s44729_s1 + $0x578] sm:$0xff]  }
 0x749   : > { %34221 = vmatprep.mubr.msk.bf16.mxu1 %vm499_vm0, %v37473_v40  ;;  %v37535_v40 = vld [vmem:[%s44729_s1 + $0x580] sm:$0xff]  }
 0x74c   : > { %33628 = vmatmul.mubr.msk.bf16.gmra.mrb[96].mxu0 %vm499_vm0, %v37472_v55  ;;  %v37534_v55 = vld [vmem:[%s44729_s1 + $0x578] sm:$0xff]  }
 0x74d   : > { %33631 = vmatprep.mubr.msk.bf16.mxu0 %vm499_vm0, %v37475_v49  ;;  %v37537_v49 = vld [vmem:[%s44729_s1 + $0x580] sm:$0xff]  }
 0x750   : > { %34222 = vmatmul.mubr.msk.bf16.gmra.mrb[96].mxu1 %vm499_vm0, %v37474_v12  ;;  %v37536_v12 = vld [vmem:[%s44729_s1 + $0x588] sm:$0xff]  }
 0x751   : > { %34225 = vmatprep.mubr.msk.bf16.mxu1 %vm499_vm0, %v37477_v24  ;;  %v37539_v24 = vld [vmem:[%s44729_s1 + $0x590] sm:$0xff]  }
 0x754   : > { %33632 = vmatmul.mubr.msk.bf16.gmra.mrb[100].mxu0 %vm499_vm0, %v37476_v5  ;;  %v37538_v5 = vld [vmem:[%s44729_s1 + $0x588] sm:$0xff]  }
 0x755   : > { %33635 = vmatprep.mubr.msk.bf16.mxu0 %vm499_vm0, %v37479_v25  ;;  %v37541_v25 = vld [vmem:[%s44729_s1 + $0x590] sm:$0xff]  }
 0x758   : > { %34226 = vmatmul.mubr.msk.bf16.gmra.mrb[100].mxu1 %vm499_vm0, %v37478_v48  ;;  %v37540_v48 = vld [vmem:[%s44729_s1 + $0x598] sm:$0xff]  }
 0x759   : > { %34229 = vmatprep.mubr.msk.bf16.mxu1 %vm499_vm0, %v37481_v30  ;;  %v37543_v30 = vld [vmem:[%s44729_s1 + $0x5a0] sm:$0xff]  }
 0x75c   : > { %33636 = vmatmul.mubr.msk.bf16.gmra.mrb[104].mxu0 %vm499_vm0, %v37480_v29  ;;  %v37542_v29 = vld [vmem:[%s44729_s1 + $0x598] sm:$0xff]  }
 0x75d   : > { %33639 = vmatprep.mubr.msk.bf16.mxu0 %vm499_vm0, %v37483_v61  ;;  %v37545_v61 = vld [vmem:[%s44729_s1 + $0x5a0] sm:$0xff]  }
 0x760   : > { %34230 = vmatmul.mubr.msk.bf16.gmra.mrb[104].mxu1 %vm499_vm0, %v37482_v6  ;;  %v37544_v6 = vld [vmem:[%s44729_s1 + $0x5a8] sm:$0xff]  }
 0x761   : > { %34233 = vmatprep.mubr.msk.bf16.mxu1 %vm499_vm0, %v37485_v8  ;;  %v37547_v8 = vld [vmem:[%s44729_s1 + $0x5b0] sm:$0xff]  }
 0x764   : > { %33640 = vmatmul.mubr.msk.bf16.gmra.mrb[108].mxu0 %vm499_vm0, %v37484_v21  ;;  %v37546_v21 = vld [vmem:[%s44729_s1 + $0x5a8] sm:$0xff]  }
 0x765   : > { %33643 = vmatprep.mubr.msk.bf16.mxu0 %vm499_vm0, %v37487_v47  ;;  %v37549_v47 = vld [vmem:[%s44729_s1 + $0x5b0] sm:$0xff]  }
 0x768   : > { %34234 = vmatmul.mubr.msk.bf16.gmra.mrb[108].mxu1 %vm499_vm0, %v37486_v26  ;;  %v37548_v26 = vld [vmem:[%s44729_s1 + $0x5b8] sm:$0xff]  }
 0x769   : > { %34237 = vmatprep.mubr.msk.bf16.mxu1 %vm499_vm0, %v37489_v46  ;;  %v37551_v46 = vld [vmem:[%s44729_s1 + $0x5c0] sm:$0xff]  }
 0x76c   : > { %33644 = vmatmul.mubr.msk.bf16.gmra.mrb[112].mxu0 %vm499_vm0, %v37488_v33  ;;  %v37550_v33 = vld [vmem:[%s44729_s1 + $0x5b8] sm:$0xff]  }
 0x76d   : > { %33647 = vmatprep.mubr.msk.bf16.mxu0 %vm499_vm0, %v37491_v62  ;;  %v37553_v62 = vld [vmem:[%s44729_s1 + $0x5c0] sm:$0xff]  }
 0x770   : > { %34238 = vmatmul.mubr.msk.bf16.gmra.mrb[112].mxu1 %vm499_vm0, %v37490_v60  ;;  %v37552_v60 = vld [vmem:[%s44729_s1 + $0x5c8] sm:$0xff]  }
 0x771   : > { %34241 = vmatprep.mubr.msk.bf16.mxu1 %vm499_vm0, %v37493_v18  ;;  %v37555_v18 = vld [vmem:[%s44729_s1 + $0x5d0] sm:$0xff]  }
 0x774   : > { %33648 = vmatmul.mubr.msk.bf16.gmra.mrb[116].mxu0 %vm499_vm0, %v37492_v3  ;;  %v37554_v3 = vld [vmem:[%s44729_s1 + $0x5c8] sm:$0xff]  }
 0x775   : > { %33651 = vmatprep.mubr.msk.bf16.mxu0 %vm499_vm0, %v37495_v4  ;;  %v37557_v4 = vld [vmem:[%s44729_s1 + $0x5d0] sm:$0xff]  }
 0x778   : > { %34242 = vmatmul.mubr.msk.bf16.gmra.mrb[116].mxu1 %vm499_vm0, %v37494_v17  ;;  %v37556_v17 = vld [vmem:[%s44729_s1 + $0x5d8] sm:$0xff]  }
 0x779   : > { %34245 = vmatprep.mubr.msk.bf16.mxu1 %vm499_vm0, %v37497_v53  ;;  %v37559_v53 = vld [vmem:[%s44729_s1 + $0x5e0] sm:$0xff]  }
 0x77c   : > { %33652 = vmatmul.mubr.msk.bf16.gmra.mrb[120].mxu0 %vm499_vm0, %v37496_v31  ;;  %v37558_v31 = vld [vmem:[%s44729_s1 + $0x5d8] sm:$0xff]  }
 0x77d   : > { %33655 = vmatprep.mubr.msk.bf16.mxu0 %vm499_vm0, %v37499_v39  ;;  %v37561_v39 = vld [vmem:[%s44729_s1 + $0x5e0] sm:$0xff]  }
 0x780   : > { %34246 = vmatmul.mubr.msk.bf16.gmra.mrb[120].mxu1 %vm499_vm0, %v37498_v45  ;;  %v37560_v45 = vld [vmem:[%s44729_s1 + $0x5e8] sm:$0xff]  }
 0x781   : > { %34249 = vmatprep.mubr.msk.bf16.mxu1 %vm499_vm0, %v37501_v43  ;;  %v37563_v43 = vld [vmem:[%s44729_s1 + $0x5f0] sm:$0xff]  }
 0x784   : > { %33656 = vmatmul.mubr.msk.bf16.gmra.mrb[124].mxu0 %vm499_vm0, %v37500_v23  ;;  %v37562_v23 = vld [vmem:[%s44729_s1 + $0x5e8] sm:$0xff]  }
 0x785   : > { %33661 = vmatprep.mubr.msk.bf16.mxu0 %vm499_vm0, %v37503_v51  ;;  %v37565_v51 = vld [vmem:[%s44729_s1 + $0x5f0] sm:$0xff]  }
 0x788   : > { %34250 = vmatmul.mubr.msk.bf16.gmra.mrb[124].mxu1 %vm499_vm0, %v37502_v16  ;;  %v37564_v16 = vld [vmem:[%s44729_s1 + $0x5f8] sm:$0xff]  }
 0x789   : > { %34255 = vmatprep.mubr.msk.bf16.mxu1 %vm499_vm0, %v37505_v13  ;;  %v37567_v13 = vld [vmem:[%s44729_s1 + $0x600] sm:$0xff]  }
 0x78c   : > { %33662 = vmatmul.mubr.msk.bf16.vlgmr.msra.gmra.mrb[64].mxu0 %vm499_vm0, %v37504_v7  ;;  %v37566_v7 = vld [vmem:[%s44729_s1 + $0x5f8] sm:$0xff]  }
 0x78d   : > { %33726 = vmatpush3.bf16.msra.mxu0 %v42911_v10  ;;  %33665 = vmatprep.mubr.msk.bf16.mxu0 %vm499_vm0, %v37507_v63  ;;  %v37511_v10 = vld [vmem:[%s44729_s1 + $0x520] sm:$0xff]  }
 0x78e   : > { %33791 = vmatprep.subr.bf16.mxu0 %v44938_v56  ;;  %v37569_v63 = vld [vmem:[%s44729_s1 + $0x600] sm:$0xff]  }
 0x790   : > { %34256 = vmatmul.mubr.msk.bf16.vlgmr.msra.gmra.mrb[64].mxu1 %vm499_vm0, %v37506_v14  ;;  %v37568_v14 = vld [vmem:[%s44729_s1 + $0x608] sm:$0xff]  }
 0x791   : > { %34320 = vmatpush3.bf16.msra.mxu1 %v42924_v35  ;;  %34259 = vmatprep.mubr.msk.bf16.mxu1 %vm499_vm0, %v37509_v44  ;;  %v37513_v35 = vld [vmem:[%s44729_s1 + $0x520] sm:$0xff]   ;;  %v37571_v44 = vld [vmem:[%s44729_s1 + $0x610] sm:$0xff]  }
 0x792   : > { %34385 = vmatprep.subr.bf16.mxu1 %v44939_v41 }
 0x794   : > { %33666 = vmatmul.mubr.msk.bf16.gmra.mrb[68].mxu0 %vm499_vm0, %v37508_v36  ;;  %v37570_v36 = vld [vmem:[%s44729_s1 + $0x608] sm:$0xff]  }
 0x795   : > { %33669 = vmatprep.mubr.msk.bf16.mxu0 %vm499_vm0, %v37511_v10  ;;  %v37573_v10 = vld [vmem:[%s44729_s1 + $0x610] sm:$0xff]  }
 0x798   : > { %34260 = vmatmul.mubr.msk.bf16.gmra.mrb[68].mxu1 %vm499_vm0, %v37510_v37  ;;  %v44940_v37 = vld [vmem:[#allocation86_spill] sm:$0xff] }
 0x799   : > { %34263 = vmatprep.mubr.msk.bf16.mxu1 %vm499_vm0, %v37513_v35  ;;  %v37572_v35 = vld [vmem:[%s44729_s1 + $0x618] sm:$0xff]  }
 0x79c   : > { %33670 = vmatmul.mubr.msk.bf16.gmra.mrb[72].mxu0 %vm499_vm0, %v37512_v28  ;;  %v44941_v28 = vld [vmem:[#allocation116_spill] sm:$0xff] }
 0x79d   : > { %33673 = vmatprep.mubr.msk.bf16.mxu0 %vm499_vm0, %v37515_v32  ;;  %v37574_v32 = vld [vmem:[%s44729_s1 + $0x618] sm:$0xff]  }
 0x7a0   : > { %34264 = vmatmul.mubr.msk.bf16.gmra.mrb[72].mxu1 %vm499_vm0, %v37514_v9  ;;  %v37576_v9 = vld [vmem:[%s44729_s1 + $0x628] sm:$0xff]  }
 0x7a1   : > { %34267 = vmatprep.mubr.msk.bf16.mxu1 %vm499_vm0, %v37517_v0  ;;  %v37579_v0 = vld [vmem:[%s44729_s1 + $0x630] sm:$0xff]  }
 0x7a4   : > { %33674 = vmatmul.mubr.msk.bf16.gmra.mrb[76].mxu0 %vm499_vm0, %v37516_v42  ;;  %v37578_v42 = vld [vmem:[%s44729_s1 + $0x628] sm:$0xff]  }
 0x7a5   : > { %33677 = vmatprep.mubr.msk.bf16.mxu0 %vm499_vm0, %v37519_v52  ;;  %v37581_v52 = vld [vmem:[%s44729_s1 + $0x630] sm:$0xff]  }
 0x7a8   : > { %34268 = vmatmul.mubr.msk.bf16.gmra.mrb[76].mxu1 %vm499_vm0, %v37518_v20  ;;  %v37580_v20 = vld [vmem:[%s44729_s1 + $0x638] sm:$0xff]  }
 0x7a9   : > { %34271 = vmatprep.mubr.msk.bf16.mxu1 %vm499_vm0, %v37521_v1  ;;  %v37583_v1 = vld [vmem:[%s44729_s1 + $0x640] sm:$0xff]  }
 0x7ac   : > { %33678 = vmatmul.mubr.msk.bf16.gmra.mrb[80].mxu0 %vm499_vm0, %v37520_v22  ;;  %v37582_v22 = vld [vmem:[%s44729_s1 + $0x638] sm:$0xff]  }
 0x7ad   : > { %33681 = vmatprep.mubr.msk.bf16.mxu0 %vm499_vm0, %v37523_v58  ;;  %v37585_v58 = vld [vmem:[%s44729_s1 + $0x640] sm:$0xff]  }
 0x7b0   : > { %34272 = vmatmul.mubr.msk.bf16.gmra.mrb[80].mxu1 %vm499_vm0, %v37522_v54  ;;  %v37584_v54 = vld [vmem:[%s44729_s1 + $0x648] sm:$0xff]  }
 0x7b1   : > { %34275 = vmatprep.mubr.msk.bf16.mxu1 %vm499_vm0, %v37525_v2  ;;  %v37587_v2 = vld [vmem:[%s44729_s1 + $0x650] sm:$0xff]  }
 0x7b4   : > { %33682 = vmatmul.mubr.msk.bf16.gmra.mrb[84].mxu0 %vm499_vm0, %v37524_v50  ;;  %v37586_v50 = vld [vmem:[%s44729_s1 + $0x648] sm:$0xff]  }
 0x7b5   : > { %33685 = vmatprep.mubr.msk.bf16.mxu0 %vm499_vm0, %v37527_v38  ;;  %v37589_v38 = vld [vmem:[%s44729_s1 + $0x650] sm:$0xff]  }
 0x7b8   : > { %34276 = vmatmul.mubr.msk.bf16.gmra.mrb[84].mxu1 %vm499_vm0, %v37526_v27  ;;  %v37588_v27 = vld [vmem:[%s44729_s1 + $0x658] sm:$0xff]  }
 0x7b9   : > { %34279 = vmatprep.mubr.msk.bf16.mxu1 %vm499_vm0, %v37529_v59  ;;  %v37591_v59 = vld [vmem:[%s44729_s1 + $0x660] sm:$0xff]  }
 0x7bc   : > { %33686 = vmatmul.mubr.msk.bf16.gmra.mrb[88].mxu0 %vm499_vm0, %v37528_v57  ;;  %v37590_v57 = vld [vmem:[%s44729_s1 + $0x658] sm:$0xff]  }
 0x7bd   : > { %33689 = vmatprep.mubr.msk.bf16.mxu0 %vm499_vm0, %v37531_v34  ;;  %v37593_v34 = vld [vmem:[%s44729_s1 + $0x660] sm:$0xff]  }
 0x7c0   : > { %34280 = vmatmul.mubr.msk.bf16.gmra.mrb[88].mxu1 %vm499_vm0, %v37530_v11  ;;  %v37592_v11 = vld [vmem:[%s44729_s1 + $0x668] sm:$0xff]  }
 0x7c1   : > { %34283 = vmatprep.mubr.msk.bf16.mxu1 %vm499_vm0, %v37533_v15  ;;  %v37595_v15 = vld [vmem:[%s44729_s1 + $0x670] sm:$0xff]  }
 0x7c4   : > { %33690 = vmatmul.mubr.msk.bf16.gmra.mrb[92].mxu0 %vm499_vm0, %v37532_v19  ;;  %v37594_v19 = vld [vmem:[%s44729_s1 + $0x668] sm:$0xff]  }
 0x7c5   : > { %33693 = vmatprep.mubr.msk.bf16.mxu0 %vm499_vm0, %v37535_v40  ;;  %v37597_v40 = vld [vmem:[%s44729_s1 + $0x670] sm:$0xff]  }
 0x7c8   : > { %34284 = vmatmul.mubr.msk.bf16.gmra.mrb[92].mxu1 %vm499_vm0, %v37534_v55  ;;  %v37596_v55 = vld [vmem:[%s44729_s1 + $0x678] sm:$0xff]  }
 0x7c9   : > { %34287 = vmatprep.mubr.msk.bf16.mxu1 %vm499_vm0, %v37537_v49  ;;  %v37599_v49 = vld [vmem:[%s44729_s1 + $0x680] sm:$0xff]  }
 0x7cc   : > { %33694 = vmatmul.mubr.msk.bf16.gmra.mrb[96].mxu0 %vm499_vm0, %v37536_v12  ;;  %v37598_v12 = vld [vmem:[%s44729_s1 + $0x678] sm:$0xff]  }
 0x7cd   : > { %33697 = vmatprep.mubr.msk.bf16.mxu0 %vm499_vm0, %v37539_v24  ;;  %v37601_v24 = vld [vmem:[%s44729_s1 + $0x680] sm:$0xff]  }
 0x7d0   : > { %34288 = vmatmul.mubr.msk.bf16.gmra.mrb[96].mxu1 %vm499_vm0, %v37538_v5  ;;  %v37600_v5 = vld [vmem:[%s44729_s1 + $0x688] sm:$0xff]  }
 0x7d1   : > { %34291 = vmatprep.mubr.msk.bf16.mxu1 %vm499_vm0, %v37541_v25  ;;  %v37603_v25 = vld [vmem:[%s44729_s1 + $0x690] sm:$0xff]  }
 0x7d4   : > { %33698 = vmatmul.mubr.msk.bf16.gmra.mrb[100].mxu0 %vm499_vm0, %v37540_v48  ;;  %v37602_v48 = vld [vmem:[%s44729_s1 + $0x688] sm:$0xff]  }
 0x7d5   : > { %33701 = vmatprep.mubr.msk.bf16.mxu0 %vm499_vm0, %v37543_v30  ;;  %v37605_v30 = vld [vmem:[%s44729_s1 + $0x690] sm:$0xff]  }
 0x7d8   : > { %34292 = vmatmul.mubr.msk.bf16.gmra.mrb[100].mxu1 %vm499_vm0, %v37542_v29  ;;  %v37604_v29 = vld [vmem:[%s44729_s1 + $0x698] sm:$0xff]  }
 0x7d9   : > { %34295 = vmatprep.mubr.msk.bf16.mxu1 %vm499_vm0, %v37545_v61  ;;  %v37607_v61 = vld [vmem:[%s44729_s1 + $0x6a0] sm:$0xff]  }
 0x7dc   : > { %33702 = vmatmul.mubr.msk.bf16.gmra.mrb[104].mxu0 %vm499_vm0, %v37544_v6  ;;  %v37606_v6 = vld [vmem:[%s44729_s1 + $0x698] sm:$0xff]  }
 0x7dd   : > { %33705 = vmatprep.mubr.msk.bf16.mxu0 %vm499_vm0, %v37547_v8  ;;  %v37609_v8 = vld [vmem:[%s44729_s1 + $0x6a0] sm:$0xff]  }
 0x7e0   : > { %34296 = vmatmul.mubr.msk.bf16.gmra.mrb[104].mxu1 %vm499_vm0, %v37546_v21  ;;  %v37608_v21 = vld [vmem:[%s44729_s1 + $0x6a8] sm:$0xff]  }
 0x7e1   : > { %34299 = vmatprep.mubr.msk.bf16.mxu1 %vm499_vm0, %v37549_v47  ;;  %v37611_v47 = vld [vmem:[%s44729_s1 + $0x6b0] sm:$0xff]  }
 0x7e4   : > { %33706 = vmatmul.mubr.msk.bf16.gmra.mrb[108].mxu0 %vm499_vm0, %v37548_v26  ;;  %v37610_v26 = vld [vmem:[%s44729_s1 + $0x6a8] sm:$0xff]  }
 0x7e5   : > { %33709 = vmatprep.mubr.msk.bf16.mxu0 %vm499_vm0, %v37551_v46  ;;  %v37613_v46 = vld [vmem:[%s44729_s1 + $0x6b0] sm:$0xff]  }
 0x7e8   : > { %34300 = vmatmul.mubr.msk.bf16.gmra.mrb[108].mxu1 %vm499_vm0, %v37550_v33  ;;  %v37612_v33 = vld [vmem:[%s44729_s1 + $0x6b8] sm:$0xff]  }
 0x7e9   : > { %34303 = vmatprep.mubr.msk.bf16.mxu1 %vm499_vm0, %v37553_v62  ;;  %v37615_v62 = vld [vmem:[%s44729_s1 + $0x6c0] sm:$0xff]  }
 0x7ec   : > { %33710 = vmatmul.mubr.msk.bf16.gmra.mrb[112].mxu0 %vm499_vm0, %v37552_v60  ;;  %v37614_v60 = vld [vmem:[%s44729_s1 + $0x6b8] sm:$0xff]  }
 0x7ed   : > { %33713 = vmatprep.mubr.msk.bf16.mxu0 %vm499_vm0, %v37555_v18  ;;  %v37617_v18 = vld [vmem:[%s44729_s1 + $0x6c0] sm:$0xff]  }
 0x7f0   : > { %34304 = vmatmul.mubr.msk.bf16.gmra.mrb[112].mxu1 %vm499_vm0, %v37554_v3  ;;  %v37616_v3 = vld [vmem:[%s44729_s1 + $0x6c8] sm:$0xff]  }
 0x7f1   : > { %34307 = vmatprep.mubr.msk.bf16.mxu1 %vm499_vm0, %v37557_v4  ;;  %v37619_v4 = vld [vmem:[%s44729_s1 + $0x6d0] sm:$0xff]  }
 0x7f4   : > { %33714 = vmatmul.mubr.msk.bf16.gmra.mrb[116].mxu0 %vm499_vm0, %v37556_v17  ;;  %v37618_v17 = vld [vmem:[%s44729_s1 + $0x6c8] sm:$0xff]  }
 0x7f5   : > { %33717 = vmatprep.mubr.msk.bf16.mxu0 %vm499_vm0, %v37559_v53  ;;  %v37621_v53 = vld [vmem:[%s44729_s1 + $0x6d0] sm:$0xff]  }
 0x7f8   : > { %34308 = vmatmul.mubr.msk.bf16.gmra.mrb[116].mxu1 %vm499_vm0, %v37558_v31  ;;  %v37620_v31 = vld [vmem:[%s44729_s1 + $0x6d8] sm:$0xff]  }
 0x7f9   : > { %34311 = vmatprep.mubr.msk.bf16.mxu1 %vm499_vm0, %v37561_v39  ;;  %v37623_v39 = vld [vmem:[%s44729_s1 + $0x6e0] sm:$0xff]  }
 0x7fc   : > { %33718 = vmatmul.mubr.msk.bf16.gmra.mrb[120].mxu0 %vm499_vm0, %v37560_v45  ;;  %v37622_v45 = vld [vmem:[%s44729_s1 + $0x6d8] sm:$0xff]  }
 0x7fd   : > { %33721 = vmatprep.mubr.msk.bf16.mxu0 %vm499_vm0, %v37563_v43  ;;  %v37625_v43 = vld [vmem:[%s44729_s1 + $0x6e0] sm:$0xff]  }
 0x800   : > { %34312 = vmatmul.mubr.msk.bf16.gmra.mrb[120].mxu1 %vm499_vm0, %v37562_v23  ;;  %v37624_v23 = vld [vmem:[%s44729_s1 + $0x6e8] sm:$0xff]  }
 0x801   : > { %34315 = vmatprep.mubr.msk.bf16.mxu1 %vm499_vm0, %v37565_v51  ;;  %v37627_v51 = vld [vmem:[%s44729_s1 + $0x6f0] sm:$0xff]  }
 0x804   : > { %33722 = vmatmul.mubr.msk.bf16.gmra.mrb[124].mxu0 %vm499_vm0, %v37564_v16  ;;  %v37626_v16 = vld [vmem:[%s44729_s1 + $0x6e8] sm:$0xff]  }
 0x805   : > { %33727 = vmatprep.mubr.msk.bf16.mxu0 %vm499_vm0, %v37567_v13  ;;  %v37629_v13 = vld [vmem:[%s44729_s1 + $0x6f0] sm:$0xff]  }
 0x808   : > { %34316 = vmatmul.mubr.msk.bf16.gmra.mrb[124].mxu1 %vm499_vm0, %v37566_v7  ;;  %v37628_v7 = vld [vmem:[%s44729_s1 + $0x6f8] sm:$0xff]  }
 0x809   : > { %34321 = vmatprep.mubr.msk.bf16.mxu1 %vm499_vm0, %v37569_v63  ;;  %v37631_v63 = vld [vmem:[%s44729_s1 + $0x700] sm:$0xff]  }
 0x80c   : > { %33728 = vmatmul.mubr.msk.bf16.vlgmr.msra.gmra.mrb[64].mxu0 %vm499_vm0, %v37568_v14  ;;  %v37630_v14 = vld [vmem:[%s44729_s1 + $0x6f8] sm:$0xff]  }
 0x80d   : > { %33792 = vmatpush3.bf16.msra.mxu0 %v44938_v56  ;;  %33731 = vmatprep.mubr.msk.bf16.mxu0 %vm499_vm0, %v37571_v44  ;;  %v37575_v56 = vld [vmem:[%s44729_s1 + $0x620] sm:$0xff]  }
 0x80e   : > { %33857 = vmatprep.subr.bf16.mxu0 %v44940_v37  ;;  %v37633_v44 = vld [vmem:[%s44729_s1 + $0x700] sm:$0xff]  }
 0x810   : > { %34322 = vmatmul.mubr.msk.bf16.vlgmr.msra.gmra.mrb[64].mxu1 %vm499_vm0, %v37570_v36  ;;  %v37632_v36 = vld [vmem:[%s44729_s1 + $0x708] sm:$0xff]  }
 0x811   : > { %34386 = vmatpush3.bf16.msra.mxu1 %v44939_v41  ;;  %34325 = vmatprep.mubr.msk.bf16.mxu1 %vm499_vm0, %v37573_v10  ;;  %v37577_v41 = vld [vmem:[%s44729_s1 + $0x620] sm:$0xff]   ;;  %v37635_v10 = vld [vmem:[%s44729_s1 + $0x710] sm:$0xff]  }
 0x812   : > { %34451 = vmatprep.subr.bf16.mxu1 %v44941_v28 }
 0x814   : > { %33732 = vmatmul.mubr.msk.bf16.gmra.mrb[68].mxu0 %vm499_vm0, %v37572_v35  ;;  %v37634_v35 = vld [vmem:[%s44729_s1 + $0x708] sm:$0xff]  }
 0x815   : > { %33735 = vmatprep.mubr.msk.bf16.mxu0 %vm499_vm0, %v37575_v56  ;;  %v37637_v56 = vld [vmem:[%s44729_s1 + $0x710] sm:$0xff]  }
 0x818   : > { %34326 = vmatmul.mubr.msk.bf16.gmra.mrb[68].mxu1 %vm499_vm0, %v37574_v32  ;;  %v37636_v32 = vld [vmem:[%s44729_s1 + $0x718] sm:$0xff]  }
 0x819   : > { %34329 = vmatprep.mubr.msk.bf16.mxu1 %vm499_vm0, %v37577_v41  ;;  %v37638_v41 = vld [vmem:[%s44729_s1 + $0x718] sm:$0xff]  }
 0x81c   : > { %33736 = vmatmul.mubr.msk.bf16.gmra.mrb[72].mxu0 %vm499_vm0, %v37576_v9  ;;  %v37641_v9 = vld [vmem:[%s44729_s1 + $0x720] sm:$0xff]  }
 0x81d   : > { %33739 = vmatprep.mubr.msk.bf16.mxu0 %vm499_vm0, %v37579_v0  ;;  %v37643_v0 = vld [vmem:[%s44729_s1 + $0x730] sm:$0xff]  }
 0x820   : > { %34330 = vmatmul.mubr.msk.bf16.gmra.mrb[72].mxu1 %vm499_vm0, %v37578_v42  ;;  %v37642_v42 = vld [vmem:[%s44729_s1 + $0x728] sm:$0xff]  }
 0x821   : > { %34333 = vmatprep.mubr.msk.bf16.mxu1 %vm499_vm0, %v37581_v52  ;;  %v37645_v52 = vld [vmem:[%s44729_s1 + $0x730] sm:$0xff]  }
 0x824   : > { %33740 = vmatmul.mubr.msk.bf16.gmra.mrb[76].mxu0 %vm499_vm0, %v37580_v20  ;;  %v37644_v20 = vld [vmem:[%s44729_s1 + $0x738] sm:$0xff]  }
 0x825   : > { %33743 = vmatprep.mubr.msk.bf16.mxu0 %vm499_vm0, %v37583_v1  ;;  %v37647_v1 = vld [vmem:[%s44729_s1 + $0x740] sm:$0xff]  }
 0x828   : > { %34334 = vmatmul.mubr.msk.bf16.gmra.mrb[76].mxu1 %vm499_vm0, %v37582_v22  ;;  %v37646_v22 = vld [vmem:[%s44729_s1 + $0x738] sm:$0xff]  }
 0x829   : > { %34337 = vmatprep.mubr.msk.bf16.mxu1 %vm499_vm0, %v37585_v58  ;;  %v37649_v58 = vld [vmem:[%s44729_s1 + $0x740] sm:$0xff]  }
 0x82c   : > { %33744 = vmatmul.mubr.msk.bf16.gmra.mrb[80].mxu0 %vm499_vm0, %v37584_v54  ;;  %v37648_v54 = vld [vmem:[%s44729_s1 + $0x748] sm:$0xff]  }
 0x82d   : > { %33747 = vmatprep.mubr.msk.bf16.mxu0 %vm499_vm0, %v37587_v2  ;;  %v37651_v2 = vld [vmem:[%s44729_s1 + $0x750] sm:$0xff]  }
 0x830   : > { %34338 = vmatmul.mubr.msk.bf16.gmra.mrb[80].mxu1 %vm499_vm0, %v37586_v50  ;;  %v37650_v50 = vld [vmem:[%s44729_s1 + $0x748] sm:$0xff]  }
 0x831   : > { %34341 = vmatprep.mubr.msk.bf16.mxu1 %vm499_vm0, %v37589_v38  ;;  %v37653_v38 = vld [vmem:[%s44729_s1 + $0x750] sm:$0xff]  }
 0x834   : > { %33748 = vmatmul.mubr.msk.bf16.gmra.mrb[84].mxu0 %vm499_vm0, %v37588_v27  ;;  %v37652_v27 = vld [vmem:[%s44729_s1 + $0x758] sm:$0xff]  }
 0x835   : > { %33751 = vmatprep.mubr.msk.bf16.mxu0 %vm499_vm0, %v37591_v59  ;;  %v37655_v59 = vld [vmem:[%s44729_s1 + $0x760] sm:$0xff]  }
 0x838   : > { %34342 = vmatmul.mubr.msk.bf16.gmra.mrb[84].mxu1 %vm499_vm0, %v37590_v57  ;;  %v37654_v57 = vld [vmem:[%s44729_s1 + $0x758] sm:$0xff]  }
 0x839   : > { %34345 = vmatprep.mubr.msk.bf16.mxu1 %vm499_vm0, %v37593_v34  ;;  %v37657_v34 = vld [vmem:[%s44729_s1 + $0x760] sm:$0xff]  }
 0x83c   : > { %33752 = vmatmul.mubr.msk.bf16.gmra.mrb[88].mxu0 %vm499_vm0, %v37592_v11  ;;  %v37656_v11 = vld [vmem:[%s44729_s1 + $0x768] sm:$0xff]  }
 0x83d   : > { %33755 = vmatprep.mubr.msk.bf16.mxu0 %vm499_vm0, %v37595_v15  ;;  %v37659_v15 = vld [vmem:[%s44729_s1 + $0x770] sm:$0xff]  }
 0x840   : > { %34346 = vmatmul.mubr.msk.bf16.gmra.mrb[88].mxu1 %vm499_vm0, %v37594_v19  ;;  %v37658_v19 = vld [vmem:[%s44729_s1 + $0x768] sm:$0xff]  }
 0x841   : > { %34349 = vmatprep.mubr.msk.bf16.mxu1 %vm499_vm0, %v37597_v40  ;;  %v37661_v40 = vld [vmem:[%s44729_s1 + $0x770] sm:$0xff]  }
 0x844   : > { %33756 = vmatmul.mubr.msk.bf16.gmra.mrb[92].mxu0 %vm499_vm0, %v37596_v55  ;;  %v37660_v55 = vld [vmem:[%s44729_s1 + $0x778] sm:$0xff]  }
 0x845   : > { %33759 = vmatprep.mubr.msk.bf16.mxu0 %vm499_vm0, %v37599_v49  ;;  %v37663_v49 = vld [vmem:[%s44729_s1 + $0x780] sm:$0xff]  }
 0x848   : > { %34350 = vmatmul.mubr.msk.bf16.gmra.mrb[92].mxu1 %vm499_vm0, %v37598_v12  ;;  %v37662_v12 = vld [vmem:[%s44729_s1 + $0x778] sm:$0xff]  }
 0x849   : > { %34353 = vmatprep.mubr.msk.bf16.mxu1 %vm499_vm0, %v37601_v24  ;;  %v37665_v24 = vld [vmem:[%s44729_s1 + $0x780] sm:$0xff]  }
 0x84c   : > { %33760 = vmatmul.mubr.msk.bf16.gmra.mrb[96].mxu0 %vm499_vm0, %v37600_v5  ;;  %v37664_v5 = vld [vmem:[%s44729_s1 + $0x788] sm:$0xff]  }
 0x84d   : > { %33763 = vmatprep.mubr.msk.bf16.mxu0 %vm499_vm0, %v37603_v25  ;;  %v37667_v25 = vld [vmem:[%s44729_s1 + $0x790] sm:$0xff]  }
 0x850   : > { %34354 = vmatmul.mubr.msk.bf16.gmra.mrb[96].mxu1 %vm499_vm0, %v37602_v48  ;;  %v37666_v48 = vld [vmem:[%s44729_s1 + $0x788] sm:$0xff]  }
 0x851   : > { %34357 = vmatprep.mubr.msk.bf16.mxu1 %vm499_vm0, %v37605_v30  ;;  %v37669_v30 = vld [vmem:[%s44729_s1 + $0x790] sm:$0xff]  }
 0x854   : > { %33764 = vmatmul.mubr.msk.bf16.gmra.mrb[100].mxu0 %vm499_vm0, %v37604_v29  ;;  %v37668_v29 = vld [vmem:[%s44729_s1 + $0x798] sm:$0xff]  }
 0x855   : > { %33767 = vmatprep.mubr.msk.bf16.mxu0 %vm499_vm0, %v37607_v61  ;;  %v37671_v61 = vld [vmem:[%s44729_s1 + $0x7a0] sm:$0xff]  }
 0x858   : > { %34358 = vmatmul.mubr.msk.bf16.gmra.mrb[100].mxu1 %vm499_vm0, %v37606_v6  ;;  %v37670_v6 = vld [vmem:[%s44729_s1 + $0x798] sm:$0xff]  }
 0x859   : > { %34361 = vmatprep.mubr.msk.bf16.mxu1 %vm499_vm0, %v37609_v8  ;;  %v37673_v8 = vld [vmem:[%s44729_s1 + $0x7a0] sm:$0xff]  }
 0x85c   : > { %33768 = vmatmul.mubr.msk.bf16.gmra.mrb[104].mxu0 %vm499_vm0, %v37608_v21  ;;  %v37672_v21 = vld [vmem:[%s44729_s1 + $0x7a8] sm:$0xff]  }
 0x85d   : > { %33771 = vmatprep.mubr.msk.bf16.mxu0 %vm499_vm0, %v37611_v47  ;;  %v37675_v47 = vld [vmem:[%s44729_s1 + $0x7b0] sm:$0xff]  }
 0x860   : > { %34362 = vmatmul.mubr.msk.bf16.gmra.mrb[104].mxu1 %vm499_vm0, %v37610_v26  ;;  %v37674_v26 = vld [vmem:[%s44729_s1 + $0x7a8] sm:$0xff]  }
 0x861   : > { %34365 = vmatprep.mubr.msk.bf16.mxu1 %vm499_vm0, %v37613_v46  ;;  %v37677_v46 = vld [vmem:[%s44729_s1 + $0x7b0] sm:$0xff]  }
 0x864   : > { %33772 = vmatmul.mubr.msk.bf16.gmra.mrb[108].mxu0 %vm499_vm0, %v37612_v33  ;;  %v37676_v33 = vld [vmem:[%s44729_s1 + $0x7b8] sm:$0xff]  }
 0x865   : > { %33775 = vmatprep.mubr.msk.bf16.mxu0 %vm499_vm0, %v37615_v62  ;;  %v37679_v62 = vld [vmem:[%s44729_s1 + $0x7c0] sm:$0xff]  }
 0x868   : > { %34366 = vmatmul.mubr.msk.bf16.gmra.mrb[108].mxu1 %vm499_vm0, %v37614_v60  ;;  %v37678_v60 = vld [vmem:[%s44729_s1 + $0x7b8] sm:$0xff]  }
 0x869   : > { %34369 = vmatprep.mubr.msk.bf16.mxu1 %vm499_vm0, %v37617_v18  ;;  %v37681_v18 = vld [vmem:[%s44729_s1 + $0x7c0] sm:$0xff]  }
 0x86c   : > { %33776 = vmatmul.mubr.msk.bf16.gmra.mrb[112].mxu0 %vm499_vm0, %v37616_v3  ;;  %v37680_v3 = vld [vmem:[%s44729_s1 + $0x7c8] sm:$0xff]  }
 0x86d   : > { %33779 = vmatprep.mubr.msk.bf16.mxu0 %vm499_vm0, %v37619_v4  ;;  %v37683_v4 = vld [vmem:[%s44729_s1 + $0x7d0] sm:$0xff]  }
 0x870   : > { %34370 = vmatmul.mubr.msk.bf16.gmra.mrb[112].mxu1 %vm499_vm0, %v37618_v17  ;;  %v37682_v17 = vld [vmem:[%s44729_s1 + $0x7c8] sm:$0xff]  }
 0x871   : > { %34373 = vmatprep.mubr.msk.bf16.mxu1 %vm499_vm0, %v37621_v53  ;;  %v37685_v53 = vld [vmem:[%s44729_s1 + $0x7d0] sm:$0xff]  }
 0x874   : > { %33780 = vmatmul.mubr.msk.bf16.gmra.mrb[116].mxu0 %vm499_vm0, %v37620_v31  ;;  %v37684_v31 = vld [vmem:[%s44729_s1 + $0x7d8] sm:$0xff]  }
 0x875   : > { %33783 = vmatprep.mubr.msk.bf16.mxu0 %vm499_vm0, %v37623_v39  ;;  %v37687_v39 = vld [vmem:[%s44729_s1 + $0x7e0] sm:$0xff]  }
 0x878   : > { %34374 = vmatmul.mubr.msk.bf16.gmra.mrb[116].mxu1 %vm499_vm0, %v37622_v45  ;;  %v37686_v45 = vld [vmem:[%s44729_s1 + $0x7d8] sm:$0xff]  }
 0x879   : > { %34377 = vmatprep.mubr.msk.bf16.mxu1 %vm499_vm0, %v37625_v43  ;;  %v37689_v43 = vld [vmem:[%s44729_s1 + $0x7e0] sm:$0xff]  }
 0x87c   : > { %33784 = vmatmul.mubr.msk.bf16.gmra.mrb[120].mxu0 %vm499_vm0, %v37624_v23  ;;  %v37688_v23 = vld [vmem:[%s44729_s1 + $0x7e8] sm:$0xff]  }
 0x87d   : > { %33787 = vmatprep.mubr.msk.bf16.mxu0 %vm499_vm0, %v37627_v51  ;;  %v37691_v51 = vld [vmem:[%s44729_s1 + $0x7f0] sm:$0xff]  }
 0x880   : > { %34378 = vmatmul.mubr.msk.bf16.gmra.mrb[120].mxu1 %vm499_vm0, %v37626_v16  ;;  %v37690_v16 = vld [vmem:[%s44729_s1 + $0x7e8] sm:$0xff]  }
 0x881   : > { %34381 = vmatprep.mubr.msk.bf16.mxu1 %vm499_vm0, %v37629_v13  ;;  %v37693_v13 = vld [vmem:[%s44729_s1 + $0x7f0] sm:$0xff]  }
 0x884   : > { %33788 = vmatmul.mubr.msk.bf16.gmra.mrb[124].mxu0 %vm499_vm0, %v37628_v7  ;;  %v37692_v7 = vld [vmem:[%s44729_s1 + $0x7f8] sm:$0xff]  }
 0x885   : > { %33793 = vmatprep.mubr.msk.bf16.mxu0 %vm499_vm0, %v37631_v63  ;;  %v37695_v63 = vld [vmem:[%s44729_s1 + $0x800] sm:$0xff]  }
 0x888   : > { %34382 = vmatmul.mubr.msk.bf16.gmra.mrb[124].mxu1 %vm499_vm0, %v37630_v14  ;;  %v37694_v14 = vld [vmem:[%s44729_s1 + $0x7f8] sm:$0xff]  }
 0x889   : > { %34387 = vmatprep.mubr.msk.bf16.mxu1 %vm499_vm0, %v37633_v44  ;;  %v37697_v44 = vld [vmem:[%s44729_s1 + $0x800] sm:$0xff]  }
 0x88c   : > { %33794 = vmatmul.mubr.msk.bf16.vlgmr.msra.gmra.mrb[64].mxu0 %vm499_vm0, %v37632_v36  ;;  %v37696_v36 = vld [vmem:[%s44729_s1 + $0x808] sm:$0xff]  }
 0x88d   : > { %33858 = vmatpush3.bf16.msra.mxu0 %v44940_v37  ;;  %33797 = vmatprep.mubr.msk.bf16.mxu0 %vm499_vm0, %v37635_v10  ;;  %v37639_v37 = vld [vmem:[%s44729_s1 + $0x720] sm:$0xff]   ;;  %v37699_v10 = vld [vmem:[%s44729_s1 + $0x810] sm:$0xff]  }
 0x890   : > { %34388 = vmatmul.mubr.msk.bf16.vlgmr.msra.gmra.mrb[64].mxu1 %vm499_vm0, %v37634_v35  ;;  %v37698_v35 = vld [vmem:[%s44729_s1 + $0x808] sm:$0xff]  }
 0x891   : > { %34452 = vmatpush3.bf16.msra.mxu1 %v44941_v28  ;;  %34391 = vmatprep.mubr.msk.bf16.mxu1 %vm499_vm0, %v37637_v56  ;;  %v37640_v28 = vld [vmem:[%s44729_s1 + $0x728] sm:$0xff]   ;;  %v37701_v56 = vld [vmem:[%s44729_s1 + $0x810] sm:$0xff]  }
 0x894   : > { %33798 = vmatmul.mubr.msk.bf16.gmra.mrb[68].mxu0 %vm499_vm0, %v37636_v32  ;;  %v37700_v32 = vld [vmem:[%s44729_s1 + $0x818] sm:$0xff]  }
 0x895   : > { %33801 = vmatprep.mubr.msk.bf16.mxu0 %vm499_vm0, %v37639_v37  ;;  %v37703_v37 = vld [vmem:[%s44729_s1 + $0x820] sm:$0xff]  }
 0x898   : > { %34392 = vmatmul.mubr.msk.bf16.gmra.mrb[68].mxu1 %vm499_vm0, %v37638_v41  ;;  %v37702_v41 = vld [vmem:[%s44729_s1 + $0x818] sm:$0xff]  }
 0x899   : > { %34395 = vmatprep.mubr.msk.bf16.mxu1 %vm499_vm0, %v37641_v9  ;;  %v37705_v9 = vld [vmem:[%s44729_s1 + $0x820] sm:$0xff]  }
 0x89c   : > { %33802 = vmatmul.mubr.msk.bf16.gmra.mrb[72].mxu0 %vm499_vm0, %v37640_v28  ;;  %v37704_v28 = vld [vmem:[%s44729_s1 + $0x828] sm:$0xff]  }
 0x89d   : > { %33805 = vmatprep.mubr.msk.bf16.mxu0 %vm499_vm0, %v37643_v0  ;;  %v37707_v0 = vld [vmem:[%s44729_s1 + $0x830] sm:$0xff]  }
 0x8a0   : > { %34396 = vmatmul.mubr.msk.bf16.gmra.mrb[72].mxu1 %vm499_vm0, %v37642_v42  ;;  %v37706_v42 = vld [vmem:[%s44729_s1 + $0x828] sm:$0xff]  }
 0x8a1   : > { %34399 = vmatprep.mubr.msk.bf16.mxu1 %vm499_vm0, %v37645_v52  ;;  %v37709_v52 = vld [vmem:[%s44729_s1 + $0x830] sm:$0xff]  }
 0x8a4   : > { %33806 = vmatmul.mubr.msk.bf16.gmra.mrb[76].mxu0 %vm499_vm0, %v37644_v20  ;;  %v37708_v20 = vld [vmem:[%s44729_s1 + $0x838] sm:$0xff]  }
 0x8a5   : > { %33809 = vmatprep.mubr.msk.bf16.mxu0 %vm499_vm0, %v37647_v1  ;;  %v37711_v1 = vld [vmem:[%s44729_s1 + $0x840] sm:$0xff]  }
 0x8a8   : > { %34400 = vmatmul.mubr.msk.bf16.gmra.mrb[76].mxu1 %vm499_vm0, %v37646_v22  ;;  %v37710_v22 = vld [vmem:[%s44729_s1 + $0x838] sm:$0xff]  }
 0x8a9   : > { %34403 = vmatprep.mubr.msk.bf16.mxu1 %vm499_vm0, %v37649_v58  ;;  %v37713_v58 = vld [vmem:[%s44729_s1 + $0x840] sm:$0xff]  }
 0x8ac   : > { %33810 = vmatmul.mubr.msk.bf16.gmra.mrb[80].mxu0 %vm499_vm0, %v37648_v54  ;;  %v37712_v54 = vld [vmem:[%s44729_s1 + $0x848] sm:$0xff]  }
 0x8ad   : > { %33813 = vmatprep.mubr.msk.bf16.mxu0 %vm499_vm0, %v37651_v2  ;;  %v37715_v2 = vld [vmem:[%s44729_s1 + $0x850] sm:$0xff]  }
 0x8b0   : > { %34404 = vmatmul.mubr.msk.bf16.gmra.mrb[80].mxu1 %vm499_vm0, %v37650_v50  ;;  %v37714_v50 = vld [vmem:[%s44729_s1 + $0x848] sm:$0xff]  }
 0x8b1   : > { %34407 = vmatprep.mubr.msk.bf16.mxu1 %vm499_vm0, %v37653_v38  ;;  %v37717_v38 = vld [vmem:[%s44729_s1 + $0x850] sm:$0xff]  }
 0x8b4   : > { %33814 = vmatmul.mubr.msk.bf16.gmra.mrb[84].mxu0 %vm499_vm0, %v37652_v27  ;;  %v37716_v27 = vld [vmem:[%s44729_s1 + $0x858] sm:$0xff]  }
 0x8b5   : > { %33817 = vmatprep.mubr.msk.bf16.mxu0 %vm499_vm0, %v37655_v59  ;;  %v37719_v59 = vld [vmem:[%s44729_s1 + $0x860] sm:$0xff]  }
 0x8b8   : > { %34408 = vmatmul.mubr.msk.bf16.gmra.mrb[84].mxu1 %vm499_vm0, %v37654_v57  ;;  %v37718_v57 = vld [vmem:[%s44729_s1 + $0x858] sm:$0xff]  }
 0x8b9   : > { %34411 = vmatprep.mubr.msk.bf16.mxu1 %vm499_vm0, %v37657_v34  ;;  %v37721_v34 = vld [vmem:[%s44729_s1 + $0x860] sm:$0xff]  }
 0x8bc   : > { %33818 = vmatmul.mubr.msk.bf16.gmra.mrb[88].mxu0 %vm499_vm0, %v37656_v11  ;;  %v37720_v11 = vld [vmem:[%s44729_s1 + $0x868] sm:$0xff]  }
 0x8bd   : > { %33821 = vmatprep.mubr.msk.bf16.mxu0 %vm499_vm0, %v37659_v15  ;;  %v37723_v15 = vld [vmem:[%s44729_s1 + $0x870] sm:$0xff]  }
 0x8c0   : > { %34412 = vmatmul.mubr.msk.bf16.gmra.mrb[88].mxu1 %vm499_vm0, %v37658_v19  ;;  %v44041_v19 = vpop.permute.xlu1 %19519 }
 0x8c1   : > { %34415 = vmatprep.mubr.msk.bf16.mxu1 %vm499_vm0, %v37661_v40  ;;  %v37722_v40 = vld [vmem:[%s44729_s1 + $0x868] sm:$0xff]  }
 0x8c4   : > { %33822 = vmatmul.mubr.msk.bf16.gmra.mrb[92].mxu0 %vm499_vm0, %v37660_v55  ;;  %v44047_v55 = vpop.permute.xlu0 %19524 }
 0x8c5   : > { %33825 = vmatprep.mubr.msk.bf16.mxu0 %vm499_vm0, %v37663_v49  ;;  %v37725_v49 = vld [vmem:[%s44729_s1 + $0x870] sm:$0xff]  }
 0x8c8   : > { %34416 = vmatmul.mubr.msk.bf16.gmra.mrb[92].mxu1 %vm499_vm0, %v37662_v12  ;;  %v37724_v12 = vld [vmem:[%s44729_s1 + $0x878] sm:$0xff]  }
 0x8c9   : > { %34419 = vmatprep.mubr.msk.bf16.mxu1 %vm499_vm0, %v37665_v24  ;;  %v44057_v24 = vpop.permute.xlu1 %19529 }
 0x8cc   : > { %33826 = vmatmul.mubr.msk.bf16.gmra.mrb[96].mxu0 %vm499_vm0, %v37664_v5  ;;  %v37727_v5 = vld [vmem:[%s44729_s1 + $0x880] sm:$0xff]  }
 0x8cd   : > { %33829 = vmatprep.mubr.msk.bf16.mxu0 %vm499_vm0, %v37667_v25  ;;  %v44063_v25 = vpop.permute.xlu0 %19534 }
 0x8d0   : > { %34420 = vmatmul.mubr.msk.bf16.gmra.mrb[96].mxu1 %vm499_vm0, %v37666_v48  ;;  %v37726_v48 = vld [vmem:[%s44729_s1 + $0x878] sm:$0xff]  }
 0x8d1   : > { %34423 = vmatprep.mubr.msk.bf16.mxu1 %vm499_vm0, %v37669_v30  ;;  %v37729_v30 = vld [vmem:[%s44729_s1 + $0x880] sm:$0xff]  }
 0x8d4   : > { %33830 = vmatmul.mubr.msk.bf16.gmra.mrb[100].mxu0 %vm499_vm0, %v37668_v29  ;;  %v44073_v29 = vpop.permute.xlu1 %19539 }
 0x8d5   : > { %33833 = vmatprep.mubr.msk.bf16.mxu0 %vm499_vm0, %v37671_v61  ;;  %v37728_v61 = vld [vmem:[%s44729_s1 + $0x888] sm:$0xff]  }
 0x8d8   : > { %34424 = vmatmul.mubr.msk.bf16.gmra.mrb[100].mxu1 %vm499_vm0, %v37670_v6  ;;  %v44079_v6 = vpop.permute.xlu0 %19544 }
 0x8d9   : > { %34427 = vmatprep.mubr.msk.bf16.mxu1 %vm499_vm0, %v37673_v8  ;;  %v37731_v8 = vld [vmem:[%s44729_s1 + $0x890] sm:$0xff]  }
 0x8dc   : > { %33834 = vmatmul.mubr.msk.bf16.gmra.mrb[104].mxu0 %vm499_vm0, %v37672_v21  ;;  %v37730_v21 = vld [vmem:[%s44729_s1 + $0x888] sm:$0xff]  }
 0x8dd   : > { %33837 = vmatprep.mubr.msk.bf16.mxu0 %vm499_vm0, %v37675_v47  ;;  %v44089_v47 = vpop.permute.xlu1 %19549 }
 0x8e0   : > { %34428 = vmatmul.mubr.msk.bf16.gmra.mrb[104].mxu1 %vm499_vm0, %v37674_v26  ;;  %v37733_v26 = vld [vmem:[%s44729_s1 + $0x890] sm:$0xff]  }
 0x8e1   : > { %34431 = vmatprep.mubr.msk.bf16.mxu1 %vm499_vm0, %v37677_v46  ;;  %v44095_v46 = vpop.permute.xlu0 %19554 }
 0x8e4   : > { %33838 = vmatmul.mubr.msk.bf16.gmra.mrb[108].mxu0 %vm499_vm0, %v37676_v33  ;;  %v37732_v33 = vld [vmem:[%s44729_s1 + $0x898] sm:$0xff]  }
 0x8e5   : > { %33841 = vmatprep.mubr.msk.bf16.mxu0 %vm499_vm0, %v37679_v62  ;;  %v37735_v62 = vld [vmem:[%s44729_s1 + $0x8a0] sm:$0xff]  }
 0x8e8   : > { %34432 = vmatmul.mubr.msk.bf16.gmra.mrb[108].mxu1 %vm499_vm0, %v37678_v60  ;;  %v44105_v60 = vpop.permute.xlu1 %19559 }
 0x8e9   : > { %34435 = vmatprep.mubr.msk.bf16.mxu1 %vm499_vm0, %v37681_v18  ;;  %v37734_v18 = vld [vmem:[%s44729_s1 + $0x898] sm:$0xff]  }
 0x8ec   : > { %33842 = vmatmul.mubr.msk.bf16.gmra.mrb[112].mxu0 %vm499_vm0, %v37680_v3  ;;  %v44111_v3 = vpop.permute.xlu0 %19564 }
 0x8ed   : > { %33845 = vmatprep.mubr.msk.bf16.mxu0 %vm499_vm0, %v37683_v4  ;;  %v37737_v4 = vld [vmem:[%s44729_s1 + $0x8a0] sm:$0xff]  }
 0x8f0   : > { %34436 = vmatmul.mubr.msk.bf16.gmra.mrb[112].mxu1 %vm499_vm0, %v37682_v17  ;;  %v37736_v17 = vld [vmem:[%s44729_s1 + $0x8a8] sm:$0xff]  }
 0x8f1   : > { %34439 = vmatprep.mubr.msk.bf16.mxu1 %vm499_vm0, %v37685_v53  ;;  %v44121_v53 = vpop.permute.xlu1 %19569 }
 0x8f4   : > { %33846 = vmatmul.mubr.msk.bf16.gmra.mrb[116].mxu0 %vm499_vm0, %v37684_v31  ;;  %v37739_v31 = vld [vmem:[%s44729_s1 + $0x8b0] sm:$0xff]  }
 0x8f5   : > { %33849 = vmatprep.mubr.msk.bf16.mxu0 %vm499_vm0, %v37687_v39  ;;  %v44127_v39 = vpop.permute.xlu0 %19574 }
 0x8f8   : > { %34440 = vmatmul.mubr.msk.bf16.gmra.mrb[116].mxu1 %vm499_vm0, %v37686_v45  ;;  %v37738_v45 = vld [vmem:[%s44729_s1 + $0x8a8] sm:$0xff]  }
 0x8f9   : > { %34443 = vmatprep.mubr.msk.bf16.mxu1 %vm499_vm0, %v37689_v43  ;;  %v37741_v43 = vld [vmem:[%s44729_s1 + $0x8b0] sm:$0xff]  }
 0x8fc   : > { %33850 = vmatmul.mubr.msk.bf16.gmra.mrb[120].mxu0 %vm499_vm0, %v37688_v23  ;;  %v44137_v23 = vpop.permute.xlu1 %19579 }
 0x8fd   : > { %33853 = vmatprep.mubr.msk.bf16.mxu0 %vm499_vm0, %v37691_v51  ;;  %v37740_v51 = vld [vmem:[%s44729_s1 + $0x8b8] sm:$0xff]  }
 0x900   : > { %34444 = vmatmul.mubr.msk.bf16.gmra.mrb[120].mxu1 %vm499_vm0, %v37690_v16  ;;  %v44143_v16 = vpop.permute.xlu0 %19584 }
 0x901   : > { %34447 = vmatprep.mubr.msk.bf16.mxu1 %vm499_vm0, %v37693_v13  ;;  %v37743_v13 = vld [vmem:[%s44729_s1 + $0x8c0] sm:$0xff]  }
 0x904   : > { %33854 = vmatmul.mubr.msk.bf16.gmra.mrb[124].mxu0 %vm499_vm0, %v37692_v7  ;;  %v37742_v7 = vld [vmem:[%s44729_s1 + $0x8b8] sm:$0xff]  }
 0x905   : > { %33859 = vmatprep.mubr.msk.bf16.mxu0 %vm499_vm0, %v37695_v63  ;;  %v44153_v63 = vpop.permute.xlu1 %19589 }
 0x908   : > { %34448 = vmatmul.mubr.msk.bf16.gmra.mrb[124].mxu1 %vm499_vm0, %v37694_v14  ;;  %v37745_v14 = vld [vmem:[%s44729_s1 + $0x8c0] sm:$0xff]  }
 0x909   : > { %34453 = vmatprep.mubr.msk.bf16.mxu1 %vm499_vm0, %v37697_v44  ;;  %v44159_v44 = vpop.permute.xlu0 %19594 }
 0x90c   : > { %33860 = vmatmul.mubr.msk.bf16.vlgmr.msra.gmra.mrb[64].mxu0 %vm499_vm0, %v37696_v36  ;;  %v37744_v36 = vld [vmem:[%s44729_s1 + $0x8c8] sm:$0xff]  }
 0x90d   : > { %33863 = vmatprep.mubr.msk.bf16.mxu0 %vm499_vm0, %v37699_v10  ;;  %v37747_v10 = vld [vmem:[%s44729_s1 + $0x8d0] sm:$0xff]  }
 0x910   : > { %34454 = vmatmul.mubr.msk.bf16.vlgmr.msra.gmra.mrb[64].mxu1 %vm499_vm0, %v37698_v35  ;;  %v44169_v35 = vpop.permute.xlu1 %19599 }
 0x911   : > { %34457 = vmatprep.mubr.msk.bf16.mxu1 %vm499_vm0, %v37701_v56  ;;  %v37746_v56 = vld [vmem:[%s44729_s1 + $0x8c8] sm:$0xff]  }
 0x914   : > { %33864 = vmatmul.mubr.msk.bf16.gmra.mrb[68].mxu0 %vm499_vm0, %v37700_v32  ;;  %v44175_v32 = vpop.permute.xlu0 %19604 }
 0x915   : > { %33867 = vmatprep.mubr.msk.bf16.mxu0 %vm499_vm0, %v37703_v37  ;;  %v37749_v37 = vld [vmem:[%s44729_s1 + $0x8d0] sm:$0xff]  }
 0x918   : > { %34458 = vmatmul.mubr.msk.bf16.gmra.mrb[68].mxu1 %vm499_vm0, %v37702_v41  ;;  %v37748_v41 = vld [vmem:[%s44729_s1 + $0x8d8] sm:$0xff]  }
 0x919   : > { %34461 = vmatprep.mubr.msk.bf16.mxu1 %vm499_vm0, %v37705_v9  ;;  %v44185_v9 = vpop.permute.xlu1 %19609 }
 0x91c   : > { %33868 = vmatmul.mubr.msk.bf16.gmra.mrb[72].mxu0 %vm499_vm0, %v37704_v28  ;;  %v37751_v28 = vld [vmem:[%s44729_s1 + $0x8e0] sm:$0xff]  }
 0x91d   : > { %33871 = vmatprep.mubr.msk.bf16.mxu0 %vm499_vm0, %v37707_v0  ;;  %v44191_v0 = vpop.permute.xlu0 %19614 }
 0x920   : > { %34462 = vmatmul.mubr.msk.bf16.gmra.mrb[72].mxu1 %vm499_vm0, %v37706_v42  ;;  %v37750_v42 = vld [vmem:[%s44729_s1 + $0x8d8] sm:$0xff]  }
 0x921   : > { %34465 = vmatprep.mubr.msk.bf16.mxu1 %vm499_vm0, %v37709_v52  ;;  %v37753_v52 = vld [vmem:[%s44729_s1 + $0x8e0] sm:$0xff]  }
 0x924   : > { %33872 = vmatmul.mubr.msk.bf16.gmra.mrb[76].mxu0 %vm499_vm0, %v37708_v20  ;;  %v44201_v20 = vpop.permute.xlu1 %19619 }
 0x925   : > { %33875 = vmatprep.mubr.msk.bf16.mxu0 %vm499_vm0, %v37711_v1  ;;  %v37752_v1 = vld [vmem:[%s44729_s1 + $0x8e8] sm:$0xff]  }
 0x928   : > { %34466 = vmatmul.mubr.msk.bf16.gmra.mrb[76].mxu1 %vm499_vm0, %v37710_v22  ;;  %v44207_v22 = vpop.permute.xlu0 %19624 }
 0x929   : > { %34469 = vmatprep.mubr.msk.bf16.mxu1 %vm499_vm0, %v37713_v58  ;;  %v37755_v58 = vld [vmem:[%s44729_s1 + $0x8f0] sm:$0xff]  }
 0x92c   : > { %33876 = vmatmul.mubr.msk.bf16.gmra.mrb[80].mxu0 %vm499_vm0, %v37712_v54  ;;  %v37754_v54 = vld [vmem:[%s44729_s1 + $0x8e8] sm:$0xff]  }
 0x92d   : > { %33879 = vmatprep.mubr.msk.bf16.mxu0 %vm499_vm0, %v37715_v2  ;;  %v44217_v2 = vpop.permute.xlu1 %19629 }
 0x930   : > { %34470 = vmatmul.mubr.msk.bf16.gmra.mrb[80].mxu1 %vm499_vm0, %v37714_v50  ;;  %v37757_v50 = vld [vmem:[%s44729_s1 + $0x8f0] sm:$0xff]  }
 0x931   : > { %34473 = vmatprep.mubr.msk.bf16.mxu1 %vm499_vm0, %v37717_v38  ;;  %v44223_v38 = vpop.permute.xlu0 %19634 }
 0x932   : > { %44942 = vst [vmem:[#allocation2_spill] sm:$0xff] %v44223_v38 }
 0x934   : > { %33880 = vmatmul.mubr.msk.bf16.gmra.mrb[84].mxu0 %vm499_vm0, %v37716_v27  ;;  %v37756_v27 = vld [vmem:[%s44729_s1 + $0x8f8] sm:$0xff]  }
 0x935   : > { %33883 = vmatprep.mubr.msk.bf16.mxu0 %vm499_vm0, %v37719_v59  ;;  %v44230_v59 = vpop.permute.xlu1 %19639 }
 0x938   : > { %34474 = vmatmul.mubr.msk.bf16.gmra.mrb[84].mxu1 %vm499_vm0, %v37718_v57  ;;  %v37758_v57 = vld [vmem:[%s44729_s1 + $0x8f8] sm:$0xff]  }
 0x939   : > { %34477 = vmatprep.mubr.msk.bf16.mxu1 %vm499_vm0, %v37721_v34  ;;  %v44236_v34 = vpop.permute.xlu0 %19644 }
 0x93c   : > { %33884 = vmatmul.mubr.msk.bf16.gmra.mrb[88].mxu0 %vm499_vm0, %v37720_v11  ;;  %v44239_v11 = vpop.permute.xlu1 %19649 }
 0x93d   : > { %33887 = vmatprep.mubr.msk.bf16.mxu0 %vm499_vm0, %v37723_v15  ;;  %44943 = vst [vmem:[#allocation4_spill] sm:$0xff] %v44239_v11  ;;  %v44241_v15 = vpop.permute.xlu0 %19654 }
 0x93e   : > { %44944 = vst [vmem:[#allocation3_spill] sm:$0xff] %v44241_v15 }
 0x940   : > { %34478 = vmatmul.mubr.msk.bf16.gmra.mrb[88].mxu1 %vm499_vm0, %v37722_v40  ;;  %v44243_v40 = vpop.permute.xlu1 %19659 }
 0x941   : > { %34481 = vmatprep.mubr.msk.bf16.mxu1 %vm499_vm0, %v37725_v49  ;;  %44945 = vst [vmem:[#allocation7_spill] sm:$0xff] %v44243_v40  ;;  %v44245_v49 = vpop.permute.xlu0 %19664 }
 0x942   : > { %44946 = vst [vmem:[#allocation5_spill] sm:$0xff] %v44245_v49  ;;  %v44954_v49 = vld [vmem:[#allocation88_spill] sm:$0xff] }
 0x944   : > { %33888 = vmatmul.mubr.msk.bf16.gmra.mrb[92].mxu0 %vm499_vm0, %v37724_v12  ;;  %v44247_v12 = vpop.permute.xlu1 %19669 }
 0x945   : > { %33891 = vmatprep.mubr.msk.bf16.mxu0 %vm499_vm0, %v37727_v5  ;;  %44947 = vst [vmem:[#allocation8_spill] sm:$0xff] %v44247_v12  ;;  %v44249_v5 = vpop.permute.xlu0 %19674 }
 0x946   : > { %44948 = vst [vmem:[#allocation6_spill] sm:$0xff] %v44249_v5  ;;  %v44953_v5 = vld [vmem:[#allocation90_spill] sm:$0xff] }
 0x948   : > { %34482 = vmatmul.mubr.msk.bf16.gmra.mrb[92].mxu1 %vm499_vm0, %v37726_v48  ;;  %v44251_v48 = vpop.permute.xlu1 %19679 }
 0x949   : > { %34485 = vmatprep.mubr.msk.bf16.mxu1 %vm499_vm0, %v37729_v30  ;;  %44949 = vst [vmem:[#allocation11_spill] sm:$0xff] %v44251_v48  ;;  %v44253_v30 = vpop.permute.xlu0 %19684 }
 0x94a   : > { %44950 = vst [vmem:[#allocation9_spill] sm:$0xff] %v44253_v30 }
 0x94c   : > { %33892 = vmatmul.mubr.msk.bf16.gmra.mrb[96].mxu0 %vm499_vm0, %v37728_v61  ;;  %v25928_v61 = vpop.permute.xlu1 %25927 }
 0x94d   : > { %33895 = vmatprep.mubr.msk.bf16.mxu0 %vm499_vm0, %v37731_v8  ;;  %v25933_v8 = vpop.permute.xlu0 %25932 }
 0x950   : > { %34486 = vmatmul.mubr.msk.bf16.gmra.mrb[96].mxu1 %vm499_vm0, %v37730_v21  ;;  %v25938_v21 = vpop.permute.xlu1 %25937 }
 0x951   : > { %34489 = vmatprep.mubr.msk.bf16.mxu1 %vm499_vm0, %v37733_v26  ;;  %v25943_v26 = vpop.permute.xlu0 %25942 }
 0x954   : > { %33896 = vmatmul.mubr.msk.bf16.gmra.mrb[100].mxu0 %vm499_vm0, %v37732_v33  ;;  %v44255_v33 = vpop.permute.xlu1 %25947 }
 0x955   : > { %33899 = vmatprep.mubr.msk.bf16.mxu0 %vm499_vm0, %v37735_v62  ;;  %v44257_v62 = vpop.permute.xlu0 %25952 }
 0x958   : > { %34490 = vmatmul.mubr.msk.bf16.gmra.mrb[100].mxu1 %vm499_vm0, %v37734_v18  ;;  %v44259_v18 = vpop.permute.xlu1 %25957 }
 0x959   : > { %34493 = vmatprep.mubr.msk.bf16.mxu1 %vm499_vm0, %v37737_v4  ;;  %v44261_v4 = vpop.permute.xlu0 %25962 }
 0x95c   : > { %33900 = vmatmul.mubr.msk.bf16.gmra.mrb[104].mxu0 %vm499_vm0, %v37736_v17  ;;  %v44263_v17 = vpop.permute.xlu1 %25967 }
 0x95d   : > { %33903 = vmatprep.mubr.msk.bf16.mxu0 %vm499_vm0, %v37739_v31  ;;  %v44265_v31 = vpop.permute.xlu0 %25972 }
 0x960   : > { %34494 = vmatmul.mubr.msk.bf16.gmra.mrb[104].mxu1 %vm499_vm0, %v37738_v45  ;;  %v44267_v45 = vpop.permute.xlu1 %25977 }
 0x961   : > { %34497 = vmatprep.mubr.msk.bf16.mxu1 %vm499_vm0, %v37741_v43  ;;  %v44269_v43 = vpop.permute.xlu0 %25982 }
 0x964   : > { %33904 = vmatmul.mubr.msk.bf16.gmra.mrb[108].mxu0 %vm499_vm0, %v37740_v51  ;;  %v44271_v51 = vpop.permute.xlu1 %25987 }
 0x965   : > { %33907 = vmatprep.mubr.msk.bf16.mxu0 %vm499_vm0, %v37743_v13  ;;  %v44273_v13 = vpop.permute.xlu0 %25992 }
 0x968   : > { %34498 = vmatmul.mubr.msk.bf16.gmra.mrb[108].mxu1 %vm499_vm0, %v37742_v7  ;;  %v44275_v7 = vpop.permute.xlu1 %25997 }
 0x969   : > { %34501 = vmatprep.mubr.msk.bf16.mxu1 %vm499_vm0, %v37745_v14  ;;  %v44277_v14 = vpop.permute.xlu0 %26002 }
 0x96c   : > { %33908 = vmatmul.mubr.msk.bf16.gmra.mrb[112].mxu0 %vm499_vm0, %v37744_v36  ;;  %v44279_v36 = vpop.permute.xlu1 %26007 }
 0x96d   : > { %33911 = vmatprep.mubr.msk.bf16.mxu0 %vm499_vm0, %v37747_v10  ;;  %v44281_v10 = vpop.permute.xlu0 %26012 }
 0x970   : > { %34502 = vmatmul.mubr.msk.bf16.gmra.mrb[112].mxu1 %vm499_vm0, %v37746_v56  ;;  %v44283_v56 = vpop.permute.xlu1 %26017 }
 0x971   : > { %34505 = vmatprep.mubr.msk.bf16.mxu1 %vm499_vm0, %v37749_v37  ;;  %v44285_v37 = vpop.permute.xlu0 %26022 }
 0x974   : > { %33912 = vmatmul.mubr.msk.bf16.gmra.mrb[116].mxu0 %vm499_vm0, %v37748_v41  ;;  %v44287_v41 = vpop.permute.xlu1 %26027 }
 0x975   : > { %33915 = vmatprep.mubr.msk.bf16.mxu0 %vm499_vm0, %v37751_v28  ;;  %v44289_v28 = vpop.permute.xlu0 %26032 }
 0x978   : > { %34506 = vmatmul.mubr.msk.bf16.gmra.mrb[116].mxu1 %vm499_vm0, %v37750_v42  ;;  %v44294_v48 = vpop.permute.xlu1 %26037 }
 0x979   : > { %34509 = vmatprep.mubr.msk.bf16.mxu1 %vm499_vm0, %v37753_v52  ;;  %v44951_v52 = vld [vmem:[#allocation89_spill] sm:$0xff] }
 0x97c   : > { %33916 = vmatmul.mubr.msk.bf16.gmra.mrb[120].mxu0 %vm499_vm0, %v37752_v1 }
 0x97d   : > { %33919 = vmatprep.mubr.msk.bf16.mxu0 %vm499_vm0, %v37755_v58 }
 0x980   : > { %34510 = vmatmul.mubr.msk.bf16.gmra.mrb[120].mxu1 %vm499_vm0, %v37754_v54  ;;  %v44952_v54 = vld [vmem:[#allocation87_spill] sm:$0xff] }
 0x981   : > { %34513 = vmatprep.mubr.msk.bf16.mxu1 %vm499_vm0, %v37757_v50 }
 0x984   : > { %33920 = vmatmul.mubr.msk.bf16.gmra.mrb[124].mxu0 %vm499_vm0, %v37756_v27 }
 0x988   : > { %34514 = vmatmul.mubr.msk.bf16.gmra.mrb[124].mxu1 %vm499_vm0, %v37758_v57 }
 0x9df   : > { %v33861_v42 = vpop.f32.mrb[64].mxu0 }
 0x9e0   : > { %v19689_v1 = vadd.f32 %v33861_v42, %v44951_v52  ;;  %v18984_v58 = vpop.f32.mrb[65].mxu0 }
 0x9e1   : > { %v19687_v50 = vadd.f32 %v44952_v54, %v18984_v58  ;;  %v33862_v27 = vpop.f32.mrb[66].mxu0  ;;  %v44299_v58 = vpop.permute.xlu0 %26042 }
 0x9e2   : > { %v19753_v57 = vmax.f32 %v19689_v1, 0.0  ;;  %v19690_v30 = vadd.f32 %v33862_v27, %v44953_v5  ;;  %v18987_v12 = vpop.f32.mrb[67].mxu0 }
 0x9e3   : > { %v19751_v15 = vmax.f32 %v19687_v50, 0.0  ;;  %v19688_v11 = vadd.f32 %v44954_v49, %v18987_v12  ;;  %v34455_v40 = vpop.f32.mrb[64].mxu1 }
 0x9e4   : > { %19817 = vst.msk [vmem:[%s41646_s20 + $0x50] sm:$0xff] %vm6698_vm1, %v19753_v57  ;;  %v19754_v42 = vmax.f32 %v19690_v30, 0.0  ;;  %v26247_v52 = vadd.f32 %v34455_v40, %v25938_v21  ;;  %v25542_v38 = vpop.f32.mrb[65].mxu1 }
 0x9e5   : > { %19815 = vst.msk [vmem:[%s41646_s20 + $0x10] sm:$0xff] %vm6698_vm1, %v19751_v15  ;;  %v19752_v1 = vmax.f32 %v19688_v11, 0.0  ;;  %v26245_v5 = vadd.f32 %v25928_v61, %v25542_v38  ;;  %v34456_v54 = vpop.f32.mrb[66].mxu1  ;;  %v44955_v15 = vld [vmem:[#allocation93_spill] sm:$0xff]  ;;  %v44310_v61 = vpop.permute.xlu1 %26047 }
 0x9e6   : > { %19818 = vst.msk [vmem:[%s41646_s20 + $0x70] sm:$0xff] %vm6698_vm1, %v19754_v42  ;;  %v26311_v50 = vmax.f32 %v26247_v52, 0.0  ;;  %v26248_v49 = vadd.f32 %v34456_v54, %v25943_v26  ;;  %v25545_v12 = vpop.f32.mrb[67].mxu1  ;;  %v44956_v26 = vld [vmem:[#allocation91_spill] sm:$0xff] }
 0x9e7   : > { %19816 = vst.msk [vmem:[%s41646_s20 + $0x30] sm:$0xff] %vm6698_vm1, %v19752_v1  ;;  %v26309_v30 = vmax.f32 %v26245_v5, 0.0  ;;  %v26246_v27 = vadd.f32 %v25933_v8, %v25545_v12  ;;  %v33865_v40 = vpop.f32.mrb[68].mxu0  ;;  %v44957_v1 = vld [vmem:[#allocation94_spill] sm:$0xff]  ;;  %v44958_v12 = vld [vmem:[#allocation92_spill] sm:$0xff] }
 0x9e8   : > { %26375 = vst.msk [vmem:[%s41646_s20 + $0x58] sm:$0xff] %vm6698_vm1, %v26311_v50  ;;  %v26312_v21 = vmax.f32 %v26248_v49, 0.0  ;;  %v19693_v11 = vadd.f32 %v33865_v40, %v44955_v15  ;;  %v19000_v38 = vpop.f32.mrb[69].mxu0  ;;  %v44318_v50 = vpop.permute.xlu0 %26052 }
 0x9e9   : > { %26373 = vst.msk [vmem:[%s41646_s20 + $0x18] sm:$0xff] %vm6698_vm1, %v26309_v30  ;;  %v26310_v57 = vmax.f32 %v26246_v27, 0.0  ;;  %v19691_v42 = vadd.f32 %v44956_v26, %v19000_v38  ;;  %v33866_v52 = vpop.f32.mrb[70].mxu0 }
 0x9ea   : > { %26376 = vst.msk [vmem:[%s41646_s20 + $0x78] sm:$0xff] %vm6698_vm1, %v26312_v21  ;;  %v19757_v8 = vmax.f32 %v19693_v11, 0.0  ;;  %v19694_v5 = vadd.f32 %v33866_v52, %v44957_v1  ;;  %v19003_v54 = vpop.f32.mrb[71].mxu0 }
 0x9eb   : > { %26374 = vst.msk [vmem:[%s41646_s20 + $0x38] sm:$0xff] %vm6698_vm1, %v26310_v57  ;;  %v19755_v49 = vmax.f32 %v19691_v42, 0.0  ;;  %v19692_v30 = vadd.f32 %v44958_v12, %v19003_v54  ;;  %v34459_v27 = vpop.f32.mrb[68].mxu1  ;;  %v44959_v54 = vld [vmem:[#allocation97_spill] sm:$0xff] }
 0x9ec   : > { %19821 = vst.msk [vmem:[%s41646_s20 + $0xd0] sm:$0xff] %vm6698_vm1, %v19757_v8  ;;  %v19758_v40 = vmax.f32 %v19694_v5, 0.0  ;;  %v26251_v21 = vadd.f32 %v34459_v27, %v44259_v18  ;;  %v25558_v15 = vpop.f32.mrb[69].mxu1  ;;  %v44332_v8 = vpop.permute.xlu1 %26057  ;;  %v44960_v27 = vld [vmem:[#allocation95_spill] sm:$0xff] }
 0x9ed   : > { %19819 = vst.msk [vmem:[%s41646_s20 + $0x90] sm:$0xff] %vm6698_vm1, %v19755_v49  ;;  %v19756_v11 = vmax.f32 %v19692_v30, 0.0  ;;  %v26249_v38 = vadd.f32 %v44255_v33, %v25558_v15  ;;  %v34460_v26 = vpop.f32.mrb[70].mxu1  ;;  %v44340_v30 = vpop.permute.xlu0 %26062  ;;  %v44961_v15 = vld [vmem:[#allocation98_spill] sm:$0xff] }
 0x9ee   : > { %19822 = vst.msk [vmem:[%s41646_s20 + $0xf0] sm:$0xff] %vm6698_vm1, %v19758_v40  ;;  %v26315_v57 = vmax.f32 %v26251_v21, 0.0  ;;  %v26252_v42 = vadd.f32 %v34460_v26, %v44261_v4  ;;  %v25561_v52 = vpop.f32.mrb[71].mxu1 }
 0x9ef   : > { %19820 = vst.msk [vmem:[%s41646_s20 + $0xb0] sm:$0xff] %vm6698_vm1, %v19756_v11  ;;  %v26313_v18 = vmax.f32 %v26249_v38, 0.0  ;;  %v26250_v1 = vadd.f32 %v44257_v62, %v25561_v52  ;;  %v33869_v5 = vpop.f32.mrb[72].mxu0 }
 0x9f0   : > { %26379 = vst.msk [vmem:[%s41646_s20 + $0xd8] sm:$0xff] %vm6698_vm1, %v26315_v57  ;;  %v26316_v33 = vmax.f32 %v26252_v42, 0.0  ;;  %v19697_v49 = vadd.f32 %v33869_v5, %v44959_v54  ;;  %v19016_v12 = vpop.f32.mrb[73].mxu0  ;;  %v44962_v57 = vld [vmem:[#allocation96_spill] sm:$0xff] }
 0x9f1   : > { %26377 = vst.msk [vmem:[%s41646_s20 + $0x98] sm:$0xff] %vm6698_vm1, %v26313_v18  ;;  %v26314_v4 = vmax.f32 %v26250_v1, 0.0  ;;  %v19695_v40 = vadd.f32 %v44960_v27, %v19016_v12  ;;  %v33870_v21 = vpop.f32.mrb[74].mxu0 }
 0x9f2   : > { %26380 = vst.msk [vmem:[%s41646_s20 + $0xf8] sm:$0xff] %vm6698_vm1, %v26316_v33  ;;  %v19761_v62 = vmax.f32 %v19697_v49, 0.0  ;;  %v19698_v11 = vadd.f32 %v33870_v21, %v44961_v15  ;;  %v19019_v38 = vpop.f32.mrb[75].mxu0  ;;  %v44354_v33 = vpop.permute.xlu1 %26067 }
 0x9f3   : > { %26378 = vst.msk [vmem:[%s41646_s20 + $0xb8] sm:$0xff] %vm6698_vm1, %v26314_v4  ;;  %v19759_v26 = vmax.f32 %v19695_v40, 0.0  ;;  %v19696_v42 = vadd.f32 %v44962_v57, %v19019_v38  ;;  %v34463_v52 = vpop.f32.mrb[72].mxu1  ;;  %v44362_v21 = vpop.permute.xlu0 %26072  ;;  %v44964_v57 = vld [vmem:[#allocation99_spill] sm:$0xff] }
 0x9f4   : > { %19825 = vst.msk [vmem:[%s41646_s20 + $0x150] sm:$0xff] %vm6698_vm1, %v19761_v62  ;;  %v19762_v18 = vmax.f32 %v19698_v11, 0.0  ;;  %v26255_v1 = vadd.f32 %v34463_v52, %v44267_v45  ;;  %v25574_v5 = vpop.f32.mrb[73].mxu1  ;;  %v44963_v11 = vld [vmem:[#allocation101_spill] sm:$0xff] }
 0x9f5   : > { %19823 = vst.msk [vmem:[%s41646_s20 + $0x110] sm:$0xff] %vm6698_vm1, %v19759_v26  ;;  %v19760_v54 = vmax.f32 %v19696_v42, 0.0  ;;  %v26253_v49 = vadd.f32 %v44263_v17, %v25574_v5  ;;  %v34464_v12 = vpop.f32.mrb[74].mxu1 }
 0x9f6   : > { %19826 = vst.msk [vmem:[%s41646_s20 + $0x170] sm:$0xff] %vm6698_vm1, %v19762_v18  ;;  %v26319_v4 = vmax.f32 %v26255_v1, 0.0  ;;  %v26256_v27 = vadd.f32 %v34464_v12, %v44269_v43  ;;  %v25577_v40 = vpop.f32.mrb[75].mxu1  ;;  %v44965_v1 = vld [vmem:[#allocation102_spill] sm:$0xff]  ;;  %v44966_v12 = vld [vmem:[#allocation100_spill] sm:$0xff] }
 0x9f7   : > { %19824 = vst.msk [vmem:[%s41646_s20 + $0x130] sm:$0xff] %vm6698_vm1, %v19760_v54  ;;  %v26317_v45 = vmax.f32 %v26253_v49, 0.0  ;;  %v26254_v62 = vadd.f32 %v44265_v31, %v25577_v40  ;;  %v33873_v15 = vpop.f32.mrb[76].mxu0  ;;  %v44376_v54 = vpop.permute.xlu1 %26077 }
 0x9f8   : > { %26383 = vst.msk [vmem:[%s41646_s20 + $0x158] sm:$0xff] %vm6698_vm1, %v26319_v4  ;;  %v26320_v17 = vmax.f32 %v26256_v27, 0.0  ;;  %v19701_v38 = vadd.f32 %v33873_v15, %v44963_v11  ;;  %v19032_v26 = vpop.f32.mrb[77].mxu0  ;;  %v44384_v15 = vpop.permute.xlu0 %26082 }
 0x9f9   : > { %26381 = vst.msk [vmem:[%s41646_s20 + $0x118] sm:$0xff] %vm6698_vm1, %v26317_v45  ;;  %v26318_v43 = vmax.f32 %v26254_v62, 0.0  ;;  %v19699_v42 = vadd.f32 %v44964_v57, %v19032_v26  ;;  %v33874_v52 = vpop.f32.mrb[78].mxu0 }
 0x9fa   : > { %26384 = vst.msk [vmem:[%s41646_s20 + $0x178] sm:$0xff] %vm6698_vm1, %v26320_v17  ;;  %v19765_v18 = vmax.f32 %v19701_v38, 0.0  ;;  %v19702_v31 = vadd.f32 %v33874_v52, %v44965_v1  ;;  %v19035_v5 = vpop.f32.mrb[79].mxu0  ;;  %v44967_v1 = vld [vmem:[#allocation105_spill] sm:$0xff] }
 0x9fb   : > { %26382 = vst.msk [vmem:[%s41646_s20 + $0x138] sm:$0xff] %vm6698_vm1, %v26318_v43  ;;  %v19763_v49 = vmax.f32 %v19699_v42, 0.0  ;;  %v19700_v4 = vadd.f32 %v44966_v12, %v19035_v5  ;;  %v34467_v27 = vpop.f32.mrb[76].mxu1  ;;  %v44398_v5 = vpop.permute.xlu1 %26087 }
 0x9fc   : > { %19829 = vst.msk [vmem:[%s41646_s20 + $0x1d0] sm:$0xff] %vm6698_vm1, %v19765_v18  ;;  %v19766_v40 = vmax.f32 %v19702_v31, 0.0  ;;  %v26259_v45 = vadd.f32 %v34467_v27, %v44275_v7  ;;  %v25590_v62 = vpop.f32.mrb[77].mxu1  ;;  %v44969_v27 = vld [vmem:[#allocation106_spill] sm:$0xff] }
 0x9fd   : > { %19827 = vst.msk [vmem:[%s41646_s20 + $0x190] sm:$0xff] %vm6698_vm1, %v19763_v49  ;;  %v19764_v17 = vmax.f32 %v19700_v4, 0.0  ;;  %v26257_v11 = vadd.f32 %v44271_v51, %v25590_v62  ;;  %v34468_v38 = vpop.f32.mrb[78].mxu1  ;;  %v44968_v49 = vld [vmem:[#allocation103_spill] sm:$0xff]  ;;  %v44406_v62 = vpop.permute.xlu0 %26092 }
 0x9fe   : > { %19830 = vst.msk [vmem:[%s41646_s20 + $0x1f0] sm:$0xff] %vm6698_vm1, %v19766_v40  ;;  %v26323_v26 = vmax.f32 %v26259_v45, 0.0  ;;  %v26260_v43 = vadd.f32 %v34468_v38, %v44277_v14  ;;  %v25593_v57 = vpop.f32.mrb[79].mxu1 }
 0x9ff   : > { %19828 = vst.msk [vmem:[%s41646_s20 + $0x1b0] sm:$0xff] %vm6698_vm1, %v19764_v17  ;;  %v26321_v7 = vmax.f32 %v26257_v11, 0.0  ;;  %v26258_v42 = vadd.f32 %v44273_v13, %v25593_v57  ;;  %v33877_v52 = vpop.f32.mrb[80].mxu0  ;;  %v44970_v11 = vld [vmem:[#allocation104_spill] sm:$0xff] }
 0xa00   : > { %26387 = vst.msk [vmem:[%s41646_s20 + $0x1d8] sm:$0xff] %vm6698_vm1, %v26323_v26  ;;  %v26324_v18 = vmax.f32 %v26260_v43, 0.0  ;;  %v19705_v51 = vadd.f32 %v33877_v52, %v44967_v1  ;;  %v19048_v31 = vpop.f32.mrb[81].mxu0 }
 0xa01   : > { %26385 = vst.msk [vmem:[%s41646_s20 + $0x198] sm:$0xff] %vm6698_vm1, %v26321_v7  ;;  %v26322_v14 = vmax.f32 %v26258_v42, 0.0  ;;  %v19703_v12 = vadd.f32 %v44968_v49, %v19048_v31  ;;  %v33878_v4 = vpop.f32.mrb[82].mxu0 }
 0xa02   : > { %26388 = vst.msk [vmem:[%s41646_s20 + $0x1f8] sm:$0xff] %vm6698_vm1, %v26324_v18  ;;  %v19769_v13 = vmax.f32 %v19705_v51, 0.0  ;;  %v19706_v40 = vadd.f32 %v33878_v4, %v44969_v27  ;;  %v19051_v45 = vpop.f32.mrb[83].mxu0  ;;  %v44971_v4 = vld [vmem:[#allocation109_spill] sm:$0xff] }
 0xa03   : > { %26386 = vst.msk [vmem:[%s41646_s20 + $0x1b8] sm:$0xff] %vm6698_vm1, %v26322_v14  ;;  %v19767_v17 = vmax.f32 %v19703_v12, 0.0  ;;  %v19704_v38 = vadd.f32 %v44970_v11, %v19051_v45  ;;  %v34471_v26 = vpop.f32.mrb[80].mxu1  ;;  %v44420_v14 = vpop.permute.xlu1 %26097  ;;  %v44972_v45 = vld [vmem:[#allocation107_spill] sm:$0xff] }
 0xa04   : > { %19833 = vst.msk [vmem:[%s41646_s20 + $0x250] sm:$0xff] %vm6698_vm1, %v19769_v13  ;;  %v19770_v43 = vmax.f32 %v19706_v40, 0.0  ;;  %v26263_v57 = vadd.f32 %v34471_v26, %v44283_v56  ;;  %v25606_v7 = vpop.f32.mrb[81].mxu1  ;;  %v44428_v40 = vpop.permute.xlu0 %26102 }
 0xa05   : > { %19831 = vst.msk [vmem:[%s41646_s20 + $0x210] sm:$0xff] %vm6698_vm1, %v19767_v17  ;;  %v19768_v42 = vmax.f32 %v19704_v38, 0.0  ;;  %v26261_v52 = vadd.f32 %v44279_v36, %v25606_v7  ;;  %v34472_v18 = vpop.f32.mrb[82].mxu1  ;;  %v44973_v38 = vld [vmem:[#allocation110_spill] sm:$0xff]  ;;  %v44974_v7 = vld [vmem:[#allocation108_spill] sm:$0xff] }
 0xa06   : > { %19834 = vst.msk [vmem:[%s41646_s20 + $0x270] sm:$0xff] %vm6698_vm1, %v19770_v43  ;;  %v26327_v1 = vmax.f32 %v26263_v57, 0.0  ;;  %v26264_v51 = vadd.f32 %v34472_v18, %v44285_v37  ;;  %v25609_v31 = vpop.f32.mrb[83].mxu1 }
 0xa07   : > { %19832 = vst.msk [vmem:[%s41646_s20 + $0x230] sm:$0xff] %vm6698_vm1, %v19768_v42  ;;  %v26325_v56 = vmax.f32 %v26261_v52, 0.0  ;;  %v26262_v49 = vadd.f32 %v44281_v10, %v25609_v31  ;;  %v33881_v12 = vpop.f32.mrb[84].mxu0  ;;  %v44442_v31 = vpop.permute.xlu1 %26107 }
 0xa08   : > { %26391 = vst.msk [vmem:[%s41646_s20 + $0x258] sm:$0xff] %vm6698_vm1, %v26327_v1  ;;  %v26328_v36 = vmax.f32 %v26264_v51, 0.0  ;;  %v19709_v13 = vadd.f32 %v33881_v12, %v44971_v4  ;;  %v19064_v27 = vpop.f32.mrb[85].mxu0 }
 0xa09   : > { %26389 = vst.msk [vmem:[%s41646_s20 + $0x218] sm:$0xff] %vm6698_vm1, %v26325_v56  ;;  %v26326_v37 = vmax.f32 %v26262_v49, 0.0  ;;  %v19707_v17 = vadd.f32 %v44972_v45, %v19064_v27  ;;  %v33882_v11 = vpop.f32.mrb[86].mxu0  ;;  %v44450_v27 = vpop.permute.xlu0 %26112 }
 0xa0a   : > { %26392 = vst.msk [vmem:[%s41646_s20 + $0x278] sm:$0xff] %vm6698_vm1, %v26328_v36  ;;  %v19773_v10 = vmax.f32 %v19709_v13, 0.0  ;;  %v19710_v26 = vadd.f32 %v33882_v11, %v44973_v38  ;;  %v19067_v43 = vpop.f32.mrb[87].mxu0  ;;  %v44976_v38 = vld [vmem:[#allocation111_spill] sm:$0xff] }
 0xa0b   : > { %26390 = vst.msk [vmem:[%s41646_s20 + $0x238] sm:$0xff] %vm6698_vm1, %v26326_v37  ;;  %v19771_v57 = vmax.f32 %v19707_v17, 0.0  ;;  %v19708_v42 = vadd.f32 %v44974_v7, %v19067_v43  ;;  %v34475_v52 = vpop.f32.mrb[84].mxu1  ;;  %v44975_v17 = vld [vmem:[#allocation113_spill] sm:$0xff]  ;;  %v44977_v7 = vld [vmem:[#allocation114_spill] sm:$0xff] }
 0xa0c   : > { %19837 = vst.msk [vmem:[%s41646_s20 + $0x2d0] sm:$0xff] %vm6698_vm1, %v19773_v10  ;;  %v19774_v18 = vmax.f32 %v19710_v26, 0.0  ;;  %v26267_v1 = vadd.f32 %v34475_v52, %v44294_v48  ;;  %v25622_v51 = vpop.f32.mrb[85].mxu1  ;;  %v44464_v52 = vpop.permute.xlu1 %26117 }
 0xa0d   : > { %19835 = vst.msk [vmem:[%s41646_s20 + $0x290] sm:$0xff] %vm6698_vm1, %v19771_v57  ;;  %v19772_v56 = vmax.f32 %v19708_v42, 0.0  ;;  %v26265_v49 = vadd.f32 %v44287_v41, %v25622_v51  ;;  %v34476_v12 = vpop.f32.mrb[86].mxu1 }
 0xa0e   : > { %19838 = vst.msk [vmem:[%s41646_s20 + $0x2f0] sm:$0xff] %vm6698_vm1, %v19774_v18  ;;  %v26331_v36 = vmax.f32 %v26267_v1, 0.0  ;;  %v26268_v4 = vadd.f32 %v34476_v12, %v44299_v58  ;;  %v25625_v13 = vpop.f32.mrb[87].mxu1  ;;  %v44978_v1 = vld [vmem:[#allocation112_spill] sm:$0xff] }
 0xa0f   : > { %19836 = vst.msk [vmem:[%s41646_s20 + $0x2b0] sm:$0xff] %vm6698_vm1, %v19772_v56  ;;  %v26329_v48 = vmax.f32 %v26265_v49, 0.0  ;;  %v26266_v37 = vadd.f32 %v44289_v28, %v25625_v13  ;;  %v33885_v45 = vpop.f32.mrb[88].mxu0 }
 0xa10   : > { %26395 = vst.msk [vmem:[%s41646_s20 + $0x2d8] sm:$0xff] %vm6698_vm1, %v26331_v36  ;;  %v26332_v41 = vmax.f32 %v26268_v4, 0.0  ;;  %v19713_v11 = vadd.f32 %v33885_v45, %v44975_v17  ;;  %v19080_v10 = vpop.f32.mrb[89].mxu0  ;;  %v44472_v4 = vpop.permute.xlu0 %26122 }
 0xa11   : > { %26393 = vst.msk [vmem:[%s41646_s20 + $0x298] sm:$0xff] %vm6698_vm1, %v26329_v48  ;;  %v26330_v58 = vmax.f32 %v26266_v37, 0.0  ;;  %v19711_v26 = vadd.f32 %v44976_v38, %v19080_v10  ;;  %v33886_v43 = vpop.f32.mrb[90].mxu0 }
 0xa12   : > { %26396 = vst.msk [vmem:[%s41646_s20 + $0x2f8] sm:$0xff] %vm6698_vm1, %v26332_v41  ;;  %v19777_v57 = vmax.f32 %v19713_v11, 0.0  ;;  %v19714_v28 = vadd.f32 %v33886_v43, %v44977_v7  ;;  %v19083_v42 = vpop.f32.mrb[91].mxu0  ;;  %v44979_v43 = vld [vmem:[#allocation115_spill] sm:$0xff] }
 0xa13   : > { %26394 = vst.msk [vmem:[%s41646_s20 + $0x2b8] sm:$0xff] %vm6698_vm1, %v26330_v58  ;;  %v19775_v18 = vmax.f32 %v19711_v26, 0.0  ;;  %v19712_v51 = vadd.f32 %v44978_v1, %v19083_v42  ;;  %v34479_v56 = vpop.f32.mrb[88].mxu1  ;;  %v44486_v26 = vpop.permute.xlu1 %26127  ;;  %v44980_v1 = vld [vmem:[#allocation117_spill] sm:$0xff] }
 0xa14   : > { %19841 = vst.msk [vmem:[%s41646_s20 + $0x350] sm:$0xff] %vm6698_vm1, %v19777_v57  ;;  %v19778_v49 = vmax.f32 %v19714_v28, 0.0  ;;  %v26271_v12 = vadd.f32 %v34479_v56, %v44332_v8  ;;  %v25638_v36 = vpop.f32.mrb[89].mxu1 }
 0xa15   : > { %19839 = vst.msk [vmem:[%s41646_s20 + $0x310] sm:$0xff] %vm6698_vm1, %v19775_v18  ;;  %v19776_v13 = vmax.f32 %v19712_v51, 0.0  ;;  %v26269_v48 = vadd.f32 %v44310_v61, %v25638_v36  ;;  %v34480_v37 = vpop.f32.mrb[90].mxu1  ;;  %v44494_v18 = vpop.permute.xlu0 %26132 }
 0xa16   : > { %19842 = vst.msk [vmem:[%s41646_s20 + $0x370] sm:$0xff] %vm6698_vm1, %v19778_v49  ;;  %v26335_v45 = vmax.f32 %v26271_v12, 0.0  ;;  %v26272_v41 = vadd.f32 %v34480_v37, %v44340_v30  ;;  %v25641_v17 = vpop.f32.mrb[91].mxu1 }
 0xa17   : > { %19840 = vst.msk [vmem:[%s41646_s20 + $0x330] sm:$0xff] %vm6698_vm1, %v19776_v13  ;;  %v26333_v8 = vmax.f32 %v26269_v48, 0.0  ;;  %v26270_v11 = vadd.f32 %v44318_v50, %v25641_v17  ;;  %v33889_v10 = vpop.f32.mrb[92].mxu0  ;;  %v44508_v17 = vpop.permute.xlu1 %26137 }
 0xa18   : > { %26399 = vst.msk [vmem:[%s41646_s20 + $0x358] sm:$0xff] %vm6698_vm1, %v26335_v45  ;;  %v26336_v58 = vmax.f32 %v26272_v41, 0.0  ;;  %v19717_v61 = vadd.f32 %v33889_v10, %v44041_v19  ;;  %v19096_v38 = vpop.f32.mrb[93].mxu0 }
 0xa19   : > { %26397 = vst.msk [vmem:[%s41646_s20 + $0x318] sm:$0xff] %vm6698_vm1, %v26333_v8  ;;  %v26334_v30 = vmax.f32 %v26270_v11, 0.0  ;;  %v19715_v57 = vadd.f32 %v44979_v43, %v19096_v38  ;;  %v33890_v7 = vpop.f32.mrb[94].mxu0 }
 0xa1a   : > { %26400 = vst.msk [vmem:[%s41646_s20 + $0x378] sm:$0xff] %vm6698_vm1, %v26336_v58  ;;  %v19781_v50 = vmax.f32 %v19717_v61, 0.0  ;;  %v19718_v28 = vadd.f32 %v33890_v7, %v44047_v55  ;;  %v19099_v42 = vpop.f32.mrb[95].mxu0  ;;  %v44516_v61 = vpop.permute.xlu0 %26142 }
 0xa1b   : > { %26398 = vst.msk [vmem:[%s41646_s20 + $0x338] sm:$0xff] %vm6698_vm1, %v26334_v30  ;;  %v19779_v19 = vmax.f32 %v19715_v57, 0.0  ;;  %v19716_v51 = vadd.f32 %v44980_v1, %v19099_v42  ;;  %v34483_v56 = vpop.f32.mrb[92].mxu1 }
 0xa1c   : > { %19845 = vst.msk [vmem:[%s41646_s20 + $0x3d0] sm:$0xff] %vm6698_vm1, %v19781_v50  ;;  %v19782_v49 = vmax.f32 %v19718_v28, 0.0  ;;  %v26275_v12 = vadd.f32 %v34483_v56, %v44376_v54  ;;  %v25654_v36 = vpop.f32.mrb[93].mxu1 }
 0xa1d   : > { %19843 = vst.msk [vmem:[%s41646_s20 + $0x390] sm:$0xff] %vm6698_vm1, %v19779_v19  ;;  %v19780_v55 = vmax.f32 %v19716_v51, 0.0  ;;  %v26273_v13 = vadd.f32 %v44354_v33, %v25654_v36  ;;  %v34484_v48 = vpop.f32.mrb[94].mxu1  ;;  %v44530_v19 = vpop.permute.xlu1 %26147 }
 0xa1e   : > { %19846 = vst.msk [vmem:[%s41646_s20 + $0x3f0] sm:$0xff] %vm6698_vm1, %v19782_v49  ;;  %v26339_v37 = vmax.f32 %v26275_v12, 0.0  ;;  %v26276_v45 = vadd.f32 %v34484_v48, %v44384_v15  ;;  %v25657_v41 = vpop.f32.mrb[95].mxu1  ;;  %v44538_v12 = vpop.permute.xlu0 %26152 }
 0xa1f   : > { %19844 = vst.msk [vmem:[%s41646_s20 + $0x3b0] sm:$0xff] %vm6698_vm1, %v19780_v55  ;;  %v26337_v54 = vmax.f32 %v26273_v13, 0.0  ;;  %v26274_v8 = vadd.f32 %v44362_v21, %v25657_v41  ;;  %v33893_v11 = vpop.f32.mrb[96].mxu0 }
 0xa20   : > { %26403 = vst.msk [vmem:[%s41646_s20 + $0x3d8] sm:$0xff] %vm6698_vm1, %v26339_v37  ;;  %v26340_v33 = vmax.f32 %v26276_v45, 0.0  ;;  %v19721_v10 = vadd.f32 %v33893_v11, %v44073_v29  ;;  %v19112_v58 = vpop.f32.mrb[97].mxu0 }
 0xa21   : > { %26401 = vst.msk [vmem:[%s41646_s20 + $0x398] sm:$0xff] %vm6698_vm1, %v26337_v54  ;;  %v26338_v15 = vmax.f32 %v26274_v8, 0.0  ;;  %v19719_v38 = vadd.f32 %v44057_v24, %v19112_v58  ;;  %v33894_v30 = vpop.f32.mrb[98].mxu0  ;;  %v44552_v8 = vpop.permute.xlu1 %26157 }
 0xa22   : > { %26404 = vst.msk [vmem:[%s41646_s20 + $0x3f8] sm:$0xff] %vm6698_vm1, %v26340_v33  ;;  %v19785_v21 = vmax.f32 %v19721_v10, 0.0  ;;  %v19722_v43 = vadd.f32 %v33894_v30, %v44079_v6  ;;  %v19115_v57 = vpop.f32.mrb[99].mxu0 }
 0xa23   : > { %26402 = vst.msk [vmem:[%s41646_s20 + $0x3b8] sm:$0xff] %vm6698_vm1, %v26338_v15  ;;  %v19783_v29 = vmax.f32 %v19719_v38, 0.0  ;;  %v19720_v7 = vadd.f32 %v44063_v25, %v19115_v57  ;;  %v34487_v50 = vpop.f32.mrb[96].mxu1  ;;  %v44560_v15 = vpop.permute.xlu0 %26162 }
 0xa24   : > { %19849 = vst.msk [vmem:[%s41646_s20 + $0x450] sm:$0xff] %vm6698_vm1, %v19785_v21  ;;  %v19786_v28 = vmax.f32 %v19722_v43, 0.0  ;;  %v26279_v24 = vadd.f32 %v34487_v50, %v44420_v14  ;;  %v25670_v42 = vpop.f32.mrb[97].mxu1 }
 0xa25   : > { %19847 = vst.msk [vmem:[%s41646_s20 + $0x410] sm:$0xff] %vm6698_vm1, %v19783_v29  ;;  %v19784_v6 = vmax.f32 %v19720_v7, 0.0  ;;  %v26277_v1 = vadd.f32 %v44398_v5, %v25670_v42  ;;  %v34488_v51 = vpop.f32.mrb[98].mxu1 }
 0xa26   : > { %19850 = vst.msk [vmem:[%s41646_s20 + $0x470] sm:$0xff] %vm6698_vm1, %v19786_v28  ;;  %v26343_v25 = vmax.f32 %v26279_v24, 0.0  ;;  %v26280_v56 = vadd.f32 %v34488_v51, %v44428_v40  ;;  %v25673_v49 = vpop.f32.mrb[99].mxu1  ;;  %v44574_v28 = vpop.permute.xlu1 %26167 }
 0xa27   : > { %19848 = vst.msk [vmem:[%s41646_s20 + $0x430] sm:$0xff] %vm6698_vm1, %v19784_v6  ;;  %v26341_v14 = vmax.f32 %v26277_v1, 0.0  ;;  %v26278_v36 = vadd.f32 %v44406_v62, %v25673_v49  ;;  %v33897_v55 = vpop.f32.mrb[100].mxu0  ;;  %v44582_v51 = vpop.permute.xlu0 %26172 }
 0xa28   : > { %26407 = vst.msk [vmem:[%s41646_s20 + $0x458] sm:$0xff] %vm6698_vm1, %v26343_v25  ;;  %v26344_v5 = vmax.f32 %v26280_v56, 0.0  ;;  %v19725_v13 = vadd.f32 %v33897_v55, %v44105_v60  ;;  %v19128_v48 = vpop.f32.mrb[101].mxu0 }
 0xa29   : > { %26405 = vst.msk [vmem:[%s41646_s20 + $0x418] sm:$0xff] %vm6698_vm1, %v26341_v14  ;;  %v26342_v40 = vmax.f32 %v26278_v36, 0.0  ;;  %v19723_v37 = vadd.f32 %v44089_v47, %v19128_v48  ;;  %v33898_v45 = vpop.f32.mrb[102].mxu0 }
 0xa2a   : > { %26408 = vst.msk [vmem:[%s41646_s20 + $0x478] sm:$0xff] %vm6698_vm1, %v26344_v5  ;;  %v19789_v41 = vmax.f32 %v19725_v13, 0.0  ;;  %v19726_v62 = vadd.f32 %v33898_v45, %v44111_v3  ;;  %v19131_v54 = vpop.f32.mrb[103].mxu0  ;;  %v26178_v48 = vpop.permute.xlu1 %26177 }
 0xa2b   : > { %26406 = vst.msk [vmem:[%s41646_s20 + $0x438] sm:$0xff] %vm6698_vm1, %v26342_v40  ;;  %v19787_v60 = vmax.f32 %v19723_v37, 0.0  ;;  %v19724_v11 = vadd.f32 %v44095_v46, %v19131_v54  ;;  %v34491_v33 = vpop.f32.mrb[100].mxu1 }
 0xa2c   : > { %19853 = vst.msk [vmem:[%s41646_s20 + $0x4d0] sm:$0xff] %vm6698_vm1, %v19789_v41  ;;  %v19790_v47 = vmax.f32 %v19726_v62, 0.0  ;;  %v26283_v10 = vadd.f32 %v34491_v33, %v44464_v52  ;;  %v25686_v58 = vpop.f32.mrb[101].mxu1  ;;  %v26183_v62 = vpop.permute.xlu0 %26182 }
 0xa2d   : > { %19851 = vst.msk [vmem:[%s41646_s20 + $0x490] sm:$0xff] %vm6698_vm1, %v19787_v60  ;;  %v19788_v3 = vmax.f32 %v19724_v11, 0.0  ;;  %v26281_v38 = vadd.f32 %v44442_v31, %v25686_v58  ;;  %v34492_v30 = vpop.f32.mrb[102].mxu1 }
 0xa2e   : > { %19854 = vst.msk [vmem:[%s41646_s20 + $0x4f0] sm:$0xff] %vm6698_vm1, %v19790_v47  ;;  %v26347_v46 = vmax.f32 %v26283_v10, 0.0  ;;  %v26284_v21 = vadd.f32 %v34492_v30, %v44472_v4  ;;  %v25689_v43 = vpop.f32.mrb[103].mxu1 }
 0xa2f   : > { %19852 = vst.msk [vmem:[%s41646_s20 + $0x4b0] sm:$0xff] %vm6698_vm1, %v19788_v3  ;;  %v26345_v52 = vmax.f32 %v26281_v38, 0.0  ;;  %v26282_v57 = vadd.f32 %v44450_v27, %v25689_v43  ;;  %v33901_v29 = vpop.f32.mrb[104].mxu0  ;;  %v44614_v38 = vpop.permute.xlu1 %26187 }
 0xa30   : > { %26411 = vst.msk [vmem:[%s41646_s20 + $0x4d8] sm:$0xff] %vm6698_vm1, %v26347_v46  ;;  %v26348_v7 = vmax.f32 %v26284_v21, 0.0  ;;  %v19729_v31 = vadd.f32 %v33901_v29, %v44137_v23  ;;  %v19144_v50 = vpop.f32.mrb[105].mxu0 }
 0xa31   : > { %26409 = vst.msk [vmem:[%s41646_s20 + $0x498] sm:$0xff] %vm6698_vm1, %v26345_v52  ;;  %v26346_v4 = vmax.f32 %v26282_v57, 0.0  ;;  %v19727_v24 = vadd.f32 %v44121_v53, %v19144_v50  ;;  %v33902_v42 = vpop.f32.mrb[106].mxu0  ;;  %v44622_v52 = vpop.permute.xlu0 %26192 }
 0xa32   : > { %26412 = vst.msk [vmem:[%s41646_s20 + $0x4f8] sm:$0xff] %vm6698_vm1, %v26348_v7  ;;  %v19793_v27 = vmax.f32 %v19729_v31, 0.0  ;;  %v19730_v6 = vadd.f32 %v33902_v42, %v44143_v16  ;;  %v19147_v1 = vpop.f32.mrb[107].mxu0 }
 0xa33   : > { %26410 = vst.msk [vmem:[%s41646_s20 + $0x4b8] sm:$0xff] %vm6698_vm1, %v26346_v4  ;;  %v19791_v23 = vmax.f32 %v19727_v24, 0.0  ;;  %v19728_v25 = vadd.f32 %v44127_v39, %v19147_v1  ;;  %v34495_v56 = vpop.f32.mrb[104].mxu1 }
 0xa34   : > { %19857 = vst.msk [vmem:[%s41646_s20 + $0x550] sm:$0xff] %vm6698_vm1, %v19793_v27  ;;  %v19794_v53 = vmax.f32 %v19730_v6, 0.0  ;;  %v26287_v49 = vadd.f32 %v34495_v56, %v44508_v17  ;;  %v25702_v14 = vpop.f32.mrb[105].mxu1  ;;  %v26198_v27 = vpop.permute.xlu1 %26197 }
 0xa35   : > { %19855 = vst.msk [vmem:[%s41646_s20 + $0x510] sm:$0xff] %vm6698_vm1, %v19791_v23  ;;  %v19792_v16 = vmax.f32 %v19728_v25, 0.0  ;;  %v26285_v36 = vadd.f32 %v44486_v26, %v25702_v14  ;;  %v34496_v55 = vpop.f32.mrb[106].mxu1  ;;  %v26203_v56 = vpop.permute.xlu0 %26202 }
 0xa36   : > { %19858 = vst.msk [vmem:[%s41646_s20 + $0x570] sm:$0xff] %vm6698_vm1, %v19794_v53  ;;  %v26351_v5 = vmax.f32 %v26287_v49, 0.0  ;;  %v26288_v39 = vadd.f32 %v34496_v55, %v44516_v61  ;;  %v25705_v13 = vpop.f32.mrb[107].mxu1 }
 0xa37   : > { %19856 = vst.msk [vmem:[%s41646_s20 + $0x530] sm:$0xff] %vm6698_vm1, %v19792_v16  ;;  %v26349_v40 = vmax.f32 %v26285_v36, 0.0  ;;  %v26286_v17 = vadd.f32 %v44494_v18, %v25705_v13  ;;  %v33905_v37 = vpop.f32.mrb[108].mxu0 }
 0xa38   : > { %26415 = vst.msk [vmem:[%s41646_s20 + $0x558] sm:$0xff] %vm6698_vm1, %v26351_v5  ;;  %v26352_v26 = vmax.f32 %v26288_v39, 0.0  ;;  %v19733_v45 = vadd.f32 %v33905_v37, %v44169_v35  ;;  %v19160_v41 = vpop.f32.mrb[109].mxu0 }
 0xa39   : > { %26413 = vst.msk [vmem:[%s41646_s20 + $0x518] sm:$0xff] %vm6698_vm1, %v26349_v40  ;;  %v26350_v61 = vmax.f32 %v26286_v17, 0.0  ;;  %v19731_v54 = vadd.f32 %v44153_v63, %v19160_v41  ;;  %v33906_v60 = vpop.f32.mrb[110].mxu0  ;;  %v26213_v41 = vpop.permute.xlu0 %26212 }
 0xa3a   : > { %26416 = vst.msk [vmem:[%s41646_s20 + $0x578] sm:$0xff] %vm6698_vm1, %v26352_v26  ;;  %v19797_v11 = vmax.f32 %v19733_v45, 0.0  ;;  %v19734_v18 = vadd.f32 %v33906_v60, %v44175_v32  ;;  %v19163_v33 = vpop.f32.mrb[111].mxu0 }
 0xa3b   : > { %26414 = vst.msk [vmem:[%s41646_s20 + $0x538] sm:$0xff] %vm6698_vm1, %v26350_v61  ;;  %v19795_v47 = vmax.f32 %v19731_v54, 0.0  ;;  %v19732_v35 = vadd.f32 %v44159_v44, %v19163_v33  ;;  %v34499_v10 = vpop.f32.mrb[108].mxu1 }
 0xa3c   : > { %19861 = vst.msk [vmem:[%s41646_s20 + $0x5d0] sm:$0xff] %vm6698_vm1, %v19797_v11  ;;  %v19798_v58 = vmax.f32 %v19734_v18, 0.0  ;;  %v26291_v63 = vadd.f32 %v34499_v10, %v44552_v8  ;;  %v25718_v3 = vpop.f32.mrb[109].mxu1 }
 0xa3d   : > { %19859 = vst.msk [vmem:[%s41646_s20 + $0x590] sm:$0xff] %vm6698_vm1, %v19795_v47  ;;  %v19796_v32 = vmax.f32 %v19732_v35, 0.0  ;;  %v26289_v30 = vadd.f32 %v44530_v19, %v25718_v3  ;;  %v34500_v46 = vpop.f32.mrb[110].mxu1 }
 0xa3e   : > { %19862 = vst.msk [vmem:[%s41646_s20 + $0x5f0] sm:$0xff] %vm6698_vm1, %v19798_v58  ;;  %v26355_v44 = vmax.f32 %v26291_v63, 0.0  ;;  %v26292_v21 = vadd.f32 %v34500_v46, %v44560_v15  ;;  %v25721_v43 = vpop.f32.mrb[111].mxu1 }
 0xa3f   : > { %19860 = vst.msk [vmem:[%s41646_s20 + $0x5b0] sm:$0xff] %vm6698_vm1, %v19796_v32  ;;  %v26353_v8 = vmax.f32 %v26289_v30, 0.0  ;;  %v26290_v57 = vadd.f32 %v44538_v12, %v25721_v43  ;;  %v33909_v29 = vpop.f32.mrb[112].mxu0 }
 0xa40   : > { %26419 = vst.msk [vmem:[%s41646_s20 + $0x5d8] sm:$0xff] %vm6698_vm1, %v26355_v44  ;;  %v26356_v19 = vmax.f32 %v26292_v21, 0.0  ;;  %v19737_v7 = vadd.f32 %v33909_v29, %v44201_v20  ;;  %v19176_v31 = vpop.f32.mrb[113].mxu0  ;;  %v26223_v21 = vpop.permute.xlu0 %26222 }
 0xa41   : > { %26417 = vst.msk [vmem:[%s41646_s20 + $0x598] sm:$0xff] %vm6698_vm1, %v26353_v8  ;;  %v26354_v15 = vmax.f32 %v26290_v57, 0.0  ;;  %v19735_v50 = vadd.f32 %v44185_v9, %v19176_v31  ;;  %v33910_v4 = vpop.f32.mrb[114].mxu0  ;;  %v44983_v8 = vld [vmem:[#allocation4_spill] sm:$0xff] }
 0xa42   : > { %26420 = vst.msk [vmem:[%s41646_s20 + $0x5f8] sm:$0xff] %vm6698_vm1, %v26356_v19  ;;  %v19801_v24 = vmax.f32 %v19737_v7, 0.0  ;;  %v19738_v12 = vadd.f32 %v33910_v4, %v44207_v22  ;;  %v19179_v42 = vpop.f32.mrb[115].mxu0 }
 0xa43   : > { %26418 = vst.msk [vmem:[%s41646_s20 + $0x5b8] sm:$0xff] %vm6698_vm1, %v26354_v15  ;;  %v19799_v6 = vmax.f32 %v19735_v50, 0.0  ;;  %v19736_v20 = vadd.f32 %v44191_v0, %v19179_v42  ;;  %v34503_v1 = vpop.f32.mrb[112].mxu1  ;;  %v44985_v50 = vld [vmem:[#allocation3_spill] sm:$0xff] }
 0xa44   : > { %19865 = vst.msk [vmem:[%s41646_s20 + $0x650] sm:$0xff] %vm6698_vm1, %v19801_v24  ;;  %v19802_v9 = vmax.f32 %v19738_v12, 0.0  ;;  %v26295_v23 = vadd.f32 %v34503_v1, %v26178_v48  ;;  %v25734_v25 = vpop.f32.mrb[113].mxu1  ;;  %v26208_v48 = vpop.permute.xlu1 %26207 }
 0xa45   : > { %19863 = vst.msk [vmem:[%s41646_s20 + $0x610] sm:$0xff] %vm6698_vm1, %v19799_v6  ;;  %v19800_v22 = vmax.f32 %v19736_v20, 0.0  ;;  %v26293_v53 = vadd.f32 %v44574_v28, %v25734_v25  ;;  %v34504_v49 = vpop.f32.mrb[114].mxu1 }
 0xa46   : > { %19866 = vst.msk [vmem:[%s41646_s20 + $0x670] sm:$0xff] %vm6698_vm1, %v19802_v9  ;;  %v26359_v14 = vmax.f32 %v26295_v23, 0.0  ;;  %v26296_v0 = vadd.f32 %v34504_v49, %v26183_v62  ;;  %v25737_v16 = vpop.f32.mrb[115].mxu1  ;;  %v44981_v62 = vld [vmem:[#allocation2_spill] sm:$0xff] }
 0xa47   : > { %19864 = vst.msk [vmem:[%s41646_s20 + $0x630] sm:$0xff] %vm6698_vm1, %v19800_v22  ;;  %v26357_v36 = vmax.f32 %v26293_v53, 0.0  ;;  %v26294_v55 = vadd.f32 %v44582_v51, %v25737_v16  ;;  %v33913_v5 = vpop.f32.mrb[116].mxu0  ;;  %v26233_v22 = vpop.permute.xlu0 %26232  ;;  %v44986_v16 = vld [vmem:[#allocation11_spill] sm:$0xff] }
 0xa48   : > { %26423 = vst.msk [vmem:[%s41646_s20 + $0x658] sm:$0xff] %vm6698_vm1, %v26359_v14  ;;  %v26360_v39 = vmax.f32 %v26296_v0, 0.0  ;;  %v19741_v13 = vadd.f32 %v33913_v5, %v44230_v59  ;;  %v19192_v28 = vpop.f32.mrb[117].mxu0  ;;  %v26218_v58 = vpop.permute.xlu1 %26217 }
 0xa49   : > { %26421 = vst.msk [vmem:[%s41646_s20 + $0x618] sm:$0xff] %vm6698_vm1, %v26357_v36  ;;  %v26358_v40 = vmax.f32 %v26294_v55, 0.0  ;;  %v19739_v17 = vadd.f32 %v44217_v2, %v19192_v28  ;;  %v33914_v37 = vpop.f32.mrb[118].mxu0 }
 0xa4a   : > { %26424 = vst.msk [vmem:[%s41646_s20 + $0x678] sm:$0xff] %vm6698_vm1, %v26360_v39  ;;  %v19805_v51 = vmax.f32 %v19741_v13, 0.0  ;;  %v19742_v26 = vadd.f32 %v33914_v37, %v44236_v34  ;;  %v19195_v45 = vpop.f32.mrb[119].mxu0  ;;  %v44987_v39 = vld [vmem:[#allocation8_spill] sm:$0xff] }
 0xa4b   : > { %26422 = vst.msk [vmem:[%s41646_s20 + $0x638] sm:$0xff] %vm6698_vm1, %v26358_v40  ;;  %v19803_v59 = vmax.f32 %v19739_v17, 0.0  ;;  %v19740_v61 = vadd.f32 %v44981_v62, %v19195_v45  ;;  %v34507_v54 = vpop.f32.mrb[116].mxu1  ;;  %v44988_v40 = vld [vmem:[#allocation9_spill] sm:$0xff]  ;;  %v44989_v45 = vld [vmem:[#allocation6_spill] sm:$0xff] }
 0xa4c   : > { %19869 = vst.msk [vmem:[%s41646_s20 + $0x6d0] sm:$0xff] %vm6698_vm1, %v19805_v51  ;;  %v19806_v60 = vmax.f32 %v19742_v26, 0.0  ;;  %v26299_v2 = vadd.f32 %v34507_v54, %v26198_v27  ;;  %v25750_v11 = vpop.f32.mrb[117].mxu1  ;;  %v26228_v6 = vpop.permute.xlu1 %26227 }
 0xa4d   : > { %19867 = vst.msk [vmem:[%s41646_s20 + $0x690] sm:$0xff] %vm6698_vm1, %v19803_v59  ;;  %v19804_v18 = vmax.f32 %v19740_v61, 0.0  ;;  %v26297_v34 = vadd.f32 %v44614_v38, %v25750_v11  ;;  %v34508_v33 = vpop.f32.mrb[118].mxu1  ;;  %v44982_v38 = vld [vmem:[#allocation7_spill] sm:$0xff] }
 0xa4e   : > { %19870 = vst.msk [vmem:[%s41646_s20 + $0x6f0] sm:$0xff] %vm6698_vm1, %v19806_v60  ;;  %v26363_v47 = vmax.f32 %v26299_v2, 0.0  ;;  %v26300_v35 = vadd.f32 %v34508_v33, %v26203_v56  ;;  %v25753_v10 = vpop.f32.mrb[119].mxu1  ;;  %v26243_v60 = vpop.permute.xlu0 %26242 }
 0xa4f   : > { %19868 = vst.msk [vmem:[%s41646_s20 + $0x6b0] sm:$0xff] %vm6698_vm1, %v19804_v18  ;;  %v26361_v63 = vmax.f32 %v26297_v34, 0.0  ;;  %v26298_v3 = vadd.f32 %v44622_v52, %v25753_v10  ;;  %v33917_v32 = vpop.f32.mrb[120].mxu0  ;;  %v44984_v52 = vld [vmem:[#allocation5_spill] sm:$0xff] }
 0xa50   : > { %26427 = vst.msk [vmem:[%s41646_s20 + $0x6d8] sm:$0xff] %vm6698_vm1, %v26363_v47  ;;  %v26364_v30 = vmax.f32 %v26300_v35, 0.0  ;;  %v19745_v46 = vadd.f32 %v33917_v32, %v44982_v38  ;;  %v19208_v44 = vpop.f32.mrb[121].mxu0  ;;  %v26238_v51 = vpop.permute.xlu1 %26237 }
 0xa51   : > { %26425 = vst.msk [vmem:[%s41646_s20 + $0x698] sm:$0xff] %vm6698_vm1, %v26361_v63  ;;  %v26362_v43 = vmax.f32 %v26298_v3, 0.0  ;;  %v19743_v57 = vadd.f32 %v44983_v8, %v19208_v44  ;;  %v33918_v29 = vpop.f32.mrb[122].mxu0 }
 0xa52   : > { %26428 = vst.msk [vmem:[%s41646_s20 + $0x6f8] sm:$0xff] %vm6698_vm1, %v26364_v30  ;;  %v19809_v19 = vmax.f32 %v19745_v46, 0.0  ;;  %v19746_v7 = vadd.f32 %v33918_v29, %v44984_v52  ;;  %v19211_v31 = vpop.f32.mrb[123].mxu0 }
 0xa53   : > { %26426 = vst.msk [vmem:[%s41646_s20 + $0x6b8] sm:$0xff] %vm6698_vm1, %v26362_v43  ;;  %v19807_v15 = vmax.f32 %v19743_v57, 0.0  ;;  %v19744_v4 = vadd.f32 %v44985_v50, %v19211_v31  ;;  %v34511_v24 = vpop.f32.mrb[120].mxu1 }
 0xa54   : > { %19873 = vst.msk [vmem:[%s41646_s20 + $0x750] sm:$0xff] %vm6698_vm1, %v19809_v19  ;;  %v19810_v12 = vmax.f32 %v19746_v7, 0.0  ;;  %v26303_v42 = vadd.f32 %v34511_v24, %v26218_v58  ;;  %v25766_v27 = vpop.f32.mrb[121].mxu1 }
 0xa55   : > { %19871 = vst.msk [vmem:[%s41646_s20 + $0x710] sm:$0xff] %vm6698_vm1, %v19807_v15  ;;  %v19808_v20 = vmax.f32 %v19744_v4, 0.0  ;;  %v26301_v1 = vadd.f32 %v26208_v48, %v25766_v27  ;;  %v34512_v9 = vpop.f32.mrb[122].mxu1 }
 0xa56   : > { %19874 = vst.msk [vmem:[%s41646_s20 + $0x770] sm:$0xff] %vm6698_vm1, %v19810_v12  ;;  %v26367_v23 = vmax.f32 %v26303_v42, 0.0  ;;  %v26304_v25 = vadd.f32 %v34512_v9, %v26223_v21  ;;  %v25769_v56 = vpop.f32.mrb[123].mxu1 }
 0xa57   : > { %19872 = vst.msk [vmem:[%s41646_s20 + $0x730] sm:$0xff] %vm6698_vm1, %v19808_v20  ;;  %v26365_v53 = vmax.f32 %v26301_v1, 0.0  ;;  %v26302_v49 = vadd.f32 %v26213_v41, %v25769_v56  ;;  %v33921_v14 = vpop.f32.mrb[124].mxu0 }
 0xa58   : > { %26431 = vst.msk [vmem:[%s41646_s20 + $0x758] sm:$0xff] %vm6698_vm1, %v26367_v23  ;;  %v26368_v0 = vmax.f32 %v26304_v25, 0.0  ;;  %v19749_v36 = vadd.f32 %v33921_v14, %v44986_v16  ;;  %v19224_v55 = vpop.f32.mrb[125].mxu0 }
 0xa59   : > { %26429 = vst.msk [vmem:[%s41646_s20 + $0x718] sm:$0xff] %vm6698_vm1, %v26365_v53  ;;  %v26366_v5 = vmax.f32 %v26302_v49, 0.0  ;;  %v19747_v13 = vadd.f32 %v44987_v39, %v19224_v55  ;;  %v33922_v28 = vpop.f32.mrb[126].mxu0 }
 0xa5a   : > { %26432 = vst.msk [vmem:[%s41646_s20 + $0x778] sm:$0xff] %vm6698_vm1, %v26368_v0  ;;  %v19813_v48 = vmax.f32 %v19749_v36, 0.0  ;;  %v19750_v17 = vadd.f32 %v33922_v28, %v44988_v40  ;;  %v19227_v37 = vpop.f32.mrb[127].mxu0 }
 0xa5b   : > { %26430 = vst.msk [vmem:[%s41646_s20 + $0x738] sm:$0xff] %vm6698_vm1, %v26366_v5  ;;  %v19811_v26 = vmax.f32 %v19747_v13, 0.0  ;;  %v19748_v41 = vadd.f32 %v44989_v45, %v19227_v37  ;;  %v34515_v59 = vpop.f32.mrb[124].mxu1 }
 0xa5c   : > { %19877 = vst.msk [vmem:[%s41646_s20 + $0x7d0] sm:$0xff] %vm6698_vm1, %v19813_v48  ;;  %v19814_v62 = vmax.f32 %v19750_v17, 0.0  ;;  %v26307_v61 = vadd.f32 %v34515_v59, %v26238_v51  ;;  %v25782_v54 = vpop.f32.mrb[125].mxu1 }
 0xa5d   : > { %19875 = vst.msk [vmem:[%s41646_s20 + $0x790] sm:$0xff] %vm6698_vm1, %v19811_v26  ;;  %v19812_v2 = vmax.f32 %v19748_v41, 0.0  ;;  %v26305_v11 = vadd.f32 %v26228_v6, %v25782_v54  ;;  %v34516_v18 = vpop.f32.mrb[126].mxu1 }
 0xa5e   : > { %19878 = vst.msk [vmem:[%s41646_s20 + $0x7f0] sm:$0xff] %vm6698_vm1, %v19814_v62  ;;  %v26371_v34 = vmax.f32 %v26307_v61, 0.0  ;;  %v26308_v33 = vadd.f32 %v34516_v18, %v26243_v60  ;;  %v25785_v47 = vpop.f32.mrb[127].mxu1 }
 0xa5f   : > { %19876 = vst.msk [vmem:[%s41646_s20 + $0x7b0] sm:$0xff] %vm6698_vm1, %v19812_v2  ;;  %v26369_v35 = vmax.f32 %v26305_v11, 0.0  ;;  %v26306_v10 = vadd.f32 %v26233_v22, %v25785_v47 }
 0xa60   : > { %26435 = vst.msk [vmem:[%s41646_s20 + $0x7d8] sm:$0xff] %vm6698_vm1, %v26371_v34  ;;  %v26372_v58 = vmax.f32 %v26308_v33, 0.0 }
 0xa61   : > { %26433 = vst.msk [vmem:[%s41646_s20 + $0x798] sm:$0xff] %vm6698_vm1, %v26369_v35  ;;  %v26370_v63 = vmax.f32 %v26306_v10, 0.0 }
 0xa62   : > { %26436 = vst.msk [vmem:[%s41646_s20 + $0x7f8] sm:$0xff] %vm6698_vm1, %v26372_v58 }
 0xa63   : > { %26434 = vst.msk [vmem:[%s41646_s20 + $0x7b8] sm:$0xff] %vm6698_vm1, %v26370_v63 }
 0xa64 PF: > { %s13_s14 = sadd.s32 1, %s37805_s14   ;;  %s44990_s12 = smov %s37801_s13 }
 0xa65   : > { %p10_p5 = scmp.ge.s32.totalorder %s13_s14, 4   ;;  %s44991_s13 = smov %s44993_s15 }
 0xa67   :  { %12 = sbr.rel (!%p10_p5) target bundleno = 2 (0x2), region = 82 }

</bundles_post_ra>
